<compile_context>
chip_gen: v5e
topology: v5e:2x2
jax: 0.10.0
libtpu: 0.0.40
codegen_flags: <defaults>
</compile_context>

<pallas_src>
import math
from functools import partial

import numpy as np
import jax
import jax.numpy as jnp
from jax.experimental import pallas as pl
from jax.experimental.pallas import tpu as pltpu

# ----------------------------- configuration -----------------------------
N = 2                 # batch
C = 1                 # in channels
H, W = 8, 16          # image H, W (after internal permute to NCHW)
P, Q = 4, 4           # patch size
GH, GW = H // P, W // Q
L = GH * GW           # num patches = 8
D = 32                # encoder embed dim
HEADS = 4
DEPTH = 2
DD = 32               # decoder embed dim
DHEADS = 4
DDEPTH = 2
MLP_RATIO = 4.0
PATCH_DIM = P * Q * C
PROJ_DIM = 1024       # as hard-coded in the module
PRED_DIM = 128        # as hard-coded in the module
MASK_RATIO = 0.75
NORM_PIX_LOSS = False
NCC_WEIGHT = 0.0

_VMEM = pl.BlockSpec(memory_space=pltpu.MemorySpace.VMEM)


def _round_up(x, m):
    return ((x + m - 1) // m) * m


def _tensorcores_per_chip():
    # v7x has 2 TensorCores/chip -> shard the "parallel" batch axis;
    # v5e/v6e have 1 -> full-batch blocks minimise grid-step overhead and
    # per-layer weight re-DMA (weights are fetched once per layer).
    try:
        dev = jax.devices()[0]
        n = getattr(dev, "num_cores", None)
        if n:
            return max(1, int(n))
        kind = str(getattr(dev, "device_kind", "")).lower()
        if "v7" in kind:
            return 2
    except Exception:
        pass
    return 1


def _pick_batch_block(batch, cores):
    blocks = max(1, min(int(cores), batch))
    while batch % blocks:
        blocks -= 1
    return batch // blocks


# ------------------------- in-kernel math helpers --------------------------
def _ln(x, g, b, eps=1e-5):
    mu = jnp.mean(x, axis=-1, keepdims=True)
    xc = x - mu
    var = jnp.mean(xc * xc, axis=-1, keepdims=True)
    return xc * jax.lax.rsqrt(var + eps) * g + b


def _erf_f32(x):
    # Abramowitz & Stegun 7.1.26 rational approximation, |err| < 1.5e-7.
    p = 0.3275911
    a1, a2, a3, a4, a5 = (0.254829592, -0.284496736, 1.421413741,
                          -1.453152027, 1.061405429)
    ax = jnp.abs(x)
    t = 1.0 / (1.0 + p * ax)          # kept exact (VALU) for GELU accuracy
    poly = ((((a5 * t + a4) * t + a3) * t + a2) * t + a1) * t
    y = 1.0 - poly * jnp.exp(-ax * ax)
    return jnp.where(x >= 0, y, -y)


def _gelu_exact(x):
    return 0.5 * x * (1.0 + _erf_f32(x * np.float32(1.0 / math.sqrt(2.0))))


# -------------------------- BlockSpec helpers -------------------------------
def _wspec(*shape):   # depth-stacked weight: (depth, *shape), depth squeezed
    return pl.BlockSpec((None,) + shape,
                        lambda i, d, _n=len(shape): (d,) + (0,) * _n)


def _cspec(*shape):   # constant (depth-independent) weight
    return pl.BlockSpec(shape, lambda i, d, _n=len(shape): (0,) * _n)


def _bspec(bb, *shape):   # per-batch-block activation / index matrix
    return pl.BlockSpec((bb,) + shape,
                        lambda i, d, _n=len(shape): (i,) + (0,) * _n)


def _stack_cost(B, tp, dim, hidden, heads, depth, extra_flops=0, extra_bytes=0):
    flops = depth * (2 * B * tp * dim * (4 * dim + 2 * hidden)
                     + 4 * B * tp * tp * dim) + extra_flops
    trans = depth * B * tp * (hidden + heads * tp)
    byts = (4 * (2 * B * tp * dim + depth * (4 * dim * dim + 2 * dim * hidden))
            + extra_bytes)
    return pl.CostEstimate(flops=int(flops), transcendentals=int(trans),
                           bytes_accessed=int(byts))


# ----------------------- shared transformer block body ----------------------
def _block_body(x, ln1g, ln1b, qkvw, qkvb, projw, projb, ln2g, ln2b,
                fc1w, fc1b, fc2w, fc2b, *, heads, t_real):
    bb, tp, dim = x.shape
    dh = dim // heads
    scale = np.float32(dh ** -0.5)

    # ------------------------------ attention ------------------------------
    h = _ln(x, ln1g, ln1b)
    qkv = (jnp.dot(h.reshape(bb * tp, dim), qkvw,
                   preferred_element_type=jnp.float32) + qkvb)
    qkv = qkv.reshape(bb, tp, 3 * dim)

    # additive key mask for the padded token slots (t_real is static)
    kmask = jax.lax.broadcasted_iota(jnp.int32, (1, tp), 1) < t_real
    # TODO(synk): replace with one 'bqhd,bkhd->bhqk' batched contraction once
    #             multi-batch-dim dot_general lowering is verified.
    heads_out = []
    for hh in range(heads):              # static unrolled
        qh = qkv[:, :, hh * dh:(hh + 1) * dh] * scale
        kh = qkv[:, :, dim + hh * dh: dim + (hh + 1) * dh]
        vh = qkv[:, :, 2 * dim + hh * dh: 2 * dim + (hh + 1) * dh]
        s = jnp.einsum("bqd,bkd->bqk", qh, kh,
                       preferred_element_type=jnp.float32)
        s = jnp.where(kmask, s, jnp.float32(-1e30))
        s = s - jnp.max(s, axis=-1, keepdims=True)
        pr = jnp.exp(s)
        pr = pr * pl.reciprocal(jnp.sum(pr, axis=-1, keepdims=True),
                                approx=True)                     # EUP slot
        heads_out.append(jnp.einsum("bqk,bkd->bqd", pr, vh,
                                    preferred_element_type=jnp.float32))
    attn = jnp.concatenate(heads_out, axis=-1)          # (bb, tp, dim)

    proj = (jnp.dot(attn.reshape(bb * tp, dim), projw,
                    preferred_element_type=jnp.float32) + projb)
    x = x + proj.reshape(bb, tp, dim)

    # ------------------------- MLP (GELU fused) ----------------------------
    h2 = _ln(x, ln2g, ln2b)
    hid = (jnp.dot(h2.reshape(bb * tp, dim), fc1w,
                   preferred_element_type=jnp.float32) + fc1b)
    hid = _gelu_exact(hid)
    mlp = (jnp.dot(hid, fc2w, preferred_element_type=jnp.float32) + fc2b)
    return x + mlp.reshape(bb, tp, dim)


# --------------------------- fused ENCODER stack ----------------------------
def _encoder_stack_kernel(patches_ref, sel_ref, pw_ref, pb_ref, pos_ref,
                          clspad_ref,
                          ln1g_ref, ln1b_ref, qkvw_ref, qkvb_ref,
                          projw_ref, projb_ref, ln2g_ref, ln2b_ref,
                          fc1w_ref, fc1b_ref, fc2w_ref, fc2b_ref,
                          fng_ref, fnb_ref, o_ref, *, heads, t_real):
    d_i = pl.program_id(1)
    n_d = pl.num_programs(1)

    @pl.when(d_i == 0)
    def _():
        # Fused prologue: patch-embed + pos-add + keep-token gather (one-hot
        # matmul) + cls insert + sublane zero-pad, all VMEM-resident.
        bb, lp, k = patches_ref.shape
        dim = pw_ref.shape[1]
        emb = (jnp.dot(patches_ref[...].reshape(bb * lp, k), pw_ref[...],
                       preferred_element_type=jnp.float32) + pb_ref[...])
        emb = emb.reshape(bb, lp, dim) + pos_ref[...]
        x0 = jnp.einsum("btl,bld->btd", sel_ref[...], emb,
                        preferred_element_type=jnp.float32)
        o_ref[...] = x0 + clspad_ref[...]

    x = _block_body(o_ref[...],
                    ln1g_ref[...], ln1b_ref[...], qkvw_ref[...], qkvb_ref[...],
                    projw_ref[...], projb_ref[...], ln2g_ref[...], ln2b_ref[...],
                    fc1w_ref[...], fc1b_ref[...], fc2w_ref[...], fc2b_ref[...],
                    heads=heads, t_real=t_real)

    @pl.when(d_i < n_d - 1)
    def _():
        o_ref[...] = x

    @pl.when(d_i == n_d - 1)
    def _():
        # final LayerNorm of the stack folded into the last grid step
        o_ref[...] = _ln(x, fng_ref[...], fnb_ref[...])


def encoder_stack(patches, sel, clspad, pos_patch, params, *, heads, t_real,
                  batch_block):
    B, Lp, K = patches.shape
    blk = params["blocks"]
    depth = blk["qkv_w"].shape[0]
    dim = params["patch_w"].shape[1]
    hidden = blk["fc1_w"].shape[-1]
    tp = sel.shape[1]
    bb = batch_block

    grid = (B // bb, depth)
    in_specs = [
        _bspec(bb, Lp, K),                       # patches
        _bspec(bb, tp, Lp),                      # keep-token selection matrix
        _cspec(K, dim), _cspec(1, dim),          # patch-embed w, b
        _cspec(1, Lp, dim),                      # pos embed (patch rows)
        _cspec(1, tp, dim),                      # cls+pos0, zero-padded rows
        _wspec(1, dim), _wspec(1, dim),          # ln1 g, b
        _wspec(dim, 3 * dim), _wspec(1, 3 * dim),
        _wspec(dim, dim), _wspec(1, dim),        # proj w, b
        _wspec(1, dim), _wspec(1, dim),          # ln2 g, b
        _wspec(dim, hidden), _wspec(1, hidden),  # fc1 w, b
        _wspec(hidden, dim), _wspec(1, dim),     # fc2 w, b
        _cspec(1, dim), _cspec(1, dim),          # final norm
    ]
    out_spec = pl.BlockSpec((bb, tp, dim), lambda i, d: (i, 0, 0))
    cost = _stack_cost(B, tp, dim, hidden, heads, depth,
                       extra_flops=2 * B * Lp * K * dim,
                       extra_bytes=4 * B * Lp * (K + tp))
    return pl.pallas_call(
        partial(_encoder_stack_kernel, heads=heads, t_real=t_real),
        grid=grid,
        in_specs=in_specs,
        out_specs=out_spec,
        out_shape=jax.ShapeDtypeStruct((B, tp, dim), jnp.float32),
        compiler_params=pltpu.CompilerParams(
            dimension_semantics=("parallel", "arbitrary")),
        cost_estimate=cost,
    )(patches, sel,
      params["patch_w"], params["patch_b"], pos_patch, clspad,
      blk["ln1_g"], blk["ln1_b"], blk["qkv_w"], blk["qkv_b"],
      blk["proj_w"], blk["proj_b"], blk["ln2_g"], blk["ln2_b"],
      blk["fc1_w"], blk["fc1_b"], blk["fc2_w"], blk["fc2_b"],
      params["norm_g"], params["norm_b"])


# --------------------------- fused DECODER stack ----------------------------
def _decoder_stack_kernel(lat_ref, scat_ref, mt_ref, dew_ref, deb_ref,
                          mtok_ref, dpos_ref,
                          ln1g_ref, ln1b_ref, qkvw_ref, qkvb_ref,
                          projw_ref, projb_ref, ln2g_ref, ln2b_ref,
                          fc1w_ref, fc1b_ref, fc2w_ref, fc2b_ref,
                          fng_ref, fnb_ref, predw_ref, predb_ref,
                          pred_ref, carry_ref, *, heads, t_real):
    d_i = pl.program_id(1)
    n_d = pl.num_programs(1)

    @pl.when(d_i == 0)
    def _():
        # Fused prologue: decoder_embed + mask-token scatter (one-hot matmul
        # over ids_restore) + decoder pos-embed add, all VMEM-resident.
        bb, te, denc = lat_ref.shape
        dd = dew_ref.shape[1]
        dec = (jnp.dot(lat_ref[...].reshape(bb * te, denc), dew_ref[...],
                       preferred_element_type=jnp.float32) + deb_ref[...])
        dec = dec.reshape(bb, te, dd)
        x0 = jnp.einsum("btj,bjd->btd", scat_ref[...], dec,
                        preferred_element_type=jnp.float32)
        carry_ref[...] = x0 + mt_ref[...] * mtok_ref[...] + dpos_ref[...]

    x = _block_body(carry_ref[...],
                    ln1g_ref[...], ln1b_ref[...], qkvw_ref[...], qkvb_ref[...],
                    projw_ref[...], projb_ref[...], ln2g_ref[...], ln2b_ref[...],
                    fc1w_ref[...], fc1b_ref[...], fc2w_ref[...], fc2b_ref[...],
                    heads=heads, t_real=t_real)

    @pl.when(d_i < n_d - 1)
    def _():
        carry_ref[...] = x

    @pl.when(d_i == n_d - 1)
    def _():
        # Fused epilogue: decoder final LayerNorm + decoder_pred linear.
        bb, tp, dd = x.shape
        xn = _ln(x, fng_ref[...], fnb_ref[...])
        pred = (jnp.dot(xn.reshape(bb * tp, dd), predw_ref[...],
                        preferred_element_type=jnp.float32) + predb_ref[...])
        pred_ref[...] = pred.reshape(bb, tp, -1)


def decoder_stack(lat, scat, mt_ind, dpos_pad, params, *, heads, t_real,
                  batch_block):
    B, te, denc = lat.shape
    blk = params["dec_blocks"]
    depth = blk["qkv_w"].shape[0]
    dd = params["dec_embed_w"].shape[1]
    hidden = blk["fc1_w"].shape[-1]
    tp = scat.shape[1]
    pq = params["dec_pred_w"].shape[1]
    bb = batch_block

    grid = (B // bb, depth)
    in_specs = [
        _bspec(bb, te, denc),                    # encoder latent (padded rows)
        _bspec(bb, tp, te),                      # restore/scatter matrix
        _bspec(bb, tp, 1),                       # mask-token indicator
        _cspec(denc, dd), _cspec(1, dd),         # decoder_embed w, b
        _cspec(1, 1, dd),                        # mask token
        _cspec(1, tp, dd),                       # decoder pos embed (padded)
        _wspec(1, dd), _wspec(1, dd),            # ln1 g, b
        _wspec(dd, 3 * dd), _wspec(1, 3 * dd),
        _wspec(dd, dd), _wspec(1, dd),           # proj w, b
        _wspec(1, dd), _wspec(1, dd),            # ln2 g, b
        _wspec(dd, hidden), _wspec(1, hidden),   # fc1 w, b
        _wspec(hidden, dd), _wspec(1, dd),       # fc2 w, b
        _cspec(1, dd), _cspec(1, dd),            # final norm
        _cspec(dd, pq), _cspec(1, pq),           # decoder_pred w, b
    ]
    out_spec = pl.BlockSpec((bb, tp, pq), lambda i, d: (i, 0, 0))
    cost = _stack_cost(B, tp, dd, hidden, heads, depth,
                       extra_flops=2 * B * tp * dd * (denc + pq),
                       extra_bytes=4 * B * tp * (denc + pq))
    return pl.pallas_call(
        partial(_decoder_stack_kernel, heads=heads, t_real=t_real),
        grid=grid,
        in_specs=in_specs,
        out_specs=out_spec,
        out_shape=jax.ShapeDtypeStruct((B, tp, pq), jnp.float32),
        scratch_shapes=[pltpu.VMEM((bb, tp, dd), jnp.float32)],
        compiler_params=pltpu.CompilerParams(
            dimension_semantics=("parallel", "arbitrary")),
        cost_estimate=cost,
    )(lat, scat, mt_ind,
      params["dec_embed_w"], params["dec_embed_b"],
      params["mask_token"], dpos_pad,
      blk["ln1_g"], blk["ln1_b"], blk["qkv_w"], blk["qkv_b"],
      blk["proj_w"], blk["proj_b"], blk["ln2_g"], blk["ln2_b"],
      blk["fc1_w"], blk["fc1_b"], blk["fc2_w"], blk["fc2_b"],
      params["dec_norm_g"], params["dec_norm_b"],
      params["dec_pred_w"], params["dec_pred_b"])


# ----------------------------- SimSiam head ---------------------------------
def _simsiam_head_kernel(z_ref, pw1_ref, pbn_g_ref, pbn_b_ref, pw2_ref,
                         qw1_ref, qbn_g_ref, qbn_b_ref, qw2_ref,
                         p_ref, h_ref, *, n_per_view):
    z = z_ref[...]                       # (2*n_per_view, D): rows 0..n-1 view1
    rows = z.shape[0]
    rid = jax.lax.broadcasted_iota(jnp.int32, (rows, 1), 0)
    m1 = (rid < n_per_view).astype(jnp.float32)
    m2 = 1.0 - m1
    inv_n = np.float32(1.0 / n_per_view)

    def bn(x, g=None, b=None, eps=1e-5):
        # training-mode BatchNorm1d with PER-VIEW batch statistics (matches the
        # two separate torch projector/predictor calls); biased variance.
        # Pure masked VPU/XLU sublane reductions (no MXU contraction).
        mu = (jnp.sum(x * m1, axis=0, keepdims=True) * m1 +
              jnp.sum(x * m2, axis=0, keepdims=True) * m2) * inv_n
        xc = x - mu
        var = (jnp.sum(xc * xc * m1, axis=0, keepdims=True) * m1 +
               jnp.sum(xc * xc * m2, axis=0, keepdims=True) * m2) * inv_n
        y = xc * jax.lax.rsqrt(var + eps)
        if g is not None:
            y = y * g + b
        return y

    # projector: Linear -> BN -> ReLU -> Linear -> BN(affine=False)
    t = jnp.dot(z, pw1_ref[...], preferred_element_type=jnp.float32)
    t = jnp.maximum(bn(t, pbn_g_ref[...], pbn_b_ref[...]), 0.0)
    p = bn(jnp.dot(t, pw2_ref[...], preferred_element_type=jnp.float32))
    p_ref[...] = p

    # predictor: Linear -> BN -> ReLU -> Linear
    t = jnp.dot(p, qw1_ref[...], preferred_element_type=jnp.float32)
    t = jnp.maximum(bn(t, qbn_g_ref[...], qbn_b_ref[...]), 0.0)
    h_ref[...] = jnp.dot(t, qw2_ref[...], preferred_element_type=jnp.float32)


def simsiam_head(z, params):
    rows, dim = z.shape
    return pl.pallas_call(
        partial(_simsiam_head_kernel, n_per_view=rows // 2),
        out_shape=(jax.ShapeDtypeStruct((rows, dim), jnp.float32),
                   jax.ShapeDtypeStruct((rows, dim), jnp.float32)),
        in_specs=[_VMEM] * 9,
        out_specs=(_VMEM, _VMEM),
    )(z, params["proj1_w"], params["proj_bn1_g"], params["proj_bn1_b"],
      params["proj2_w"], params["pred1_w"], params["pred_bn1_g"],
      params["pred_bn1_b"], params["pred2_w"])


# ------------------------ squared-error reduction ---------------------------
def _sqerr_sum_kernel(p_ref, t_ref, o_ref):
    d = p_ref[...] - t_ref[...]
    o_ref[...] = jnp.reshape(jnp.sum(d * d), (1, 1))


def pallas_sq_err_sum(pred, target):
    p2 = pred.reshape(-1, pred.shape[-1])
    t2 = target.reshape(-1, target.shape[-1])
    out = pl.pallas_call(
        _sqerr_sum_kernel,
        out_shape=jax.ShapeDtypeStruct((1, 1), jnp.float32),
        in_specs=[_VMEM, _VMEM],
        out_specs=_VMEM,
    )(p2, t2)
    return out[0, 0]


# ------------------------------ parameter init -----------------------------
def _xavier(key, fan_in, fan_out):
    a = math.sqrt(6.0 / (fan_in + fan_out))
    return jax.random.uniform(key, (fan_in, fan_out), jnp.float32, -a, a)


def _sincos_1d(embed_dim, pos):
    omega = np.arange(embed_dim // 2, dtype=np.float64)
    omega /= embed_dim / 2.0
    omega = 1.0 / 10000 ** omega
    out = np.einsum("m,d->md", pos.reshape(-1), omega)
    return np.concatenate([np.sin(out), np.cos(out)], axis=1)


def get_2d_sincos_pos_embed(embed_dim, grid_size, cls_token=False):
    gh, gw = grid_size
    grid_h = np.arange(gh, dtype=np.float64)
    grid_w = np.arange(gw, dtype=np.float64)
    grid = np.meshgrid(grid_w, grid_h)          # w first (MAE convention)
    grid = np.stack(grid, axis=0).reshape(2, 1, gh, gw)
    emb_h = _sincos_1d(embed_dim // 2, grid[0])
    emb_w = _sincos_1d(embed_dim // 2, grid[1])
    pos = np.concatenate([emb_h, emb_w], axis=1)
    if cls_token:
        pos = np.concatenate([np.zeros([1, embed_dim]), pos], axis=0)
    return pos.astype(np.float32)


def init_stacked_blocks(key, depth, dim, mlp_ratio):
    hidden = int(dim * mlp_ratio)
    keys = jax.random.split(key, depth)
    per = [jax.random.split(k, 4) for k in keys]
    return dict(
        ln1_g=jnp.ones((depth, 1, dim)), ln1_b=jnp.zeros((depth, 1, dim)),
        ln2_g=jnp.ones((depth, 1, dim)), ln2_b=jnp.zeros((depth, 1, dim)),
        qkv_w=jnp.stack([_xavier(k[0], dim, 3 * dim) for k in per]),
        qkv_b=jnp.zeros((depth, 1, 3 * dim)),
        proj_w=jnp.stack([_xavier(k[1], dim, dim) for k in per]),
        proj_b=jnp.zeros((depth, 1, dim)),
        fc1_w=jnp.stack([_xavier(k[2], dim, hidden) for k in per]),
        fc1_b=jnp.zeros((depth, 1, hidden)),
        fc2_w=jnp.stack([_xavier(k[3], hidden, dim) for k in per]),
        fc2_b=jnp.zeros((depth, 1, dim)),
    )


def init_params(key):
    ks = jax.random.split(key, 12)
    return dict(
        patch_w=_xavier(ks[0], PATCH_DIM, D),          # conv-as-matmul weight
        patch_b=jnp.zeros((1, D)),
        cls_token=0.02 * jax.random.normal(ks[1], (1, 1, D)),
        mask_token=0.02 * jax.random.normal(ks[2], (1, 1, DD)),
        pos_embed=jnp.asarray(
            get_2d_sincos_pos_embed(D, (GH, GW), cls_token=True))[None],
        dec_pos_embed=jnp.asarray(
            get_2d_sincos_pos_embed(DD, (GH, GW), cls_token=True))[None],
        norm_g=jnp.ones((1, D)), norm_b=jnp.zeros((1, D)),
        dec_norm_g=jnp.ones((1, DD)), dec_norm_b=jnp.zeros((1, DD)),
        dec_embed_w=_xavier(ks[3], D, DD), dec_embed_b=jnp.zeros((1, DD)),
        dec_pred_w=_xavier(ks[4], DD, P * Q), dec_pred_b=jnp.zeros((1, P * Q)),
        proj1_w=_xavier(ks[5], D, PROJ_DIM),
        proj_bn1_g=jnp.ones((1, PROJ_DIM)), proj_bn1_b=jnp.zeros((1, PROJ_DIM)),
        proj2_w=_xavier(ks[6], PROJ_DIM, D),
        pred1_w=_xavier(ks[7], D, PRED_DIM),
        pred_bn1_g=jnp.ones((1, PRED_DIM)), pred_bn1_b=jnp.zeros((1, PRED_DIM)),
        pred2_w=_xavier(ks[8], PRED_DIM, D),
        blocks=init_stacked_blocks(ks[9], DEPTH, D, MLP_RATIO),
        dec_blocks=init_stacked_blocks(ks[10], DDEPTH, DD, MLP_RATIO),
    )


# ------------------------------ model pieces -------------------------------
def extract_patches_conv_order(imgs):
    """(N,C,H,W) -> (N, L, C*P*Q), flatten order (c, p, q) to match Conv2d."""
    n, c, _, _ = imgs.shape
    x = imgs.reshape(n, c, GH, P, GW, Q)
    x = x.transpose(0, 2, 4, 1, 3, 5)
    return x.reshape(n, GH * GW, c * P * Q)


def patchify(imgs):
    """(N,C,H,W) -> (N, L, p*q*C) with c fastest (module's einsum order)."""
    n, c, _, _ = imgs.shape
    x = imgs.reshape(n, c, GH, P, GW, Q)
    x = x.transpose(0, 2, 4, 3, 5, 1)          # nchpwq -> nhwpqc
    return x.reshape(n, GH * GW, P * Q * c)


def unpatchify(x):
    n = x.shape[0]
    c = x.shape[2] // (P * Q)
    x = x.reshape(n, GH, GW, P, Q, c)
    x = x.transpose(0, 5, 1, 3, 2, 4)          # nhwpqc -> nchpwq
    return x.reshape(n, c, GH * P, GW * Q)


def forward_loss(imgs, pred, mask):
    # NOTE: the reference module does NOT apply `mask` to the reconstruction
    # loss -- it is a plain global mean of squared error (kept identical).
    target = patchify(imgs)
    if NORM_PIX_LOSS:
        mean = target.mean(-1, keepdims=True)
        var = target.var(-1, keepdims=True, ddof=1)
        target = (target - mean) / (var + 1e-6) ** 0.5
    loss = pallas_sq_err_sum(pred, target) / (pred.size + 1e-5)
    imgs_hat = unpatchify(pred)

    def _norm(a):
        mu = a.mean(-1, keepdims=True)
        var = a.var(-1, keepdims=True, ddof=1)      # torch.var default unbiased
        return (a - mu) / (var + 1e-12) ** 0.5

    tn, pn = _norm(imgs), _norm(imgs_hat)
    nb = imgs.shape[0] * imgs.shape[1] * imgs.shape[2]
    cross = (1.0 / (imgs.shape[-1] - 1)) * jnp.sum(tn * pn, axis=-1)
    ncc = cross.sum() / nb
    return (1 - NCC_WEIGHT) * loss + NCC_WEIGHT * (1 - ncc)


def cosine_sim(a, b, eps=1e-8):
    num = jnp.sum(a * b, axis=1)
    den = jnp.maximum(jnp.linalg.norm(a, axis=1) * jnp.linalg.norm(b, axis=1), eps)
    return num / den


def mae_forward(imgs, params, key, mask_ratio=MASK_RATIO):
    # imgs: (N, H, C, W)  ->  permute(0,2,1,3) -> NCHW, like the PyTorch module
    imgs = jnp.transpose(imgs, (0, 2, 1, 3))
    cores = _tensorcores_per_chip()

    # ------------------ encoder (both views in one fused pass) -------------
    B = 2 * N
    patches = extract_patches_conv_order(jnp.concatenate([imgs, imgs], axis=0))

    # TODO(synk): per-sample random masking (uniform noise + argsort) has no
    #             clean Pallas equivalent; indices / one-hot matrices built in XLA.
    len_keep = int(L * (1 - mask_ratio))
    noise = jax.random.uniform(key, (B, L))
    ids_shuffle = jnp.argsort(noise, axis=1)
    ids_restore = jnp.argsort(ids_shuffle, axis=1)
    ids_keep = ids_shuffle[:, :len_keep]
    mask = jnp.ones((B, L), jnp.float32).at[:, :len_keep].set(0.0)
    mask = jnp.take_along_axis(mask, ids_restore, axis=1)

    t_enc = 1 + len_keep
    tp_enc = _round_up(t_enc, 8)
    keep_oh = (ids_keep[:, :, None] ==
               jnp.arange(L)[None, None, :]).astype(jnp.float32)   # (B,lk,L)
    sel = jnp.zeros((B, tp_enc, L), jnp.float32)
    sel = sel.at[:, 1:1 + len_keep, :].set(keep_oh)
    cls0 = params["cls_token"] + params["pos_embed"][:, :1, :]      # (1,1,D)
    clspad = jnp.concatenate(
        [cls0, jnp.zeros((1, tp_enc - 1, D), jnp.float32)], axis=1)
    pos_patch = params["pos_embed"][:, 1:, :]                       # (1,L,D)

    bb_enc = _pick_batch_block(B, cores)
    lat_all = encoder_stack(patches, sel, clspad, pos_patch, params,
                            heads=HEADS, t_real=t_enc, batch_block=bb_enc)

    lat1, lat2 = lat_all[:N], lat_all[N:]
    mask1, ids_restore1 = mask[:N], ids_restore[:N]

    # ------------------------------- decoder --------------------------------
    t_dec = L + 1
    tp_dec = _round_up(t_dec, 8)
    # scatter matrix: decoder token t <- encoder-latent row j (cls passthrough
    # + visible tokens restored to their original positions)
    rest_oh = (ids_restore1[:, :, None] ==
               jnp.arange(len_keep)[None, None, :]).astype(jnp.float32)
    scat = jnp.zeros((N, tp_dec, tp_enc), jnp.float32)
    scat = scat.at[:, 0, 0].set(1.0)
    scat = scat.at[:, 1:1 + L, 1:1 + len_keep].set(rest_oh)
    mt_ind = jnp.zeros((N, tp_dec, 1), jnp.float32).at[:, 1:1 + L, 0].set(mask1)
    if tp_dec > t_dec:
        dpos_pad = jnp.concatenate(
            [params["dec_pos_embed"],
             jnp.zeros((1, tp_dec - t_dec, DD), jnp.float32)], axis=1)
    else:
        dpos_pad = params["dec_pos_embed"]

    bb_dec = _pick_batch_block(N, cores)
    pred_pad = decoder_stack(lat1, scat, mt_ind, dpos_pad, params,
                             heads=DHEADS, t_real=t_dec, batch_block=bb_dec)
    pred = pred_pad[:, 1:1 + L, :]

    # -------------------------------- losses --------------------------------
    loss = forward_loss(imgs, pred, mask1)
    imgs_hat = unpatchify(pred)
    imgs_hat_masked = unpatchify(pred * (1 - mask1)[..., None])

    z1 = lat1[:, 1:t_enc, :].mean(axis=1)
    z2 = lat2[:, 1:t_enc, :].mean(axis=1)
    p_all, h_all = simsiam_head(jnp.concatenate([z1, z2], axis=0), params)
    p1, p2 = p_all[:N], p_all[N:]
    h1, h2 = h_all[:N], h_all[N:]
    loss_cos = -(cosine_sim(h1, jax.lax.stop_gradient(p2)).mean()
                 + cosine_sim(h2, jax.lax.stop_gradient(p1)).mean()) * 0.5
    cos_embed = cosine_sim(z1, z2).mean()
    z1n = z1 / jnp.maximum(jnp.linalg.norm(z1, axis=-1, keepdims=True), 1e-12)
    z_std = jnp.std(z1n, axis=0, ddof=1).mean() * (z1.shape[-1] ** 0.5)
    return loss, loss_cos, cos_embed, z_std, imgs_hat, imgs_hat_masked


# ---------------------------------- main -----------------------------------
if __name__ == "__main__":
    root = jax.random.PRNGKey(0)
    k_data, k_param, k_mask = jax.random.split(root, 3)
    imgs = jax.random.normal(k_data, (N, H, C, W), jnp.float32)  # (N, H, C, W)
    params = init_params(k_param)

    fwd = jax.jit(mae_forward)
    outs = fwd(imgs, params, k_mask)
    outs = jax.block_until_ready(outs)
    loss, loss_cos, cos_embed, z_std, imgs_hat, imgs_hat_masked = outs
    assert imgs_hat.shape == (N, C, H, W)
    assert imgs_hat_masked.shape == (N, C, H, W)
    assert all(bool(jnp.isfinite(jnp.asarray(v)).all())
               for v in (loss, loss_cos, cos_embed, z_std))
    print("KERNEL_OK")
</pallas_src>

<mosaic_0001>
module attributes {stable_mosaic.version = 11 : i64} {
  func.func @_encoder_stack_kernel(%arg0: i32, %arg1: i32, %arg2: memref<4x8x16xf32, #tpu.memory_space<vmem>>, %arg3: memref<4x8x8xf32, #tpu.memory_space<vmem>>, %arg4: memref<16x32xf32, #tpu.memory_space<vmem>>, %arg5: memref<1x32xf32, #tpu.memory_space<vmem>>, %arg6: memref<1x8x32xf32, #tpu.memory_space<vmem>>, %arg7: memref<1x8x32xf32, #tpu.memory_space<vmem>>, %arg8: memref<1x1x32xf32, #tpu.memory_space<vmem>>, %arg9: memref<1x1x32xf32, #tpu.memory_space<vmem>>, %arg10: memref<1x32x96xf32, #tpu.memory_space<vmem>>, %arg11: memref<1x1x96xf32, #tpu.memory_space<vmem>>, %arg12: memref<1x32x32xf32, #tpu.memory_space<vmem>>, %arg13: memref<1x1x32xf32, #tpu.memory_space<vmem>>, %arg14: memref<1x1x32xf32, #tpu.memory_space<vmem>>, %arg15: memref<1x1x32xf32, #tpu.memory_space<vmem>>, %arg16: memref<1x32x128xf32, #tpu.memory_space<vmem>>, %arg17: memref<1x1x128xf32, #tpu.memory_space<vmem>>, %arg18: memref<1x128x32xf32, #tpu.memory_space<vmem>>, %arg19: memref<1x1x32xf32, #tpu.memory_space<vmem>>, %arg20: memref<1x32xf32, #tpu.memory_space<vmem>>, %arg21: memref<1x32xf32, #tpu.memory_space<vmem>>, %arg22: memref<4x8x32xf32, #tpu.memory_space<vmem>>) attributes {dimension_semantics = [#tpu.dimension_semantics<parallel>, #tpu.dimension_semantics<arbitrary>], iteration_bounds = array<i64: 1, 2>, scalar_prefetch = 0 : i64, scratch_operands = 0 : i64, tpu.core_type = #tpu.core_type<tc>, window_params = [{transform_indices = @transform_0, window_bounds = array<i64: 4, 8, 16>}, {transform_indices = @transform_1, window_bounds = array<i64: 4, 8, 8>}, {pipeline_mode = #tpu.pipeline_mode<synchronous>, transform_indices = @transform_2, window_bounds = array<i64: 16, 32>}, {pipeline_mode = #tpu.pipeline_mode<synchronous>, transform_indices = @transform_3, window_bounds = array<i64: 1, 32>}, {pipeline_mode = #tpu.pipeline_mode<synchronous>, transform_indices = @transform_4, window_bounds = array<i64: 1, 8, 32>}, {pipeline_mode = #tpu.pipeline_mode<synchronous>, transform_indices = @transform_5, window_bounds = array<i64: 1, 8, 32>}, {transform_indices = @transform_6, window_bounds = array<i64: 1, 1, 32>}, {transform_indices = @transform_7, window_bounds = array<i64: 1, 1, 32>}, {transform_indices = @transform_8, window_bounds = array<i64: 1, 32, 96>}, {transform_indices = @transform_9, window_bounds = array<i64: 1, 1, 96>}, {transform_indices = @transform_10, window_bounds = array<i64: 1, 32, 32>}, {transform_indices = @transform_11, window_bounds = array<i64: 1, 1, 32>}, {transform_indices = @transform_12, window_bounds = array<i64: 1, 1, 32>}, {transform_indices = @transform_13, window_bounds = array<i64: 1, 1, 32>}, {transform_indices = @transform_14, window_bounds = array<i64: 1, 32, 128>}, {transform_indices = @transform_15, window_bounds = array<i64: 1, 1, 128>}, {transform_indices = @transform_16, window_bounds = array<i64: 1, 128, 32>}, {transform_indices = @transform_17, window_bounds = array<i64: 1, 1, 32>}, {pipeline_mode = #tpu.pipeline_mode<synchronous>, transform_indices = @transform_18, window_bounds = array<i64: 1, 32>}, {pipeline_mode = #tpu.pipeline_mode<synchronous>, transform_indices = @transform_19, window_bounds = array<i64: 1, 32>}, {transform_indices = @transform_20, window_bounds = array<i64: 4, 8, 32>}]} {
    %c0_i32 = arith.constant 0 : i32
    %0 = arith.cmpi eq, %arg1, %c0_i32 : i32
    %1 = arith.extui %0 : i1 to i32
    %c0_i32_0 = arith.constant 0 : i32
    %2 = arith.cmpi ne, %1, %c0_i32_0 : i32
    scf.if %2 {
      %c0_94 = arith.constant 0 : index
      %c0_95 = arith.constant 0 : index
      %c0_96 = arith.constant 0 : index
      %226 = vector.load %arg2[%c0_94, %c0_95, %c0_96] : memref<4x8x16xf32, #tpu.memory_space<vmem>>, vector<4x8x16xf32>
      %227 = vector.shape_cast %226 : vector<4x8x16xf32> to vector<32x16xf32>
      %c0_97 = arith.constant 0 : index
      %c0_98 = arith.constant 0 : index
      %228 = vector.load %arg4[%c0_97, %c0_98] : memref<16x32xf32, #tpu.memory_space<vmem>>, vector<16x32xf32>
      %cst_99 = arith.constant dense<0.000000e+00> : vector<32x32xf32>
      %229 = tpu.matmul %227, %228, %cst_99 {dimension_numbers = #tpu.dot_dimension_numbers<[1], [0], [0], [1], [0, 0, 1, 1], [], []>} : vector<32x16xf32>, vector<16x32xf32>, vector<32x32xf32> -> vector<32x32xf32>
      %c0_100 = arith.constant 0 : index
      %c0_101 = arith.constant 0 : index
      %230 = vector.load %arg5[%c0_100, %c0_101] : memref<1x32xf32, #tpu.memory_space<vmem>>, vector<1x32xf32>
      %231 = vector.broadcast %230 : vector<1x32xf32> to vector<32x32xf32>
      %232 = arith.addf %229, %231 : vector<32x32xf32>
      %233 = vector.shape_cast %232 : vector<32x32xf32> to vector<4x8x32xf32>
      %c0_102 = arith.constant 0 : index
      %c0_103 = arith.constant 0 : index
      %c0_104 = arith.constant 0 : index
      %234 = vector.load %arg6[%c0_102, %c0_103, %c0_104] : memref<1x8x32xf32, #tpu.memory_space<vmem>>, vector<1x8x32xf32>
      %235 = vector.broadcast %234 : vector<1x8x32xf32> to vector<4x8x32xf32>
      %236 = arith.addf %233, %235 : vector<4x8x32xf32>
      %c0_105 = arith.constant 0 : index
      %c0_106 = arith.constant 0 : index
      %c0_107 = arith.constant 0 : index
      %237 = vector.load %arg3[%c0_105, %c0_106, %c0_107] : memref<4x8x8xf32, #tpu.memory_space<vmem>>, vector<4x8x8xf32>
      "tpu.trace_start"() <{level = 10 : i32, message = "btl,bld->btd"}> : () -> ()
      %cst_108 = arith.constant dense<0.000000e+00> : vector<4x8x32xf32>
      %238 = tpu.matmul %237, %236, %cst_108 {dimension_numbers = #tpu.dot_dimension_numbers<[2], [1], [1], [2], [0, 0, 0, 1, 1, 2], [0], [0]>} : vector<4x8x8xf32>, vector<4x8x32xf32>, vector<4x8x32xf32> -> vector<4x8x32xf32>
      "tpu.trace_stop"() : () -> ()
      %c0_109 = arith.constant 0 : index
      %c0_110 = arith.constant 0 : index
      %c0_111 = arith.constant 0 : index
      %239 = vector.load %arg7[%c0_109, %c0_110, %c0_111] : memref<1x8x32xf32, #tpu.memory_space<vmem>>, vector<1x8x32xf32>
      %240 = vector.broadcast %239 : vector<1x8x32xf32> to vector<4x8x32xf32>
      %241 = arith.addf %238, %240 : vector<4x8x32xf32>
      %c0_112 = arith.constant 0 : index
      %c0_113 = arith.constant 0 : index
      %c0_114 = arith.constant 0 : index
      %242 = vector.load %arg22[%c0_112, %c0_113, %c0_114] : memref<4x8x32xf32, #tpu.memory_space<vmem>>, vector<4x8x32xf32>
      tpu.vector_store %arg22[%c0_112, %c0_113, %c0_114], %241 {strides = array<i32>} : memref<4x8x32xf32, #tpu.memory_space<vmem>>, vector<4x8x32xf32>,
    } else {
    }
    %c0 = arith.constant 0 : index
    %c0_1 = arith.constant 0 : index
    %c0_2 = arith.constant 0 : index
    %3 = vector.load %arg22[%c0, %c0_1, %c0_2] : memref<4x8x32xf32, #tpu.memory_space<vmem>>, vector<4x8x32xf32>
    %c0_3 = arith.constant 0 : index
    %c0_4 = arith.constant 0 : index
    %c0_5 = arith.constant 0 : index
    %4 = vector.load %arg8[%c0_3, %c0_4, %c0_5] : memref<1x1x32xf32, #tpu.memory_space<vmem>>, vector<1x1x32xf32>
    %5 = vector.shape_cast %4 : vector<1x1x32xf32> to vector<1x32xf32>
    %c0_6 = arith.constant 0 : index
    %c0_7 = arith.constant 0 : index
    %c0_8 = arith.constant 0 : index
    %6 = vector.load %arg9[%c0_6, %c0_7, %c0_8] : memref<1x1x32xf32, #tpu.memory_space<vmem>>, vector<1x1x32xf32>
    %7 = vector.shape_cast %6 : vector<1x1x32xf32> to vector<1x32xf32>
    %c0_9 = arith.constant 0 : index
    %c0_10 = arith.constant 0 : index
    %c0_11 = arith.constant 0 : index
    %8 = vector.load %arg10[%c0_9, %c0_10, %c0_11] : memref<1x32x96xf32, #tpu.memory_space<vmem>>, vector<1x32x96xf32>
    %9 = vector.shape_cast %8 : vector<1x32x96xf32> to vector<32x96xf32>
    %c0_12 = arith.constant 0 : index
    %c0_13 = arith.constant 0 : index
    %c0_14 = arith.constant 0 : index
    %10 = vector.load %arg11[%c0_12, %c0_13, %c0_14] : memref<1x1x96xf32, #tpu.memory_space<vmem>>, vector<1x1x96xf32>
    %11 = vector.shape_cast %10 : vector<1x1x96xf32> to vector<1x96xf32>
    %c0_15 = arith.constant 0 : index
    %c0_16 = arith.constant 0 : index
    %c0_17 = arith.constant 0 : index
    %12 = vector.load %arg12[%c0_15, %c0_16, %c0_17] : memref<1x32x32xf32, #tpu.memory_space<vmem>>, vector<1x32x32xf32>
    %13 = vector.shape_cast %12 : vector<1x32x32xf32> to vector<32x32xf32>
    %c0_18 = arith.constant 0 : index
    %c0_19 = arith.constant 0 : index
    %c0_20 = arith.constant 0 : index
    %14 = vector.load %arg13[%c0_18, %c0_19, %c0_20] : memref<1x1x32xf32, #tpu.memory_space<vmem>>, vector<1x1x32xf32>
    %15 = vector.shape_cast %14 : vector<1x1x32xf32> to vector<1x32xf32>
    %c0_21 = arith.constant 0 : index
    %c0_22 = arith.constant 0 : index
    %c0_23 = arith.constant 0 : index
    %16 = vector.load %arg14[%c0_21, %c0_22, %c0_23] : memref<1x1x32xf32, #tpu.memory_space<vmem>>, vector<1x1x32xf32>
    %17 = vector.shape_cast %16 : vector<1x1x32xf32> to vector<1x32xf32>
    %c0_24 = arith.constant 0 : index
    %c0_25 = arith.constant 0 : index
    %c0_26 = arith.constant 0 : index
    %18 = vector.load %arg15[%c0_24, %c0_25, %c0_26] : memref<1x1x32xf32, #tpu.memory_space<vmem>>, vector<1x1x32xf32>
    %19 = vector.shape_cast %18 : vector<1x1x32xf32> to vector<1x32xf32>
    %c0_27 = arith.constant 0 : index
    %c0_28 = arith.constant 0 : index
    %c0_29 = arith.constant 0 : index
    %20 = vector.load %arg16[%c0_27, %c0_28, %c0_29] : memref<1x32x128xf32, #tpu.memory_space<vmem>>, vector<1x32x128xf32>
    %21 = vector.shape_cast %20 : vector<1x32x128xf32> to vector<32x128xf32>
    %c0_30 = arith.constant 0 : index
    %c0_31 = arith.constant 0 : index
    %c0_32 = arith.constant 0 : index
    %22 = vector.load %arg17[%c0_30, %c0_31, %c0_32] : memref<1x1x128xf32, #tpu.memory_space<vmem>>, vector<1x1x128xf32>
    %23 = vector.shape_cast %22 : vector<1x1x128xf32> to vector<1x128xf32>
    %c0_33 = arith.constant 0 : index
    %c0_34 = arith.constant 0 : index
    %c0_35 = arith.constant 0 : index
    %24 = vector.load %arg18[%c0_33, %c0_34, %c0_35] : memref<1x128x32xf32, #tpu.memory_space<vmem>>, vector<1x128x32xf32>
    %25 = vector.shape_cast %24 : vector<1x128x32xf32> to vector<128x32xf32>
    %c0_36 = arith.constant 0 : index
    %c0_37 = arith.constant 0 : index
    %c0_38 = arith.constant 0 : index
    %26 = vector.load %arg19[%c0_36, %c0_37, %c0_38] : memref<1x1x32xf32, #tpu.memory_space<vmem>>, vector<1x1x32xf32>
    %27 = vector.shape_cast %26 : vector<1x1x32xf32> to vector<1x32xf32>
    %cst = arith.constant dense<0.000000e+00> : vector<4x8xf32>
    %28 = vector.multi_reduction <add>, %3, %cst [2] : vector<4x8x32xf32> to vector<4x8xf32>
    %29 = vector.shape_cast %28 : vector<4x8xf32> to vector<4x8x1xf32>
    %cst_39 = arith.constant 3.200000e+01 : f32
    %30 = vector.broadcast %cst_39 : f32 to vector<4x8x1xf32>
    %31 = arith.divf %29, %30 : vector<4x8x1xf32>
    %32 = vector.broadcast %31 : vector<4x8x1xf32> to vector<4x8x32xf32>
    %33 = arith.subf %3, %32 : vector<4x8x32xf32>
    %34 = arith.mulf %33, %33 : vector<4x8x32xf32>
    %cst_40 = arith.constant dense<0.000000e+00> : vector<4x8xf32>
    %35 = vector.multi_reduction <add>, %34, %cst_40 [2] : vector<4x8x32xf32> to vector<4x8xf32>
    %36 = vector.shape_cast %35 : vector<4x8xf32> to vector<4x8x1xf32>
    %cst_41 = arith.constant 3.200000e+01 : f32
    %37 = vector.broadcast %cst_41 : f32 to vector<4x8x1xf32>
    %38 = arith.divf %36, %37 : vector<4x8x1xf32>
    %cst_42 = arith.constant 9.99999974E-6 : f32
    %39 = vector.broadcast %cst_42 : f32 to vector<4x8x1xf32>
    %40 = arith.addf %38, %39 : vector<4x8x1xf32>
    %41 = math.rsqrt %40 : vector<4x8x1xf32>
    %42 = vector.broadcast %41 : vector<4x8x1xf32> to vector<4x8x32xf32>
    %43 = arith.mulf %33, %42 : vector<4x8x32xf32>
    %44 = vector.shape_cast %5 : vector<1x32xf32> to vector<1x1x32xf32>
    %45 = vector.broadcast %44 : vector<1x1x32xf32> to vector<4x8x32xf32>
    %46 = arith.mulf %43, %45 : vector<4x8x32xf32>
    %47 = vector.shape_cast %7 : vector<1x32xf32> to vector<1x1x32xf32>
    %48 = vector.broadcast %47 : vector<1x1x32xf32> to vector<4x8x32xf32>
    %49 = arith.addf %46, %48 : vector<4x8x32xf32>
    %50 = vector.shape_cast %49 : vector<4x8x32xf32> to vector<32x32xf32>
    %cst_43 = arith.constant dense<0.000000e+00> : vector<32x96xf32>
    %51 = tpu.matmul %50, %9, %cst_43 {dimension_numbers = #tpu.dot_dimension_numbers<[1], [0], [0], [1], [0, 0, 1, 1], [], []>} : vector<32x32xf32>, vector<32x96xf32>, vector<32x96xf32> -> vector<32x96xf32>
    %52 = vector.broadcast %11 : vector<1x96xf32> to vector<32x96xf32>
    %53 = arith.addf %51, %52 : vector<32x96xf32>
    %54 = vector.shape_cast %53 : vector<32x96xf32> to vector<4x8x96xf32>
    %55 = tpu.iota {dimensions = array<i32: 1>} : vector<1x8xi32>
    %c3_i32 = arith.constant 3 : i32
    %56 = vector.broadcast %c3_i32 : i32 to vector<1x8xi32>
    %57 = arith.cmpi slt, %55, %56 : vector<1x8xi32>
    %58 = vector.extract_strided_slice %54 {offsets = [0, 0, 0], sizes = [4, 8, 8], strides = [1, 1, 1]} : vector<4x8x96xf32> to vector<4x8x8xf32>
    %cst_44 = arith.constant 0.353553385 : f32
    %59 = vector.broadcast %cst_44 : f32 to vector<4x8x8xf32>
    %60 = arith.mulf %58, %59 : vector<4x8x8xf32>
    %61 = vector.extract_strided_slice %54 {offsets = [0, 0, 32], sizes = [4, 8, 8], strides = [1, 1, 1]} : vector<4x8x96xf32> to vector<4x8x8xf32>
    %62 = vector.extract_strided_slice %54 {offsets = [0, 0, 64], sizes = [4, 8, 8], strides = [1, 1, 1]} : vector<4x8x96xf32> to vector<4x8x8xf32>
    "tpu.trace_start"() <{level = 10 : i32, message = "bqd,bkd->bqk"}> : () -> ()
    %cst_45 = arith.constant dense<0.000000e+00> : vector<4x8x8xf32>
    %63 = tpu.matmul %60, %61, %cst_45 {dimension_numbers = #tpu.dot_dimension_numbers<[2], [2], [1], [1], [0, 0, 0, 1, 1, 1], [0], [0]>} : vector<4x8x8xf32>, vector<4x8x8xf32>, vector<4x8x8xf32> -> vector<4x8x8xf32>
    %cst_46 = arith.constant -1.000000e+30 : f32
    "tpu.trace_stop"() : () -> ()
    %64 = vector.shape_cast %57 : vector<1x8xi1> to vector<1x1x8xi1>
    %65 = vector.broadcast %64 : vector<1x1x8xi1> to vector<4x8x8xi1>
    %66 = vector.broadcast %cst_46 : f32 to vector<4x8x8xf32>
    %67 = arith.select %65, %63, %66 : vector<4x8x8xi1>, vector<4x8x8xf32>
    %cst_47 = arith.constant dense<0xFF800000> : vector<4x8xf32>
    %68 = vector.multi_reduction <maximumf>, %67, %cst_47 [2] : vector<4x8x8xf32> to vector<4x8xf32>
    %69 = vector.shape_cast %68 : vector<4x8xf32> to vector<4x8x1xf32>
    %70 = vector.broadcast %69 : vector<4x8x1xf32> to vector<4x8x8xf32>
    %71 = arith.subf %67, %70 : vector<4x8x8xf32>
    %72 = math.exp %71 : vector<4x8x8xf32>
    %cst_48 = arith.constant dense<0.000000e+00> : vector<4x8xf32>
    %73 = vector.multi_reduction <add>, %72, %cst_48 [2] : vector<4x8x8xf32> to vector<4x8xf32>
    %74 = vector.shape_cast %73 : vector<4x8xf32> to vector<4x8x1xf32>
    %75 = tpu.reciprocal %74 {approx = true} : vector<4x8x1xf32> -> vector<4x8x1xf32>
    %76 = vector.broadcast %75 : vector<4x8x1xf32> to vector<4x8x8xf32>
    %77 = arith.mulf %72, %76 : vector<4x8x8xf32>
    "tpu.trace_start"() <{level = 10 : i32, message = "bqk,bkd->bqd"}> : () -> ()
    %cst_49 = arith.constant dense<0.000000e+00> : vector<4x8x8xf32>
    %78 = tpu.matmul %77, %62, %cst_49 {dimension_numbers = #tpu.dot_dimension_numbers<[2], [1], [1], [2], [0, 0, 0, 1, 1, 2], [0], [0]>} : vector<4x8x8xf32>, vector<4x8x8xf32>, vector<4x8x8xf32> -> vector<4x8x8xf32>
    "tpu.trace_stop"() : () -> ()
    %79 = vector.extract_strided_slice %54 {offsets = [0, 0, 8], sizes = [4, 8, 8], strides = [1, 1, 1]} : vector<4x8x96xf32> to vector<4x8x8xf32>
    %cst_50 = arith.constant 0.353553385 : f32
    %80 = vector.broadcast %cst_50 : f32 to vector<4x8x8xf32>
    %81 = arith.mulf %79, %80 : vector<4x8x8xf32>
    %82 = vector.extract_strided_slice %54 {offsets = [0, 0, 40], sizes = [4, 8, 8], strides = [1, 1, 1]} : vector<4x8x96xf32> to vector<4x8x8xf32>
    %83 = vector.extract_strided_slice %54 {offsets = [0, 0, 72], sizes = [4, 8, 8], strides = [1, 1, 1]} : vector<4x8x96xf32> to vector<4x8x8xf32>
    "tpu.trace_start"() <{level = 10 : i32, message = "bqd,bkd->bqk"}> : () -> ()
    %cst_51 = arith.constant dense<0.000000e+00> : vector<4x8x8xf32>
    %84 = tpu.matmul %81, %82, %cst_51 {dimension_numbers = #tpu.dot_dimension_numbers<[2], [2], [1], [1], [0, 0, 0, 1, 1, 1], [0], [0]>} : vector<4x8x8xf32>, vector<4x8x8xf32>, vector<4x8x8xf32> -> vector<4x8x8xf32>
    %cst_52 = arith.constant -1.000000e+30 : f32
    "tpu.trace_stop"() : () -> ()
    %85 = vector.shape_cast %57 : vector<1x8xi1> to vector<1x1x8xi1>
    %86 = vector.broadcast %85 : vector<1x1x8xi1> to vector<4x8x8xi1>
    %87 = vector.broadcast %cst_52 : f32 to vector<4x8x8xf32>
    %88 = arith.select %86, %84, %87 : vector<4x8x8xi1>, vector<4x8x8xf32>
    %cst_53 = arith.constant dense<0xFF800000> : vector<4x8xf32>
    %89 = vector.multi_reduction <maximumf>, %88, %cst_53 [2] : vector<4x8x8xf32> to vector<4x8xf32>
    %90 = vector.shape_cast %89 : vector<4x8xf32> to vector<4x8x1xf32>
    %91 = vector.broadcast %90 : vector<4x8x1xf32> to vector<4x8x8xf32>
    %92 = arith.subf %88, %91 : vector<4x8x8xf32>
    %93 = math.exp %92 : vector<4x8x8xf32>
    %cst_54 = arith.constant dense<0.000000e+00> : vector<4x8xf32>
    %94 = vector.multi_reduction <add>, %93, %cst_54 [2] : vector<4x8x8xf32> to vector<4x8xf32>
    %95 = vector.shape_cast %94 : vector<4x8xf32> to vector<4x8x1xf32>
    %96 = tpu.reciprocal %95 {approx = true} : vector<4x8x1xf32> -> vector<4x8x1xf32>
    %97 = vector.broadcast %96 : vector<4x8x1xf32> to vector<4x8x8xf32>
    %98 = arith.mulf %93, %97 : vector<4x8x8xf32>
    "tpu.trace_start"() <{level = 10 : i32, message = "bqk,bkd->bqd"}> : () -> ()
    %cst_55 = arith.constant dense<0.000000e+00> : vector<4x8x8xf32>
    %99 = tpu.matmul %98, %83, %cst_55 {dimension_numbers = #tpu.dot_dimension_numbers<[2], [1], [1], [2], [0, 0, 0, 1, 1, 2], [0], [0]>} : vector<4x8x8xf32>, vector<4x8x8xf32>, vector<4x8x8xf32> -> vector<4x8x8xf32>
    "tpu.trace_stop"() : () -> ()
    %100 = vector.extract_strided_slice %54 {offsets = [0, 0, 16], sizes = [4, 8, 8], strides = [1, 1, 1]} : vector<4x8x96xf32> to vector<4x8x8xf32>
    %cst_56 = arith.constant 0.353553385 : f32
    %101 = vector.broadcast %cst_56 : f32 to vector<4x8x8xf32>
    %102 = arith.mulf %100, %101 : vector<4x8x8xf32>
    %103 = vector.extract_strided_slice %54 {offsets = [0, 0, 48], sizes = [4, 8, 8], strides = [1, 1, 1]} : vector<4x8x96xf32> to vector<4x8x8xf32>
    %104 = vector.extract_strided_slice %54 {offsets = [0, 0, 80], sizes = [4, 8, 8], strides = [1, 1, 1]} : vector<4x8x96xf32> to vector<4x8x8xf32>
    "tpu.trace_start"() <{level = 10 : i32, message = "bqd,bkd->bqk"}> : () -> ()
    %cst_57 = arith.constant dense<0.000000e+00> : vector<4x8x8xf32>
    %105 = tpu.matmul %102, %103, %cst_57 {dimension_numbers = #tpu.dot_dimension_numbers<[2], [2], [1], [1], [0, 0, 0, 1, 1, 1], [0], [0]>} : vector<4x8x8xf32>, vector<4x8x8xf32>, vector<4x8x8xf32> -> vector<4x8x8xf32>
    %cst_58 = arith.constant -1.000000e+30 : f32
    "tpu.trace_stop"() : () -> ()
    %106 = vector.shape_cast %57 : vector<1x8xi1> to vector<1x1x8xi1>
    %107 = vector.broadcast %106 : vector<1x1x8xi1> to vector<4x8x8xi1>
    %108 = vector.broadcast %cst_58 : f32 to vector<4x8x8xf32>
    %109 = arith.select %107, %105, %108 : vector<4x8x8xi1>, vector<4x8x8xf32>
    %cst_59 = arith.constant dense<0xFF800000> : vector<4x8xf32>
    %110 = vector.multi_reduction <maximumf>, %109, %cst_59 [2] : vector<4x8x8xf32> to vector<4x8xf32>
    %111 = vector.shape_cast %110 : vector<4x8xf32> to vector<4x8x1xf32>
    %112 = vector.broadcast %111 : vector<4x8x1xf32> to vector<4x8x8xf32>
    %113 = arith.subf %109, %112 : vector<4x8x8xf32>
    %114 = math.exp %113 : vector<4x8x8xf32>
    %cst_60 = arith.constant dense<0.000000e+00> : vector<4x8xf32>
    %115 = vector.multi_reduction <add>, %114, %cst_60 [2] : vector<4x8x8xf32> to vector<4x8xf32>
    %116 = vector.shape_cast %115 : vector<4x8xf32> to vector<4x8x1xf32>
    %117 = tpu.reciprocal %116 {approx = true} : vector<4x8x1xf32> -> vector<4x8x1xf32>
    %118 = vector.broadcast %117 : vector<4x8x1xf32> to vector<4x8x8xf32>
    %119 = arith.mulf %114, %118 : vector<4x8x8xf32>
    "tpu.trace_start"() <{level = 10 : i32, message = "bqk,bkd->bqd"}> : () -> ()
    %cst_61 = arith.constant dense<0.000000e+00> : vector<4x8x8xf32>
    %120 = tpu.matmul %119, %104, %cst_61 {dimension_numbers = #tpu.dot_dimension_numbers<[2], [1], [1], [2], [0, 0, 0, 1, 1, 2], [0], [0]>} : vector<4x8x8xf32>, vector<4x8x8xf32>, vector<4x8x8xf32> -> vector<4x8x8xf32>
    "tpu.trace_stop"() : () -> ()
    %121 = vector.extract_strided_slice %54 {offsets = [0, 0, 24], sizes = [4, 8, 8], strides = [1, 1, 1]} : vector<4x8x96xf32> to vector<4x8x8xf32>
    %cst_62 = arith.constant 0.353553385 : f32
    %122 = vector.broadcast %cst_62 : f32 to vector<4x8x8xf32>
    %123 = arith.mulf %121, %122 : vector<4x8x8xf32>
    %124 = vector.extract_strided_slice %54 {offsets = [0, 0, 56], sizes = [4, 8, 8], strides = [1, 1, 1]} : vector<4x8x96xf32> to vector<4x8x8xf32>
    %125 = vector.extract_strided_slice %54 {offsets = [0, 0, 88], sizes = [4, 8, 8], strides = [1, 1, 1]} : vector<4x8x96xf32> to vector<4x8x8xf32>
    "tpu.trace_start"() <{level = 10 : i32, message = "bqd,bkd->bqk"}> : () -> ()
    %cst_63 = arith.constant dense<0.000000e+00> : vector<4x8x8xf32>
    %126 = tpu.matmul %123, %124, %cst_63 {dimension_numbers = #tpu.dot_dimension_numbers<[2], [2], [1], [1], [0, 0, 0, 1, 1, 1], [0], [0]>} : vector<4x8x8xf32>, vector<4x8x8xf32>, vector<4x8x8xf32> -> vector<4x8x8xf32>
    %cst_64 = arith.constant -1.000000e+30 : f32
    "tpu.trace_stop"() : () -> ()
    %127 = vector.shape_cast %57 : vector<1x8xi1> to vector<1x1x8xi1>
    %128 = vector.broadcast %127 : vector<1x1x8xi1> to vector<4x8x8xi1>
    %129 = vector.broadcast %cst_64 : f32 to vector<4x8x8xf32>
    %130 = arith.select %128, %126, %129 : vector<4x8x8xi1>, vector<4x8x8xf32>
    %cst_65 = arith.constant dense<0xFF800000> : vector<4x8xf32>
    %131 = vector.multi_reduction <maximumf>, %130, %cst_65 [2] : vector<4x8x8xf32> to vector<4x8xf32>
    %132 = vector.shape_cast %131 : vector<4x8xf32> to vector<4x8x1xf32>
    %133 = vector.broadcast %132 : vector<4x8x1xf32> to vector<4x8x8xf32>
    %134 = arith.subf %130, %133 : vector<4x8x8xf32>
    %135 = math.exp %134 : vector<4x8x8xf32>
    %cst_66 = arith.constant dense<0.000000e+00> : vector<4x8xf32>
    %136 = vector.multi_reduction <add>, %135, %cst_66 [2] : vector<4x8x8xf32> to vector<4x8xf32>
    %137 = vector.shape_cast %136 : vector<4x8xf32> to vector<4x8x1xf32>
    %138 = tpu.reciprocal %137 {approx = true} : vector<4x8x1xf32> -> vector<4x8x1xf32>
    %139 = vector.broadcast %138 : vector<4x8x1xf32> to vector<4x8x8xf32>
    %140 = arith.mulf %135, %139 : vector<4x8x8xf32>
    "tpu.trace_start"() <{level = 10 : i32, message = "bqk,bkd->bqd"}> : () -> ()
    %cst_67 = arith.constant dense<0.000000e+00> : vector<4x8x8xf32>
    %141 = tpu.matmul %140, %125, %cst_67 {dimension_numbers = #tpu.dot_dimension_numbers<[2], [1], [1], [2], [0, 0, 0, 1, 1, 2], [0], [0]>} : vector<4x8x8xf32>, vector<4x8x8xf32>, vector<4x8x8xf32> -> vector<4x8x8xf32>
    "tpu.trace_stop"() : () -> ()
    %142 = tpu.concatenate %78, %99, %120, %141 in 2 : vector<4x8x8xf32>, vector<4x8x8xf32>, vector<4x8x8xf32>, vector<4x8x8xf32> -> vector<4x8x32xf32>
    %143 = vector.shape_cast %142 : vector<4x8x32xf32> to vector<32x32xf32>
    %cst_68 = arith.constant dense<0.000000e+00> : vector<32x32xf32>
    %144 = tpu.matmul %143, %13, %cst_68 {dimension_numbers = #tpu.dot_dimension_numbers<[1], [0], [0], [1], [0, 0, 1, 1], [], []>} : vector<32x32xf32>, vector<32x32xf32>, vector<32x32xf32> -> vector<32x32xf32>
    %145 = vector.broadcast %15 : vector<1x32xf32> to vector<32x32xf32>
    %146 = arith.addf %144, %145 : vector<32x32xf32>
    %147 = vector.shape_cast %146 : vector<32x32xf32> to vector<4x8x32xf32>
    %148 = arith.addf %3, %147 : vector<4x8x32xf32>
    %cst_69 = arith.constant dense<0.000000e+00> : vector<4x8xf32>
    %149 = vector.multi_reduction <add>, %148, %cst_69 [2] : vector<4x8x32xf32> to vector<4x8xf32>
    %150 = vector.shape_cast %149 : vector<4x8xf32> to vector<4x8x1xf32>
    %cst_70 = arith.constant 3.200000e+01 : f32
    %151 = vector.broadcast %cst_70 : f32 to vector<4x8x1xf32>
    %152 = arith.divf %150, %151 : vector<4x8x1xf32>
    %153 = vector.broadcast %152 : vector<4x8x1xf32> to vector<4x8x32xf32>
    %154 = arith.subf %148, %153 : vector<4x8x32xf32>
    %155 = arith.mulf %154, %154 : vector<4x8x32xf32>
    %cst_71 = arith.constant dense<0.000000e+00> : vector<4x8xf32>
    %156 = vector.multi_reduction <add>, %155, %cst_71 [2] : vector<4x8x32xf32> to vector<4x8xf32>
    %157 = vector.shape_cast %156 : vector<4x8xf32> to vector<4x8x1xf32>
    %cst_72 = arith.constant 3.200000e+01 : f32
    %158 = vector.broadcast %cst_72 : f32 to vector<4x8x1xf32>
    %159 = arith.divf %157, %158 : vector<4x8x1xf32>
    %cst_73 = arith.constant 9.99999974E-6 : f32
    %160 = vector.broadcast %cst_73 : f32 to vector<4x8x1xf32>
    %161 = arith.addf %159, %160 : vector<4x8x1xf32>
    %162 = math.rsqrt %161 : vector<4x8x1xf32>
    %163 = vector.broadcast %162 : vector<4x8x1xf32> to vector<4x8x32xf32>
    %164 = arith.mulf %154, %163 : vector<4x8x32xf32>
    %165 = vector.shape_cast %17 : vector<1x32xf32> to vector<1x1x32xf32>
    %166 = vector.broadcast %165 : vector<1x1x32xf32> to vector<4x8x32xf32>
    %167 = arith.mulf %164, %166 : vector<4x8x32xf32>
    %168 = vector.shape_cast %19 : vector<1x32xf32> to vector<1x1x32xf32>
    %169 = vector.broadcast %168 : vector<1x1x32xf32> to vector<4x8x32xf32>
    %170 = arith.addf %167, %169 : vector<4x8x32xf32>
    %171 = vector.shape_cast %170 : vector<4x8x32xf32> to vector<32x32xf32>
    %cst_74 = arith.constant dense<0.000000e+00> : vector<32x128xf32>
    %172 = tpu.matmul %171, %21, %cst_74 {dimension_numbers = #tpu.dot_dimension_numbers<[1], [0], [0], [1], [0, 0, 1, 1], [], []>} : vector<32x32xf32>, vector<32x128xf32>, vector<32x128xf32> -> vector<32x128xf32>
    %173 = vector.broadcast %23 : vector<1x128xf32> to vector<32x128xf32>
    %174 = arith.addf %172, %173 : vector<32x128xf32>
    %cst_75 = arith.constant 5.000000e-01 : f32
    %175 = vector.broadcast %cst_75 : f32 to vector<32x128xf32>
    %176 = arith.mulf %175, %174 : vector<32x128xf32>
    %cst_76 = arith.constant 0.707106769 : f32
    %177 = vector.broadcast %cst_76 : f32 to vector<32x128xf32>
    %178 = arith.mulf %174, %177 : vector<32x128xf32>
    %179 = math.absf %178 : vector<32x128xf32>
    %cst_77 = arith.constant 0.327591091 : f32
    %180 = vector.broadcast %cst_77 : f32 to vector<32x128xf32>
    %181 = arith.mulf %180, %179 : vector<32x128xf32>
    %cst_78 = arith.constant 1.000000e+00 : f32
    %182 = vector.broadcast %cst_78 : f32 to vector<32x128xf32>
    %183 = arith.addf %182, %181 : vector<32x128xf32>
    %cst_79 = arith.constant 1.000000e+00 : f32
    %184 = vector.broadcast %cst_79 : f32 to vector<32x128xf32>
    %185 = arith.divf %184, %183 : vector<32x128xf32>
    %cst_80 = arith.constant 1.06140542 : f32
    %186 = vector.broadcast %cst_80 : f32 to vector<32x128xf32>
    %187 = arith.mulf %186, %185 : vector<32x128xf32>
    %cst_81 = arith.constant -1.45315206 : f32
    %188 = vector.broadcast %cst_81 : f32 to vector<32x128xf32>
    %189 = arith.addf %187, %188 : vector<32x128xf32>
    %190 = arith.mulf %189, %185 : vector<32x128xf32>
    %cst_82 = arith.constant 1.42141378 : f32
    %191 = vector.broadcast %cst_82 : f32 to vector<32x128xf32>
    %192 = arith.addf %190, %191 : vector<32x128xf32>
    %193 = arith.mulf %192, %185 : vector<32x128xf32>
    %cst_83 = arith.constant -0.284496725 : f32
    %194 = vector.broadcast %cst_83 : f32 to vector<32x128xf32>
    %195 = arith.addf %193, %194 : vector<32x128xf32>
    %196 = arith.mulf %195, %185 : vector<32x128xf32>
    %cst_84 = arith.constant 0.254829586 : f32
    %197 = vector.broadcast %cst_84 : f32 to vector<32x128xf32>
    %198 = arith.addf %196, %197 : vector<32x128xf32>
    %199 = arith.mulf %198, %185 : vector<32x128xf32>
    %cst_85 = arith.constant 0.000000e+00 : f32
    %200 = vector.broadcast %cst_85 : f32 to vector<32x128xf32>
    %201 = arith.subf %200, %179 : vector<32x128xf32>
    %202 = arith.mulf %201, %179 : vector<32x128xf32>
    %203 = math.exp %202 : vector<32x128xf32>
    %204 = arith.mulf %199, %203 : vector<32x128xf32>
    %cst_86 = arith.constant 1.000000e+00 : f32
    %205 = vector.broadcast %cst_86 : f32 to vector<32x128xf32>
    %206 = arith.subf %205, %204 : vector<32x128xf32>
    %cst_87 = arith.constant 0.000000e+00 : f32
    %207 = vector.broadcast %cst_87 : f32 to vector<32x128xf32>
    %208 = arith.cmpf oge, %178, %207 : vector<32x128xf32>
    %cst_88 = arith.constant 0.000000e+00 : f32
    %209 = vector.broadcast %cst_88 : f32 to vector<32x128xf32>
    %210 = arith.subf %209, %206 : vector<32x128xf32>
    %211 = arith.select %208, %206, %210 : vector<32x128xi1>, vector<32x128xf32>
    %cst_89 = arith.constant 1.000000e+00 : f32
    %212 = vector.broadcast %cst_89 : f32 to vector<32x128xf32>
    %213 = arith.addf %212, %211 : vector<32x128xf32>
    %214 = arith.mulf %176, %213 : vector<32x128xf32>
    %cst_90 = arith.constant dense<0.000000e+00> : vector<32x32xf32>
    %215 = tpu.matmul %214, %25, %cst_90 {dimension_numbers = #tpu.dot_dimension_numbers<[1], [0], [0], [1], [0, 0, 1, 1], [], []>} : vector<32x128xf32>, vector<128x32xf32>, vector<32x32xf32> -> vector<32x32xf32>
    %216 = vector.broadcast %27 : vector<1x32xf32> to vector<32x32xf32>
    %217 = arith.addf %215, %216 : vector<32x32xf32>
    %218 = vector.shape_cast %217 : vector<32x32xf32> to vector<4x8x32xf32>
    %219 = arith.addf %148, %218 : vector<4x8x32xf32>
    %c1_i32 = arith.constant 1 : i32
    %220 = arith.cmpi slt, %arg1, %c1_i32 : i32
    %221 = arith.extui %220 : i1 to i32
    %c0_i32_91 = arith.constant 0 : i32
    %222 = arith.cmpi ne, %221, %c0_i32_91 : i32
    scf.if %222 {
      %c0_94 = arith.constant 0 : index
      %c0_95 = arith.constant 0 : index
      %c0_96 = arith.constant 0 : index
      %226 = vector.load %arg22[%c0_94, %c0_95, %c0_96] : memref<4x8x32xf32, #tpu.memory_space<vmem>>, vector<4x8x32xf32>
      tpu.vector_store %arg22[%c0_94, %c0_95, %c0_96], %219 {strides = array<i32>} : memref<4x8x32xf32, #tpu.memory_space<vmem>>, vector<4x8x32xf32>,
    } else {
    }
    %c1_i32_92 = arith.constant 1 : i32
    %223 = arith.cmpi eq, %arg1, %c1_i32_92 : i32
    %224 = arith.extui %223 : i1 to i32
    %c0_i32_93 = arith.constant 0 : i32
    %225 = arith.cmpi ne, %224, %c0_i32_93 : i32
    scf.if %225 {
      %c0_94 = arith.constant 0 : index
      %c0_95 = arith.constant 0 : index
      %226 = vector.load %arg20[%c0_94, %c0_95] : memref<1x32xf32, #tpu.memory_space<vmem>>, vector<1x32xf32>
      %c0_96 = arith.constant 0 : index
      %c0_97 = arith.constant 0 : index
      %227 = vector.load %arg21[%c0_96, %c0_97] : memref<1x32xf32, #tpu.memory_space<vmem>>, vector<1x32xf32>
      %cst_98 = arith.constant dense<0.000000e+00> : vector<4x8xf32>
      %228 = vector.multi_reduction <add>, %219, %cst_98 [2] : vector<4x8x32xf32> to vector<4x8xf32>
      %229 = vector.shape_cast %228 : vector<4x8xf32> to vector<4x8x1xf32>
      %cst_99 = arith.constant 3.200000e+01 : f32
      %230 = vector.broadcast %cst_99 : f32 to vector<4x8x1xf32>
      %231 = arith.divf %229, %230 : vector<4x8x1xf32>
      %232 = vector.broadcast %231 : vector<4x8x1xf32> to vector<4x8x32xf32>
      %233 = arith.subf %219, %232 : vector<4x8x32xf32>
      %234 = arith.mulf %233, %233 : vector<4x8x32xf32>
      %cst_100 = arith.constant dense<0.000000e+00> : vector<4x8xf32>
      %235 = vector.multi_reduction <add>, %234, %cst_100 [2] : vector<4x8x32xf32> to vector<4x8xf32>
      %236 = vector.shape_cast %235 : vector<4x8xf32> to vector<4x8x1xf32>
      %cst_101 = arith.constant 3.200000e+01 : f32
      %237 = vector.broadcast %cst_101 : f32 to vector<4x8x1xf32>
      %238 = arith.divf %236, %237 : vector<4x8x1xf32>
      %cst_102 = arith.constant 9.99999974E-6 : f32
      %239 = vector.broadcast %cst_102 : f32 to vector<4x8x1xf32>
      %240 = arith.addf %238, %239 : vector<4x8x1xf32>
      %241 = math.rsqrt %240 : vector<4x8x1xf32>
      %242 = vector.broadcast %241 : vector<4x8x1xf32> to vector<4x8x32xf32>
      %243 = arith.mulf %233, %242 : vector<4x8x32xf32>
      %244 = vector.shape_cast %226 : vector<1x32xf32> to vector<1x1x32xf32>
      %245 = vector.broadcast %244 : vector<1x1x32xf32> to vector<4x8x32xf32>
      %246 = arith.mulf %243, %245 : vector<4x8x32xf32>
      %247 = vector.shape_cast %227 : vector<1x32xf32> to vector<1x1x32xf32>
      %248 = vector.broadcast %247 : vector<1x1x32xf32> to vector<4x8x32xf32>
      %249 = arith.addf %246, %248 : vector<4x8x32xf32>
      %c0_103 = arith.constant 0 : index
      %c0_104 = arith.constant 0 : index
      %c0_105 = arith.constant 0 : index
      %250 = vector.load %arg22[%c0_103, %c0_104, %c0_105] : memref<4x8x32xf32, #tpu.memory_space<vmem>>, vector<4x8x32xf32>
      tpu.vector_store %arg22[%c0_103, %c0_104, %c0_105], %249 {strides = array<i32>} : memref<4x8x32xf32, #tpu.memory_space<vmem>>, vector<4x8x32xf32>,
    } else {
    }
    return
  }
  func.func @transform_0(%arg0: i32, %arg1: i32) -> (i32, i32, i32) {
    %c0_i32 = arith.constant 0 : i32
    %c0_i32_0 = arith.constant 0 : i32
    %c0_i32_1 = arith.constant 0 : i32
    return %arg0, %c0_i32, %c0_i32_0 : i32, i32, i32
  }
  func.func @transform_1(%arg0: i32, %arg1: i32) -> (i32, i32, i32) {
    %c0_i32 = arith.constant 0 : i32
    %c0_i32_0 = arith.constant 0 : i32
    %c0_i32_1 = arith.constant 0 : i32
    return %arg0, %c0_i32, %c0_i32_0 : i32, i32, i32
  }
  func.func @transform_2(%arg0: i32, %arg1: i32) -> (i32, i32) {
    %c0_i32 = arith.constant 0 : i32
    %c0_i32_0 = arith.constant 0 : i32
    %c0_i32_1 = arith.constant 0 : i32
    return %c0_i32, %c0_i32_0 : i32, i32
  }
  func.func @transform_3(%arg0: i32, %arg1: i32) -> (i32, i32) {
    %c0_i32 = arith.constant 0 : i32
    %c0_i32_0 = arith.constant 0 : i32
    %c0_i32_1 = arith.constant 0 : i32
    return %c0_i32, %c0_i32_0 : i32, i32
  }
  func.func @transform_4(%arg0: i32, %arg1: i32) -> (i32, i32, i32) {
    %c0_i32 = arith.constant 0 : i32
    %c0_i32_0 = arith.constant 0 : i32
    %c0_i32_1 = arith.constant 0 : i32
    %c0_i32_2 = arith.constant 0 : i32
    return %c0_i32, %c0_i32_0, %c0_i32_1 : i32, i32, i32
  }
  func.func @transform_5(%arg0: i32, %arg1: i32) -> (i32, i32, i32) {
    %c0_i32 = arith.constant 0 : i32
    %c0_i32_0 = arith.constant 0 : i32
    %c0_i32_1 = arith.constant 0 : i32
    %c0_i32_2 = arith.constant 0 : i32
    return %c0_i32, %c0_i32_0, %c0_i32_1 : i32, i32, i32
  }
  func.func @transform_6(%arg0: i32, %arg1: i32) -> (i32, i32, i32) {
    %c0_i32 = arith.constant 0 : i32
    %c0_i32_0 = arith.constant 0 : i32
    %c0_i32_1 = arith.constant 0 : i32
    return %arg1, %c0_i32, %c0_i32_0 : i32, i32, i32
  }
  func.func @transform_7(%arg0: i32, %arg1: i32) -> (i32, i32, i32) {
    %c0_i32 = arith.constant 0 : i32
    %c0_i32_0 = arith.constant 0 : i32
    %c0_i32_1 = arith.constant 0 : i32
    return %arg1, %c0_i32, %c0_i32_0 : i32, i32, i32
  }
  func.func @transform_8(%arg0: i32, %arg1: i32) -> (i32, i32, i32) {
    %c0_i32 = arith.constant 0 : i32
    %c0_i32_0 = arith.constant 0 : i32
    %c0_i32_1 = arith.constant 0 : i32
    return %arg1, %c0_i32, %c0_i32_0 : i32, i32, i32
  }
  func.func @transform_9(%arg0: i32, %arg1: i32) -> (i32, i32, i32) {
    %c0_i32 = arith.constant 0 : i32
    %c0_i32_0 = arith.constant 0 : i32
    %c0_i32_1 = arith.constant 0 : i32
    return %arg1, %c0_i32, %c0_i32_0 : i32, i32, i32
  }
  func.func @transform_10(%arg0: i32, %arg1: i32) -> (i32, i32, i32) {
    %c0_i32 = arith.constant 0 : i32
    %c0_i32_0 = arith.constant 0 : i32
    %c0_i32_1 = arith.constant 0 : i32
    return %arg1, %c0_i32, %c0_i32_0 : i32, i32, i32
  }
  func.func @transform_11(%arg0: i32, %arg1: i32) -> (i32, i32, i32) {
    %c0_i32 = arith.constant 0 : i32
    %c0_i32_0 = arith.constant 0 : i32
    %c0_i32_1 = arith.constant 0 : i32
    return %arg1, %c0_i32, %c0_i32_0 : i32, i32, i32
  }
  func.func @transform_12(%arg0: i32, %arg1: i32) -> (i32, i32, i32) {
    %c0_i32 = arith.constant 0 : i32
    %c0_i32_0 = arith.constant 0 : i32
    %c0_i32_1 = arith.constant 0 : i32
    return %arg1, %c0_i32, %c0_i32_0 : i32, i32, i32
  }
  func.func @transform_13(%arg0: i32, %arg1: i32) -> (i32, i32, i32) {
    %c0_i32 = arith.constant 0 : i32
    %c0_i32_0 = arith.constant 0 : i32
    %c0_i32_1 = arith.constant 0 : i32
    return %arg1, %c0_i32, %c0_i32_0 : i32, i32, i32
  }
  func.func @transform_14(%arg0: i32, %arg1: i32) -> (i32, i32, i32) {
    %c0_i32 = arith.constant 0 : i32
    %c0_i32_0 = arith.constant 0 : i32
    %c0_i32_1 = arith.constant 0 : i32
    return %arg1, %c0_i32, %c0_i32_0 : i32, i32, i32
  }
  func.func @transform_15(%arg0: i32, %arg1: i32) -> (i32, i32, i32) {
    %c0_i32 = arith.constant 0 : i32
    %c0_i32_0 = arith.constant 0 : i32
    %c0_i32_1 = arith.constant 0 : i32
    return %arg1, %c0_i32, %c0_i32_0 : i32, i32, i32
  }
  func.func @transform_16(%arg0: i32, %arg1: i32) -> (i32, i32, i32) {
    %c0_i32 = arith.constant 0 : i32
    %c0_i32_0 = arith.constant 0 : i32
    %c0_i32_1 = arith.constant 0 : i32
    return %arg1, %c0_i32, %c0_i32_0 : i32, i32, i32
  }
  func.func @transform_17(%arg0: i32, %arg1: i32) -> (i32, i32, i32) {
    %c0_i32 = arith.constant 0 : i32
    %c0_i32_0 = arith.constant 0 : i32
    %c0_i32_1 = arith.constant 0 : i32
    return %arg1, %c0_i32, %c0_i32_0 : i32, i32, i32
  }
  func.func @transform_18(%arg0: i32, %arg1: i32) -> (i32, i32) {
    %c0_i32 = arith.constant 0 : i32
    %c0_i32_0 = arith.constant 0 : i32
    %c0_i32_1 = arith.constant 0 : i32
    return %c0_i32, %c0_i32_0 : i32, i32
  }
  func.func @transform_19(%arg0: i32, %arg1: i32) -> (i32, i32) {
    %c0_i32 = arith.constant 0 : i32
    %c0_i32_0 = arith.constant 0 : i32
    %c0_i32_1 = arith.constant 0 : i32
    return %c0_i32, %c0_i32_0 : i32, i32
  }
  func.func @transform_20(%arg0: i32, %arg1: i32) -> (i32, i32, i32) {
    %c0_i32 = arith.constant 0 : i32
    %c0_i32_0 = arith.constant 0 : i32
    %c0_i32_1 = arith.constant 0 : i32
    return %arg0, %c0_i32, %c0_i32_0 : i32, i32, i32
  }
}

module attributes {stable_mosaic.version = 11 : i64} {
  func.func @_sqerr_sum_kernel(%arg0: memref<16x16xf32, #tpu.memory_space<vmem>>, %arg1: memref<16x16xf32, #tpu.memory_space<vmem>>, %arg2: memref<1x1xf32, #tpu.memory_space<vmem>>) attributes {dimension_semantics = [], scalar_prefetch = 0 : i64, scratch_operands = 0 : i64, tpu.core_type = #tpu.core_type<tc>} {
    %c0 = arith.constant 0 : index
    %c0_0 = arith.constant 0 : index
    %0 = vector.load %arg0[%c0, %c0_0] : memref<16x16xf32, #tpu.memory_space<vmem>>, vector<16x16xf32>
    %c0_1 = arith.constant 0 : index
    %c0_2 = arith.constant 0 : index
    %1 = vector.load %arg1[%c0_1, %c0_2] : memref<16x16xf32, #tpu.memory_space<vmem>>, vector<16x16xf32>
    %2 = arith.subf %0, %1 : vector<16x16xf32>
    %3 = arith.mulf %2, %2 : vector<16x16xf32>
    %4 = vector.shape_cast %3 : vector<16x16xf32> to vector<1x16x16xf32>
    %cst = arith.constant dense<0.000000e+00> : vector<1xf32>
    %5 = vector.multi_reduction <add>, %4, %cst [1, 2] : vector<1x16x16xf32> to vector<1xf32>
    %6 = vector.shape_cast %5 : vector<1xf32> to vector<1x1x1xf32>
    %7 = vector.extract %6[0, 0, 0] : f32 from vector<1x1x1xf32>
    %8 = vector.broadcast %7 : f32 to vector<1x1xf32>
    %c0_3 = arith.constant 0 : index
    %c0_4 = arith.constant 0 : index
    %9 = vector.load %arg2[%c0_3, %c0_4] : memref<1x1xf32, #tpu.memory_space<vmem>>, vector<1x1xf32>
    tpu.vector_store %arg2[%c0_3, %c0_4], %8 {strides = array<i32>} : memref<1x1xf32, #tpu.memory_space<vmem>>, vector<1x1xf32>,
    return
  }
}

module attributes {stable_mosaic.version = 11 : i64} {
  func.func @_decoder_stack_kernel(%arg0: i32, %arg1: i32, %arg2: memref<2x8x32xf32, #tpu.memory_space<vmem>>, %arg3: memref<2x16x8xf32, #tpu.memory_space<vmem>>, %arg4: memref<2x16x1xf32, #tpu.memory_space<vmem>>, %arg5: memref<32x32xf32, #tpu.memory_space<vmem>>, %arg6: memref<1x32xf32, #tpu.memory_space<vmem>>, %arg7: memref<1x1x32xf32, #tpu.memory_space<vmem>>, %arg8: memref<1x16x32xf32, #tpu.memory_space<vmem>>, %arg9: memref<1x1x32xf32, #tpu.memory_space<vmem>>, %arg10: memref<1x1x32xf32, #tpu.memory_space<vmem>>, %arg11: memref<1x32x96xf32, #tpu.memory_space<vmem>>, %arg12: memref<1x1x96xf32, #tpu.memory_space<vmem>>, %arg13: memref<1x32x32xf32, #tpu.memory_space<vmem>>, %arg14: memref<1x1x32xf32, #tpu.memory_space<vmem>>, %arg15: memref<1x1x32xf32, #tpu.memory_space<vmem>>, %arg16: memref<1x1x32xf32, #tpu.memory_space<vmem>>, %arg17: memref<1x32x128xf32, #tpu.memory_space<vmem>>, %arg18: memref<1x1x128xf32, #tpu.memory_space<vmem>>, %arg19: memref<1x128x32xf32, #tpu.memory_space<vmem>>, %arg20: memref<1x1x32xf32, #tpu.memory_space<vmem>>, %arg21: memref<1x32xf32, #tpu.memory_space<vmem>>, %arg22: memref<1x32xf32, #tpu.memory_space<vmem>>, %arg23: memref<32x16xf32, #tpu.memory_space<vmem>>, %arg24: memref<1x16xf32, #tpu.memory_space<vmem>>, %arg25: memref<2x16x16xf32, #tpu.memory_space<vmem>>, %arg26: memref<2x16x32xf32, #tpu.memory_space<vmem>>) attributes {dimension_semantics = [#tpu.dimension_semantics<parallel>, #tpu.dimension_semantics<arbitrary>], iteration_bounds = array<i64: 1, 2>, scalar_prefetch = 0 : i64, scratch_operands = 1 : i64, tpu.core_type = #tpu.core_type<tc>, window_params = [{transform_indices = @transform_0, window_bounds = array<i64: 2, 8, 32>}, {transform_indices = @transform_1, window_bounds = array<i64: 2, 16, 8>}, {transform_indices = @transform_2, window_bounds = array<i64: 2, 16, 1>}, {pipeline_mode = #tpu.pipeline_mode<synchronous>, transform_indices = @transform_3, window_bounds = array<i64: 32, 32>}, {pipeline_mode = #tpu.pipeline_mode<synchronous>, transform_indices = @transform_4, window_bounds = array<i64: 1, 32>}, {pipeline_mode = #tpu.pipeline_mode<synchronous>, transform_indices = @transform_5, window_bounds = array<i64: 1, 1, 32>}, {pipeline_mode = #tpu.pipeline_mode<synchronous>, transform_indices = @transform_6, window_bounds = array<i64: 1, 16, 32>}, {transform_indices = @transform_7, window_bounds = array<i64: 1, 1, 32>}, {transform_indices = @transform_8, window_bounds = array<i64: 1, 1, 32>}, {transform_indices = @transform_9, window_bounds = array<i64: 1, 32, 96>}, {transform_indices = @transform_10, window_bounds = array<i64: 1, 1, 96>}, {transform_indices = @transform_11, window_bounds = array<i64: 1, 32, 32>}, {transform_indices = @transform_12, window_bounds = array<i64: 1, 1, 32>}, {transform_indices = @transform_13, window_bounds = array<i64: 1, 1, 32>}, {transform_indices = @transform_14, window_bounds = array<i64: 1, 1, 32>}, {transform_indices = @transform_15, window_bounds = array<i64: 1, 32, 128>}, {transform_indices = @transform_16, window_bounds = array<i64: 1, 1, 128>}, {transform_indices = @transform_17, window_bounds = array<i64: 1, 128, 32>}, {transform_indices = @transform_18, window_bounds = array<i64: 1, 1, 32>}, {pipeline_mode = #tpu.pipeline_mode<synchronous>, transform_indices = @transform_19, window_bounds = array<i64: 1, 32>}, {pipeline_mode = #tpu.pipeline_mode<synchronous>, transform_indices = @transform_20, window_bounds = array<i64: 1, 32>}, {pipeline_mode = #tpu.pipeline_mode<synchronous>, transform_indices = @transform_21, window_bounds = array<i64: 32, 16>}, {pipeline_mode = #tpu.pipeline_mode<synchronous>, transform_indices = @transform_22, window_bounds = array<i64: 1, 16>}, {transform_indices = @transform_23, window_bounds = array<i64: 2, 16, 16>}]} {
    %c0_i32 = arith.constant 0 : i32
    %0 = arith.cmpi eq, %arg1, %c0_i32 : i32
    %1 = arith.extui %0 : i1 to i32
    %c0_i32_0 = arith.constant 0 : i32
    %2 = arith.cmpi ne, %1, %c0_i32_0 : i32
    scf.if %2 {
      %c0_94 = arith.constant 0 : index
      %c0_95 = arith.constant 0 : index
      %c0_96 = arith.constant 0 : index
      %226 = vector.load %arg2[%c0_94, %c0_95, %c0_96] : memref<2x8x32xf32, #tpu.memory_space<vmem>>, vector<2x8x32xf32>
      %227 = vector.shape_cast %226 : vector<2x8x32xf32> to vector<16x32xf32>
      %c0_97 = arith.constant 0 : index
      %c0_98 = arith.constant 0 : index
      %228 = vector.load %arg5[%c0_97, %c0_98] : memref<32x32xf32, #tpu.memory_space<vmem>>, vector<32x32xf32>
      %cst_99 = arith.constant dense<0.000000e+00> : vector<16x32xf32>
      %229 = tpu.matmul %227, %228, %cst_99 {dimension_numbers = #tpu.dot_dimension_numbers<[1], [0], [0], [1], [0, 0, 1, 1], [], []>} : vector<16x32xf32>, vector<32x32xf32>, vector<16x32xf32> -> vector<16x32xf32>
      %c0_100 = arith.constant 0 : index
      %c0_101 = arith.constant 0 : index
      %230 = vector.load %arg6[%c0_100, %c0_101] : memref<1x32xf32, #tpu.memory_space<vmem>>, vector<1x32xf32>
      %231 = vector.broadcast %230 : vector<1x32xf32> to vector<16x32xf32>
      %232 = arith.addf %229, %231 : vector<16x32xf32>
      %233 = vector.shape_cast %232 : vector<16x32xf32> to vector<2x8x32xf32>
      %c0_102 = arith.constant 0 : index
      %c0_103 = arith.constant 0 : index
      %c0_104 = arith.constant 0 : index
      %234 = vector.load %arg3[%c0_102, %c0_103, %c0_104] : memref<2x16x8xf32, #tpu.memory_space<vmem>>, vector<2x16x8xf32>
      "tpu.trace_start"() <{level = 10 : i32, message = "btj,bjd->btd"}> : () -> ()
      %cst_105 = arith.constant dense<0.000000e+00> : vector<2x16x32xf32>
      %235 = tpu.matmul %234, %233, %cst_105 {dimension_numbers = #tpu.dot_dimension_numbers<[2], [1], [1], [2], [0, 0, 0, 1, 1, 2], [0], [0]>} : vector<2x16x8xf32>, vector<2x8x32xf32>, vector<2x16x32xf32> -> vector<2x16x32xf32>
      "tpu.trace_stop"() : () -> ()
      %c0_106 = arith.constant 0 : index
      %c0_107 = arith.constant 0 : index
      %c0_108 = arith.constant 0 : index
      %236 = vector.load %arg4[%c0_106, %c0_107, %c0_108] : memref<2x16x1xf32, #tpu.memory_space<vmem>>, vector<2x16x1xf32>
      %c0_109 = arith.constant 0 : index
      %c0_110 = arith.constant 0 : index
      %c0_111 = arith.constant 0 : index
      %237 = vector.load %arg7[%c0_109, %c0_110, %c0_111] : memref<1x1x32xf32, #tpu.memory_space<vmem>>, vector<1x1x32xf32>
      %238 = vector.broadcast %236 : vector<2x16x1xf32> to vector<2x16x32xf32>
      %239 = vector.broadcast %237 : vector<1x1x32xf32> to vector<2x16x32xf32>
      %240 = arith.mulf %238, %239 : vector<2x16x32xf32>
      %241 = arith.addf %235, %240 : vector<2x16x32xf32>
      %c0_112 = arith.constant 0 : index
      %c0_113 = arith.constant 0 : index
      %c0_114 = arith.constant 0 : index
      %242 = vector.load %arg8[%c0_112, %c0_113, %c0_114] : memref<1x16x32xf32, #tpu.memory_space<vmem>>, vector<1x16x32xf32>
      %243 = vector.broadcast %242 : vector<1x16x32xf32> to vector<2x16x32xf32>
      %244 = arith.addf %241, %243 : vector<2x16x32xf32>
      %c0_115 = arith.constant 0 : index
      %c0_116 = arith.constant 0 : index
      %c0_117 = arith.constant 0 : index
      %245 = vector.load %arg26[%c0_115, %c0_116, %c0_117] : memref<2x16x32xf32, #tpu.memory_space<vmem>>, vector<2x16x32xf32>
      tpu.vector_store %arg26[%c0_115, %c0_116, %c0_117], %244 {strides = array<i32>} : memref<2x16x32xf32, #tpu.memory_space<vmem>>, vector<2x16x32xf32>,
    } else {
    }
    %c0 = arith.constant 0 : index
    %c0_1 = arith.constant 0 : index
    %c0_2 = arith.constant 0 : index
    %3 = vector.load %arg26[%c0, %c0_1, %c0_2] : memref<2x16x32xf32, #tpu.memory_space<vmem>>, vector<2x16x32xf32>
    %c0_3 = arith.constant 0 : index
    %c0_4 = arith.constant 0 : index
    %c0_5 = arith.constant 0 : index
    %4 = vector.load %arg9[%c0_3, %c0_4, %c0_5] : memref<1x1x32xf32, #tpu.memory_space<vmem>>, vector<1x1x32xf32>
    %5 = vector.shape_cast %4 : vector<1x1x32xf32> to vector<1x32xf32>
    %c0_6 = arith.constant 0 : index
    %c0_7 = arith.constant 0 : index
    %c0_8 = arith.constant 0 : index
    %6 = vector.load %arg10[%c0_6, %c0_7, %c0_8] : memref<1x1x32xf32, #tpu.memory_space<vmem>>, vector<1x1x32xf32>
    %7 = vector.shape_cast %6 : vector<1x1x32xf32> to vector<1x32xf32>
    %c0_9 = arith.constant 0 : index
    %c0_10 = arith.constant 0 : index
    %c0_11 = arith.constant 0 : index
    %8 = vector.load %arg11[%c0_9, %c0_10, %c0_11] : memref<1x32x96xf32, #tpu.memory_space<vmem>>, vector<1x32x96xf32>
    %9 = vector.shape_cast %8 : vector<1x32x96xf32> to vector<32x96xf32>
    %c0_12 = arith.constant 0 : index
    %c0_13 = arith.constant 0 : index
    %c0_14 = arith.constant 0 : index
    %10 = vector.load %arg12[%c0_12, %c0_13, %c0_14] : memref<1x1x96xf32, #tpu.memory_space<vmem>>, vector<1x1x96xf32>
    %11 = vector.shape_cast %10 : vector<1x1x96xf32> to vector<1x96xf32>
    %c0_15 = arith.constant 0 : index
    %c0_16 = arith.constant 0 : index
    %c0_17 = arith.constant 0 : index
    %12 = vector.load %arg13[%c0_15, %c0_16, %c0_17] : memref<1x32x32xf32, #tpu.memory_space<vmem>>, vector<1x32x32xf32>
    %13 = vector.shape_cast %12 : vector<1x32x32xf32> to vector<32x32xf32>
    %c0_18 = arith.constant 0 : index
    %c0_19 = arith.constant 0 : index
    %c0_20 = arith.constant 0 : index
    %14 = vector.load %arg14[%c0_18, %c0_19, %c0_20] : memref<1x1x32xf32, #tpu.memory_space<vmem>>, vector<1x1x32xf32>
    %15 = vector.shape_cast %14 : vector<1x1x32xf32> to vector<1x32xf32>
    %c0_21 = arith.constant 0 : index
    %c0_22 = arith.constant 0 : index
    %c0_23 = arith.constant 0 : index
    %16 = vector.load %arg15[%c0_21, %c0_22, %c0_23] : memref<1x1x32xf32, #tpu.memory_space<vmem>>, vector<1x1x32xf32>
    %17 = vector.shape_cast %16 : vector<1x1x32xf32> to vector<1x32xf32>
    %c0_24 = arith.constant 0 : index
    %c0_25 = arith.constant 0 : index
    %c0_26 = arith.constant 0 : index
    %18 = vector.load %arg16[%c0_24, %c0_25, %c0_26] : memref<1x1x32xf32, #tpu.memory_space<vmem>>, vector<1x1x32xf32>
    %19 = vector.shape_cast %18 : vector<1x1x32xf32> to vector<1x32xf32>
    %c0_27 = arith.constant 0 : index
    %c0_28 = arith.constant 0 : index
    %c0_29 = arith.constant 0 : index
    %20 = vector.load %arg17[%c0_27, %c0_28, %c0_29] : memref<1x32x128xf32, #tpu.memory_space<vmem>>, vector<1x32x128xf32>
    %21 = vector.shape_cast %20 : vector<1x32x128xf32> to vector<32x128xf32>
    %c0_30 = arith.constant 0 : index
    %c0_31 = arith.constant 0 : index
    %c0_32 = arith.constant 0 : index
    %22 = vector.load %arg18[%c0_30, %c0_31, %c0_32] : memref<1x1x128xf32, #tpu.memory_space<vmem>>, vector<1x1x128xf32>
    %23 = vector.shape_cast %22 : vector<1x1x128xf32> to vector<1x128xf32>
    %c0_33 = arith.constant 0 : index
    %c0_34 = arith.constant 0 : index
    %c0_35 = arith.constant 0 : index
    %24 = vector.load %arg19[%c0_33, %c0_34, %c0_35] : memref<1x128x32xf32, #tpu.memory_space<vmem>>, vector<1x128x32xf32>
    %25 = vector.shape_cast %24 : vector<1x128x32xf32> to vector<128x32xf32>
    %c0_36 = arith.constant 0 : index
    %c0_37 = arith.constant 0 : index
    %c0_38 = arith.constant 0 : index
    %26 = vector.load %arg20[%c0_36, %c0_37, %c0_38] : memref<1x1x32xf32, #tpu.memory_space<vmem>>, vector<1x1x32xf32>
    %27 = vector.shape_cast %26 : vector<1x1x32xf32> to vector<1x32xf32>
    %cst = arith.constant dense<0.000000e+00> : vector<2x16xf32>
    %28 = vector.multi_reduction <add>, %3, %cst [2] : vector<2x16x32xf32> to vector<2x16xf32>
    %29 = vector.shape_cast %28 : vector<2x16xf32> to vector<2x16x1xf32>
    %cst_39 = arith.constant 3.200000e+01 : f32
    %30 = vector.broadcast %cst_39 : f32 to vector<2x16x1xf32>
    %31 = arith.divf %29, %30 : vector<2x16x1xf32>
    %32 = vector.broadcast %31 : vector<2x16x1xf32> to vector<2x16x32xf32>
    %33 = arith.subf %3, %32 : vector<2x16x32xf32>
    %34 = arith.mulf %33, %33 : vector<2x16x32xf32>
    %cst_40 = arith.constant dense<0.000000e+00> : vector<2x16xf32>
    %35 = vector.multi_reduction <add>, %34, %cst_40 [2] : vector<2x16x32xf32> to vector<2x16xf32>
    %36 = vector.shape_cast %35 : vector<2x16xf32> to vector<2x16x1xf32>
    %cst_41 = arith.constant 3.200000e+01 : f32
    %37 = vector.broadcast %cst_41 : f32 to vector<2x16x1xf32>
    %38 = arith.divf %36, %37 : vector<2x16x1xf32>
    %cst_42 = arith.constant 9.99999974E-6 : f32
    %39 = vector.broadcast %cst_42 : f32 to vector<2x16x1xf32>
    %40 = arith.addf %38, %39 : vector<2x16x1xf32>
    %41 = math.rsqrt %40 : vector<2x16x1xf32>
    %42 = vector.broadcast %41 : vector<2x16x1xf32> to vector<2x16x32xf32>
    %43 = arith.mulf %33, %42 : vector<2x16x32xf32>
    %44 = vector.shape_cast %5 : vector<1x32xf32> to vector<1x1x32xf32>
    %45 = vector.broadcast %44 : vector<1x1x32xf32> to vector<2x16x32xf32>
    %46 = arith.mulf %43, %45 : vector<2x16x32xf32>
    %47 = vector.shape_cast %7 : vector<1x32xf32> to vector<1x1x32xf32>
    %48 = vector.broadcast %47 : vector<1x1x32xf32> to vector<2x16x32xf32>
    %49 = arith.addf %46, %48 : vector<2x16x32xf32>
    %50 = vector.shape_cast %49 : vector<2x16x32xf32> to vector<32x32xf32>
    %cst_43 = arith.constant dense<0.000000e+00> : vector<32x96xf32>
    %51 = tpu.matmul %50, %9, %cst_43 {dimension_numbers = #tpu.dot_dimension_numbers<[1], [0], [0], [1], [0, 0, 1, 1], [], []>} : vector<32x32xf32>, vector<32x96xf32>, vector<32x96xf32> -> vector<32x96xf32>
    %52 = vector.broadcast %11 : vector<1x96xf32> to vector<32x96xf32>
    %53 = arith.addf %51, %52 : vector<32x96xf32>
    %54 = vector.shape_cast %53 : vector<32x96xf32> to vector<2x16x96xf32>
    %55 = tpu.iota {dimensions = array<i32: 1>} : vector<1x16xi32>
    %c9_i32 = arith.constant 9 : i32
    %56 = vector.broadcast %c9_i32 : i32 to vector<1x16xi32>
    %57 = arith.cmpi slt, %55, %56 : vector<1x16xi32>
    %58 = vector.extract_strided_slice %54 {offsets = [0, 0, 0], sizes = [2, 16, 8], strides = [1, 1, 1]} : vector<2x16x96xf32> to vector<2x16x8xf32>
    %cst_44 = arith.constant 0.353553385 : f32
    %59 = vector.broadcast %cst_44 : f32 to vector<2x16x8xf32>
    %60 = arith.mulf %58, %59 : vector<2x16x8xf32>
    %61 = vector.extract_strided_slice %54 {offsets = [0, 0, 32], sizes = [2, 16, 8], strides = [1, 1, 1]} : vector<2x16x96xf32> to vector<2x16x8xf32>
    %62 = vector.extract_strided_slice %54 {offsets = [0, 0, 64], sizes = [2, 16, 8], strides = [1, 1, 1]} : vector<2x16x96xf32> to vector<2x16x8xf32>
    "tpu.trace_start"() <{level = 10 : i32, message = "bqd,bkd->bqk"}> : () -> ()
    %cst_45 = arith.constant dense<0.000000e+00> : vector<2x16x16xf32>
    %63 = tpu.matmul %60, %61, %cst_45 {dimension_numbers = #tpu.dot_dimension_numbers<[2], [2], [1], [1], [0, 0, 0, 1, 1, 1], [0], [0]>} : vector<2x16x8xf32>, vector<2x16x8xf32>, vector<2x16x16xf32> -> vector<2x16x16xf32>
    %cst_46 = arith.constant -1.000000e+30 : f32
    "tpu.trace_stop"() : () -> ()
    %64 = vector.shape_cast %57 : vector<1x16xi1> to vector<1x1x16xi1>
    %65 = vector.broadcast %64 : vector<1x1x16xi1> to vector<2x16x16xi1>
    %66 = vector.broadcast %cst_46 : f32 to vector<2x16x16xf32>
    %67 = arith.select %65, %63, %66 : vector<2x16x16xi1>, vector<2x16x16xf32>
    %cst_47 = arith.constant dense<0xFF800000> : vector<2x16xf32>
    %68 = vector.multi_reduction <maximumf>, %67, %cst_47 [2] : vector<2x16x16xf32> to vector<2x16xf32>
    %69 = vector.shape_cast %68 : vector<2x16xf32> to vector<2x16x1xf32>
    %70 = vector.broadcast %69 : vector<2x16x1xf32> to vector<2x16x16xf32>
    %71 = arith.subf %67, %70 : vector<2x16x16xf32>
    %72 = math.exp %71 : vector<2x16x16xf32>
    %cst_48 = arith.constant dense<0.000000e+00> : vector<2x16xf32>
    %73 = vector.multi_reduction <add>, %72, %cst_48 [2] : vector<2x16x16xf32> to vector<2x16xf32>
    %74 = vector.shape_cast %73 : vector<2x16xf32> to vector<2x16x1xf32>
    %75 = tpu.reciprocal %74 {approx = true} : vector<2x16x1xf32> -> vector<2x16x1xf32>
    %76 = vector.broadcast %75 : vector<2x16x1xf32> to vector<2x16x16xf32>
    %77 = arith.mulf %72, %76 : vector<2x16x16xf32>
    "tpu.trace_start"() <{level = 10 : i32, message = "bqk,bkd->bqd"}> : () -> ()
    %cst_49 = arith.constant dense<0.000000e+00> : vector<2x16x8xf32>
    %78 = tpu.matmul %77, %62, %cst_49 {dimension_numbers = #tpu.dot_dimension_numbers<[2], [1], [1], [2], [0, 0, 0, 1, 1, 2], [0], [0]>} : vector<2x16x16xf32>, vector<2x16x8xf32>, vector<2x16x8xf32> -> vector<2x16x8xf32>
    "tpu.trace_stop"() : () -> ()
    %79 = vector.extract_strided_slice %54 {offsets = [0, 0, 8], sizes = [2, 16, 8], strides = [1, 1, 1]} : vector<2x16x96xf32> to vector<2x16x8xf32>
    %cst_50 = arith.constant 0.353553385 : f32
    %80 = vector.broadcast %cst_50 : f32 to vector<2x16x8xf32>
    %81 = arith.mulf %79, %80 : vector<2x16x8xf32>
    %82 = vector.extract_strided_slice %54 {offsets = [0, 0, 40], sizes = [2, 16, 8], strides = [1, 1, 1]} : vector<2x16x96xf32> to vector<2x16x8xf32>
    %83 = vector.extract_strided_slice %54 {offsets = [0, 0, 72], sizes = [2, 16, 8], strides = [1, 1, 1]} : vector<2x16x96xf32> to vector<2x16x8xf32>
    "tpu.trace_start"() <{level = 10 : i32, message = "bqd,bkd->bqk"}> : () -> ()
    %cst_51 = arith.constant dense<0.000000e+00> : vector<2x16x16xf32>
    %84 = tpu.matmul %81, %82, %cst_51 {dimension_numbers = #tpu.dot_dimension_numbers<[2], [2], [1], [1], [0, 0, 0, 1, 1, 1], [0], [0]>} : vector<2x16x8xf32>, vector<2x16x8xf32>, vector<2x16x16xf32> -> vector<2x16x16xf32>
    %cst_52 = arith.constant -1.000000e+30 : f32
    "tpu.trace_stop"() : () -> ()
    %85 = vector.shape_cast %57 : vector<1x16xi1> to vector<1x1x16xi1>
    %86 = vector.broadcast %85 : vector<1x1x16xi1> to vector<2x16x16xi1>
    %87 = vector.broadcast %cst_52 : f32 to vector<2x16x16xf32>
    %88 = arith.select %86, %84, %87 : vector<2x16x16xi1>, vector<2x16x16xf32>
    %cst_53 = arith.constant dense<0xFF800000> : vector<2x16xf32>
    %89 = vector.multi_reduction <maximumf>, %88, %cst_53 [2] : vector<2x16x16xf32> to vector<2x16xf32>
    %90 = vector.shape_cast %89 : vector<2x16xf32> to vector<2x16x1xf32>
    %91 = vector.broadcast %90 : vector<2x16x1xf32> to vector<2x16x16xf32>
    %92 = arith.subf %88, %91 : vector<2x16x16xf32>
    %93 = math.exp %92 : vector<2x16x16xf32>
    %cst_54 = arith.constant dense<0.000000e+00> : vector<2x16xf32>
    %94 = vector.multi_reduction <add>, %93, %cst_54 [2] : vector<2x16x16xf32> to vector<2x16xf32>
    %95 = vector.shape_cast %94 : vector<2x16xf32> to vector<2x16x1xf32>
    %96 = tpu.reciprocal %95 {approx = true} : vector<2x16x1xf32> -> vector<2x16x1xf32>
    %97 = vector.broadcast %96 : vector<2x16x1xf32> to vector<2x16x16xf32>
    %98 = arith.mulf %93, %97 : vector<2x16x16xf32>
    "tpu.trace_start"() <{level = 10 : i32, message = "bqk,bkd->bqd"}> : () -> ()
    %cst_55 = arith.constant dense<0.000000e+00> : vector<2x16x8xf32>
    %99 = tpu.matmul %98, %83, %cst_55 {dimension_numbers = #tpu.dot_dimension_numbers<[2], [1], [1], [2], [0, 0, 0, 1, 1, 2], [0], [0]>} : vector<2x16x16xf32>, vector<2x16x8xf32>, vector<2x16x8xf32> -> vector<2x16x8xf32>
    "tpu.trace_stop"() : () -> ()
    %100 = vector.extract_strided_slice %54 {offsets = [0, 0, 16], sizes = [2, 16, 8], strides = [1, 1, 1]} : vector<2x16x96xf32> to vector<2x16x8xf32>
    %cst_56 = arith.constant 0.353553385 : f32
    %101 = vector.broadcast %cst_56 : f32 to vector<2x16x8xf32>
    %102 = arith.mulf %100, %101 : vector<2x16x8xf32>
    %103 = vector.extract_strided_slice %54 {offsets = [0, 0, 48], sizes = [2, 16, 8], strides = [1, 1, 1]} : vector<2x16x96xf32> to vector<2x16x8xf32>
    %104 = vector.extract_strided_slice %54 {offsets = [0, 0, 80], sizes = [2, 16, 8], strides = [1, 1, 1]} : vector<2x16x96xf32> to vector<2x16x8xf32>
    "tpu.trace_start"() <{level = 10 : i32, message = "bqd,bkd->bqk"}> : () -> ()
    %cst_57 = arith.constant dense<0.000000e+00> : vector<2x16x16xf32>
    %105 = tpu.matmul %102, %103, %cst_57 {dimension_numbers = #tpu.dot_dimension_numbers<[2], [2], [1], [1], [0, 0, 0, 1, 1, 1], [0], [0]>} : vector<2x16x8xf32>, vector<2x16x8xf32>, vector<2x16x16xf32> -> vector<2x16x16xf32>
    %cst_58 = arith.constant -1.000000e+30 : f32
    "tpu.trace_stop"() : () -> ()
    %106 = vector.shape_cast %57 : vector<1x16xi1> to vector<1x1x16xi1>
    %107 = vector.broadcast %106 : vector<1x1x16xi1> to vector<2x16x16xi1>
    %108 = vector.broadcast %cst_58 : f32 to vector<2x16x16xf32>
    %109 = arith.select %107, %105, %108 : vector<2x16x16xi1>, vector<2x16x16xf32>
    %cst_59 = arith.constant dense<0xFF800000> : vector<2x16xf32>
    %110 = vector.multi_reduction <maximumf>, %109, %cst_59 [2] : vector<2x16x16xf32> to vector<2x16xf32>
    %111 = vector.shape_cast %110 : vector<2x16xf32> to vector<2x16x1xf32>
    %112 = vector.broadcast %111 : vector<2x16x1xf32> to vector<2x16x16xf32>
    %113 = arith.subf %109, %112 : vector<2x16x16xf32>
    %114 = math.exp %113 : vector<2x16x16xf32>
    %cst_60 = arith.constant dense<0.000000e+00> : vector<2x16xf32>
    %115 = vector.multi_reduction <add>, %114, %cst_60 [2] : vector<2x16x16xf32> to vector<2x16xf32>
    %116 = vector.shape_cast %115 : vector<2x16xf32> to vector<2x16x1xf32>
    %117 = tpu.reciprocal %116 {approx = true} : vector<2x16x1xf32> -> vector<2x16x1xf32>
    %118 = vector.broadcast %117 : vector<2x16x1xf32> to vector<2x16x16xf32>
    %119 = arith.mulf %114, %118 : vector<2x16x16xf32>
    "tpu.trace_start"() <{level = 10 : i32, message = "bqk,bkd->bqd"}> : () -> ()
    %cst_61 = arith.constant dense<0.000000e+00> : vector<2x16x8xf32>
    %120 = tpu.matmul %119, %104, %cst_61 {dimension_numbers = #tpu.dot_dimension_numbers<[2], [1], [1], [2], [0, 0, 0, 1, 1, 2], [0], [0]>} : vector<2x16x16xf32>, vector<2x16x8xf32>, vector<2x16x8xf32> -> vector<2x16x8xf32>
    "tpu.trace_stop"() : () -> ()
    %121 = vector.extract_strided_slice %54 {offsets = [0, 0, 24], sizes = [2, 16, 8], strides = [1, 1, 1]} : vector<2x16x96xf32> to vector<2x16x8xf32>
    %cst_62 = arith.constant 0.353553385 : f32
    %122 = vector.broadcast %cst_62 : f32 to vector<2x16x8xf32>
    %123 = arith.mulf %121, %122 : vector<2x16x8xf32>
    %124 = vector.extract_strided_slice %54 {offsets = [0, 0, 56], sizes = [2, 16, 8], strides = [1, 1, 1]} : vector<2x16x96xf32> to vector<2x16x8xf32>
    %125 = vector.extract_strided_slice %54 {offsets = [0, 0, 88], sizes = [2, 16, 8], strides = [1, 1, 1]} : vector<2x16x96xf32> to vector<2x16x8xf32>
    "tpu.trace_start"() <{level = 10 : i32, message = "bqd,bkd->bqk"}> : () -> ()
    %cst_63 = arith.constant dense<0.000000e+00> : vector<2x16x16xf32>
    %126 = tpu.matmul %123, %124, %cst_63 {dimension_numbers = #tpu.dot_dimension_numbers<[2], [2], [1], [1], [0, 0, 0, 1, 1, 1], [0], [0]>} : vector<2x16x8xf32>, vector<2x16x8xf32>, vector<2x16x16xf32> -> vector<2x16x16xf32>
    %cst_64 = arith.constant -1.000000e+30 : f32
    "tpu.trace_stop"() : () -> ()
    %127 = vector.shape_cast %57 : vector<1x16xi1> to vector<1x1x16xi1>
    %128 = vector.broadcast %127 : vector<1x1x16xi1> to vector<2x16x16xi1>
    %129 = vector.broadcast %cst_64 : f32 to vector<2x16x16xf32>
    %130 = arith.select %128, %126, %129 : vector<2x16x16xi1>, vector<2x16x16xf32>
    %cst_65 = arith.constant dense<0xFF800000> : vector<2x16xf32>
    %131 = vector.multi_reduction <maximumf>, %130, %cst_65 [2] : vector<2x16x16xf32> to vector<2x16xf32>
    %132 = vector.shape_cast %131 : vector<2x16xf32> to vector<2x16x1xf32>
    %133 = vector.broadcast %132 : vector<2x16x1xf32> to vector<2x16x16xf32>
    %134 = arith.subf %130, %133 : vector<2x16x16xf32>
    %135 = math.exp %134 : vector<2x16x16xf32>
    %cst_66 = arith.constant dense<0.000000e+00> : vector<2x16xf32>
    %136 = vector.multi_reduction <add>, %135, %cst_66 [2] : vector<2x16x16xf32> to vector<2x16xf32>
    %137 = vector.shape_cast %136 : vector<2x16xf32> to vector<2x16x1xf32>
    %138 = tpu.reciprocal %137 {approx = true} : vector<2x16x1xf32> -> vector<2x16x1xf32>
    %139 = vector.broadcast %138 : vector<2x16x1xf32> to vector<2x16x16xf32>
    %140 = arith.mulf %135, %139 : vector<2x16x16xf32>
    "tpu.trace_start"() <{level = 10 : i32, message = "bqk,bkd->bqd"}> : () -> ()
    %cst_67 = arith.constant dense<0.000000e+00> : vector<2x16x8xf32>
    %141 = tpu.matmul %140, %125, %cst_67 {dimension_numbers = #tpu.dot_dimension_numbers<[2], [1], [1], [2], [0, 0, 0, 1, 1, 2], [0], [0]>} : vector<2x16x16xf32>, vector<2x16x8xf32>, vector<2x16x8xf32> -> vector<2x16x8xf32>
    "tpu.trace_stop"() : () -> ()
    %142 = tpu.concatenate %78, %99, %120, %141 in 2 : vector<2x16x8xf32>, vector<2x16x8xf32>, vector<2x16x8xf32>, vector<2x16x8xf32> -> vector<2x16x32xf32>
    %143 = vector.shape_cast %142 : vector<2x16x32xf32> to vector<32x32xf32>
    %cst_68 = arith.constant dense<0.000000e+00> : vector<32x32xf32>
    %144 = tpu.matmul %143, %13, %cst_68 {dimension_numbers = #tpu.dot_dimension_numbers<[1], [0], [0], [1], [0, 0, 1, 1], [], []>} : vector<32x32xf32>, vector<32x32xf32>, vector<32x32xf32> -> vector<32x32xf32>
    %145 = vector.broadcast %15 : vector<1x32xf32> to vector<32x32xf32>
    %146 = arith.addf %144, %145 : vector<32x32xf32>
    %147 = vector.shape_cast %146 : vector<32x32xf32> to vector<2x16x32xf32>
    %148 = arith.addf %3, %147 : vector<2x16x32xf32>
    %cst_69 = arith.constant dense<0.000000e+00> : vector<2x16xf32>
    %149 = vector.multi_reduction <add>, %148, %cst_69 [2] : vector<2x16x32xf32> to vector<2x16xf32>
    %150 = vector.shape_cast %149 : vector<2x16xf32> to vector<2x16x1xf32>
    %cst_70 = arith.constant 3.200000e+01 : f32
    %151 = vector.broadcast %cst_70 : f32 to vector<2x16x1xf32>
    %152 = arith.divf %150, %151 : vector<2x16x1xf32>
    %153 = vector.broadcast %152 : vector<2x16x1xf32> to vector<2x16x32xf32>
    %154 = arith.subf %148, %153 : vector<2x16x32xf32>
    %155 = arith.mulf %154, %154 : vector<2x16x32xf32>
    %cst_71 = arith.constant dense<0.000000e+00> : vector<2x16xf32>
    %156 = vector.multi_reduction <add>, %155, %cst_71 [2] : vector<2x16x32xf32> to vector<2x16xf32>
    %157 = vector.shape_cast %156 : vector<2x16xf32> to vector<2x16x1xf32>
    %cst_72 = arith.constant 3.200000e+01 : f32
    %158 = vector.broadcast %cst_72 : f32 to vector<2x16x1xf32>
    %159 = arith.divf %157, %158 : vector<2x16x1xf32>
    %cst_73 = arith.constant 9.99999974E-6 : f32
    %160 = vector.broadcast %cst_73 : f32 to vector<2x16x1xf32>
    %161 = arith.addf %159, %160 : vector<2x16x1xf32>
    %162 = math.rsqrt %161 : vector<2x16x1xf32>
    %163 = vector.broadcast %162 : vector<2x16x1xf32> to vector<2x16x32xf32>
    %164 = arith.mulf %154, %163 : vector<2x16x32xf32>
    %165 = vector.shape_cast %17 : vector<1x32xf32> to vector<1x1x32xf32>
    %166 = vector.broadcast %165 : vector<1x1x32xf32> to vector<2x16x32xf32>
    %167 = arith.mulf %164, %166 : vector<2x16x32xf32>
    %168 = vector.shape_cast %19 : vector<1x32xf32> to vector<1x1x32xf32>
    %169 = vector.broadcast %168 : vector<1x1x32xf32> to vector<2x16x32xf32>
    %170 = arith.addf %167, %169 : vector<2x16x32xf32>
    %171 = vector.shape_cast %170 : vector<2x16x32xf32> to vector<32x32xf32>
    %cst_74 = arith.constant dense<0.000000e+00> : vector<32x128xf32>
    %172 = tpu.matmul %171, %21, %cst_74 {dimension_numbers = #tpu.dot_dimension_numbers<[1], [0], [0], [1], [0, 0, 1, 1], [], []>} : vector<32x32xf32>, vector<32x128xf32>, vector<32x128xf32> -> vector<32x128xf32>
    %173 = vector.broadcast %23 : vector<1x128xf32> to vector<32x128xf32>
    %174 = arith.addf %172, %173 : vector<32x128xf32>
    %cst_75 = arith.constant 5.000000e-01 : f32
    %175 = vector.broadcast %cst_75 : f32 to vector<32x128xf32>
    %176 = arith.mulf %175, %174 : vector<32x128xf32>
    %cst_76 = arith.constant 0.707106769 : f32
    %177 = vector.broadcast %cst_76 : f32 to vector<32x128xf32>
    %178 = arith.mulf %174, %177 : vector<32x128xf32>
    %179 = math.absf %178 : vector<32x128xf32>
    %cst_77 = arith.constant 0.327591091 : f32
    %180 = vector.broadcast %cst_77 : f32 to vector<32x128xf32>
    %181 = arith.mulf %180, %179 : vector<32x128xf32>
    %cst_78 = arith.constant 1.000000e+00 : f32
    %182 = vector.broadcast %cst_78 : f32 to vector<32x128xf32>
    %183 = arith.addf %182, %181 : vector<32x128xf32>
    %cst_79 = arith.constant 1.000000e+00 : f32
    %184 = vector.broadcast %cst_79 : f32 to vector<32x128xf32>
    %185 = arith.divf %184, %183 : vector<32x128xf32>
    %cst_80 = arith.constant 1.06140542 : f32
    %186 = vector.broadcast %cst_80 : f32 to vector<32x128xf32>
    %187 = arith.mulf %186, %185 : vector<32x128xf32>
    %cst_81 = arith.constant -1.45315206 : f32
    %188 = vector.broadcast %cst_81 : f32 to vector<32x128xf32>
    %189 = arith.addf %187, %188 : vector<32x128xf32>
    %190 = arith.mulf %189, %185 : vector<32x128xf32>
    %cst_82 = arith.constant 1.42141378 : f32
    %191 = vector.broadcast %cst_82 : f32 to vector<32x128xf32>
    %192 = arith.addf %190, %191 : vector<32x128xf32>
    %193 = arith.mulf %192, %185 : vector<32x128xf32>
    %cst_83 = arith.constant -0.284496725 : f32
    %194 = vector.broadcast %cst_83 : f32 to vector<32x128xf32>
    %195 = arith.addf %193, %194 : vector<32x128xf32>
    %196 = arith.mulf %195, %185 : vector<32x128xf32>
    %cst_84 = arith.constant 0.254829586 : f32
    %197 = vector.broadcast %cst_84 : f32 to vector<32x128xf32>
    %198 = arith.addf %196, %197 : vector<32x128xf32>
    %199 = arith.mulf %198, %185 : vector<32x128xf32>
    %cst_85 = arith.constant 0.000000e+00 : f32
    %200 = vector.broadcast %cst_85 : f32 to vector<32x128xf32>
    %201 = arith.subf %200, %179 : vector<32x128xf32>
    %202 = arith.mulf %201, %179 : vector<32x128xf32>
    %203 = math.exp %202 : vector<32x128xf32>
    %204 = arith.mulf %199, %203 : vector<32x128xf32>
    %cst_86 = arith.constant 1.000000e+00 : f32
    %205 = vector.broadcast %cst_86 : f32 to vector<32x128xf32>
    %206 = arith.subf %205, %204 : vector<32x128xf32>
    %cst_87 = arith.constant 0.000000e+00 : f32
    %207 = vector.broadcast %cst_87 : f32 to vector<32x128xf32>
    %208 = arith.cmpf oge, %178, %207 : vector<32x128xf32>
    %cst_88 = arith.constant 0.000000e+00 : f32
    %209 = vector.broadcast %cst_88 : f32 to vector<32x128xf32>
    %210 = arith.subf %209, %206 : vector<32x128xf32>
    %211 = arith.select %208, %206, %210 : vector<32x128xi1>, vector<32x128xf32>
    %cst_89 = arith.constant 1.000000e+00 : f32
    %212 = vector.broadcast %cst_89 : f32 to vector<32x128xf32>
    %213 = arith.addf %212, %211 : vector<32x128xf32>
    %214 = arith.mulf %176, %213 : vector<32x128xf32>
    %cst_90 = arith.constant dense<0.000000e+00> : vector<32x32xf32>
    %215 = tpu.matmul %214, %25, %cst_90 {dimension_numbers = #tpu.dot_dimension_numbers<[1], [0], [0], [1], [0, 0, 1, 1], [], []>} : vector<32x128xf32>, vector<128x32xf32>, vector<32x32xf32> -> vector<32x32xf32>
    %216 = vector.broadcast %27 : vector<1x32xf32> to vector<32x32xf32>
    %217 = arith.addf %215, %216 : vector<32x32xf32>
    %218 = vector.shape_cast %217 : vector<32x32xf32> to vector<2x16x32xf32>
    %219 = arith.addf %148, %218 : vector<2x16x32xf32>
    %c1_i32 = arith.constant 1 : i32
    %220 = arith.cmpi slt, %arg1, %c1_i32 : i32
    %221 = arith.extui %220 : i1 to i32
    %c0_i32_91 = arith.constant 0 : i32
    %222 = arith.cmpi ne, %221, %c0_i32_91 : i32
    scf.if %222 {
      %c0_94 = arith.constant 0 : index
      %c0_95 = arith.constant 0 : index
      %c0_96 = arith.constant 0 : index
      %226 = vector.load %arg26[%c0_94, %c0_95, %c0_96] : memref<2x16x32xf32, #tpu.memory_space<vmem>>, vector<2x16x32xf32>
      tpu.vector_store %arg26[%c0_94, %c0_95, %c0_96], %219 {strides = array<i32>} : memref<2x16x32xf32, #tpu.memory_space<vmem>>, vector<2x16x32xf32>,
    } else {
    }
    %c1_i32_92 = arith.constant 1 : i32
    %223 = arith.cmpi eq, %arg1, %c1_i32_92 : i32
    %224 = arith.extui %223 : i1 to i32
    %c0_i32_93 = arith.constant 0 : i32
    %225 = arith.cmpi ne, %224, %c0_i32_93 : i32
    scf.if %225 {
      %c0_94 = arith.constant 0 : index
      %c0_95 = arith.constant 0 : index
      %226 = vector.load %arg21[%c0_94, %c0_95] : memref<1x32xf32, #tpu.memory_space<vmem>>, vector<1x32xf32>
      %c0_96 = arith.constant 0 : index
      %c0_97 = arith.constant 0 : index
      %227 = vector.load %arg22[%c0_96, %c0_97] : memref<1x32xf32, #tpu.memory_space<vmem>>, vector<1x32xf32>
      %cst_98 = arith.constant dense<0.000000e+00> : vector<2x16xf32>
      %228 = vector.multi_reduction <add>, %219, %cst_98 [2] : vector<2x16x32xf32> to vector<2x16xf32>
      %229 = vector.shape_cast %228 : vector<2x16xf32> to vector<2x16x1xf32>
      %cst_99 = arith.constant 3.200000e+01 : f32
      %230 = vector.broadcast %cst_99 : f32 to vector<2x16x1xf32>
      %231 = arith.divf %229, %230 : vector<2x16x1xf32>
      %232 = vector.broadcast %231 : vector<2x16x1xf32> to vector<2x16x32xf32>
      %233 = arith.subf %219, %232 : vector<2x16x32xf32>
      %234 = arith.mulf %233, %233 : vector<2x16x32xf32>
      %cst_100 = arith.constant dense<0.000000e+00> : vector<2x16xf32>
      %235 = vector.multi_reduction <add>, %234, %cst_100 [2] : vector<2x16x32xf32> to vector<2x16xf32>
      %236 = vector.shape_cast %235 : vector<2x16xf32> to vector<2x16x1xf32>
      %cst_101 = arith.constant 3.200000e+01 : f32
      %237 = vector.broadcast %cst_101 : f32 to vector<2x16x1xf32>
      %238 = arith.divf %236, %237 : vector<2x16x1xf32>
      %cst_102 = arith.constant 9.99999974E-6 : f32
      %239 = vector.broadcast %cst_102 : f32 to vector<2x16x1xf32>
      %240 = arith.addf %238, %239 : vector<2x16x1xf32>
      %241 = math.rsqrt %240 : vector<2x16x1xf32>
      %242 = vector.broadcast %241 : vector<2x16x1xf32> to vector<2x16x32xf32>
      %243 = arith.mulf %233, %242 : vector<2x16x32xf32>
      %244 = vector.shape_cast %226 : vector<1x32xf32> to vector<1x1x32xf32>
      %245 = vector.broadcast %244 : vector<1x1x32xf32> to vector<2x16x32xf32>
      %246 = arith.mulf %243, %245 : vector<2x16x32xf32>
      %247 = vector.shape_cast %227 : vector<1x32xf32> to vector<1x1x32xf32>
      %248 = vector.broadcast %247 : vector<1x1x32xf32> to vector<2x16x32xf32>
      %249 = arith.addf %246, %248 : vector<2x16x32xf32>
      %250 = vector.shape_cast %249 : vector<2x16x32xf32> to vector<32x32xf32>
      %c0_103 = arith.constant 0 : index
      %c0_104 = arith.constant 0 : index
      %251 = vector.load %arg23[%c0_103, %c0_104] : memref<32x16xf32, #tpu.memory_space<vmem>>, vector<32x16xf32>
      %cst_105 = arith.constant dense<0.000000e+00> : vector<32x16xf32>
      %252 = tpu.matmul %250, %251, %cst_105 {dimension_numbers = #tpu.dot_dimension_numbers<[1], [0], [0], [1], [0, 0, 1, 1], [], []>} : vector<32x32xf32>, vector<32x16xf32>, vector<32x16xf32> -> vector<32x16xf32>
      %c0_106 = arith.constant 0 : index
      %c0_107 = arith.constant 0 : index
      %253 = vector.load %arg24[%c0_106, %c0_107] : memref<1x16xf32, #tpu.memory_space<vmem>>, vector<1x16xf32>
      %254 = vector.broadcast %253 : vector<1x16xf32> to vector<32x16xf32>
      %255 = arith.addf %252, %254 : vector<32x16xf32>
      %256 = vector.shape_cast %255 : vector<32x16xf32> to vector<2x16x16xf32>
      %c0_108 = arith.constant 0 : index
      %c0_109 = arith.constant 0 : index
      %c0_110 = arith.constant 0 : index
      %257 = vector.load %arg25[%c0_108, %c0_109, %c0_110] : memref<2x16x16xf32, #tpu.memory_space<vmem>>, vector<2x16x16xf32>
      tpu.vector_store %arg25[%c0_108, %c0_109, %c0_110], %256 {strides = array<i32>} : memref<2x16x16xf32, #tpu.memory_space<vmem>>, vector<2x16x16xf32>,
    } else {
    }
    return
  }
  func.func @transform_0(%arg0: i32, %arg1: i32) -> (i32, i32, i32) {
    %c0_i32 = arith.constant 0 : i32
    %c0_i32_0 = arith.constant 0 : i32
    %c0_i32_1 = arith.constant 0 : i32
    return %arg0, %c0_i32, %c0_i32_0 : i32, i32, i32
  }
  func.func @transform_1(%arg0: i32, %arg1: i32) -> (i32, i32, i32) {
    %c0_i32 = arith.constant 0 : i32
    %c0_i32_0 = arith.constant 0 : i32
    %c0_i32_1 = arith.constant 0 : i32
    return %arg0, %c0_i32, %c0_i32_0 : i32, i32, i32
  }
  func.func @transform_2(%arg0: i32, %arg1: i32) -> (i32, i32, i32) {
    %c0_i32 = arith.constant 0 : i32
    %c0_i32_0 = arith.constant 0 : i32
    %c0_i32_1 = arith.constant 0 : i32
    return %arg0, %c0_i32, %c0_i32_0 : i32, i32, i32
  }
  func.func @transform_3(%arg0: i32, %arg1: i32) -> (i32, i32) {
    %c0_i32 = arith.constant 0 : i32
    %c0_i32_0 = arith.constant 0 : i32
    %c0_i32_1 = arith.constant 0 : i32
    return %c0_i32, %c0_i32_0 : i32, i32
  }
  func.func @transform_4(%arg0: i32, %arg1: i32) -> (i32, i32) {
    %c0_i32 = arith.constant 0 : i32
    %c0_i32_0 = arith.constant 0 : i32
    %c0_i32_1 = arith.constant 0 : i32
    return %c0_i32, %c0_i32_0 : i32, i32
  }
  func.func @transform_5(%arg0: i32, %arg1: i32) -> (i32, i32, i32) {
    %c0_i32 = arith.constant 0 : i32
    %c0_i32_0 = arith.constant 0 : i32
    %c0_i32_1 = arith.constant 0 : i32
    %c0_i32_2 = arith.constant 0 : i32
    return %c0_i32, %c0_i32_0, %c0_i32_1 : i32, i32, i32
  }
  func.func @transform_6(%arg0: i32, %arg1: i32) -> (i32, i32, i32) {
    %c0_i32 = arith.constant 0 : i32
    %c0_i32_0 = arith.constant 0 : i32
    %c0_i32_1 = arith.constant 0 : i32
    %c0_i32_2 = arith.constant 0 : i32
    return %c0_i32, %c0_i32_0, %c0_i32_1 : i32, i32, i32
  }
  func.func @transform_7(%arg0: i32, %arg1: i32) -> (i32, i32, i32) {
    %c0_i32 = arith.constant 0 : i32
    %c0_i32_0 = arith.constant 0 : i32
    %c0_i32_1 = arith.constant 0 : i32
    return %arg1, %c0_i32, %c0_i32_0 : i32, i32, i32
  }
  func.func @transform_8(%arg0: i32, %arg1: i32) -> (i32, i32, i32) {
    %c0_i32 = arith.constant 0 : i32
    %c0_i32_0 = arith.constant 0 : i32
    %c0_i32_1 = arith.constant 0 : i32
    return %arg1, %c0_i32, %c0_i32_0 : i32, i32, i32
  }
  func.func @transform_9(%arg0: i32, %arg1: i32) -> (i32, i32, i32) {
    %c0_i32 = arith.constant 0 : i32
    %c0_i32_0 = arith.constant 0 : i32
    %c0_i32_1 = arith.constant 0 : i32
    return %arg1, %c0_i32, %c0_i32_0 : i32, i32, i32
  }
  func.func @transform_10(%arg0: i32, %arg1: i32) -> (i32, i32, i32) {
    %c0_i32 = arith.constant 0 : i32
    %c0_i32_0 = arith.constant 0 : i32
    %c0_i32_1 = arith.constant 0 : i32
    return %arg1, %c0_i32, %c0_i32_0 : i32, i32, i32
  }
  func.func @transform_11(%arg0: i32, %arg1: i32) -> (i32, i32, i32) {
    %c0_i32 = arith.constant 0 : i32
    %c0_i32_0 = arith.constant 0 : i32
    %c0_i32_1 = arith.constant 0 : i32
    return %arg1, %c0_i32, %c0_i32_0 : i32, i32, i32
  }
  func.func @transform_12(%arg0: i32, %arg1: i32) -> (i32, i32, i32) {
    %c0_i32 = arith.constant 0 : i32
    %c0_i32_0 = arith.constant 0 : i32
    %c0_i32_1 = arith.constant 0 : i32
    return %arg1, %c0_i32, %c0_i32_0 : i32, i32, i32
  }
  func.func @transform_13(%arg0: i32, %arg1: i32) -> (i32, i32, i32) {
    %c0_i32 = arith.constant 0 : i32
    %c0_i32_0 = arith.constant 0 : i32
    %c0_i32_1 = arith.constant 0 : i32
    return %arg1, %c0_i32, %c0_i32_0 : i32, i32, i32
  }
  func.func @transform_14(%arg0: i32, %arg1: i32) -> (i32, i32, i32) {
    %c0_i32 = arith.constant 0 : i32
    %c0_i32_0 = arith.constant 0 : i32
    %c0_i32_1 = arith.constant 0 : i32
    return %arg1, %c0_i32, %c0_i32_0 : i32, i32, i32
  }
  func.func @transform_15(%arg0: i32, %arg1: i32) -> (i32, i32, i32) {
    %c0_i32 = arith.constant 0 : i32
    %c0_i32_0 = arith.constant 0 : i32
    %c0_i32_1 = arith.constant 0 : i32
    return %arg1, %c0_i32, %c0_i32_0 : i32, i32, i32
  }
  func.func @transform_16(%arg0: i32, %arg1: i32) -> (i32, i32, i32) {
    %c0_i32 = arith.constant 0 : i32
    %c0_i32_0 = arith.constant 0 : i32
    %c0_i32_1 = arith.constant 0 : i32
    return %arg1, %c0_i32, %c0_i32_0 : i32, i32, i32
  }
  func.func @transform_17(%arg0: i32, %arg1: i32) -> (i32, i32, i32) {
    %c0_i32 = arith.constant 0 : i32
    %c0_i32_0 = arith.constant 0 : i32
    %c0_i32_1 = arith.constant 0 : i32
    return %arg1, %c0_i32, %c0_i32_0 : i32, i32, i32
  }
  func.func @transform_18(%arg0: i32, %arg1: i32) -> (i32, i32, i32) {
    %c0_i32 = arith.constant 0 : i32
    %c0_i32_0 = arith.constant 0 : i32
    %c0_i32_1 = arith.constant 0 : i32
    return %arg1, %c0_i32, %c0_i32_0 : i32, i32, i32
  }
  func.func @transform_19(%arg0: i32, %arg1: i32) -> (i32, i32) {
    %c0_i32 = arith.constant 0 : i32
    %c0_i32_0 = arith.constant 0 : i32
    %c0_i32_1 = arith.constant 0 : i32
    return %c0_i32, %c0_i32_0 : i32, i32
  }
  func.func @transform_20(%arg0: i32, %arg1: i32) -> (i32, i32) {
    %c0_i32 = arith.constant 0 : i32
    %c0_i32_0 = arith.constant 0 : i32
    %c0_i32_1 = arith.constant 0 : i32
    return %c0_i32, %c0_i32_0 : i32, i32
  }
  func.func @transform_21(%arg0: i32, %arg1: i32) -> (i32, i32) {
    %c0_i32 = arith.constant 0 : i32
    %c0_i32_0 = arith.constant 0 : i32
    %c0_i32_1 = arith.constant 0 : i32
    return %c0_i32, %c0_i32_0 : i32, i32
  }
  func.func @transform_22(%arg0: i32, %arg1: i32) -> (i32, i32) {
    %c0_i32 = arith.constant 0 : i32
    %c0_i32_0 = arith.constant 0 : i32
    %c0_i32_1 = arith.constant 0 : i32
    return %c0_i32, %c0_i32_0 : i32, i32
  }
  func.func @transform_23(%arg0: i32, %arg1: i32) -> (i32, i32, i32) {
    %c0_i32 = arith.constant 0 : i32
    %c0_i32_0 = arith.constant 0 : i32
    %c0_i32_1 = arith.constant 0 : i32
    return %arg0, %c0_i32, %c0_i32_0 : i32, i32, i32
  }
}

module attributes {stable_mosaic.version = 11 : i64} {
  func.func @_simsiam_head_kernel(%arg0: memref<4x32xf32, #tpu.memory_space<vmem>>, %arg1: memref<32x1024xf32, #tpu.memory_space<vmem>>, %arg2: memref<1x1024xf32, #tpu.memory_space<vmem>>, %arg3: memref<1x1024xf32, #tpu.memory_space<vmem>>, %arg4: memref<1024x32xf32, #tpu.memory_space<vmem>>, %arg5: memref<32x128xf32, #tpu.memory_space<vmem>>, %arg6: memref<1x128xf32, #tpu.memory_space<vmem>>, %arg7: memref<1x128xf32, #tpu.memory_space<vmem>>, %arg8: memref<128x32xf32, #tpu.memory_space<vmem>>, %arg9: memref<4x32xf32, #tpu.memory_space<vmem>>, %arg10: memref<4x32xf32, #tpu.memory_space<vmem>>) attributes {dimension_semantics = [], scalar_prefetch = 0 : i64, scratch_operands = 0 : i64, tpu.core_type = #tpu.core_type<tc>} {
    %c0 = arith.constant 0 : index
    %c0_0 = arith.constant 0 : index
    %0 = vector.load %arg0[%c0, %c0_0] : memref<4x32xf32, #tpu.memory_space<vmem>>, vector<4x32xf32>
    %1 = tpu.iota {dimensions = array<i32: 0>} : vector<4x1xi32>
    %c2_i32 = arith.constant 2 : i32
    %2 = vector.broadcast %c2_i32 : i32 to vector<4x1xi32>
    %3 = arith.cmpi slt, %1, %2 : vector<4x1xi32>
    %4 = arith.extui %3 : vector<4x1xi1> to vector<4x1xi32>
    %5 = arith.sitofp %4 : vector<4x1xi32> to vector<4x1xf32>
    %cst = arith.constant 1.000000e+00 : f32
    %6 = vector.broadcast %cst : f32 to vector<4x1xf32>
    %7 = arith.subf %6, %5 : vector<4x1xf32>
    %c0_1 = arith.constant 0 : index
    %c0_2 = arith.constant 0 : index
    %8 = vector.load %arg1[%c0_1, %c0_2] : memref<32x1024xf32, #tpu.memory_space<vmem>>, vector<32x1024xf32>
    %cst_3 = arith.constant dense<0.000000e+00> : vector<4x1024xf32>
    %9 = tpu.matmul %0, %8, %cst_3 {dimension_numbers = #tpu.dot_dimension_numbers<[1], [0], [0], [1], [0, 0, 1, 1], [], []>} : vector<4x32xf32>, vector<32x1024xf32>, vector<4x1024xf32> -> vector<4x1024xf32>
    %c0_4 = arith.constant 0 : index
    %c0_5 = arith.constant 0 : index
    %10 = vector.load %arg2[%c0_4, %c0_5] : memref<1x1024xf32, #tpu.memory_space<vmem>>, vector<1x1024xf32>
    %c0_6 = arith.constant 0 : index
    %c0_7 = arith.constant 0 : index
    %11 = vector.load %arg3[%c0_6, %c0_7] : memref<1x1024xf32, #tpu.memory_space<vmem>>, vector<1x1024xf32>
    %12 = vector.broadcast %5 : vector<4x1xf32> to vector<4x1024xf32>
    %13 = arith.mulf %9, %12 : vector<4x1024xf32>
    %cst_8 = arith.constant dense<0.000000e+00> : vector<1024xf32>
    %14 = vector.multi_reduction <add>, %13, %cst_8 [0] : vector<4x1024xf32> to vector<1024xf32>
    %15 = vector.shape_cast %14 : vector<1024xf32> to vector<1x1024xf32>
    %16 = vector.broadcast %15 : vector<1x1024xf32> to vector<4x1024xf32>
    %17 = vector.broadcast %5 : vector<4x1xf32> to vector<4x1024xf32>
    %18 = arith.mulf %16, %17 : vector<4x1024xf32>
    %19 = vector.broadcast %7 : vector<4x1xf32> to vector<4x1024xf32>
    %20 = arith.mulf %9, %19 : vector<4x1024xf32>
    %cst_9 = arith.constant dense<0.000000e+00> : vector<1024xf32>
    %21 = vector.multi_reduction <add>, %20, %cst_9 [0] : vector<4x1024xf32> to vector<1024xf32>
    %22 = vector.shape_cast %21 : vector<1024xf32> to vector<1x1024xf32>
    %23 = vector.broadcast %22 : vector<1x1024xf32> to vector<4x1024xf32>
    %24 = vector.broadcast %7 : vector<4x1xf32> to vector<4x1024xf32>
    %25 = arith.mulf %23, %24 : vector<4x1024xf32>
    %26 = arith.addf %18, %25 : vector<4x1024xf32>
    %cst_10 = arith.constant 5.000000e-01 : f32
    %27 = vector.broadcast %cst_10 : f32 to vector<4x1024xf32>
    %28 = arith.mulf %26, %27 : vector<4x1024xf32>
    %29 = arith.subf %9, %28 : vector<4x1024xf32>
    %30 = arith.mulf %29, %29 : vector<4x1024xf32>
    %31 = vector.broadcast %5 : vector<4x1xf32> to vector<4x1024xf32>
    %32 = arith.mulf %30, %31 : vector<4x1024xf32>
    %cst_11 = arith.constant dense<0.000000e+00> : vector<1024xf32>
    %33 = vector.multi_reduction <add>, %32, %cst_11 [0] : vector<4x1024xf32> to vector<1024xf32>
    %34 = vector.shape_cast %33 : vector<1024xf32> to vector<1x1024xf32>
    %35 = vector.broadcast %34 : vector<1x1024xf32> to vector<4x1024xf32>
    %36 = vector.broadcast %5 : vector<4x1xf32> to vector<4x1024xf32>
    %37 = arith.mulf %35, %36 : vector<4x1024xf32>
    %38 = arith.mulf %29, %29 : vector<4x1024xf32>
    %39 = vector.broadcast %7 : vector<4x1xf32> to vector<4x1024xf32>
    %40 = arith.mulf %38, %39 : vector<4x1024xf32>
    %cst_12 = arith.constant dense<0.000000e+00> : vector<1024xf32>
    %41 = vector.multi_reduction <add>, %40, %cst_12 [0] : vector<4x1024xf32> to vector<1024xf32>
    %42 = vector.shape_cast %41 : vector<1024xf32> to vector<1x1024xf32>
    %43 = vector.broadcast %42 : vector<1x1024xf32> to vector<4x1024xf32>
    %44 = vector.broadcast %7 : vector<4x1xf32> to vector<4x1024xf32>
    %45 = arith.mulf %43, %44 : vector<4x1024xf32>
    %46 = arith.addf %37, %45 : vector<4x1024xf32>
    %cst_13 = arith.constant 5.000000e-01 : f32
    %47 = vector.broadcast %cst_13 : f32 to vector<4x1024xf32>
    %48 = arith.mulf %46, %47 : vector<4x1024xf32>
    %cst_14 = arith.constant 9.99999974E-6 : f32
    %49 = vector.broadcast %cst_14 : f32 to vector<4x1024xf32>
    %50 = arith.addf %48, %49 : vector<4x1024xf32>
    %51 = math.rsqrt %50 : vector<4x1024xf32>
    %52 = arith.mulf %29, %51 : vector<4x1024xf32>
    %53 = vector.broadcast %10 : vector<1x1024xf32> to vector<4x1024xf32>
    %54 = arith.mulf %52, %53 : vector<4x1024xf32>
    %55 = vector.broadcast %11 : vector<1x1024xf32> to vector<4x1024xf32>
    %56 = arith.addf %54, %55 : vector<4x1024xf32>
    %cst_15 = arith.constant 0.000000e+00 : f32
    %57 = vector.broadcast %cst_15 : f32 to vector<4x1024xf32>
    %58 = arith.maximumf %56, %57 : vector<4x1024xf32>
    %c0_16 = arith.constant 0 : index
    %c0_17 = arith.constant 0 : index
    %59 = vector.load %arg4[%c0_16, %c0_17] : memref<1024x32xf32, #tpu.memory_space<vmem>>, vector<1024x32xf32>
    %cst_18 = arith.constant dense<0.000000e+00> : vector<4x32xf32>
    %60 = tpu.matmul %58, %59, %cst_18 {dimension_numbers = #tpu.dot_dimension_numbers<[1], [0], [0], [1], [0, 0, 1, 1], [], []>} : vector<4x1024xf32>, vector<1024x32xf32>, vector<4x32xf32> -> vector<4x32xf32>
    %61 = vector.broadcast %5 : vector<4x1xf32> to vector<4x32xf32>
    %62 = arith.mulf %60, %61 : vector<4x32xf32>
    %cst_19 = arith.constant dense<0.000000e+00> : vector<32xf32>
    %63 = vector.multi_reduction <add>, %62, %cst_19 [0] : vector<4x32xf32> to vector<32xf32>
    %64 = vector.shape_cast %63 : vector<32xf32> to vector<1x32xf32>
    %65 = vector.broadcast %64 : vector<1x32xf32> to vector<4x32xf32>
    %66 = vector.broadcast %5 : vector<4x1xf32> to vector<4x32xf32>
    %67 = arith.mulf %65, %66 : vector<4x32xf32>
    %68 = vector.broadcast %7 : vector<4x1xf32> to vector<4x32xf32>
    %69 = arith.mulf %60, %68 : vector<4x32xf32>
    %cst_20 = arith.constant dense<0.000000e+00> : vector<32xf32>
    %70 = vector.multi_reduction <add>, %69, %cst_20 [0] : vector<4x32xf32> to vector<32xf32>
    %71 = vector.shape_cast %70 : vector<32xf32> to vector<1x32xf32>
    %72 = vector.broadcast %71 : vector<1x32xf32> to vector<4x32xf32>
    %73 = vector.broadcast %7 : vector<4x1xf32> to vector<4x32xf32>
    %74 = arith.mulf %72, %73 : vector<4x32xf32>
    %75 = arith.addf %67, %74 : vector<4x32xf32>
    %cst_21 = arith.constant 5.000000e-01 : f32
    %76 = vector.broadcast %cst_21 : f32 to vector<4x32xf32>
    %77 = arith.mulf %75, %76 : vector<4x32xf32>
    %78 = arith.subf %60, %77 : vector<4x32xf32>
    %79 = arith.mulf %78, %78 : vector<4x32xf32>
    %80 = vector.broadcast %5 : vector<4x1xf32> to vector<4x32xf32>
    %81 = arith.mulf %79, %80 : vector<4x32xf32>
    %cst_22 = arith.constant dense<0.000000e+00> : vector<32xf32>
    %82 = vector.multi_reduction <add>, %81, %cst_22 [0] : vector<4x32xf32> to vector<32xf32>
    %83 = vector.shape_cast %82 : vector<32xf32> to vector<1x32xf32>
    %84 = vector.broadcast %83 : vector<1x32xf32> to vector<4x32xf32>
    %85 = vector.broadcast %5 : vector<4x1xf32> to vector<4x32xf32>
    %86 = arith.mulf %84, %85 : vector<4x32xf32>
    %87 = arith.mulf %78, %78 : vector<4x32xf32>
    %88 = vector.broadcast %7 : vector<4x1xf32> to vector<4x32xf32>
    %89 = arith.mulf %87, %88 : vector<4x32xf32>
    %cst_23 = arith.constant dense<0.000000e+00> : vector<32xf32>
    %90 = vector.multi_reduction <add>, %89, %cst_23 [0] : vector<4x32xf32> to vector<32xf32>
    %91 = vector.shape_cast %90 : vector<32xf32> to vector<1x32xf32>
    %92 = vector.broadcast %91 : vector<1x32xf32> to vector<4x32xf32>
    %93 = vector.broadcast %7 : vector<4x1xf32> to vector<4x32xf32>
    %94 = arith.mulf %92, %93 : vector<4x32xf32>
    %95 = arith.addf %86, %94 : vector<4x32xf32>
    %cst_24 = arith.constant 5.000000e-01 : f32
    %96 = vector.broadcast %cst_24 : f32 to vector<4x32xf32>
    %97 = arith.mulf %95, %96 : vector<4x32xf32>
    %cst_25 = arith.constant 9.99999974E-6 : f32
    %98 = vector.broadcast %cst_25 : f32 to vector<4x32xf32>
    %99 = arith.addf %97, %98 : vector<4x32xf32>
    %100 = math.rsqrt %99 : vector<4x32xf32>
    %101 = arith.mulf %78, %100 : vector<4x32xf32>
    %c0_26 = arith.constant 0 : index
    %c0_27 = arith.constant 0 : index
    %102 = vector.load %arg9[%c0_26, %c0_27] : memref<4x32xf32, #tpu.memory_space<vmem>>, vector<4x32xf32>
    tpu.vector_store %arg9[%c0_26, %c0_27], %101 {strides = array<i32>} : memref<4x32xf32, #tpu.memory_space<vmem>>, vector<4x32xf32>,
    %c0_28 = arith.constant 0 : index
    %c0_29 = arith.constant 0 : index
    %103 = vector.load %arg5[%c0_28, %c0_29] : memref<32x128xf32, #tpu.memory_space<vmem>>, vector<32x128xf32>
    %cst_30 = arith.constant dense<0.000000e+00> : vector<4x128xf32>
    %104 = tpu.matmul %101, %103, %cst_30 {dimension_numbers = #tpu.dot_dimension_numbers<[1], [0], [0], [1], [0, 0, 1, 1], [], []>} : vector<4x32xf32>, vector<32x128xf32>, vector<4x128xf32> -> vector<4x128xf32>
    %c0_31 = arith.constant 0 : index
    %c0_32 = arith.constant 0 : index
    %105 = vector.load %arg6[%c0_31, %c0_32] : memref<1x128xf32, #tpu.memory_space<vmem>>, vector<1x128xf32>
    %c0_33 = arith.constant 0 : index
    %c0_34 = arith.constant 0 : index
    %106 = vector.load %arg7[%c0_33, %c0_34] : memref<1x128xf32, #tpu.memory_space<vmem>>, vector<1x128xf32>
    %107 = vector.broadcast %5 : vector<4x1xf32> to vector<4x128xf32>
    %108 = arith.mulf %104, %107 : vector<4x128xf32>
    %cst_35 = arith.constant dense<0.000000e+00> : vector<128xf32>
    %109 = vector.multi_reduction <add>, %108, %cst_35 [0] : vector<4x128xf32> to vector<128xf32>
    %110 = vector.shape_cast %109 : vector<128xf32> to vector<1x128xf32>
    %111 = vector.broadcast %110 : vector<1x128xf32> to vector<4x128xf32>
    %112 = vector.broadcast %5 : vector<4x1xf32> to vector<4x128xf32>
    %113 = arith.mulf %111, %112 : vector<4x128xf32>
    %114 = vector.broadcast %7 : vector<4x1xf32> to vector<4x128xf32>
    %115 = arith.mulf %104, %114 : vector<4x128xf32>
    %cst_36 = arith.constant dense<0.000000e+00> : vector<128xf32>
    %116 = vector.multi_reduction <add>, %115, %cst_36 [0] : vector<4x128xf32> to vector<128xf32>
    %117 = vector.shape_cast %116 : vector<128xf32> to vector<1x128xf32>
    %118 = vector.broadcast %117 : vector<1x128xf32> to vector<4x128xf32>
    %119 = vector.broadcast %7 : vector<4x1xf32> to vector<4x128xf32>
    %120 = arith.mulf %118, %119 : vector<4x128xf32>
    %121 = arith.addf %113, %120 : vector<4x128xf32>
    %cst_37 = arith.constant 5.000000e-01 : f32
    %122 = vector.broadcast %cst_37 : f32 to vector<4x128xf32>
    %123 = arith.mulf %121, %122 : vector<4x128xf32>
    %124 = arith.subf %104, %123 : vector<4x128xf32>
    %125 = arith.mulf %124, %124 : vector<4x128xf32>
    %126 = vector.broadcast %5 : vector<4x1xf32> to vector<4x128xf32>
    %127 = arith.mulf %125, %126 : vector<4x128xf32>
    %cst_38 = arith.constant dense<0.000000e+00> : vector<128xf32>
    %128 = vector.multi_reduction <add>, %127, %cst_38 [0] : vector<4x128xf32> to vector<128xf32>
    %129 = vector.shape_cast %128 : vector<128xf32> to vector<1x128xf32>
    %130 = vector.broadcast %129 : vector<1x128xf32> to vector<4x128xf32>
    %131 = vector.broadcast %5 : vector<4x1xf32> to vector<4x128xf32>
    %132 = arith.mulf %130, %131 : vector<4x128xf32>
    %133 = arith.mulf %124, %124 : vector<4x128xf32>
    %134 = vector.broadcast %7 : vector<4x1xf32> to vector<4x128xf32>
    %135 = arith.mulf %133, %134 : vector<4x128xf32>
    %cst_39 = arith.constant dense<0.000000e+00> : vector<128xf32>
    %136 = vector.multi_reduction <add>, %135, %cst_39 [0] : vector<4x128xf32> to vector<128xf32>
    %137 = vector.shape_cast %136 : vector<128xf32> to vector<1x128xf32>
    %138 = vector.broadcast %137 : vector<1x128xf32> to vector<4x128xf32>
    %139 = vector.broadcast %7 : vector<4x1xf32> to vector<4x128xf32>
    %140 = arith.mulf %138, %139 : vector<4x128xf32>
    %141 = arith.addf %132, %140 : vector<4x128xf32>
    %cst_40 = arith.constant 5.000000e-01 : f32
    %142 = vector.broadcast %cst_40 : f32 to vector<4x128xf32>
    %143 = arith.mulf %141, %142 : vector<4x128xf32>
    %cst_41 = arith.constant 9.99999974E-6 : f32
    %144 = vector.broadcast %cst_41 : f32 to vector<4x128xf32>
    %145 = arith.addf %143, %144 : vector<4x128xf32>
    %146 = math.rsqrt %145 : vector<4x128xf32>
    %147 = arith.mulf %124, %146 : vector<4x128xf32>
    %148 = vector.broadcast %105 : vector<1x128xf32> to vector<4x128xf32>
    %149 = arith.mulf %147, %148 : vector<4x128xf32>
    %150 = vector.broadcast %106 : vector<1x128xf32> to vector<4x128xf32>
    %151 = arith.addf %149, %150 : vector<4x128xf32>
    %cst_42 = arith.constant 0.000000e+00 : f32
    %152 = vector.broadcast %cst_42 : f32 to vector<4x128xf32>
    %153 = arith.maximumf %151, %152 : vector<4x128xf32>
    %c0_43 = arith.constant 0 : index
    %c0_44 = arith.constant 0 : index
    %154 = vector.load %arg8[%c0_43, %c0_44] : memref<128x32xf32, #tpu.memory_space<vmem>>, vector<128x32xf32>
    %cst_45 = arith.constant dense<0.000000e+00> : vector<4x32xf32>
    %155 = tpu.matmul %153, %154, %cst_45 {dimension_numbers = #tpu.dot_dimension_numbers<[1], [0], [0], [1], [0, 0, 1, 1], [], []>} : vector<4x128xf32>, vector<128x32xf32>, vector<4x32xf32> -> vector<4x32xf32>
    %c0_46 = arith.constant 0 : index
    %c0_47 = arith.constant 0 : index
    %156 = vector.load %arg10[%c0_46, %c0_47] : memref<4x32xf32, #tpu.memory_space<vmem>>, vector<4x32xf32>
    tpu.vector_store %arg10[%c0_46, %c0_47], %155 {strides = array<i32>} : memref<4x32xf32, #tpu.memory_space<vmem>>, vector<4x32xf32>,
    return
  }
}

</mosaic_0001>

<bundles_post_ra>
// kernel: mae_forward.6
= control target key start
LH: loop header
LB: loop body
LE: loop exit
PB: predicated region body
PF: predicated region fallthrough
CT: control target
= control target key end

     0   :  { %s112_s0 = inlined_call_operand.vmem [shape: f32[16,16], index: 0, kind: input, shape index: {}]   ;;  %s113_s1 = inlined_call_operand.vmem [shape: f32[16,16], index: 1, kind: input, shape index: {}]   ;;  %s114_s2 = inlined_call_operand.hbm [shape: f32[1,1], index: 2, kind: output, shape index: {}]  }
   0x1   :  { %v12_v0 = vld [vmem:[%s112_s0] sm:$0xff]  ;;  %v13_v1 = vld [vmem:[%s112_s0 + $0x8] sm:$0xff] }
   0x2   :  { %v14_v2 = vld [vmem:[%s113_s1] sm:$0xff]  ;;  %v15_v3 = vld [vmem:[%s113_s1 + $0x8] sm:$0xff] }
   0x3   :  { %v16_v4 = vsub.f32 %v12_v0, %v14_v2 }
   0x4   :  { %7 = vsyncpa [#allocation3], 0  ;;  %v17_v5 = vsub.f32 %v13_v1, %v15_v3  ;;  %vm20_vm0 = vcmask 130048   ;;  %s81_s0 = smov [#allocation2]   ;;  %s43_s19 = sshll.u32 %s114_s2, 4  ;;  %vm34_vm1 = vcmask 0   ;;  %s44_s19 = int_to_ptr.hbm [resolvable:$true] %s43_s19 }
   0x5   :  { %v18_v6 = vmul.f32 %v16_v4, %v16_v4  ;;  %s41_s1 = sshll.u32 %s81_s0, 4  ;;  %s42_s1 = int_to_ptr.vmem [resolvable:$true] %s41_s1 }
   0x6   :  { %v19_v7 = vmul.f32 %v17_v5, %v17_v5 }
   0x7   :  { %v21_v8 = vsel %vm20_vm0, %v18_v6, 0.0 }
   0x8   :  { %v22_v9 = vsel %vm20_vm0, %v19_v7, 0.0 }
   0x9   :  { %v23_v10 = vadd.f32 %v22_v9, %v21_v8 }
   0xb   :  { %24 = vadd.xlane.f32.xlu0 %v23_v10 }
  0x7e   :  { %v25_v11 = vpop.xlane.xlu0 %24 }
  0x7f   :  { %v26_v12 = vrot.slane %v25_v11, 4 }
  0x81   :  { %v27_v13 = vadd.f32 %v26_v12, %v25_v11 }
  0x83   :  { %v28_v14 = vrot.slane %v27_v13, 2 }
  0x85   :  { %v29_v15 = vadd.f32 %v28_v14, %v27_v13 }
  0x87   :  { %v30_v16 = vrot.slane %v29_v15, 1 }
  0x89   :  { %v31_v17 = vadd.f32 %v30_v16, %v29_v15 }
  0x8b   :  { %52 = vpush %v31_v17 }
  0xbc   :  { %s53_s20 = spop %52 }
  0xbd   :  { %v33_v18 = vstv %s53_s20 }
  0xbe   :  { %35 = vst.msk [vmem:[#allocation2] sm:$0x1] %vm34_vm1, %v33_v18 }
  0xbf   :  { %46 = dma.vmem_to_hbm [thread:$0]  %s42_s1, 16, %s44_s19, [#allocation3]  }
  0xc0   :  { %79 = dma.done.wait [#allocation3], 16  }
  0xc1   :  { %80 = vsyncadd [#allocation3], 4294967280 }
  0xc2   :  { %51 = vsyncpa [#allocation3], 1 }

// kernel: mae_forward.4
= control target key start
LH: loop header
LB: loop body
LE: loop exit
PB: predicated region body
PF: predicated region fallthrough
CT: control target
= control target key end

     0   :  { %s3504_s22 = smov 0   ;;  %s3506_s23 = smov 0   ;;  %s4223_s0 = inlined_call_operand.vmem [shape: f32[4,8,16], index: 0, kind: input, shape index: {}]   ;;  %s4224_s1 = inlined_call_operand.vmem [shape: f32[4,8,8], index: 1, kind: input, shape index: {}]   ;;  %s4225_s2 = inlined_call_operand.vmem [shape: f32[16,32], index: 2, kind: input, shape index: {}]   ;;  %s4226_s3 = inlined_call_operand.vmem [shape: f32[1,32], index: 3, kind: input, shape index: {}]   ;;  %s4227_s4 = inlined_call_operand.vmem [shape: f32[1,8,32], index: 4, kind: input, shape index: {}]   ;;  %s4228_s5 = inlined_call_operand.vmem [shape: f32[1,8,32], index: 5, kind: input, shape index: {}]   ;;  %s4229_s6 = inlined_call_operand.vmem [shape: f32[2,1,32], index: 6, kind: input, shape index: {}]   ;;  %s4230_s7 = inlined_call_operand.vmem [shape: f32[2,1,32], index: 7, kind: input, shape index: {}]   ;;  %s4231_s8 = inlined_call_operand.vmem [shape: f32[2,32,96], index: 8, kind: input, shape index: {}]   ;;  %s4232_s9 = inlined_call_operand.vmem [shape: f32[2,1,96], index: 9, kind: input, shape index: {}]   ;;  %s4233_s10 = inlined_call_operand.vmem [shape: f32[2,32,32], index: 10, kind: input, shape index: {}]   ;;  %s4234_s11 = inlined_call_operand.vmem [shape: f32[2,1,32], index: 11, kind: input, shape index: {}]   ;;  %s4235_s12 = inlined_call_operand.vmem [shape: f32[2,1,32], index: 12, kind: input, shape index: {}]   ;;  %s4236_s13 = inlined_call_operand.vmem [shape: f32[2,1,32], index: 13, kind: input, shape index: {}]   ;;  %s4237_s14 = inlined_call_operand.vmem [shape: f32[2,32,128], index: 14, kind: input, shape index: {}]   ;;  %s4238_s15 = inlined_call_operand.vmem [shape: f32[2,1,128], index: 15, kind: input, shape index: {}]   ;;  %s4239_s16 = inlined_call_operand.vmem [shape: f32[2,128,32], index: 16, kind: input, shape index: {}]   ;;  %s4240_s17 = inlined_call_operand.vmem [shape: f32[2,1,32], index: 17, kind: input, shape index: {}]   ;;  %s4241_s18 = inlined_call_operand.vmem [shape: f32[1,32], index: 18, kind: input, shape index: {}]   ;;  %s4242_s19 = inlined_call_operand.vmem [shape: f32[1,32], index: 19, kind: input, shape index: {}]   ;;  %s4243_s20 = inlined_call_operand.vmem [shape: f32[4,8,32], index: 20, kind: output, shape index: {}]  }
   0x1   :  { %4250 = sst [smem:[#allocation6_spill]] %s4223_s0 }
   0x2   :  { %4251 = sst [smem:[#allocation7_spill]] %s4224_s1  ;;  %s3502_s1 = smov 0  }
   0x3   :  { %4252 = sst [smem:[#allocation8_spill]] %s4225_s2 }
   0x4   :  { %4253 = sst [smem:[#allocation9_spill]] %s4226_s3 }
   0x5   :  { %4254 = sst [smem:[#allocation10_spill]] %s4227_s4 }
   0x6   :  { %4255 = sst [smem:[#allocation11_spill]] %s4230_s7 }
   0x7   :  { %4256 = sst [smem:[#allocation12_spill]] %s4231_s8 }
   0x8   :  { %4257 = sst [smem:[#allocation13_spill]] %s4233_s10 }
   0x9   :  { %4258 = sst [smem:[#allocation14_spill]] %s4241_s18 }
   0xa   :  { %4259 = sst [smem:[#allocation15_spill]] %s4242_s19 }
   0xb LB: > { %4260 = sst [smem:[#allocation2_spill]] %s3376_s22  ;;  %s39_s24 = sadd.s32 1, %s3376_s22  ;;  %s3380_s23 = sphi %s3506_s23, %s30_s23   ;;  %s3376_s22 = sphi %s3504_s22, %s4284_s22   ;;  %s3372_s1 = sphi %s3502_s1, %s4283_s1  }
   0xc   : > { %4261 = sst [smem:[#allocation3_spill]] %s3380_s23  ;;  %p3060_p0 = scmp.ge.s32.totalorder %s3380_s23, 1 }
   0xd   : > { %p40_p1 = scmp.ge.s32.totalorder %s39_s24, 2  ;;  %p690_p2 = scmp.lt.s32.totalorder %s3380_s23, 3 }
   0xf   : > { %s4286_s24 = smov (%p40_p1, %s39_s24), 0  ;;  %p691_p3 = pnand %p3060_p0, %p690_p2 }
  0x10   : > { %4262 = sst [smem:[#allocation4_spill]] %s4286_s24 }
  0x11   : > { %694 = sbr.rel (%p691_p3) target bundleno = 3792 (0xed0), region = 100 }
  0x16   : > { %p809_p4 = scmp.lt.s32.totalorder %s3372_s1, 1  ;;  %s4264_s8 = sld [smem:[#allocation12_spill]] }
  0x17   : > { %s4265_s10 = sld [smem:[#allocation13_spill]]  ;;  %p3069_p5 = scmp.ne.s32.totalorder %s3372_s1, 0 }
  0x18   : > { %s3524_s2 = scalar_select %p809_p4, %s3372_s1, 1 }
  0x19   : > { %s4267_s25 = sld [smem:[#allocation8_spill]] (!%p3069_p5) }
  0x1a   : > { %s3144_s29 = sshll.u32 %s3524_s2, 5  ;;  %s833_s7 = scalar_lea.vmem %s4235_s12, %s3524_s2 }
  0x1b   : > { %s836_s21 = scalar_lea.vmem %s4236_s13, %s3524_s2  ;;  %862 = sbr.rel (%p3069_p5) target bundleno = 310 (0x136), region = 104 }
  0x1c   : > { %s3542_s24 = scalar_lea.vmem %s4264_s8, %s3144_s29  ;;  %s3564_s8 = scalar_lea.vmem %s4237_s14, %s3144_s29 }
  0x1d   : > { %s3547_s19 = scalar_lea.vmem %s4265_s10, %s3144_s29  ;;  %s4268_s18 = sld [smem:[#allocation6_spill]] (!%p3069_p5) }
  0x1e   : > { %4266 = sst [smem:[#allocation5_spill]] %s3547_s19  ;;  %s3147_s19 = sshll.u32 %s3524_s2, 7 }
  0x1f   : > { %s3574_s27 = scalar_lea.vmem %s4239_s16, %s3147_s19  ;;  %s4269_s19 = sld [smem:[#allocation9_spill]] (!%p3069_p5) }
  0x20   : > { %v868_v0 = vld [vmem:[%s4267_s25 + $0x8] sm:$0xff]  ;;  %v867_v1 = vld [vmem:[%s4267_s25] sm:$0xff]  ;;  %vm873_vm0 = vcmask 130048   ;;  %s4270_s30 = sld [smem:[#allocation10_spill]]  ;;  %vm925_vm1 = vcmask 64512   ;;  %vm1018_vm2 = vcmask 261120  }
  0x21   : > { %900 = vmatpush.msra.mxu0 %v868_v0  ;;  %3148 = vmatpush.msra.mxu2 %v868_v0  ;;  %s4271_s10 = sld [smem:[#allocation7_spill]]  ;;  %v924_v24 = vld [vmem:[%s4228_s5] sm:$0xff] }
  0x22   : > { %3149 = vmatpush.msra.mxu3 %v868_v0 }
  0x23   : > { %v863_v2 = vld [vmem:[%s4268_s18] sm:$0xff]  ;;  %v865_v3 = vld [vmem:[%s4268_s18 + $0x10] sm:$0xff]  ;;  %901 = vmatpush.msra.mxu0 %v867_v1  ;;  %3150 = vmatpush.msra.mxu2 %v867_v1  ;;  %v866_v4 = vld [vmem:[%s4268_s18 + $0x18] sm:$0xff] }
  0x24   : > { %3070 = vmatmul.msk.f32.vlgmr.msra.gmra.mxu0 %vm873_vm0, %v863_v2  ;;  %3072 = vmatmul.msk.f32.vlgmr.msra.gmra.mxu2 %vm873_vm0, %v865_v3  ;;  %v864_v5 = vld [vmem:[%s4268_s18 + $0x8] sm:$0xff] }
  0x25   : > { %3151 = vmatpush.msra.mxu3 %v867_v1  ;;  %v3207_v6 = vld [vmem:[%s4269_s19] ss:$0 sm:$0xff] }
  0x26   : > { %3073 = vmatmul.msk.f32.vlgmr.msra.gmra.mxu3 %vm873_vm0, %v866_v4  ;;  %v915_v8 = vld [vmem:[%s4270_s30] sm:$0xff] }
  0x27   : > { %v920_v11 = vld [vmem:[%s4271_s10] sm:$0xff]  ;;  %v922_v19 = vld [vmem:[%s4271_s10 + $0x10] sm:$0xff]  ;;  %v921_v22 = vld [vmem:[%s4271_s10 + $0x8] sm:$0xff] }
  0x28   : > { %v923_v23 = vld [vmem:[%s4271_s10 + $0x18] sm:$0xff] }
  0x2c   : > { %3071 = vmatmul.msk.f32.gmra.mxu0 %vm873_vm0, %v864_v5 }
  0xa1   : > { %v903_v7 = vpop.f32.mrf.mxu0 }
  0xa2   : > { %v904_v9 = vadd.f32 %v3207_v6, %v903_v7 }
  0xa4   : > { %v916_v10 = vadd.f32 %v915_v8, %v904_v9 }
  0xa6   : > { %944 = vmatpush.msra.mxu1 %v916_v10 }
  0xa7   : > { %v909_v12 = vpop.f32.mrf.mxu2  ;;  %3074 = vmatmul.msk.f32.vlgmr.msra.gmra.mxu1 %vm925_vm1, %v920_v11 }
  0xa8   : > { %v910_v13 = vadd.f32 %v3207_v6, %v909_v12 }
  0xa9   : > { %v906_v14 = vpop.f32.mrf.mxu0  ;;  %v912_v15 = vpop.f32.mrf.mxu3 }
  0xaa   : > { %v907_v16 = vadd.f32 %v3207_v6, %v906_v14  ;;  %v918_v17 = vadd.f32 %v915_v8, %v910_v13  ;;  %v913_v18 = vadd.f32 %v3207_v6, %v912_v15 }
  0xac   : > { %v917_v20 = vadd.f32 %v915_v8, %v907_v16  ;;  %990 = vmatpush.msrb.mxu3 %v918_v17  ;;  %v919_v21 = vadd.f32 %v915_v8, %v913_v18 }
  0xad   : > { %3076 = vmatmul.msk.f32.vlgmr.msrb.gmra.mxu3 %vm925_vm1, %v922_v19 }
  0xae   : > { %967 = vmatpush.msrb.mxu2 %v917_v20  ;;  %1013 = vmatpush.msrb.mxu1 %v919_v21 }
  0xaf   : > { %3075 = vmatmul.msk.f32.vlgmr.msrb.gmra.mxu2 %vm925_vm1, %v921_v22  ;;  %3077 = vmatmul.msk.f32.vlgmr.msrb.gmra.mxu1 %vm925_vm1, %v923_v23 }
 0x124   : > { %v946_v25 = vpop.f32.mrf.mxu1 }
 0x125   : > { %v947_v26 = vadd.f32 %v946_v25, %v924_v24 }
 0x127   : > { %1019 = vst.msk [vmem:[%s4243_s20] sm:$0xff] %vm1018_vm2, %v947_v26 }
 0x12c   : > { %v1015_v27 = vpop.f32.mrf.mxu1 }
 0x12d   : > { %v1016_v28 = vadd.f32 %v1015_v27, %v924_v24 }
 0x12f   : > { %1022 = vst.msk [vmem:[%s4243_s20 + $0x18] sm:$0xff] %vm1018_vm2, %v1016_v28 }
 0x130   : > { %v992_v29 = vpop.f32.mrf.mxu3 }
 0x131   : > { %v993_v30 = vadd.f32 %v992_v29, %v924_v24 }
 0x132   : > { %v969_v31 = vpop.f32.mrf.mxu2 }
 0x133   : > { %v970_v32 = vadd.f32 %v969_v31, %v924_v24  ;;  %1021 = vst.msk [vmem:[%s4243_s20 + $0x10] sm:$0xff] %vm1018_vm2, %v993_v30 }
 0x135   : > { %1020 = vst.msk [vmem:[%s4243_s20 + $0x8] sm:$0xff] %vm1018_vm2, %v970_v32 }
 0x136 PF: > { %vm1063_vm3 = vcmask 261120   ;;  %v1023_v34 = vld [vmem:[%s4243_s20] sm:$0xff]  ;;  %v1026_v37 = vld [vmem:[%s4243_s20 + $0x18] sm:$0xff]  ;;  %v3382_v41 = vmov 32.0   ;;  %v1031_v5 = vld [vmem:[%s3542_s24 + $0x10] sm:$0xff]  ;;  %s4272_s19 = scalar_lea.vmem %s4229_s6, %s3524_s2  ;;  %s4273_s28 = sld [smem:[#allocation11_spill]] }
 0x137   : > { %v1064_v36 = vsel %vm1063_vm3, %v1023_v34, 0.0  ;;  %v1073_v39 = vsel %vm1063_vm3, %v1026_v37, 0.0  ;;  %3246 = vrcp.f32 %v3382_v41  ;;  %v1032_v4 = vld [vmem:[%s3542_s24 + $0x18] sm:$0xff]  ;;  %v1030_v6 = vld [vmem:[%s3542_s24 + $0x8] sm:$0xff]  ;;  %v1029_v7 = vld [vmem:[%s3542_s24] sm:$0xff]  ;;  %s4275_s30 = scalar_lea.vmem %s4232_s9, %s3524_s2  ;;  %s3383_s22 = smov 96  }
 0x138   : > { %1065 = vadd.xlane.f32.xlu0 %v1064_v36  ;;  %1200 = vmatpush.msra.mxu0 %v1032_v4  ;;  %s3384_s24 = smov 120   ;;  %s3385_s23 = smov 64   ;;  %vm1227_vm1 = vcmask 64512  }
 0x139   : > { %s3387_s26 = smov 80   ;;  %s3388_s4 = smov 56  }
 0x13a   : > { %v1025_v33 = vld [vmem:[%s4243_s20 + $0x10] sm:$0xff]  ;;  %1201 = vmatpush.msra.mxu0 %v1031_v5  ;;  %s3391_s29 = smov 72   ;;  %s3392_s3 = smov 104  }
 0x13b   : > { %v1070_v35 = vsel %vm1063_vm3, %v1025_v33, 0.0  ;;  %p3138_p6 = scmp.ge.s32.totalorder %s3372_s1, 1 }
 0x13c   : > { %1071 = vadd.xlane.f32.xlu1 %v1070_v35  ;;  %v1024_v38 = vld [vmem:[%s4243_s20 + $0x8] sm:$0xff]  ;;  %1202 = vmatpush.msra.mxu0 %v1030_v6  ;;  %s4274_s0 = scalar_lea.vmem %s4273_s28, %s3524_s2  ;;  %s3389_s28 = smov 112  }
 0x13d   : > { %v1067_v40 = vsel %vm1063_vm3, %v1024_v38, 0.0  ;;  %v3247_v42 = vpop.eup %3246 }
 0x13e   : > { %v1077_v43 = vmul.f32 32.0, %v3247_v42  ;;  %vm1081_vm4 = vweird.f32 %v3247_v42  ;;  %1203 = vmatpush.msra.mxu0 %v1029_v7 }
 0x140   : > { %1068 = vadd.xlane.f32.xlu0 %v1067_v40  ;;  %v1078_v44 = vsub.f32 1.0, %v1077_v43 }
 0x142   : > { %v1079_v45 = vmul.f32 %v3247_v42, %v1078_v44 }
 0x144   : > { %1074 = vadd.xlane.f32.xlu1 %v1073_v39  ;;  %v1080_v46 = vadd.f32 %v3247_v42, %v1079_v45 }
 0x146   : > { %v3652_v47 = vsel %vm1081_vm4, %v3247_v42, %v1080_v46  ;;  %vm2335_vm4 = vcmask 130048  }
 0x1ab   : > { %v1066_v49 = vpop.xlane.xlu0 %1065 }
 0x1ac   : > { %v1083_v51 = vmul.f32 %v3652_v47, %v1066_v49 }
 0x1ae   : > { %v3658_v53 = vsub.f32 %v1023_v34, %v1083_v51  ;;  %v3238_v34 = vld [vmem:[%s4272_s19] ss:$0 sm:$0xff]  ;;  %s3386_s19 = smov 88  }
 0x1af   : > { %v1072_v48 = vpop.xlane.xlu1 %1071 }
 0x1b0   : > { %v1085_v50 = vmul.f32 %v3652_v47, %v1072_v48  ;;  %v1091_v55 = vmul.f32 %v3658_v53, %v3658_v53 }
 0x1b2   : > { %v3656_v52 = vsub.f32 %v1025_v33, %v1085_v50  ;;  %v1095_v57 = vsel %vm1063_vm3, %v1091_v55, 0.0 }
 0x1b3   : > { %1096 = vadd.xlane.f32.xlu2 %v1095_v57  ;;  %v1069_v59 = vpop.xlane.xlu0 %1068 }
 0x1b4   : > { %v1093_v54 = vmul.f32 %v3656_v52, %v3656_v52  ;;  %v1084_v61 = vmul.f32 %v3652_v47, %v1069_v59 }
 0x1b6   : > { %v1101_v56 = vsel %vm1063_vm3, %v1093_v54, 0.0  ;;  %v3670_v63 = vsub.f32 %v1024_v38, %v1084_v61  ;;  %v3239_v38 = vld [vmem:[%s4274_s0] ss:$0 sm:$0xff]  ;;  %s3390_s0 = smov 48  }
 0x1b7   : > { %v1075_v58 = vpop.xlane.xlu1 %1074  ;;  %1102 = vadd.xlane.f32.xlu0 %v1101_v56 }
 0x1b8   : > { %v1086_v60 = vmul.f32 %v3652_v47, %v1075_v58  ;;  %v1092_v1 = vmul.f32 %v3670_v63, %v3670_v63 }
 0x1ba   : > { %v3668_v62 = vsub.f32 %v1026_v37, %v1086_v60  ;;  %v1098_v3 = vsel %vm1063_vm3, %v1092_v1, 0.0 }
 0x1bb   : > { %1099 = vadd.xlane.f32.xlu2 %v1098_v3 }
 0x1bc   : > { %v1094_v0 = vmul.f32 %v3668_v62, %v3668_v62 }
 0x1be   : > { %v1104_v2 = vsel %vm1063_vm3, %v1094_v0, 0.0 }
 0x1bf   : > { %1105 = vadd.xlane.f32.xlu1 %v1104_v2 }
 0x226   : > { %v1097_v8 = vpop.xlane.xlu2 %1096 }
 0x227   : > { %v1107_v10 = vmul.f32 %v1097_v8, %v3652_v47 }
 0x229   : > { %v1111_v12 = vadd.f32 1e-05, %v1107_v10 }
 0x22a   : > { %v1103_v9 = vpop.xlane.xlu0 %1102 }
 0x22b   : > { %v1109_v11 = vmul.f32 %v1103_v9, %v3652_v47  ;;  %3248 = vrsqrt.f32 %v1111_v12  ;;  %vm1121_vm6 = vweird.f32 %v1111_v12 }
 0x22d   : > { %v1113_v13 = vadd.f32 1e-05, %v1109_v11 }
 0x22e   : > { %v1100_v15 = vpop.xlane.xlu2 %1099 }
 0x22f   : > { %3250 = vrsqrt.f32 %v1113_v13  ;;  %v1108_v17 = vmul.f32 %v1100_v15, %v3652_v47  ;;  %vm1141_vm8 = vweird.f32 %v1113_v13 }
 0x231   : > { %v3249_v18 = vpop.eup %3248  ;;  %v1112_v20 = vadd.f32 1e-05, %v1108_v17 }
 0x232   : > { %v1106_v14 = vpop.xlane.xlu1 %1105  ;;  %v1116_v22 = vmul.f32 %v3249_v18, %v1111_v12  ;;  %vm1122_vm5 = vweird.f32 %v3249_v18 }
 0x233   : > { %v1110_v16 = vmul.f32 %v1106_v14, %v3652_v47  ;;  %vm1123_vm7 = vmor %vm1121_vm6, %vm1122_vm5  ;;  %vm1131_vm12 = vweird.f32 %v1112_v20  ;;  %vm2340_vm5 = vcmask 195584  }
 0x234   : > { %v1117_v24 = vmul.f32 %v3249_v18, %v1116_v22 }
 0x235   : > { %v1114_v19 = vadd.f32 1e-05, %v1110_v16  ;;  %v3251_v21 = vpop.eup %3250 }
 0x236   : > { %v1136_v23 = vmul.f32 %v3251_v21, %v1113_v13  ;;  %v1118_v25 = vmul.f32 0.5, %v1117_v24  ;;  %vm1142_vm9 = vweird.f32 %v3251_v21 }
 0x237   : > { %3252 = vrsqrt.f32 %v1114_v19  ;;  %vm1143_vm11 = vmor %vm1141_vm8, %vm1142_vm9  ;;  %vm1151_vm14 = vweird.f32 %v1114_v19 }
 0x238   : > { %3254 = vrsqrt.f32 %v1112_v20  ;;  %v1137_v26 = vmul.f32 %v3251_v21, %v1136_v23  ;;  %v1119_v27 = vsub.f32 1.5, %v1118_v25 }
 0x23a   : > { %v1120_v30 = vmul.f32 %v3249_v18, %v1119_v27  ;;  %v1138_v31 = vmul.f32 0.5, %v1137_v26  ;;  %v1217_v26 = vlaneseq }
 0x23c   : > { %v1124_v35 = vsel %vm1123_vm7, %v3249_v18, %v1120_v30  ;;  %v1139_v39 = vsub.f32 1.5, %v1138_v31  ;;  %v3762_v27 = vand.u32 127, %v1217_v26 }
 0x23d   : > { %v3253_v28 = vpop.eup %3252  ;;  %v1155_v37 = vmul.f32 %v1124_v35, %v3658_v53 }
 0x23e   : > { %v3255_v29 = vpop.eup %3254  ;;  %v1146_v32 = vmul.f32 %v3253_v28, %v1114_v19  ;;  %v1140_v45 = vmul.f32 %v3251_v21, %v1139_v39  ;;  %vm1152_vm15 = vweird.f32 %v3253_v28  ;;  %vm1219_vm2 = vcmp.lt.s32.totalorder %v3762_v27, 3 }
 0x23f   : > { %v1126_v33 = vmul.f32 %v3255_v29, %v1112_v20  ;;  %v1162_v42 = vmul.f32 %v3238_v34, %v1155_v37  ;;  %vm1132_vm10 = vweird.f32 %v3255_v29  ;;  %vm1153_vm0 = vmor %vm1151_vm14, %vm1152_vm15 }
 0x240   : > { %v1147_v40 = vmul.f32 %v3253_v28, %v1146_v32  ;;  %vm1133_vm13 = vmor %vm1131_vm12, %vm1132_vm10  ;;  %v1144_v51 = vsel %vm1143_vm11, %v3251_v21, %v1140_v45 }
 0x241   : > { %v1127_v36 = vmul.f32 %v3255_v29, %v1126_v33  ;;  %v1169_v44 = vadd.f32 %v3239_v38, %v1162_v42  ;;  %v1157_v56 = vmul.f32 %v1144_v51, %v3656_v52  ;;  %v3240_v52 = vld [vmem:[%s4275_s30] ss:$0 sm:$0xff]  ;;  %s3393_s30 = smov 40  }
 0x242   : > { %v1148_v46 = vmul.f32 0.5, %v1147_v40 }
 0x243   : > { %v1128_v41 = vmul.f32 0.5, %v1127_v36  ;;  %3078 = vmatmul.msk.f32.vlgmr.msra.gmra.mxu0 %vm1063_vm3, %v1169_v44  ;;  %v1164_v58 = vmul.f32 %v3238_v34, %v1157_v56 }
 0x244   : > { %v1149_v53 = vsub.f32 1.5, %v1148_v46 }
 0x245   : > { %v1129_v43 = vsub.f32 1.5, %v1128_v41  ;;  %v1171_v60 = vadd.f32 %v3239_v38, %v1164_v58 }
 0x246   : > { %v1150_v57 = vmul.f32 %v3253_v28, %v1149_v53 }
 0x247   : > { %v1130_v48 = vmul.f32 %v3255_v29, %v1129_v43 }
 0x248   : > { %v1154_v59 = vsel %vm1153_vm0, %v3253_v28, %v1150_v57 }
 0x249   : > { %v1134_v49 = vsel %vm1133_vm13, %v3255_v29, %v1130_v48  ;;  %v1158_v61 = vmul.f32 %v1154_v59, %v3668_v62 }
 0x24a   : > { %v1156_v50 = vmul.f32 %v1134_v49, %v3670_v63 }
 0x24b   : > { %v1165_v63 = vmul.f32 %v3238_v34, %v1158_v61 }
 0x24c   : > { %v1163_v54 = vmul.f32 %v3238_v34, %v1156_v50 }
 0x24d   : > { %v1172_v0 = vadd.f32 %v3239_v38, %v1165_v63 }
 0x24e   : > { %v1170_v55 = vadd.f32 %v3239_v38, %v1163_v54 }
 0x250   : > { %3079 = vmatmul.msk.f32.gmra.mxu0 %vm1063_vm3, %v1170_v55 }
 0x258   : > { %3080 = vmatmul.msk.f32.gmra.mxu0 %vm1063_vm3, %v1171_v60 }
 0x260   : > { %3081 = vmatmul.msk.f32.gmra.mxu0 %vm1063_vm3, %v1172_v0 }
 0x2c0   : > { %v1205_v1 = vpop.f32.mrf.mxu0 }
 0x2c1   : > { %v3709_v2 = vadd.f32 %v3240_v52, %v1205_v1 }
 0x2c3   : > { %1225 = vrot.lane.b32.xlu0 %v3709_v2, %s3383_s22  ;;  %v3713_v62 = vmul.f32 0.35355338, %v3709_v2 }
 0x2cb   : > { %1491 = vrot.lane.b32.xlu0 %v3713_v62, %s3384_s24 }
 0x2cd   : > { %v1208_v3 = vpop.f32.mrf.mxu0 }
 0x2ce   : > { %v3715_v4 = vadd.f32 %v3240_v52, %v1208_v3 }
 0x2d0   : > { %1254 = vrot.lane.b32.xlu2 %v3715_v4, %s3383_s22  ;;  %v3727_v9 = vpack.i.bf16 %v3715_v4, %v3709_v2  ;;  %v3740_v12 = vmul.f32 0.35355338, %v3715_v4  ;;  %v3796_v0 = vpack.i.bf16 %v3709_v2, %v3715_v4 }
 0x2d5   : > { %v1211_v5 = vpop.f32.mrf.mxu0 }
 0x2d6   : > { %v3720_v6 = vadd.f32 %v3240_v52, %v1211_v5 }
 0x2d8   : > { %1282 = vrot.lane.b32.xlu1 %v3720_v6, %s3383_s22  ;;  %v3757_v18 = vmul.f32 0.35355338, %v3720_v6 }
 0x2dd   : > { %v1214_v7 = vpop.f32.mrf.mxu0 }
 0x2de   : > { %v3723_v8 = vadd.f32 %v3240_v52, %v1214_v7 }
 0x2e0   : > { %1310 = vrot.lane.b32.xlu2 %v3723_v8, %s3383_s22  ;;  %3209 = vrot.lane.b32.xlu1 %v3727_v9, %s3385_s23  ;;  %v3733_v10 = vpack.i.bf16 %v3723_v8, %v3720_v6  ;;  %v3749_v15 = vmul.f32 0.35355338, %v3723_v8  ;;  %s3394_s22 = smov 16  }
 0x2e2   : > { %3214 = vrot.lane.b32.xlu0 %v3733_v10, %s3385_s23  ;;  %s4276_s23 = sld [smem:[#allocation5_spill]] }
 0x2e8   : > { %1493 = vrot.lane.b32.xlu2 %v3709_v2, %s3386_s19 }
 0x32a   : > { %v1255_v11 = vpop.permute.xlu2 %1254 }
 0x32b   : > { %3084 = vmatpush.xpose.msk.msra.mxu2 %vm1227_vm1, %v1255_v11 }
 0x32e   : > { %3085 = vmatmul.msk.f32.vlgmr.msra.gmra.mxu2 %vm1227_vm1, %v3740_v12 }
 0x335   : > { %v1226_v13 = vpop.permute.xlu0 %1225 }
 0x336   : > { %3082 = vmatpush.xpose.msk.msra.mxu1 %vm1227_vm1, %v1226_v13 }
 0x339   : > { %3083 = vmatmul.msk.f32.vlgmr.msra.gmra.mxu1 %vm1227_vm1, %v3713_v62 }
 0x33a   : > { %v1311_v14 = vpop.permute.xlu2 %1310 }
 0x33b   : > { %3088 = vmatpush.xpose.msk.msrb.mxu1 %vm1227_vm1, %v1311_v14 }
 0x33d   : > { %v3754_v17 = vpop.permute.xlu0 %1491 }
 0x341   : > { %3089 = vmatmul.msk.f32.vlgmr.msrb.gmra.mxu1 %vm1227_vm1, %v3749_v15 }
 0x342   : > { %v1494_v23 = vpop.permute.xlu2 %1493 }
 0x34a   : > { %v1283_v16 = vpop.permute.xlu1 %1282 }
 0x34b   : > { %3086 = vmatpush.xpose.msk.msra.mxu3 %vm1227_vm1, %v1283_v16 }
 0x34e   : > { %3087 = vmatmul.msk.f32.vlgmr.msra.gmra.mxu3 %vm1227_vm1, %v3757_v18 }
 0x352   : > { %v3210_v19 = vpop.permute.xlu1 %3209 }
 0x353   : > { %v3211_v20 = vunpack.i.l.bf16 %v3210_v19  ;;  %v3212_v21 = vunpack.i.h.bf16 %v3210_v19 }
 0x354   : > { %v3215_v22 = vpop.permute.xlu0 %3214 }
 0x355   : > { %v3217_v24 = vunpack.i.h.bf16 %v3215_v22  ;;  %v3216_v25 = vunpack.i.l.bf16 %v3215_v22  ;;  %1408 = vmatpush.msrb.mxu2 %v3211_v20  ;;  %1434 = vmatpush.msrb.mxu3 %v3212_v21 }
 0x357   : > { %3094 = vmatpush.xpose.msk.msra.mxu3 %vm1227_vm1, %v1494_v23  ;;  %1460 = vmatpush.msra.mxu1 %v3216_v25 }
 0x358   : > { %1486 = vmatpush.msra.mxu2 %v3217_v24 }
 0x3b1   : > { %v1278_v28 = vpop.f32.mrf.mxu2 }
 0x3b2   : > { %v1340_v29 = vsel %vm1219_vm2, %v1278_v28, -1e+30 }
 0x3b3   : > { %v1346_v30 = vsel %vm1227_vm1, %v1340_v29, -inf }
 0x3b4   : > { %1347 = vmax.xlane.f32.xlu2 %v1346_v30 }
 0x3b6   : > { %v1250_v31 = vpop.f32.mrf.mxu1 }
 0x3b7   : > { %v1339_v32 = vsel %vm1219_vm2, %v1250_v31, -1e+30 }
 0x3b8   : > { %v1343_v33 = vsel %vm1227_vm1, %v1339_v32, -inf }
 0x3b9   : > { %1344 = vmax.xlane.f32.xlu0 %v1343_v33 }
 0x3be   : > { %v1334_v34 = vpop.f32.mrf.mxu1 }
 0x3bf   : > { %v1342_v35 = vsel %vm1219_vm2, %v1334_v34, -1e+30 }
 0x3c0   : > { %v1352_v36 = vsel %vm1227_vm1, %v1342_v35, -inf }
 0x3c1   : > { %1353 = vmax.xlane.f32.xlu0 %v1352_v36 }
 0x3cc   : > { %1549 = vrot.lane.b32.xlu2 %v3720_v6, %s3386_s19 }
 0x3d1   : > { %v1306_v37 = vpop.f32.mrf.mxu3 }
 0x3d2   : > { %v1341_v38 = vsel %vm1219_vm2, %v1306_v37, -1e+30 }
 0x3d3   : > { %v1349_v39 = vsel %vm1227_vm1, %v1341_v38, -inf }
 0x3d4   : > { %1350 = vmax.xlane.f32.xlu1 %v1349_v39 }
 0x3d5   : > { %1519 = vrot.lane.b32.xlu0 %v3740_v12, %s3384_s24 }
 0x3ed   : > { %1521 = vrot.lane.b32.xlu1 %v3715_v4, %s3386_s19 }
 0x427   : > { %v1348_v40 = vpop.xlane.xlu2 %1347 }
 0x428   : > { %v1356_v41 = vsub.f32 %v1340_v29, %v1348_v40 }
 0x42a   : > { %v1361_v42 = vmul.f32 1.442695, %v1356_v41 }
 0x42c   : > { %3256 = vpow2.f32 %v1361_v42  ;;  %v1345_v43 = vpop.xlane.xlu0 %1344 }
 0x42d   : > { %v1355_v44 = vsub.f32 %v1339_v32, %v1345_v43 }
 0x42f   : > { %v1359_v46 = vmul.f32 1.442695, %v1355_v44  ;;  %v1550_v1 = vpop.permute.xlu2 %1549 }
 0x431   : > { %3258 = vpow2.f32 %v1359_v46 }
 0x432   : > { %v3257_v45 = vpop.eup %3256 }
 0x433   : > { %v1370_v48 = vsel %vm1227_vm1, %v3257_v45, 0.0 }
 0x434   : > { %1371 = vadd.xlane.f32.xlu1 %v1370_v48  ;;  %v1354_v49 = vpop.xlane.xlu0 %1353 }
 0x435   : > { %v1358_v50 = vsub.f32 %v1342_v35, %v1354_v49 }
 0x437   : > { %v3259_v51 = vpop.eup %3258  ;;  %v1365_v53 = vmul.f32 1.442695, %v1358_v50 }
 0x438   : > { %v1367_v54 = vsel %vm1227_vm1, %v3259_v51, 0.0 }
 0x439   : > { %3260 = vpow2.f32 %v1365_v53  ;;  %1368 = vadd.xlane.f32.xlu2 %v1367_v54 }
 0x43f   : > { %v3261_v55 = vpop.eup %3260 }
 0x440   : > { %v1376_v56 = vsel %vm1227_vm1, %v3261_v55, 0.0 }
 0x441   : > { %1377 = vadd.xlane.f32.xlu2 %v1376_v56 }
 0x447   : > { %v1351_v57 = vpop.xlane.xlu1 %1350  ;;  %v1520_v16 = vpop.permute.xlu0 %1519 }
 0x448   : > { %v1357_v58 = vsub.f32 %v1341_v38, %v1351_v57 }
 0x44a   : > { %v1363_v59 = vmul.f32 1.442695, %v1357_v58 }
 0x44c   : > { %3262 = vpow2.f32 %v1363_v59 }
 0x44d   : > { %1577 = vrot.lane.b32.xlu1 %v3723_v8, %s3386_s19  ;;  %s3396_s19 = smov 24  }
 0x452   : > { %v3263_v60 = vpop.eup %3262 }
 0x453   : > { %v1373_v61 = vsel %vm1227_vm1, %v3263_v60, 0.0 }
 0x454   : > { %1374 = vadd.xlane.f32.xlu0 %v1373_v61 }
 0x455   : > { %1785 = vrot.lane.b32.xlu1 %v3715_v4, %s3387_s26 }
 0x459   : > { %1547 = vrot.lane.b32.xlu2 %v3757_v18, %s3384_s24 }
 0x45f   : > { %v1522_v63 = vpop.permute.xlu1 %1521 }
 0x460   : > { %3096 = vmatpush.xpose.msk.msrb.mxu1 %vm1227_vm1, %v1522_v63 }
 0x461   : > { %3219 = vrot.lane.b32.xlu2 %v3796_v0, %s3388_s4 }
 0x468   : > { %1575 = vrot.lane.b32.xlu0 %v3749_v15, %s3384_s24  ;;  %s3395_s24 = smov 8  }
 0x470   : > { %3224 = vrot.lane.b32.xlu0 %v3733_v10, %s3388_s4 }
 0x4a7   : > { %v1372_v52 = vpop.xlane.xlu1 %1371 }
 0x4a8   : > { %3264 = vrcp.f32 %v1372_v52 }
 0x4ac   : > { %v1369_v7 = vpop.xlane.xlu2 %1368 }
 0x4ad   : > { %3266 = vrcp.f32 %v1369_v7 }
 0x4ae   : > { %v3265_v3 = vpop.eup %3264 }
 0x4af   : > { %v1384_v5 = vmul.f32 %v3265_v3, %v3257_v45 }
 0x4b1   : > { %3091 = vmatmul.msk.f32.vlgmr.msrb.gmra.mxu3 %vm1227_vm1, %v1384_v5 }
 0x4b3   : > { %v3267_v11 = vpop.eup %3266 }
 0x4b4   : > { %v1378_v13 = vpop.xlane.xlu2 %1377  ;;  %v1383_v14 = vmul.f32 %v3267_v11, %v3259_v51 }
 0x4b5   : > { %3268 = vrcp.f32 %v1378_v13 }
 0x4b6   : > { %3090 = vmatmul.msk.f32.vlgmr.msrb.gmra.mxu2 %vm1227_vm1, %v1383_v14 }
 0x4b7   : > { %3098 = vmatpush.xpose.msk.msrb.mxu2 %vm1227_vm1, %v1550_v1 }
 0x4b9   : > { %3095 = vmatmul.msk.f32.vlgmr.msra.gmra.mxu3 %vm1227_vm1, %v3754_v17 }
 0x4bb   : > { %v3269_v10 = vpop.eup %3268 }
 0x4bc   : > { %v1386_v20 = vmul.f32 %v3269_v10, %v3261_v55  ;;  %v1548_v21 = vpop.permute.xlu2 %1547 }
 0x4be   : > { %3093 = vmatmul.msk.f32.vlgmr.msra.gmra.mxu2 %vm1227_vm1, %v1386_v20 }
 0x4bf   : > { %v1578_v19 = vpop.permute.xlu1 %1577 }
 0x4c0   : > { %3100 = vmatpush.xpose.msk.msrb.mxu3 %vm1227_vm1, %v1578_v19 }
 0x4c4   : > { %v3220_v23 = vpop.permute.xlu2 %3219 }
 0x4c5   : > { %v3221_v24 = vunpack.i.l.bf16 %v3220_v23  ;;  %v3222_v28 = vunpack.i.h.bf16 %v3220_v23 }
 0x4c6   : > { %3099 = vmatmul.msk.f32.vlgmr.msrb.gmra.mxu2 %vm1227_vm1, %v1548_v21 }
 0x4c7   : > { %v1375_v22 = vpop.xlane.xlu0 %1374  ;;  %v1786_v17 = vpop.permute.xlu1 %1785  ;;  %1698 = vmatpush.msra.mxu2 %v3221_v24 }
 0x4c8   : > { %3270 = vrcp.f32 %v1375_v22 }
 0x4c9   : > { %3108 = vmatpush.xpose.msk.msrb.mxu2 %vm1227_vm1, %v1786_v17 }
 0x4ce   : > { %v3271_v25 = vpop.eup %3270 }
 0x4cf   : > { %v1385_v26 = vmul.f32 %v3271_v25, %v3263_v60 }
 0x4d1   : > { %3092 = vmatmul.msk.f32.vlgmr.msra.gmra.mxu1 %vm1227_vm1, %v1385_v26 }
 0x4d2   : > { %1672 = vmatpush.msra.mxu1 %v3222_v28 }
 0x4d9   : > { %3097 = vmatmul.msk.f32.vlgmr.msrb.gmra.mxu1 %vm1227_vm1, %v1520_v16 }
 0x4da   : > { %v1576_v29 = vpop.permute.xlu0 %1575 }
 0x4db   : > { %3101 = vmatmul.msk.f32.vlgmr.msrb.gmra.mxu3 %vm1227_vm1, %v1576_v29 }
 0x4e2   : > { %v3225_v30 = vpop.permute.xlu0 %3224 }
 0x4e3   : > { %v3227_v31 = vunpack.i.h.bf16 %v3225_v30  ;;  %v3226_v32 = vunpack.i.l.bf16 %v3225_v30 }
 0x4e5   : > { %1724 = vmatpush.msra.mxu3 %v3226_v32  ;;  %1750 = vmatpush.msrb.mxu1 %v3227_v31 }
 0x534   : > { %v3814_v33 = vpop.f32.mrf.mxu3 }
 0x539   : > { %v3818_v36 = vpop.f32.mrf.mxu2 }
 0x53c   : > { %v1516_v34 = vpop.f32.mrf.mxu3 }
 0x53d   : > { %v1603_v35 = vsel %vm1219_vm2, %v1516_v34, -1e+30 }
 0x53e   : > { %v1607_v37 = vsel %vm1227_vm1, %v1603_v35, -inf }
 0x53f   : > { %1608 = vmax.xlane.f32.xlu2 %v1607_v37 }
 0x541   : > { %v3821_v38 = vpop.f32.mrf.mxu2 }
 0x549   : > { %v1572_v39 = vpop.f32.mrf.mxu2 }
 0x54a   : > { %v1605_v41 = vsel %vm1219_vm2, %v1572_v39, -1e+30 }
 0x54b   : > { %v1613_v42 = vsel %vm1227_vm1, %v1605_v41, -inf }
 0x54c   : > { %1614 = vmax.xlane.f32.xlu0 %v1613_v42 }
 0x54e   : > { %v3823_v40 = vpop.f32.mrf.mxu1 }
 0x556   : > { %v1544_v43 = vpop.f32.mrf.mxu1 }
 0x557   : > { %v1604_v44 = vsel %vm1219_vm2, %v1544_v43, -1e+30  ;;  %1783 = vrot.lane.b32.xlu2 %v3740_v12, %s3389_s28 }
 0x558   : > { %v1610_v45 = vsel %vm1227_vm1, %v1604_v44, -inf }
 0x559   : > { %1611 = vmax.xlane.f32.xlu1 %v1610_v45 }
 0x55e   : > { %v1600_v46 = vpop.f32.mrf.mxu3 }
 0x55f   : > { %v1606_v48 = vsel %vm1219_vm2, %v1600_v46, -1e+30 }
 0x560   : > { %v1616_v49 = vsel %vm1227_vm1, %v1606_v48, -inf  ;;  %1757 = vrot.lane.b32.xlu0 %v3709_v2, %s3387_s26 }
 0x561   : > { %1617 = vmax.xlane.f32.xlu1 %v1616_v49 }
 0x57a   : > { %1813 = vrot.lane.b32.xlu1 %v3720_v6, %s3387_s26 }
 0x5b2   : > { %v1609_v50 = vpop.xlane.xlu2 %1608 }
 0x5b3   : > { %v1619_v51 = vsub.f32 %v1603_v35, %v1609_v50 }
 0x5b5   : > { %v1623_v53 = vmul.f32 1.442695, %v1619_v51 }
 0x5b7   : > { %3272 = vpow2.f32 %v1623_v53 }
 0x5ba   : > { %v1784_v23 = vpop.permute.xlu2 %1783 }
 0x5bd   : > { %v3273_v54 = vpop.eup %3272 }
 0x5be   : > { %v1631_v55 = vsel %vm1227_vm1, %v3273_v54, 0.0 }
 0x5bf   : > { %1632 = vadd.xlane.f32.xlu0 %v1631_v55  ;;  %v1615_v56 = vpop.xlane.xlu0 %1614 }
 0x5c0   : > { %v1621_v57 = vsub.f32 %v1605_v41, %v1615_v56 }
 0x5c2   : > { %v1627_v58 = vmul.f32 1.442695, %v1621_v57 }
 0x5c4   : > { %3274 = vpow2.f32 %v1627_v58 }
 0x5ca   : > { %v3275_v61 = vpop.eup %3274 }
 0x5cb   : > { %v1637_v52 = vsel %vm1227_vm1, %v3275_v61, 0.0 }
 0x5cc   : > { %v1612_v59 = vpop.xlane.xlu1 %1611  ;;  %1638 = vadd.xlane.f32.xlu1 %v1637_v52 }
 0x5cd   : > { %v1620_v60 = vsub.f32 %v1604_v44, %v1612_v59 }
 0x5cf   : > { %v1625_v63 = vmul.f32 1.442695, %v1620_v60 }
 0x5d1   : > { %3276 = vpow2.f32 %v1625_v63 }
 0x5d2   : > { %v1758_v16 = vpop.permute.xlu0 %1757 }
 0x5d4   : > { %v1618_v1 = vpop.xlane.xlu1 %1617 }
 0x5d5   : > { %v1622_v3 = vsub.f32 %v1606_v48, %v1618_v1 }
 0x5d7   : > { %v3277_v5 = vpop.eup %3276  ;;  %v1629_v7 = vmul.f32 1.442695, %v1622_v3 }
 0x5d8   : > { %v1634_v11 = vsel %vm1227_vm1, %v3277_v5, 0.0 }
 0x5d9   : > { %3278 = vpow2.f32 %v1629_v7  ;;  %1635 = vadd.xlane.f32.xlu2 %v1634_v11 }
 0x5df   : > { %v3279_v13 = vpop.eup %3278 }
 0x5e0   : > { %v1640_v14 = vsel %vm1227_vm1, %v3279_v13, 0.0 }
 0x5e1   : > { %1641 = vadd.xlane.f32.xlu0 %v1640_v14 }
 0x5e5   : > { %1755 = vrot.lane.b32.xlu1 %v3713_v62, %s3389_s28 }
 0x5ec   : > { %v1814_v10 = vpop.permute.xlu1 %1813 }
 0x5ed   : > { %3110 = vmatpush.xpose.msk.msrb.mxu3 %vm1227_vm1, %v1814_v10 }
 0x5f1   : > { %1811 = vrot.lane.b32.xlu2 %v3757_v18, %s3389_s28 }
 0x5f5   : > { %1841 = vrot.lane.b32.xlu0 %v3723_v8, %s3387_s26 }
 0x5f9   : > { %1839 = vrot.lane.b32.xlu2 %v3749_v15, %s3389_s28  ;;  %s4277_s28 = scalar_lea.vmem %s4234_s11, %s3524_s2 }
 0x5fd   : > { %3229 = vrot.lane.b32.xlu0 %v3796_v0, %s3390_s0 }
 0x601   : > { %2049 = vrot.lane.b32.xlu2 %v3715_v4, %s3391_s29 }
 0x609   : > { %2021 = vrot.lane.b32.xlu2 %v3709_v2, %s3391_s29 }
 0x632   : > { %v1633_v19 = vpop.xlane.xlu0 %1632 }
 0x633   : > { %3280 = vrcp.f32 %v1633_v19 }
 0x639   : > { %v3281_v20 = vpop.eup %3280 }
 0x63a   : > { %v1647_v21 = vmul.f32 %v3281_v20, %v3273_v54 }
 0x63c   : > { %3102 = vmatmul.msk.f32.vlgmr.msra.gmra.mxu1 %vm1227_vm1, %v1647_v21 }
 0x63d   : > { %3106 = vmatpush.xpose.msk.msra.mxu1 %vm1227_vm1, %v1758_v16 }
 0x63f   : > { %v1639_v22 = vpop.xlane.xlu1 %1638 }
 0x640   : > { %3282 = vrcp.f32 %v1639_v22 }
 0x646   : > { %v3283_v0 = vpop.eup %3282 }
 0x647   : > { %v1649_v24 = vmul.f32 %v3283_v0, %v3275_v61 }
 0x649   : > { %3104 = vmatmul.msk.f32.vlgmr.msra.gmra.mxu3 %vm1227_vm1, %v1649_v24 }
 0x64c   : > { %v1636_v17 = vpop.xlane.xlu2 %1635 }
 0x64d   : > { %3284 = vrcp.f32 %v1636_v17 }
 0x653   : > { %v3285_v4 = vpop.eup %3284 }
 0x654   : > { %v1648_v2 = vmul.f32 %v3285_v4, %v3277_v5  ;;  %v1812_v25 = vpop.permute.xlu2 %1811  ;;  %v1642_v26 = vpop.xlane.xlu0 %1641 }
 0x655   : > { %3286 = vrcp.f32 %v1642_v26  ;;  %3111 = vmatmul.msk.f32.vlgmr.msrb.gmra.mxu3 %vm1227_vm1, %v1812_v25 }
 0x656   : > { %3103 = vmatmul.msk.f32.vlgmr.msra.gmra.mxu2 %vm1227_vm1, %v1648_v2 }
 0x657   : > { %v1756_v31 = vpop.permute.xlu1 %1755 }
 0x65b   : > { %v3287_v28 = vpop.eup %3286 }
 0x65c   : > { %v1650_v29 = vmul.f32 %v3287_v28, %v3279_v13  ;;  %v1840_v30 = vpop.permute.xlu2 %1839 }
 0x65e   : > { %3105 = vmatmul.msk.f32.vlgmr.msrb.gmra.mxu1 %vm1227_vm1, %v1650_v29  ;;  %3109 = vmatmul.msk.f32.vlgmr.msrb.gmra.mxu2 %vm1227_vm1, %v1784_v23 }
 0x664   : > { %v2050_v34 = vpop.permute.xlu2 %2049 }
 0x666   : > { %3107 = vmatmul.msk.f32.vlgmr.msra.gmra.mxu1 %vm1227_vm1, %v1756_v31 }
 0x667   : > { %v1842_v32 = vpop.permute.xlu0 %1841 }
 0x668   : > { %3112 = vmatpush.xpose.msk.msrb.mxu0 %vm1227_vm1, %v1842_v32 }
 0x66b   : > { %3113 = vmatmul.msk.f32.vlgmr.msrb.gmra.mxu0 %vm1227_vm1, %v1840_v30 }
 0x66c   : > { %v2022_v41 = vpop.permute.xlu2 %2021 }
 0x66f   : > { %v3230_v35 = vpop.permute.xlu0 %3229 }
 0x670   : > { %v3232_v37 = vunpack.i.h.bf16 %v3230_v35  ;;  %v3231_v39 = vunpack.i.l.bf16 %v3230_v35 }
 0x672   : > { %1936 = vmatpush.msrb.mxu1 %v3232_v37  ;;  %1962 = vmatpush.msra.mxu2 %v3231_v39 }
 0x674   : > { %3118 = vmatpush.xpose.msk.msra.mxu1 %vm1227_vm1, %v2022_v41  ;;  %3120 = vmatpush.xpose.msk.msrb.mxu2 %vm1227_vm1, %v2050_v34 }
 0x6b9   : > { %v3873_v43 = vpop.f32.mrf.mxu1 }
 0x6cc   : > { %v3871_v42 = vpop.f32.mrf.mxu3 }
 0x6d8   : > { %v1836_v44 = vpop.f32.mrf.mxu3 }
 0x6d9   : > { %v1869_v45 = vsel %vm1219_vm2, %v1836_v44, -1e+30  ;;  %v3892_v56 = vpop.f32.mrf.mxu2 }
 0x6da   : > { %v1877_v46 = vsel %vm1227_vm1, %v1869_v45, -inf }
 0x6db   : > { %v3878_v48 = vpop.f32.mrf.mxu1  ;;  %1878 = vmax.xlane.f32.xlu2 %v1877_v46 }
 0x6e1   : > { %v1808_v57 = vpop.f32.mrf.mxu2 }
 0x6e2   : > { %v1868_v58 = vsel %vm1219_vm2, %v1808_v57, -1e+30 }
 0x6e3   : > { %v1780_v49 = vpop.f32.mrf.mxu1  ;;  %v1874_v59 = vsel %vm1227_vm1, %v1868_v58, -inf }
 0x6e4   : > { %v1867_v50 = vsel %vm1219_vm2, %v1780_v49, -1e+30 }
 0x6e5   : > { %v1871_v51 = vsel %vm1227_vm1, %v1867_v50, -inf }
 0x6e6   : > { %1872 = vmax.xlane.f32.xlu0 %v1871_v51 }
 0x6e8   : > { %v1864_v53 = vpop.f32.mrf.mxu0 }
 0x6e9   : > { %v1870_v54 = vsel %vm1219_vm2, %v1864_v53, -1e+30 }
 0x6ea   : > { %v1880_v55 = vsel %vm1227_vm1, %v1870_v54, -inf }
 0x6eb   : > { %1881 = vmax.xlane.f32.xlu1 %v1880_v55 }
 0x6f3   : > { %2075 = vrot.lane.b32.xlu2 %v3757_v18, %s3392_s3 }
 0x6fa   : > { %2047 = vrot.lane.b32.xlu0 %v3740_v12, %s3392_s3 }
 0x704   : > { %1967 = vrot.lane.b32.xlu1 %v3720_v6, %s3390_s0 }
 0x72e   : > { %1875 = vmax.xlane.f32.xlu1 %v1874_v59 }
 0x747   : > { %2077 = vrot.lane.b32.xlu1 %v3720_v6, %s3391_s29 }
 0x74e   : > { %v1879_v63 = vpop.xlane.xlu2 %1878 }
 0x74f   : > { %1993 = vrot.lane.b32.xlu1 %v3723_v8, %s3390_s0  ;;  %v1885_v1 = vsub.f32 %v1869_v45, %v1879_v63  ;;  %s4278_s0 = scalar_lea.vmem %s4238_s15, %s3524_s2 }
 0x751   : > { %v1891_v3 = vmul.f32 1.442695, %v1885_v1 }
 0x756   : > { %v2076_v23 = vpop.permute.xlu2 %2075 }
 0x759   : > { %v1873_v18 = vpop.xlane.xlu0 %1872 }
 0x75a   : > { %v1883_v12 = vsub.f32 %v1867_v50, %v1873_v18 }
 0x75c   : > { %v1887_v60 = vmul.f32 1.442695, %v1883_v12 }
 0x75e   : > { %3288 = vpow2.f32 %v1887_v60  ;;  %v1882_v5 = vpop.xlane.xlu1 %1881 }
 0x75f   : > { %3290 = vpow2.f32 %v1891_v3  ;;  %v1886_v24 = vsub.f32 %v1870_v54, %v1882_v5 }
 0x764   : > { %v3289_v61 = vpop.eup %3288 }
 0x765   : > { %v1895_v52 = vsel %vm1227_vm1, %v3289_v61, 0.0  ;;  %v3291_v7 = vpop.eup %3290 }
 0x766   : > { %1896 = vadd.xlane.f32.xlu2 %v1895_v52  ;;  %v1901_v13 = vsel %vm1227_vm1, %v3291_v7, 0.0 }
 0x76c   : > { %v2048_v30 = vpop.permute.xlu0 %2047 }
 0x776   : > { %v1968_v11 = vpop.permute.xlu1 %1967 }
 0x777   : > { %1988 = vmatpush.msra.mxu3 %v1968_v11 }
 0x779   : > { %1902 = vadd.xlane.f32.xlu1 %v1901_v13 }
 0x77e   : > { %2105 = vrot.lane.b32.xlu2 %v3723_v8, %s3391_s29 }
 0x792   : > { %2103 = vrot.lane.b32.xlu1 %v3749_v15, %s3392_s3  ;;  %v1893_v15 = vmul.f32 1.442695, %v1886_v24 }
 0x7a1   : > { %v1876_v14 = vpop.xlane.xlu1 %1875 }
 0x7a2   : > { %v1884_v10 = vsub.f32 %v1868_v58, %v1876_v14 }
 0x7a4   : > { %v1889_v16 = vmul.f32 1.442695, %v1884_v10 }
 0x7a6   : > { %3292 = vpow2.f32 %v1889_v16 }
 0x7ac   : > { %v3293_v19 = vpop.eup %3292 }
 0x7ad   : > { %v1898_v20 = vsel %vm1227_vm1, %v3293_v19, 0.0 }
 0x7ae   : > { %1899 = vadd.xlane.f32.xlu0 %v1898_v20 }
 0x7b9   : > { %v2078_v21 = vpop.permute.xlu1 %2077 }
 0x7ba   : > { %3122 = vmatpush.xpose.msk.msrb.mxu3 %vm1227_vm1, %v2078_v21 }
 0x7c1   : > { %v1994_v22 = vpop.permute.xlu1 %1993 }
 0x7c2   : > { %2019 = vrot.lane.b32.xlu0 %v3713_v62, %s3392_s3  ;;  %2014 = vmatpush.msra.mxu0 %v1994_v22  ;;  %s4279_s3 = scalar_lea.vmem %s4240_s17, %s3524_s2 }
 0x7d9   : > { %v1897_v0 = vpop.xlane.xlu2 %1896 }
 0x7da   : > { %3294 = vrcp.f32 %v1897_v0 }
 0x7db   : > { %3296 = vpow2.f32 %v1893_v15 }
 0x7e0   : > { %v3295_v17 = vpop.eup %3294 }
 0x7e1   : > { %v1911_v4 = vmul.f32 %v3295_v17, %v3289_v61  ;;  %v2106_v2 = vpop.permute.xlu2 %2105  ;;  %v3297_v25 = vpop.eup %3296 }
 0x7e2   : > { %3124 = vmatpush.xpose.msk.msrb.mxu0 %vm1227_vm1, %v2106_v2  ;;  %v1904_v26 = vsel %vm1227_vm1, %v3297_v25, 0.0 }
 0x7e3   : > { %3114 = vmatmul.msk.f32.vlgmr.msrb.gmra.mxu1 %vm1227_vm1, %v1911_v4 }
 0x7ec   : > { %1905 = vadd.xlane.f32.xlu0 %v1904_v26  ;;  %v1903_v28 = vpop.xlane.xlu1 %1902 }
 0x7ed   : > { %3298 = vrcp.f32 %v1903_v28 }
 0x7f3   : > { %v3299_v62 = vpop.eup %3298 }
 0x7f4   : > { %v1913_v29 = vmul.f32 %v3299_v62, %v3291_v7 }
 0x7f6   : > { %3116 = vmatmul.msk.f32.vlgmr.msra.gmra.mxu3 %vm1227_vm1, %v1913_v29 }
 0x7fe   : > { %3123 = vmatmul.msk.f32.vlgmr.msrb.gmra.mxu3 %vm1227_vm1, %v2076_v23 }
 0x804   : > { %v2104_v44 = vpop.permute.xlu1 %2103 }
 0x821   : > { %v1900_v31 = vpop.xlane.xlu0 %1899 }
 0x822   : > { %3300 = vrcp.f32 %v1900_v31 }
 0x828   : > { %v3301_v32 = vpop.eup %3300 }
 0x829   : > { %v1912_v34 = vmul.f32 %v3301_v32, %v3293_v19 }
 0x82b   : > { %3115 = vmatmul.msk.f32.vlgmr.msra.gmra.mxu2 %vm1227_vm1, %v1912_v34 }
 0x833   : > { %3121 = vmatmul.msk.f32.vlgmr.msrb.gmra.mxu2 %vm1227_vm1, %v2048_v30 }
 0x834   : > { %v2020_v35 = vpop.permute.xlu0 %2019 }
 0x835   : > { %3119 = vmatmul.msk.f32.vlgmr.msra.gmra.mxu1 %vm1227_vm1, %v2020_v35 }
 0x85f   : > { %v1906_v37 = vpop.xlane.xlu0 %1905 }
 0x860   : > { %3302 = vrcp.f32 %v1906_v37  ;;  %v1938_v51 = vpop.f32.mrf.mxu1  ;;  %v1037_v37 = vld [vmem:[%s4276_s23 + $0x18] sm:$0xff] }
 0x866   : > { %v3303_v39 = vpop.eup %3302 }
 0x867   : > { %v1914_v41 = vmul.f32 %v3303_v39, %v3297_v25  ;;  %v1036_v39 = vld [vmem:[%s4276_s23 + $0x10] sm:$0xff] }
 0x869   : > { %3117 = vmatmul.msk.f32.vlgmr.msra.gmra.mxu0 %vm1227_vm1, %v1914_v41  ;;  %v1035_v41 = vld [vmem:[%s4276_s23 + $0x8] sm:$0xff] }
 0x871   : > { %3125 = vmatmul.msk.f32.vlgmr.msrb.gmra.mxu0 %vm1227_vm1, %v2104_v44 }
 0x879   : > { %v3921_v45 = vpop.f32.mrf.mxu3 }
 0x881   : > { %v2100_v46 = vpop.f32.mrf.mxu3 }
 0x882   : > { %v2133_v49 = vsel %vm1219_vm2, %v2100_v46, -1e+30 }
 0x883   : > { %v2141_v50 = vsel %vm1227_vm1, %v2133_v49, -inf }
 0x884   : > { %2142 = vmax.xlane.f32.xlu0 %v2141_v50 }
 0x8ae   : > { %v3926_v53 = vpop.f32.mrf.mxu2 }
 0x8b2   : > { %v2044_v54 = vpop.f32.mrf.mxu1 }
 0x8b3   : > { %v2131_v55 = vsel %vm1219_vm2, %v2044_v54, -1e+30 }
 0x8b4   : > { %v2135_v57 = vsel %vm1227_vm1, %v2131_v55, -inf }
 0x8b5   : > { %2136 = vmax.xlane.f32.xlu2 %v2135_v57 }
 0x8b6   : > { %v2072_v58 = vpop.f32.mrf.mxu2 }
 0x8b7   : > { %v2132_v59 = vsel %vm1219_vm2, %v2072_v58, -1e+30 }
 0x8b8   : > { %v2138_v18 = vsel %vm1227_vm1, %v2132_v59, -inf }
 0x8b9   : > { %2139 = vmax.xlane.f32.xlu1 %v2138_v18 }
 0x8d2   : > { %3234 = vrot.lane.b32.xlu1 %v3727_v9, %s3393_s30 }
 0x8da   : > { %2303 = vrot.lane.b32.xlu1 %v1938_v51, %s3394_s22 }
 0x8e2   : > { %2289 = vrot.lane.b32.xlu1 %v3892_v56, %s3395_s24 }
 0x8e6   : > { %v3938_v12 = vpop.f32.mrf.mxu0 }
 0x8ea   : > { %2291 = vrot.lane.b32.xlu1 %v3871_v42, %s3395_s24 }
 0x8ee   : > { %v2128_v60 = vpop.f32.mrf.mxu0 }
 0x8ef   : > { %v2134_v61 = vsel %vm1219_vm2, %v2128_v60, -1e+30 }
 0x8f0   : > { %v2144_v63 = vsel %vm1227_vm1, %v2134_v61, -inf }
 0x8f1   : > { %2145 = vmax.xlane.f32.xlu0 %v2144_v63 }
 0x8f2   : > { %2293 = vrot.lane.b32.xlu1 %v3878_v48, %s3395_s24 }
 0x8f7   : > { %v2143_v48 = vpop.xlane.xlu0 %2142 }
 0x8f8   : > { %v2149_v20 = vsub.f32 %v2133_v49, %v2143_v48  ;;  %v1034_v49 = vld [vmem:[%s4276_s23] sm:$0xff] }
 0x8fa   : > { %v2155_v22 = vmul.f32 1.442695, %v2149_v20 }
 0x928   : > { %v2137_v9 = vpop.xlane.xlu2 %2136 }
 0x929   : > { %v2147_v52 = vsub.f32 %v2131_v55, %v2137_v9 }
 0x92b   : > { %v2151_v1 = vmul.f32 1.442695, %v2147_v52 }
 0x92c   : > { %v2140_v3 = vpop.xlane.xlu1 %2139 }
 0x92d   : > { %3304 = vpow2.f32 %v2151_v1  ;;  %v2148_v5 = vsub.f32 %v2132_v59, %v2140_v3 }
 0x92f   : > { %v2153_v56 = vmul.f32 1.442695, %v2148_v5 }
 0x931   : > { %3306 = vpow2.f32 %v2153_v56 }
 0x933   : > { %v3305_v7 = vpop.eup %3304 }
 0x934   : > { %v2159_v42 = vsel %vm1227_vm1, %v3305_v7, 0.0 }
 0x935   : > { %2160 = vadd.xlane.f32.xlu2 %v2159_v42 }
 0x937   : > { %v3307_v11 = vpop.eup %3306 }
 0x938   : > { %v2162_v27 = vsel %vm1227_vm1, %v3307_v11, 0.0 }
 0x939   : > { %2163 = vadd.xlane.f32.xlu0 %v2162_v27 }
 0x944   : > { %v3235_v13 = vpop.permute.xlu1 %3234 }
 0x945   : > { %v3237_v14 = vunpack.i.h.bf16 %v3235_v13  ;;  %v3236_v10 = vunpack.i.l.bf16 %v3235_v13  ;;  %v3344_v13 = vld [vmem:[%s4243_s20] sm:$0xff] }
 0x947   : > { %2200 = vmatpush.msrb.mxu1 %v3236_v10  ;;  %2226 = vmatpush.msra.mxu2 %v3237_v14 }
 0x949   : > { %2372 = vmatpush.msra.mxu1 %v1037_v37 }
 0x94b   : > { %2373 = vmatpush.msra.mxu1 %v1036_v39 }
 0x94c   : > { %v2304_v51 = vpop.permute.xlu1 %2303 }
 0x94d   : > { %2231 = vrot.lane.b32.xlu0 %v3720_v6, %s3393_s30  ;;  %2374 = vmatpush.msra.mxu1 %v1035_v41 }
 0x94f   : > { %2375 = vmatpush.msra.mxu1 %v1034_v49 }
 0x954   : > { %v2290_v57 = vpop.permute.xlu1 %2289 }
 0x955   : > { %2287 = vrot.lane.b32.xlu0 %v3873_v43, %s3395_s24  ;;  %v2332_v58 = vsel %vm1227_vm1, %v3814_v33, %v2290_v57 }
 0x964   : > { %v2146_v16 = vpop.xlane.xlu0 %2145 }
 0x965   : > { %v2150_v19 = vsub.f32 %v2134_v61, %v2146_v16  ;;  %v3345_v16 = vld [vmem:[%s4243_s20 + $0x8] sm:$0xff] }
 0x967   : > { %v2157_v21 = vmul.f32 1.442695, %v2150_v19 }
 0x969   : > { %3308 = vpow2.f32 %v2157_v21 }
 0x96a   : > { %3310 = vpow2.f32 %v2155_v22 }
 0x96f   : > { %v3309_v23 = vpop.eup %3308 }
 0x970   : > { %v2168_v0 = vsel %vm1227_vm1, %v3309_v23, 0.0  ;;  %v3311_v24 = vpop.eup %3310 }
 0x971   : > { %2169 = vadd.xlane.f32.xlu2 %v2168_v0  ;;  %v2165_v15 = vsel %vm1227_vm1, %v3311_v24, 0.0 }
 0x979   : > { %2166 = vadd.xlane.f32.xlu2 %v2165_v15 }
 0x991   : > { %2257 = vrot.lane.b32.xlu2 %v3723_v8, %s3393_s30 }
 0x9a8   : > { %v2161_v6 = vpop.xlane.xlu2 %2160 }
 0x9a9   : > { %3312 = vrcp.f32 %v2161_v6 }
 0x9ac   : > { %v2164_v43 = vpop.xlane.xlu0 %2163 }
 0x9ad   : > { %3314 = vrcp.f32 %v2164_v43  ;;  %v3347_v43 = vld [vmem:[%s4243_s20 + $0x18] sm:$0xff] }
 0x9af   : > { %v3313_v17 = vpop.eup %3312 }
 0x9b0   : > { %v2175_v4 = vmul.f32 %v3313_v17, %v3305_v7 }
 0x9b2   : > { %3126 = vmatmul.msk.f32.vlgmr.msrb.gmra.mxu1 %vm1227_vm1, %v2175_v4 }
 0x9b3   : > { %v3315_v2 = vpop.eup %3314 }
 0x9b4   : > { %v2176_v25 = vmul.f32 %v3315_v2, %v3307_v11 }
 0x9b6   : > { %3127 = vmatmul.msk.f32.vlgmr.msra.gmra.mxu2 %vm1227_vm1, %v2176_v25 }
 0x9bf   : > { %v2232_v26 = vpop.permute.xlu0 %2231 }
 0x9c0   : > { %2252 = vmatpush.msra.mxu3 %v2232_v26 }
 0x9c7   : > { %v2288_v50 = vpop.permute.xlu0 %2287 }
 0x9e4   : > { %v2170_v28 = vpop.xlane.xlu2 %2169 }
 0x9e5   : > { %3316 = vrcp.f32 %v2170_v28 }
 0x9eb   : > { %v3317_v29 = vpop.eup %3316 }
 0x9ec   : > { %v2167_v62 = vpop.xlane.xlu2 %2166  ;;  %v2178_v30 = vmul.f32 %v3317_v29, %v3309_v23  ;;  %v3346_v23 = vld [vmem:[%s4243_s20 + $0x10] sm:$0xff] }
 0x9ed   : > { %3318 = vrcp.f32 %v2167_v62 }
 0x9f3   : > { %v3319_v8 = vpop.eup %3318 }
 0x9f4   : > { %v2177_v31 = vmul.f32 %v3319_v8, %v3311_v24  ;;  %v2258_v32 = vpop.permute.xlu2 %2257 }
 0x9f5   : > { %2278 = vmatpush.msra.mxu0 %v2258_v32 }
 0x9f6   : > { %3128 = vmatmul.msk.f32.vlgmr.msra.gmra.mxu3 %vm1227_vm1, %v2177_v31  ;;  %3129 = vmatmul.msk.f32.vlgmr.msra.gmra.mxu0 %vm1227_vm1, %v2178_v30 }
 0xa2f   : > { %v2202_v34 = vpop.f32.mrf.mxu1 }
 0xa30   : > { %2319 = vrot.lane.b32.xlu0 %v2202_v34, %s3396_s19 }
 0xa38   : > { %2305 = vrot.lane.b32.xlu0 %v3926_v53, %s3394_s22 }
 0xa39   : > { %v2228_v35 = vpop.f32.mrf.mxu2 }
 0xa3a   : > { %2321 = vrot.lane.b32.xlu2 %v2228_v35, %s3396_s19 }
 0xa40   : > { %2307 = vrot.lane.b32.xlu0 %v3921_v45, %s3394_s22  ;;  %v2331_v45 = vsel %vm1227_vm1, %v3818_v36, %v2288_v50  ;;  %v2292_v36 = vpop.permute.xlu1 %2291 }
 0xa41   : > { %v2336_v53 = vsel %vm2335_vm4, %v2331_v45, %v2304_v51  ;;  %v2333_v63 = vsel %vm1227_vm1, %v3823_v40, %v2292_v36  ;;  %v3241_v40 = vld [vmem:[%s4277_s28] ss:$0 sm:$0xff]  ;;  %v1044_v45 = vld [vmem:[%s3564_s8 + $0x18] sm:$0xff] }
 0xa42   : > { %2522 = vmatpush.msrb.mxu2 %v1044_v45 }
 0xa48   : > { %2309 = vrot.lane.b32.xlu0 %v3938_v12, %s3394_s22  ;;  %v2294_v33 = vpop.permute.xlu1 %2293 }
 0xa49   : > { %v2334_v5 = vsel %vm1227_vm1, %v3821_v38, %v2294_v33 }
 0xa73   : > { %v2280_v46 = vpop.f32.mrf.mxu0 }
 0xa79   : > { %v2254_v44 = vpop.f32.mrf.mxu3 }
 0xa7a   : > { %2323 = vrot.lane.b32.xlu2 %v2254_v44, %s3396_s19 }
 0xa82   : > { %2325 = vrot.lane.b32.xlu2 %v2280_v46, %s3396_s19 }
 0xa94   : > { %v2322_v18 = vpop.permute.xlu2 %2321 }
 0xaa2   : > { %v2320_v54 = vpop.permute.xlu0 %2319 }
 0xaa3   : > { %v2341_v55 = vsel %vm2340_vm5, %v2336_v53, %v2320_v54  ;;  %v1043_v53 = vld [vmem:[%s3564_s8 + $0x10] sm:$0xff]  ;;  %v1042_v54 = vld [vmem:[%s3564_s8 + $0x8] sm:$0xff] }
 0xaa4   : > { %3130 = vmatmul.msk.f32.vlgmr.msra.gmra.mxu1 %vm1063_vm3, %v2341_v55  ;;  %2523 = vmatpush.msrb.mxu2 %v1043_v53  ;;  %v1041_v55 = vld [vmem:[%s3564_s8] sm:$0xff]  ;;  %v1060_v53 = vld [vmem:[%s3574_s27 + $0x70] sm:$0xff] }
 0xaa6   : > { %2524 = vmatpush.msrb.mxu2 %v1042_v54  ;;  %v4072_v54 = vld [vmem:[%s4278_s0] ss:$0 sm:$0xff] }
 0xaa8   : > { %2525 = vmatpush.msrb.mxu2 %v1041_v55  ;;  %v1059_v55 = vld [vmem:[%s3574_s27 + $0x68] sm:$0xff] }
 0xaaa   : > { %v2306_v59 = vpop.permute.xlu0 %2305 }
 0xaab   : > { %v2337_v12 = vsel %vm2335_vm4, %v2332_v58, %v2306_v59 }
 0xaac   : > { %v2342_v60 = vsel %vm2340_vm5, %v2337_v12, %v2322_v18 }
 0xaad   : > { %3131 = vmatmul.msk.f32.gmra.mxu1 %vm1063_vm3, %v2342_v60 }
 0xab2   : > { %v2308_v61 = vpop.permute.xlu0 %2307 }
 0xab3   : > { %v2338_v9 = vsel %vm2335_vm4, %v2333_v63, %v2308_v61 }
 0xaba   : > { %v2310_v3 = vpop.permute.xlu0 %2309 }
 0xabb   : > { %v2339_v56 = vsel %vm2335_vm4, %v2334_v5, %v2310_v3  ;;  %v3242_v3 = vld [vmem:[%s833_s7] ss:$0 sm:$0xff] }
 0xad4   : > { %v2324_v52 = vpop.permute.xlu2 %2323 }
 0xad5   : > { %v2343_v1 = vsel %vm2340_vm5, %v2338_v9, %v2324_v52 }
 0xad6   : > { %3132 = vmatmul.msk.f32.gmra.mxu1 %vm1063_vm3, %v2343_v1 }
 0xadc   : > { %v2326_v7 = vpop.permute.xlu2 %2325 }
 0xadd   : > { %v2344_v42 = vsel %vm2340_vm5, %v2339_v56, %v2326_v7 }
 0xade   : > { %3133 = vmatmul.msk.f32.gmra.mxu1 %vm1063_vm3, %v2344_v42 }
 0xb21   : > { %v2377_v11 = vpop.f32.mrf.mxu1 }
 0xb22   : > { %v2378_v27 = vadd.f32 %v3241_v40, %v2377_v11 }
 0xb24   : > { %v3996_v14 = vadd.f32 %v3344_v13, %v2378_v27 }
 0xb26   : > { %v2393_v38 = vsel %vm1063_vm3, %v3996_v14, 0.0 }
 0xb27   : > { %2394 = vadd.xlane.f32.xlu1 %v2393_v38 }
 0xb2a   : > { %v2380_v10 = vpop.f32.mrf.mxu1 }
 0xb2b   : > { %v2381_v48 = vadd.f32 %v3241_v40, %v2380_v10 }
 0xb2d   : > { %v4003_v19 = vadd.f32 %v3345_v16, %v2381_v48 }
 0xb2f   : > { %v2396_v20 = vsel %vm1063_vm3, %v4003_v19, 0.0 }
 0xb30   : > { %2397 = vadd.xlane.f32.xlu0 %v2396_v20 }
 0xb53   : > { %v2383_v21 = vpop.f32.mrf.mxu1 }
 0xb54   : > { %v2384_v22 = vadd.f32 %v3241_v40, %v2383_v21 }
 0xb56   : > { %v4010_v0 = vadd.f32 %v3346_v23, %v2384_v22 }
 0xb58   : > { %v2399_v24 = vsel %vm1063_vm3, %v4010_v0, 0.0 }
 0xb59   : > { %2400 = vadd.xlane.f32.xlu2 %v2399_v24 }
 0xb5b   : > { %v2386_v15 = vpop.f32.mrf.mxu1 }
 0xb5c   : > { %v2387_v6 = vadd.f32 %v3241_v40, %v2386_v15  ;;  %v3243_v40 = vld [vmem:[%s836_s21] ss:$0 sm:$0xff] }
 0xb5e   : > { %v4017_v17 = vadd.f32 %v3347_v43, %v2387_v6 }
 0xb60   : > { %v2402_v4 = vsel %vm1063_vm3, %v4017_v17, 0.0 }
 0xb61   : > { %2403 = vadd.xlane.f32.xlu1 %v2402_v4 }
 0xb9a   : > { %v2395_v2 = vpop.xlane.xlu1 %2394 }
 0xb9b   : > { %v2405_v25 = vmul.f32 %v2395_v2, %v3652_v47 }
 0xb9d   : > { %v2409_v26 = vsub.f32 %v3996_v14, %v2405_v25 }
 0xb9f   : > { %v2413_v28 = vmul.f32 %v2409_v26, %v2409_v26 }
 0xba1   : > { %v2417_v62 = vsel %vm1063_vm3, %v2413_v28, 0.0 }
 0xba2   : > { %2418 = vadd.xlane.f32.xlu2 %v2417_v62 }
 0xba3   : > { %v2398_v29 = vpop.xlane.xlu0 %2397 }
 0xba4   : > { %v2406_v8 = vmul.f32 %v2398_v29, %v3652_v47 }
 0xba6   : > { %v2410_v30 = vsub.f32 %v4003_v19, %v2406_v8 }
 0xba8   : > { %v2414_v31 = vmul.f32 %v2410_v30, %v2410_v30 }
 0xbaa   : > { %v2420_v32 = vsel %vm1063_vm3, %v2414_v31, 0.0 }
 0xbab   : > { %2421 = vadd.xlane.f32.xlu0 %v2420_v32 }
 0xbcc   : > { %v2401_v34 = vpop.xlane.xlu2 %2400 }
 0xbcd   : > { %v2407_v35 = vmul.f32 %v2401_v34, %v3652_v47 }
 0xbcf   : > { %v4029_v37 = vsub.f32 %v4010_v0, %v2407_v35 }
 0xbd1   : > { %v2415_v39 = vmul.f32 %v4029_v37, %v4029_v37 }
 0xbd3   : > { %v2423_v41 = vsel %vm1063_vm3, %v2415_v39, 0.0 }
 0xbd4   : > { %2424 = vadd.xlane.f32.xlu1 %v2423_v41  ;;  %v2404_v44 = vpop.xlane.xlu1 %2403 }
 0xbd5   : > { %v2408_v46 = vmul.f32 %v2404_v44, %v3652_v47 }
 0xbd7   : > { %v4036_v49 = vsub.f32 %v4017_v17, %v2408_v46 }
 0xbd9   : > { %v2416_v50 = vmul.f32 %v4036_v49, %v4036_v49 }
 0xbdb   : > { %v2426_v51 = vsel %vm1063_vm3, %v2416_v50, 0.0 }
 0xbdc   : > { %2427 = vadd.xlane.f32.xlu2 %v2426_v51 }
 0xc15   : > { %v2419_v57 = vpop.xlane.xlu2 %2418 }
 0xc16   : > { %v2429_v58 = vmul.f32 %v2419_v57, %v3652_v47  ;;  %v1058_v57 = vld [vmem:[%s3574_s27 + $0x60] sm:$0xff] }
 0xc18   : > { %v2433_v59 = vadd.f32 1e-05, %v2429_v58 }
 0xc1a   : > { %3320 = vrsqrt.f32 %v2433_v59  ;;  %vm2443_vm7 = vweird.f32 %v2433_v59 }
 0xc1e   : > { %v2422_v18 = vpop.xlane.xlu0 %2421 }
 0xc1f   : > { %v2430_v12 = vmul.f32 %v2422_v18, %v3652_v47 }
 0xc20   : > { %v3321_v60 = vpop.eup %3320 }
 0xc21   : > { %v2438_v36 = vmul.f32 %v3321_v60, %v2433_v59  ;;  %v2434_v61 = vadd.f32 1e-05, %v2430_v12  ;;  %vm2444_vm6 = vweird.f32 %v3321_v60  ;;  %v1057_v59 = vld [vmem:[%s3574_s27 + $0x58] sm:$0xff]  ;;  %v1056_v12 = vld [vmem:[%s3574_s27 + $0x50] sm:$0xff] }
 0xc22   : > { %vm2445_vm8 = vmor %vm2443_vm7, %vm2444_vm6 }
 0xc23   : > { %v2439_v63 = vmul.f32 %v3321_v60, %v2438_v36  ;;  %3322 = vrsqrt.f32 %v2434_v61  ;;  %vm2453_vm10 = vweird.f32 %v2434_v61  ;;  %v1055_v36 = vld [vmem:[%s3574_s27 + $0x48] sm:$0xff] }
 0xc25   : > { %v2440_v9 = vmul.f32 0.5, %v2439_v63  ;;  %v1054_v63 = vld [vmem:[%s3574_s27 + $0x40] sm:$0xff] }
 0xc27   : > { %v2441_v52 = vsub.f32 1.5, %v2440_v9 }
 0xc29   : > { %v3323_v1 = vpop.eup %3322  ;;  %v2442_v33 = vmul.f32 %v3321_v60, %v2441_v52 }
 0xc2a   : > { %v2448_v5 = vmul.f32 %v3323_v1, %v2434_v61  ;;  %vm2454_vm9 = vweird.f32 %v3323_v1 }
 0xc2b   : > { %v2446_v56 = vsel %vm2445_vm8, %v3321_v60, %v2442_v33  ;;  %vm2455_vm11 = vmor %vm2453_vm10, %vm2454_vm9  ;;  %v1053_v33 = vld [vmem:[%s3574_s27 + $0x38] sm:$0xff] }
 0xc2c   : > { %v2477_v7 = vmul.f32 %v2446_v56, %v2409_v26  ;;  %v2449_v42 = vmul.f32 %v3323_v1, %v2448_v5  ;;  %v1052_v5 = vld [vmem:[%s3574_s27 + $0x30] sm:$0xff] }
 0xc2e   : > { %v2484_v11 = vmul.f32 %v3242_v3, %v2477_v7  ;;  %v2450_v27 = vmul.f32 0.5, %v2449_v42  ;;  %v1051_v7 = vld [vmem:[%s3574_s27 + $0x28] sm:$0xff] }
 0xc30   : > { %v2451_v13 = vsub.f32 1.5, %v2450_v27  ;;  %v2491_v38 = vadd.f32 %v3243_v40, %v2484_v11 }
 0xc32   : > { %v2452_v10 = vmul.f32 %v3323_v1, %v2451_v13  ;;  %3134 = vmatmul.msk.f32.vlgmr.msrb.gmra.mxu2 %vm1063_vm3, %v2491_v38  ;;  %v1049_v38 = vld [vmem:[%s3574_s27 + $0x18] sm:$0xff] }
 0xc34   : > { %v2456_v48 = vsel %vm2455_vm11, %v3323_v1, %v2452_v10 }
 0xc35   : > { %v2478_v16 = vmul.f32 %v2456_v48, %v2410_v30  ;;  %v1048_v48 = vld [vmem:[%s3574_s27 + $0x10] sm:$0xff] }
 0xc37   : > { %v2485_v20 = vmul.f32 %v3242_v3, %v2478_v16 }
 0xc39   : > { %v2492_v21 = vadd.f32 %v3243_v40, %v2485_v20 }
 0xc3b   : > { %3135 = vmatmul.msk.f32.gmra.mxu2 %vm1063_vm3, %v2492_v21 }
 0xc47   : > { %v2425_v22 = vpop.xlane.xlu1 %2424 }
 0xc48   : > { %v2431_v23 = vmul.f32 %v2425_v22, %v3652_v47  ;;  %v1047_v22 = vld [vmem:[%s3574_s27 + $0x8] sm:$0xff] }
 0xc4a   : > { %v2435_v24 = vadd.f32 1e-05, %v2431_v23 }
 0xc4c   : > { %3324 = vrsqrt.f32 %v2435_v24  ;;  %vm2463_vm13 = vweird.f32 %v2435_v24 }
 0xc4f   : > { %v2428_v15 = vpop.xlane.xlu2 %2427 }
 0xc50   : > { %v2432_v6 = vmul.f32 %v2428_v15, %v3652_v47 }
 0xc52   : > { %v3325_v43 = vpop.eup %3324  ;;  %v2436_v4 = vadd.f32 1e-05, %v2432_v6 }
 0xc53   : > { %v2458_v2 = vmul.f32 %v3325_v43, %v2435_v24  ;;  %vm2464_vm12 = vweird.f32 %v3325_v43  ;;  %v1046_v24 = vld [vmem:[%s3574_s27] sm:$0xff] }
 0xc54   : > { %3326 = vrsqrt.f32 %v2436_v4  ;;  %vm2465_vm14 = vmor %vm2463_vm13, %vm2464_vm12  ;;  %vm2473_vm0 = vweird.f32 %v2436_v4 }
 0xc55   : > { %v2459_v25 = vmul.f32 %v3325_v43, %v2458_v2 }
 0xc57   : > { %v2460_v26 = vmul.f32 0.5, %v2459_v25 }
 0xc59   : > { %v2461_v28 = vsub.f32 1.5, %v2460_v26 }
 0xc5a   : > { %v3327_v62 = vpop.eup %3326 }
 0xc5b   : > { %v2462_v29 = vmul.f32 %v3325_v43, %v2461_v28  ;;  %v2468_v8 = vmul.f32 %v3327_v62, %v2436_v4  ;;  %vm2474_vm15 = vweird.f32 %v3327_v62 }
 0xc5c   : > { %vm2475_vm1 = vmor %vm2473_vm0, %vm2474_vm15 }
 0xc5d   : > { %v2466_v30 = vsel %vm2465_vm14, %v3325_v43, %v2462_v29  ;;  %v2469_v31 = vmul.f32 %v3327_v62, %v2468_v8 }
 0xc5e   : > { %v2479_v32 = vmul.f32 %v2466_v30, %v4029_v37  ;;  %v1061_v37 = vld [vmem:[%s3574_s27 + $0x78] sm:$0xff] }
 0xc5f   : > { %v2470_v34 = vmul.f32 0.5, %v2469_v31  ;;  %2702 = vmatpush.msrb.mxu0 %v1061_v37  ;;  %3152 = vmatpush.msrb.mxu3 %v1061_v37 }
 0xc60   : > { %v2486_v35 = vmul.f32 %v3242_v3, %v2479_v32 }
 0xc61   : > { %v2471_v39 = vsub.f32 1.5, %v2470_v34  ;;  %2703 = vmatpush.msrb.mxu0 %v1060_v53  ;;  %3153 = vmatpush.msrb.mxu3 %v1060_v53 }
 0xc62   : > { %v2493_v41 = vadd.f32 %v3243_v40, %v2486_v35 }
 0xc63   : > { %v2472_v44 = vmul.f32 %v3327_v62, %v2471_v39  ;;  %2704 = vmatpush.msrb.mxu0 %v1059_v55  ;;  %3154 = vmatpush.msrb.mxu3 %v1059_v55 }
 0xc64   : > { %3136 = vmatmul.msk.f32.gmra.mxu2 %vm1063_vm3, %v2493_v41 }
 0xc65   : > { %v2476_v46 = vsel %vm2475_vm1, %v3327_v62, %v2472_v44  ;;  %2705 = vmatpush.msrb.mxu0 %v1058_v57  ;;  %3155 = vmatpush.msrb.mxu3 %v1058_v57 }
 0xc66   : > { %v2480_v50 = vmul.f32 %v2476_v46, %v4036_v49 }
 0xc67   : > { %2706 = vmatpush.msrb.mxu0 %v1057_v59  ;;  %3156 = vmatpush.msrb.mxu3 %v1057_v59 }
 0xc68   : > { %v2487_v51 = vmul.f32 %v3242_v3, %v2480_v50 }
 0xc69   : > { %2707 = vmatpush.msrb.mxu0 %v1056_v12  ;;  %3157 = vmatpush.msrb.mxu3 %v1056_v12 }
 0xc6a   : > { %v2494_v45 = vadd.f32 %v3243_v40, %v2487_v51  ;;  %v1050_v40 = vld [vmem:[%s3574_s27 + $0x20] sm:$0xff] }
 0xc6b   : > { %2708 = vmatpush.msrb.mxu0 %v1055_v36  ;;  %3158 = vmatpush.msrb.mxu3 %v1055_v36 }
 0xc6c   : > { %3137 = vmatmul.msk.f32.gmra.mxu2 %vm1063_vm3, %v2494_v45 }
 0xc6d   : > { %2709 = vmatpush.msrb.mxu0 %v1054_v63  ;;  %3159 = vmatpush.msrb.mxu3 %v1054_v63 }
 0xc6f   : > { %2710 = vmatpush.msrb.mxu0 %v1053_v33  ;;  %3160 = vmatpush.msrb.mxu3 %v1053_v33 }
 0xc71   : > { %2711 = vmatpush.msrb.mxu0 %v1052_v5  ;;  %3161 = vmatpush.msrb.mxu3 %v1052_v5 }
 0xc73   : > { %2712 = vmatpush.msrb.mxu0 %v1051_v7  ;;  %3162 = vmatpush.msrb.mxu3 %v1051_v7 }
 0xc75   : > { %2713 = vmatpush.msrb.mxu0 %v1050_v40  ;;  %3163 = vmatpush.msrb.mxu3 %v1050_v40 }
 0xc77   : > { %2714 = vmatpush.msrb.mxu0 %v1049_v38  ;;  %3164 = vmatpush.msrb.mxu3 %v1049_v38 }
 0xc79   : > { %2715 = vmatpush.msrb.mxu0 %v1048_v48  ;;  %3165 = vmatpush.msrb.mxu3 %v1048_v48 }
 0xc7b   : > { %2716 = vmatpush.msrb.mxu0 %v1047_v22  ;;  %3166 = vmatpush.msrb.mxu3 %v1047_v22 }
 0xc7d   : > { %2717 = vmatpush.msrb.mxu0 %v1046_v24  ;;  %3167 = vmatpush.msrb.mxu3 %v1046_v24 }
 0xcb5   : > { %v2527_v49 = vpop.f32.mrf.mxu2 }
 0xcb6   : > { %v4077_v58 = vadd.f32 %v4072_v54, %v2527_v49 }
 0xcb8   : > { %v4081_v18 = vmul.f32 0.70710677, %v4077_v58 }
 0xcba   : > { %v4085_v60 = vand.u32 2147483647, %v4081_v18  ;;  %vm2679_vm11 = vcmp.ge.f32.partialorder %v4081_v18, 0.0 }
 0xcbc   : > { %v2551_v61 = vmul.f32 0.3275911, %v4085_v60  ;;  %v2655_v2 = vsub.f32 0.0, %v4085_v60 }
 0xcbe   : > { %v2555_v9 = vadd.f32 1.0, %v2551_v61  ;;  %v2530_v52 = vpop.f32.mrf.mxu2  ;;  %v2659_v8 = vmul.f32 %v2655_v2, %v4085_v60 }
 0xcbf   : > { %v4091_v1 = vadd.f32 %v4072_v54, %v2530_v52 }
 0xcc0   : > { %3328 = vrcp.f32 %v2555_v9  ;;  %v2570_v16 = vand.u32 2147483648, %v2555_v9  ;;  %v2568_v21 = vand.u32 2147483647, %v2555_v9  ;;  %vm2564_vm4 = vweird.f32 %v2555_v9 }
 0xcc1   : > { %v4095_v3 = vmul.f32 0.70710677, %v4091_v1  ;;  %v2663_v41 = vmul.f32 1.442695, %v2659_v8 }
 0xcc2   : > { %v2571_v15 = vor.u32 1.1754944e-38, %v2570_v16  ;;  %vm2569_vm6 = vcmp.eq.f32.partialorder %v2568_v21, 8.507059e+37 }
 0xcc3   : > { %v4099_v56 = vand.u32 2147483647, %v4095_v3  ;;  %vm2680_vm12 = vcmp.ge.f32.partialorder %v4095_v3, 0.0 }
 0xcc5   : > { %v2552_v42 = vmul.f32 0.3275911, %v4099_v56  ;;  %v2656_v50 = vsub.f32 0.0, %v4099_v56 }
 0xcc6   : > { %v3329_v11 = vpop.eup %3328 }
 0xcc7   : > { %v2560_v27 = vmul.f32 %v3329_v11, %v2555_v9  ;;  %v2556_v13 = vadd.f32 1.0, %v2552_v42  ;;  %vm2565_vm2 = vweird.f32 %v3329_v11  ;;  %v2660_v49 = vmul.f32 %v2656_v50, %v4099_v56 }
 0xcc8   : > { %vm2566_vm5 = vmor %vm2564_vm4, %vm2565_vm2 }
 0xcc9   : > { %v2561_v10 = vsub.f32 1.0, %v2560_v27  ;;  %3330 = vrcp.f32 %v2556_v13  ;;  %v2585_v29 = vand.u32 2147483648, %v2556_v13  ;;  %v2583_v31 = vand.u32 2147483647, %v2556_v13 }
 0xcca   : > { %vm2579_vm8 = vweird.f32 %v2556_v13  ;;  %3332 = vpow2.f32 %v2663_v41  ;;  %v2665_v36 = vmul.f32 1.442695, %v2660_v49  ;;  %v2539_v27 = vmul.f32 0.5, %v4077_v58 }
 0xccb   : > { %v2562_v20 = vmul.f32 %v3329_v11, %v2561_v10  ;;  %v2586_v39 = vor.u32 1.1754944e-38, %v2585_v29  ;;  %vm2584_vm10 = vcmp.eq.f32.partialorder %v2583_v31, 8.507059e+37 }
 0xccc   : > { %3334 = vpow2.f32 %v2665_v36 }
 0xccd   : > { %v2563_v23 = vadd.f32 %v3329_v11, %v2562_v20 }
 0xccf   : > { %v3331_v6 = vpop.eup %3330  ;;  %v2567_v43 = vsel %vm2566_vm5, %v3329_v11, %v2563_v23 }
 0xcd0   : > { %v2572_v4 = vsel %vm2569_vm6, %v2571_v15, %v2567_v43  ;;  %v2575_v25 = vmul.f32 %v3331_v6, %v2556_v13  ;;  %vm2580_vm7 = vweird.f32 %v3331_v6  ;;  %v3333_v61 = vpop.eup %3332 }
 0xcd1   : > { %v2619_v26 = vmul.f32 1.0614054, %v2572_v4  ;;  %vm2581_vm9 = vmor %vm2579_vm8, %vm2580_vm7 }
 0xcd2   : > { %v2576_v28 = vsub.f32 1.0, %v2575_v25  ;;  %v3335_v48 = vpop.eup %3334 }
 0xcd3   : > { %v2623_v62 = vadd.f32 -1.4531521, %v2619_v26 }
 0xcd4   : > { %v2577_v30 = vmul.f32 %v3331_v6, %v2576_v28 }
 0xcd5   : > { %v2627_v32 = vmul.f32 %v2623_v62, %v2572_v4 }
 0xcd6   : > { %v2578_v34 = vadd.f32 %v3331_v6, %v2577_v30 }
 0xcd7   : > { %v2631_v35 = vadd.f32 1.4214138, %v2627_v32 }
 0xcd8   : > { %v2582_v44 = vsel %vm2581_vm9, %v3331_v6, %v2578_v34 }
 0xcd9   : > { %v2635_v46 = vmul.f32 %v2631_v35, %v2572_v4  ;;  %v2587_v51 = vsel %vm2584_vm10, %v2586_v39, %v2582_v44 }
 0xcda   : > { %v2620_v45 = vmul.f32 1.0614054, %v2587_v51 }
 0xcdb   : > { %v2639_v37 = vadd.f32 -0.28449672, %v2635_v46 }
 0xcdc   : > { %v2624_v53 = vadd.f32 -1.4531521, %v2620_v45 }
 0xcdd   : > { %v2643_v55 = vmul.f32 %v2639_v37, %v2572_v4 }
 0xcde   : > { %v2628_v57 = vmul.f32 %v2624_v53, %v2587_v51 }
 0xcdf   : > { %v2647_v59 = vadd.f32 0.2548296, %v2643_v55 }
 0xce0   : > { %v2632_v12 = vadd.f32 1.4214138, %v2628_v57 }
 0xce1   : > { %v2651_v60 = vmul.f32 %v2647_v59, %v2572_v4  ;;  %v2540_v4 = vmul.f32 0.5, %v4091_v1 }
 0xce2   : > { %v2636_v63 = vmul.f32 %v2632_v12, %v2587_v51 }
 0xce3   : > { %v2671_v9 = vmul.f32 %v3333_v61, %v2651_v60 }
 0xce4   : > { %v2640_v52 = vadd.f32 -0.28449672, %v2636_v63 }
 0xce5   : > { %v2675_v33 = vsub.f32 1.0, %v2671_v9 }
 0xce6   : > { %v2644_v5 = vmul.f32 %v2640_v52, %v2587_v51 }
 0xce7   : > { %v2683_v7 = vsub.f32 0.0, %v2675_v33  ;;  %v2533_v42 = vpop.f32.mrf.mxu2 }
 0xce8   : > { %v4114_v40 = vadd.f32 %v4072_v54, %v2533_v42  ;;  %v2648_v56 = vadd.f32 0.2548296, %v2644_v5 }
 0xce9   : > { %v2687_v11 = vsel %vm2679_vm11, %v2675_v33, %v2683_v7 }
 0xcea   : > { %v2691_v13 = vadd.f32 1.0, %v2687_v11  ;;  %v4118_v38 = vmul.f32 0.70710677, %v4114_v40  ;;  %v2652_v10 = vmul.f32 %v2648_v56, %v2587_v51 }
 0xcec   : > { %v2695_v16 = vmul.f32 %v2691_v13, %v2539_v27  ;;  %v2549_v20 = vand.u32 2147483647, %v4118_v38  ;;  %v2672_v21 = vmul.f32 %v3335_v48, %v2652_v10  ;;  %vm2681_vm6 = vcmp.ge.f32.partialorder %v4118_v38, 0.0 }
 0xcee   : > { %v2553_v22 = vmul.f32 0.3275911, %v2549_v20  ;;  %2718 = vmatmul.f32.vlgmr.msrb.gmra.mxu0 %v2695_v16  ;;  %v2676_v18 = vsub.f32 1.0, %v2672_v21  ;;  %v2657_v41 = vsub.f32 0.0, %v2549_v20 }
 0xcef   : > { %v2536_v23 = vpop.f32.mrf.mxu2 }
 0xcf0   : > { %v2557_v24 = vadd.f32 1.0, %v2553_v22  ;;  %v4122_v15 = vadd.f32 %v4072_v54, %v2536_v23  ;;  %v2684_v6 = vsub.f32 0.0, %v2676_v18  ;;  %v2661_v37 = vmul.f32 %v2657_v41, %v2549_v20 }
 0xcf2   : > { %3336 = vrcp.f32 %v2557_v24  ;;  %v4126_v58 = vmul.f32 0.70710677, %v4122_v15  ;;  %v2688_v43 = vsel %vm2680_vm12, %v2676_v18, %v2684_v6  ;;  %v2600_v30 = vand.u32 2147483648, %v2557_v24 }
 0xcf3   : > { %v2692_v2 = vadd.f32 1.0, %v2688_v43  ;;  %v2598_v31 = vand.u32 2147483647, %v2557_v24  ;;  %vm2594_vm14 = vweird.f32 %v2557_v24  ;;  %v2667_v60 = vmul.f32 1.442695, %v2661_v37 }
 0xcf4   : > { %v2550_v25 = vand.u32 2147483647, %v4126_v58  ;;  %v2601_v34 = vor.u32 1.1754944e-38, %v2600_v30  ;;  %v2541_v43 = vmul.f32 0.5, %v4114_v40  ;;  %vm2682_vm7 = vcmp.ge.f32.partialorder %v4126_v58, 0.0 }
 0xcf5   : > { %v2696_v26 = vmul.f32 %v2692_v2, %v2540_v4  ;;  %vm2599_vm0 = vcmp.eq.f32.partialorder %v2598_v31, 8.507059e+37  ;;  %v3245_v40 = vld [vmem:[%s4279_s3] ss:$0 sm:$0xff] }
 0xcf6   : > { %v2554_v28 = vmul.f32 0.3275911, %v2550_v25  ;;  %v2658_v63 = vsub.f32 0.0, %v2550_v25 }
 0xcf7   : > { %2721 = vmatmul.f32.gmra.mxu0 %v2696_v26 }
 0xcf8   : > { %v3337_v62 = vpop.eup %3336  ;;  %v2558_v54 = vadd.f32 1.0, %v2554_v28  ;;  %v2662_v42 = vmul.f32 %v2658_v63, %v2550_v25 }
 0xcf9   : > { %v2590_v29 = vmul.f32 %v3337_v62, %v2557_v24  ;;  %vm2595_vm13 = vweird.f32 %v3337_v62 }
 0xcfa   : > { %3338 = vrcp.f32 %v2558_v54  ;;  %vm2596_vm15 = vmor %vm2594_vm14, %vm2595_vm13  ;;  %v2615_v45 = vand.u32 2147483648, %v2558_v54  ;;  %v2613_v55 = vand.u32 2147483647, %v2558_v54  ;;  %vm2609_vm2 = vweird.f32 %v2558_v54 }
 0xcfb   : > { %v2591_v8 = vsub.f32 1.0, %v2590_v29  ;;  %3340 = vpow2.f32 %v2667_v60  ;;  %v2669_v10 = vmul.f32 1.442695, %v2662_v42 }
 0xcfc   : > { %v2616_v12 = vor.u32 1.1754944e-38, %v2615_v45  ;;  %vm2614_vm5 = vcmp.eq.f32.partialorder %v2613_v55, 8.507059e+37 }
 0xcfd   : > { %v2592_v3 = vmul.f32 %v3337_v62, %v2591_v8  ;;  %3342 = vpow2.f32 %v2669_v10  ;;  %v2542_v8 = vmul.f32 0.5, %v4122_v15 }
 0xcff   : > { %v2593_v32 = vadd.f32 %v3337_v62, %v2592_v3 }
 0xd00   : > { %v3339_v1 = vpop.eup %3338 }
 0xd01   : > { %v2597_v35 = vsel %vm2596_vm15, %v3337_v62, %v2593_v32  ;;  %v2605_v44 = vmul.f32 %v3339_v1, %v2558_v54  ;;  %vm2610_vm1 = vweird.f32 %v3339_v1  ;;  %v3341_v48 = vpop.eup %3340 }
 0xd02   : > { %v2602_v39 = vsel %vm2599_vm0, %v2601_v34, %v2597_v35  ;;  %vm2611_vm4 = vmor %vm2609_vm2, %vm2610_vm1 }
 0xd03   : > { %v2621_v46 = vmul.f32 1.0614054, %v2602_v39  ;;  %v2606_v50 = vsub.f32 1.0, %v2605_v44  ;;  %v3343_v25 = vpop.eup %3342 }
 0xd05   : > { %v2625_v51 = vadd.f32 -1.4531521, %v2621_v46  ;;  %v2607_v53 = vmul.f32 %v3339_v1, %v2606_v50 }
 0xd07   : > { %v2629_v49 = vmul.f32 %v2625_v51, %v2602_v39  ;;  %v2608_v57 = vadd.f32 %v3339_v1, %v2607_v53 }
 0xd09   : > { %v2633_v59 = vadd.f32 1.4214138, %v2629_v49  ;;  %v2612_v36 = vsel %vm2611_vm4, %v3339_v1, %v2608_v57 }
 0xd0a   : > { %v2617_v9 = vsel %vm2614_vm5, %v2616_v12, %v2612_v36 }
 0xd0b   : > { %v2637_v61 = vmul.f32 %v2633_v59, %v2602_v39  ;;  %v2622_v52 = vmul.f32 1.0614054, %v2617_v9 }
 0xd0d   : > { %v2641_v33 = vadd.f32 -0.28449672, %v2637_v61  ;;  %v2626_v5 = vadd.f32 -1.4531521, %v2622_v52 }
 0xd0f   : > { %v2645_v7 = vmul.f32 %v2641_v33, %v2602_v39  ;;  %v2630_v56 = vmul.f32 %v2626_v5, %v2617_v9 }
 0xd11   : > { %v2649_v11 = vadd.f32 0.2548296, %v2645_v7  ;;  %v2634_v27 = vadd.f32 1.4214138, %v2630_v56 }
 0xd13   : > { %v2653_v13 = vmul.f32 %v2649_v11, %v2602_v39  ;;  %v2638_v16 = vmul.f32 %v2634_v27, %v2617_v9 }
 0xd15   : > { %v2673_v20 = vmul.f32 %v3341_v48, %v2653_v13  ;;  %v2642_v21 = vadd.f32 -0.28449672, %v2638_v16 }
 0xd17   : > { %v2677_v22 = vsub.f32 1.0, %v2673_v20  ;;  %v2646_v18 = vmul.f32 %v2642_v21, %v2617_v9 }
 0xd19   : > { %v2685_v23 = vsub.f32 0.0, %v2677_v22  ;;  %v2650_v24 = vadd.f32 0.2548296, %v2646_v18 }
 0xd1b   : > { %v2689_v6 = vsel %vm2681_vm6, %v2677_v22, %v2685_v23  ;;  %v2654_v2 = vmul.f32 %v2650_v24, %v2617_v9 }
 0xd1c   : > { %v2693_v4 = vadd.f32 1.0, %v2689_v6 }
 0xd1d   : > { %v2674_v28 = vmul.f32 %v3343_v25, %v2654_v2 }
 0xd1e   : > { %v2697_v26 = vmul.f32 %v2693_v4, %v2541_v43 }
 0xd1f   : > { %v2678_v62 = vsub.f32 1.0, %v2674_v28 }
 0xd20   : > { %2724 = vmatmul.f32.vlgmr.msrb.gmra.mxu3 %v2697_v26 }
 0xd21   : > { %v2686_v29 = vsub.f32 0.0, %v2678_v62 }
 0xd23   : > { %v2690_v54 = vsel %vm2682_vm7, %v2678_v62, %v2686_v29 }
 0xd24   : > { %v2694_v30 = vadd.f32 1.0, %v2690_v54 }
 0xd26   : > { %v2698_v38 = vmul.f32 %v2694_v30, %v2542_v8 }
 0xd28   : > { %2727 = vmatmul.f32.gmra.mxu3 %v2698_v38 }
 0xd6b   : > { %v2719_v3 = vpop.f32.mrf.mxu0 }
 0xd6c   : > { %v2720_v31 = vadd.f32 %v3245_v40, %v2719_v3 }
 0xd6e   : > { %v2731_v32 = vadd.f32 %v2720_v31, %v3996_v14 }
 0xd74   : > { %v2722_v34 = vpop.f32.mrf.mxu0 }
 0xd75   : > { %v2723_v1 = vadd.f32 %v3245_v40, %v2722_v34 }
 0xd77   : > { %v2732_v35 = vadd.f32 %v2723_v1, %v4003_v19 }
 0xda3   : > { %v2725_v58 = vpop.f32.mrf.mxu3 }
 0xda4   : > { %v2726_v39 = vadd.f32 %v3245_v40, %v2725_v58 }
 0xda6   : > { %v2733_v15 = vadd.f32 %v2726_v39, %v4010_v0 }
 0xdaa   : > { %2738 = sbr.rel (%p3138_p6) target bundleno = 3507 (0xdb3), region = 108 }
 0xdab   : > { %v2728_v41 = vpop.f32.mrf.mxu3 }
 0xdac   : > { %v2729_v44 = vadd.f32 %v3245_v40, %v2728_v41 }
 0xdae   : > { %v2734_v46 = vadd.f32 %v2729_v44, %v4017_v17 }
 0xdaf   : > { %2739 = vst.msk [vmem:[%s4243_s20] sm:$0xff] %vm1063_vm3, %v2731_v32 }
 0xdb0   : > { %2740 = vst.msk [vmem:[%s4243_s20 + $0x8] sm:$0xff] %vm1063_vm3, %v2732_v35 }
 0xdb1   : > { %2741 = vst.msk [vmem:[%s4243_s20 + $0x10] sm:$0xff] %vm1063_vm3, %v2733_v15 }
 0xdb2   : > { %2742 = vst.msk [vmem:[%s4243_s20 + $0x18] sm:$0xff] %vm1063_vm3, %v2734_v46 }
 0xdb3 PF: > { %p3139_p7 = scmp.ne.s32.totalorder %s3372_s1, 1 }
 0xdb4   : > { %s4280_s28 = sld [smem:[#allocation14_spill]] (!%p3139_p7) }
 0xdb5   : > { %2746 = sbr.rel (%p3139_p7) target bundleno = 3792 (0xed0), region = 112  ;;  %s4281_s0 = sld [smem:[#allocation15_spill]] (!%p3139_p7) }
 0xdba   : > { %v2755_v14 = vsel %vm1063_vm3, %v2733_v15, 0.0  ;;  %v2749_v19 = vsel %vm1063_vm3, %v2731_v32, 0.0  ;;  %v2758_v0 = vsel %vm1063_vm3, %v2734_v46, 0.0  ;;  %v2752_v17 = vsel %vm1063_vm3, %v2732_v35, 0.0  ;;  %v3348_v38 = vld [vmem:[%s4280_s28] ss:$0 sm:$0xff] }
 0xdbb   : > { %2756 = vadd.xlane.f32.xlu1 %v2755_v14  ;;  %2750 = vadd.xlane.f32.xlu0 %v2749_v19  ;;  %v3349_v1 = vld [vmem:[%s4281_s0] ss:$0 sm:$0xff] }
 0xdc3   : > { %2759 = vadd.xlane.f32.xlu1 %v2758_v0  ;;  %2753 = vadd.xlane.f32.xlu0 %v2752_v17 }
 0xe2e   : > { %v2757_v50 = vpop.xlane.xlu1 %2756  ;;  %v2751_v51 = vpop.xlane.xlu0 %2750 }
 0xe2f   : > { %v2763_v45 = vmul.f32 %v2757_v50, %v3652_v47  ;;  %v2761_v37 = vmul.f32 %v2751_v51, %v3652_v47 }
 0xe31   : > { %v4167_v53 = vsub.f32 %v2733_v15, %v2763_v45  ;;  %v2765_v55 = vsub.f32 %v2731_v32, %v2761_v37 }
 0xe33   : > { %v2771_v49 = vmul.f32 %v4167_v53, %v4167_v53  ;;  %v2769_v57 = vmul.f32 %v2765_v55, %v2765_v55 }
 0xe35   : > { %v2779_v59 = vsel %vm1063_vm3, %v2771_v49, 0.0  ;;  %v2773_v12 = vsel %vm1063_vm3, %v2769_v57, 0.0 }
 0xe36   : > { %v2760_v60 = vpop.xlane.xlu1 %2759  ;;  %2780 = vadd.xlane.f32.xlu0 %v2779_v59  ;;  %2774 = vadd.xlane.f32.xlu2 %v2773_v12  ;;  %v2754_v36 = vpop.xlane.xlu0 %2753 }
 0xe37   : > { %v2764_v61 = vmul.f32 %v2760_v60, %v3652_v47  ;;  %v2762_v63 = vmul.f32 %v2754_v36, %v3652_v47 }
 0xe39   : > { %v4175_v9 = vsub.f32 %v2734_v46, %v2764_v61  ;;  %v4177_v52 = vsub.f32 %v2732_v35, %v2762_v63 }
 0xe3b   : > { %v2772_v33 = vmul.f32 %v4175_v9, %v4175_v9  ;;  %v2770_v5 = vmul.f32 %v4177_v52, %v4177_v52 }
 0xe3d   : > { %v2782_v7 = vsel %vm1063_vm3, %v2772_v33, 0.0  ;;  %v2776_v42 = vsel %vm1063_vm3, %v2770_v5, 0.0 }
 0xe3e   : > { %2783 = vadd.xlane.f32.xlu1 %v2782_v7  ;;  %2777 = vadd.xlane.f32.xlu2 %v2776_v42 }
 0xea9   : > { %v2775_v56 = vpop.xlane.xlu2 %2774  ;;  %v2781_v11 = vpop.xlane.xlu0 %2780 }
 0xeaa   : > { %v2785_v27 = vmul.f32 %v2775_v56, %v3652_v47  ;;  %v2787_v13 = vmul.f32 %v2781_v11, %v3652_v47 }
 0xeac   : > { %v2789_v10 = vadd.f32 1e-05, %v2785_v27  ;;  %v2791_v48 = vadd.f32 1e-05, %v2787_v13 }
 0xeae   : > { %3350 = vrsqrt.f32 %v2789_v10  ;;  %vm2799_vm10 = vweird.f32 %v2789_v10  ;;  %vm2819_vm12 = vweird.f32 %v2791_v48 }
 0xeaf   : > { %3352 = vrsqrt.f32 %v2791_v48 }
 0xeb1   : > { %v2784_v16 = vpop.xlane.xlu1 %2783  ;;  %v2778_v20 = vpop.xlane.xlu2 %2777 }
 0xeb2   : > { %v2788_v21 = vmul.f32 %v2784_v16, %v3652_v47  ;;  %v2786_v22 = vmul.f32 %v2778_v20, %v3652_v47 }
 0xeb4   : > { %v3351_v18 = vpop.eup %3350  ;;  %v2792_v23 = vadd.f32 1e-05, %v2788_v21  ;;  %v2790_v24 = vadd.f32 1e-05, %v2786_v22 }
 0xeb5   : > { %v3353_v6 = vpop.eup %3352  ;;  %v2794_v43 = vmul.f32 %v3351_v18, %v2789_v10  ;;  %vm2800_vm8 = vweird.f32 %v3351_v18 }
 0xeb6   : > { %v2814_v4 = vmul.f32 %v3353_v6, %v2791_v48  ;;  %3354 = vrsqrt.f32 %v2792_v23  ;;  %vm2820_vm9 = vweird.f32 %v3353_v6  ;;  %vm2801_vm11 = vmor %vm2799_vm10, %vm2800_vm8  ;;  %vm2829_vm0 = vweird.f32 %v2792_v23 }
 0xeb7   : > { %v2795_v2 = vmul.f32 %v3351_v18, %v2794_v43  ;;  %3356 = vrsqrt.f32 %v2790_v24  ;;  %vm2821_vm13 = vmor %vm2819_vm12, %vm2820_vm9  ;;  %vm2809_vm2 = vweird.f32 %v2790_v24 }
 0xeb8   : > { %v2815_v25 = vmul.f32 %v3353_v6, %v2814_v4 }
 0xeb9   : > { %v2796_v26 = vmul.f32 0.5, %v2795_v2 }
 0xeba   : > { %v2816_v28 = vmul.f32 0.5, %v2815_v25 }
 0xebb   : > { %v2797_v62 = vsub.f32 1.5, %v2796_v26 }
 0xebc   : > { %v3355_v29 = vpop.eup %3354  ;;  %v2817_v54 = vsub.f32 1.5, %v2816_v28 }
 0xebd   : > { %v3357_v8 = vpop.eup %3356  ;;  %v2798_v30 = vmul.f32 %v3351_v18, %v2797_v62  ;;  %v2824_v47 = vmul.f32 %v3355_v29, %v2792_v23  ;;  %vm2830_vm14 = vweird.f32 %v3355_v29 }
 0xebe   : > { %v2818_v40 = vmul.f32 %v3353_v6, %v2817_v54  ;;  %v2804_v3 = vmul.f32 %v3357_v8, %v2790_v24  ;;  %vm2810_vm15 = vweird.f32 %v3357_v8  ;;  %vm2831_vm1 = vmor %vm2829_vm0, %vm2830_vm14 }
 0xebf   : > { %v2802_v31 = vsel %vm2801_vm11, %v3351_v18, %v2798_v30  ;;  %v2825_v32 = vmul.f32 %v3355_v29, %v2824_v47  ;;  %vm2811_vm4 = vmor %vm2809_vm2, %vm2810_vm15 }
 0xec0   : > { %v2833_v34 = vmul.f32 %v2802_v31, %v2765_v55  ;;  %v2822_v35 = vsel %vm2821_vm13, %v3353_v6, %v2818_v40  ;;  %v2805_v58 = vmul.f32 %v3357_v8, %v2804_v3 }
 0xec1   : > { %v2835_v39 = vmul.f32 %v2822_v35, %v4167_v53  ;;  %v2826_v15 = vmul.f32 0.5, %v2825_v32 }
 0xec2   : > { %v2840_v41 = vmul.f32 %v3348_v38, %v2833_v34  ;;  %v2806_v44 = vmul.f32 0.5, %v2805_v58 }
 0xec3   : > { %v2842_v46 = vmul.f32 %v3348_v38, %v2835_v39  ;;  %v2827_v14 = vsub.f32 1.5, %v2826_v15 }
 0xec4   : > { %v2847_v19 = vadd.f32 %v3349_v1, %v2840_v41  ;;  %v2807_v0 = vsub.f32 1.5, %v2806_v44 }
 0xec5   : > { %v2849_v17 = vadd.f32 %v3349_v1, %v2842_v46  ;;  %v2828_v50 = vmul.f32 %v3355_v29, %v2827_v14 }
 0xec6   : > { %2851 = vst.msk [vmem:[%s4243_s20] sm:$0xff] %vm1063_vm3, %v2847_v19  ;;  %v2808_v51 = vmul.f32 %v3357_v8, %v2807_v0 }
 0xec7   : > { %2853 = vst.msk [vmem:[%s4243_s20 + $0x10] sm:$0xff] %vm1063_vm3, %v2849_v17  ;;  %v2832_v45 = vsel %vm2831_vm1, %v3355_v29, %v2828_v50 }
 0xec8   : > { %v2836_v37 = vmul.f32 %v2832_v45, %v4175_v9  ;;  %v2812_v53 = vsel %vm2811_vm4, %v3357_v8, %v2808_v51 }
 0xec9   : > { %v2834_v55 = vmul.f32 %v2812_v53, %v4177_v52 }
 0xeca   : > { %v2843_v49 = vmul.f32 %v3348_v38, %v2836_v37 }
 0xecb   : > { %v2841_v57 = vmul.f32 %v3348_v38, %v2834_v55 }
 0xecc   : > { %v2850_v59 = vadd.f32 %v3349_v1, %v2843_v49 }
 0xecd   : > { %v2848_v12 = vadd.f32 %v3349_v1, %v2841_v57 }
 0xece   : > { %2854 = vst.msk [vmem:[%s4243_s20 + $0x18] sm:$0xff] %vm1063_vm3, %v2850_v59 }
 0xecf   : > { %2852 = vst.msk [vmem:[%s4243_s20 + $0x8] sm:$0xff] %vm1063_vm3, %v2848_v12 }
 0xed0 PF: > { %s4282_s19 = sld [smem:[#allocation3_spill]] }
 0xed1   : > { %s4283_s1 = sld [smem:[#allocation2_spill]] }
 0xed2   : > { %s4284_s22 = sld [smem:[#allocation4_spill]] }
 0xed6   : > { %s30_s23 = sadd.s32 1, %s4282_s19  }
 0xed7   : > { %p27_p8 = scmp.ge.s32.totalorder %s30_s23, 4  }
 0xed9   :  { %29 = sbr.rel (!%p27_p8) target bundleno = 11 (0xb), region = 181 }

// kernel: mae_forward.5
= control target key start
LH: loop header
LB: loop body
LE: loop exit
PB: predicated region body
PF: predicated region fallthrough
CT: control target
= control target key end

     0   :  { %s3426_s30 = smov 0   ;;  %s3428_s24 = smov 0   ;;  %s4135_s0 = inlined_call_operand.vmem [shape: f32[2,8,32], index: 0, kind: input, shape index: {}]   ;;  %s4136_s1 = inlined_call_operand.vmem [shape: f32[2,16,8], index: 1, kind: input, shape index: {}]   ;;  %s4137_s2 = inlined_call_operand.vmem [shape: f32[2,16,1], index: 2, kind: input, shape index: {}]   ;;  %s4138_s3 = inlined_call_operand.vmem [shape: f32[32,32], index: 3, kind: input, shape index: {}]   ;;  %s4139_s4 = inlined_call_operand.vmem [shape: f32[1,32], index: 4, kind: input, shape index: {}]   ;;  %s4140_s5 = inlined_call_operand.vmem [shape: f32[1,1,32], index: 5, kind: input, shape index: {}]   ;;  %s4141_s6 = inlined_call_operand.vmem [shape: f32[1,16,32], index: 6, kind: input, shape index: {}]   ;;  %s4142_s7 = inlined_call_operand.vmem [shape: f32[2,1,32], index: 7, kind: input, shape index: {}]   ;;  %s4143_s8 = inlined_call_operand.vmem [shape: f32[2,1,32], index: 8, kind: input, shape index: {}]   ;;  %s4144_s9 = inlined_call_operand.vmem [shape: f32[2,32,96], index: 9, kind: input, shape index: {}]   ;;  %s4145_s10 = inlined_call_operand.vmem [shape: f32[2,1,96], index: 10, kind: input, shape index: {}]   ;;  %s4146_s11 = inlined_call_operand.vmem [shape: f32[2,32,32], index: 11, kind: input, shape index: {}]   ;;  %s4147_s12 = inlined_call_operand.vmem [shape: f32[2,1,32], index: 12, kind: input, shape index: {}]   ;;  %s4148_s13 = inlined_call_operand.vmem [shape: f32[2,1,32], index: 13, kind: input, shape index: {}]   ;;  %s4149_s14 = inlined_call_operand.vmem [shape: f32[2,1,32], index: 14, kind: input, shape index: {}]   ;;  %s4150_s15 = inlined_call_operand.vmem [shape: f32[2,32,128], index: 15, kind: input, shape index: {}]   ;;  %s4151_s16 = inlined_call_operand.vmem [shape: f32[2,1,128], index: 16, kind: input, shape index: {}]   ;;  %s4152_s17 = inlined_call_operand.vmem [shape: f32[2,128,32], index: 17, kind: input, shape index: {}]   ;;  %s4153_s18 = inlined_call_operand.vmem [shape: f32[2,1,32], index: 18, kind: input, shape index: {}]   ;;  %s4154_s19 = inlined_call_operand.vmem [shape: f32[1,32], index: 19, kind: input, shape index: {}]   ;;  %s4155_s20 = inlined_call_operand.vmem [shape: f32[1,32], index: 20, kind: input, shape index: {}]   ;;  %s4156_s21 = inlined_call_operand.vmem [shape: f32[32,16], index: 21, kind: input, shape index: {}]   ;;  %s4157_s22 = inlined_call_operand.vmem [shape: f32[1,16], index: 22, kind: input, shape index: {}]   ;;  %s4158_s23 = inlined_call_operand.vmem [shape: f32[2,16,16], index: 23, kind: output, shape index: {}]  }
   0x1   :  { %4167 = sst [smem:[#allocation6_spill]] %s4135_s0 }
   0x2   :  { %4168 = sst [smem:[#allocation7_spill]] %s4136_s1 }
   0x3   :  { %4169 = sst [smem:[#allocation8_spill]] %s4137_s2 }
   0x4   :  { %4170 = sst [smem:[#allocation9_spill]] %s4138_s3 }
   0x5   :  { %4171 = sst [smem:[#allocation10_spill]] %s4139_s4  ;;  %s3424_s4 = smov 0  }
   0x6   :  { %4172 = sst [smem:[#allocation11_spill]] %s4140_s5 }
   0x7   :  { %4173 = sst [smem:[#allocation12_spill]] %s4141_s6 }
   0x8   :  { %4174 = sst [smem:[#allocation13_spill]] %s4142_s7 }
   0x9   :  { %4175 = sst [smem:[#allocation14_spill]] %s4144_s9 }
   0xa   :  { %4176 = sst [smem:[#allocation15_spill]] %s4146_s11 }
   0xb   :  { %4177 = sst [smem:[#allocation16_spill]] %s4154_s19 }
   0xc   :  { %4178 = sst [smem:[#allocation17_spill]] %s4155_s20 }
   0xd   :  { %4179 = sst [smem:[#allocation18_spill]] %s4157_s22 }
   0xe   :  { %4180 = sst [smem:[#allocation19_spill]] %s4158_s23 }
   0xf LB: > { %4181 = sst [smem:[#allocation3_spill]] %s3282_s30  ;;  %s42_s25 = sadd.s32 1, %s3282_s30  ;;  %s3286_s24 = sphi %s3428_s24, %s33_s24   ;;  %s3282_s30 = sphi %s3426_s30, %s4209_s30   ;;  %s3278_s4 = sphi %s3424_s4, %s4208_s4  }
  0x10   : > { %4182 = sst [smem:[#allocation4_spill]] %s3286_s24  ;;  %p2951_p0 = scmp.ge.s32.totalorder %s3286_s24, 1 }
  0x11   : > { %p43_p1 = scmp.ge.s32.totalorder %s42_s25, 2  ;;  %p778_p2 = scmp.lt.s32.totalorder %s3286_s24, 3 }
  0x13   : > { %s4211_s25 = smov (%p43_p1, %s42_s25), 0  ;;  %p779_p3 = pnand %p2951_p0, %p778_p2 }
  0x14   : > { %4183 = sst [smem:[#allocation5_spill]] %s4211_s25  ;;  %p919_p4 = scmp.lt.s32.totalorder (!%p779_p3), %s3278_s4, 1 }
  0x15   : > { %782 = sbr.rel (%p779_p3) target bundleno = 2763 (0xacb), region = 112  ;;  %s4185_s9 = sld [smem:[#allocation14_spill]] (!%p779_p3) }
  0x16   : > { %s4186_s11 = sld [smem:[#allocation15_spill]] (!%p779_p3)  ;;  %p2960_p5 = scmp.ne.s32.totalorder (!%p779_p3), %s3278_s4, 0 }
  0x1a   : > { %s3446_s5 = scalar_select %p919_p4, %s3278_s4, 1 }
  0x1b   : > { %973 = sbr.rel (%p2960_p5) target bundleno = 321 (0x141), region = 116  ;;  %s4187_s1 = sld [smem:[#allocation9_spill]] (!%p2960_p5) }
  0x1c   : > { %s3037_s29 = sshll.u32 %s3446_s5, 5  ;;  %s943_s20 = scalar_lea.vmem %s4148_s13, %s3446_s5 }
  0x1d   : > { %s3464_s30 = scalar_lea.vmem %s4185_s9, %s3037_s29  ;;  %s3469_s22 = scalar_lea.vmem %s4186_s11, %s3037_s29 }
  0x1e   : > { %s3486_s9 = scalar_lea.vmem %s4150_s15, %s3037_s29  ;;  %s3040_s19 = sshll.u32 %s3446_s5, 7 }
  0x1f   : > { %s3496_s27 = scalar_lea.vmem %s4152_s17, %s3040_s19  ;;  %s4188_s0 = sld [smem:[#allocation6_spill]] (!%p2960_p5) }
  0x20   : > { %vm984_vm0 = vcmask 261120   ;;  %v3288_v6 = vmov 0   ;;  %s4189_s19 = sld [smem:[#allocation8_spill]]  ;;  %vm1050_vm1 = vcmask 64512  }
  0x21   : > { %v979_v0 = vld [vmem:[%s4187_s1 + $0x18] sm:$0xff]  ;;  %v978_v1 = vld [vmem:[%s4187_s1 + $0x10] sm:$0xff]  ;;  %v977_v2 = vld [vmem:[%s4187_s1 + $0x8] sm:$0xff]  ;;  %3100 = vset.pattern.permute.xlu1 %v3288_v6  ;;  %3099 = vset.pattern.permute.xlu0 %v3288_v6  ;;  %s4190_s23 = sld [smem:[#allocation10_spill]] }
  0x22   : > { %3041 = vmatpush.msra.mxu3 %v979_v0  ;;  %1003 = vmatpush.msra.mxu0 %v979_v0  ;;  %v976_v3 = vld [vmem:[%s4187_s1] sm:$0xff]  ;;  %s4191_s2 = sld [smem:[#allocation7_spill]] }
  0x23   : > { %s4192_s6 = sld [smem:[#allocation11_spill]] }
  0x24   : > { %3042 = vmatpush.msra.mxu3 %v978_v1  ;;  %1004 = vmatpush.msra.mxu0 %v978_v1  ;;  %s4193_s25 = sld [smem:[#allocation12_spill]] }
  0x25   : > { %v975_v4 = vld [vmem:[%s4188_s0 + $0x8] sm:$0xff]  ;;  %v974_v5 = vld [vmem:[%s4188_s0] sm:$0xff] }
  0x26   : > { %3043 = vmatpush.msra.mxu3 %v977_v2  ;;  %1005 = vmatpush.msra.mxu0 %v977_v2  ;;  %v1020_v7 = vld [vmem:[%s4189_s19 + $0x10] sm:$0xff]  ;;  %v1018_v8 = vld [vmem:[%s4189_s19] sm:$0xff]  ;;  %v1021_v9 = vld [vmem:[%s4189_s19 + $0x18] sm:$0xff] }
  0x27   : > { %1035 = vperm.xlu1 %3100, %v1020_v7   ;;  %1025 = vperm.xlu0 %3099, %v1018_v8   ;;  %v1019_v10 = vld [vmem:[%s4189_s19 + $0x8] sm:$0xff]  ;;  %v3101_v11 = vld [vmem:[%s4190_s23] ss:$0 sm:$0xff] }
  0x28   : > { %3044 = vmatpush.msra.mxu3 %v976_v3  ;;  %1006 = vmatpush.msra.mxu0 %v976_v3  ;;  %v1014_v14 = vld [vmem:[%s4191_s2] sm:$0xff]  ;;  %v1016_v17 = vld [vmem:[%s4191_s2 + $0x10] sm:$0xff]  ;;  %v1015_v18 = vld [vmem:[%s4191_s2 + $0x8] sm:$0xff] }
  0x29   : > { %2962 = vmatmul.msk.f32.vlgmr.msra.gmra.mxu3 %vm984_vm0, %v975_v4  ;;  %2961 = vmatmul.msk.f32.vlgmr.msra.gmra.mxu0 %vm984_vm0, %v974_v5  ;;  %v1017_v19 = vld [vmem:[%s4191_s2 + $0x18] sm:$0xff]  ;;  %v3102_v21 = vld [vmem:[%s4192_s6] ss:$0 sm:$0xff] }
  0x2a   : > { %v1109_v24 = vld [vmem:[%s4193_s25] sm:$0xff]  ;;  %v1110_v31 = vld [vmem:[%s4193_s25 + $0x8] sm:$0xff] }
  0x2f   : > { %1040 = vperm.xlu1 %3100, %v1021_v9   ;;  %1030 = vperm.xlu0 %3099, %v1019_v10  }
  0x99   : > { %v1026_v20 = vpop.permute.xlu0 %1025  ;;  %v1036_v29 = vpop.permute.xlu1 %1035 }
  0x9a   : > { %v1046_v22 = vmul.f32 %v3102_v21, %v1026_v20  ;;  %v1048_v32 = vmul.f32 %v3102_v21, %v1036_v29 }
  0xa1   : > { %v1031_v26 = vpop.permute.xlu0 %1030  ;;  %v1041_v38 = vpop.permute.xlu1 %1040 }
  0xa2   : > { %v1047_v28 = vmul.f32 %v3102_v21, %v1031_v26  ;;  %v1049_v39 = vmul.f32 %v3102_v21, %v1041_v38 }
  0xa6   : > { %v1008_v12 = vpop.f32.mrf.mxu0 }
  0xa7   : > { %v1009_v13 = vadd.f32 %v3101_v11, %v1008_v12 }
  0xa9   : > { %1072 = vmatpush.msra.mxu1 %v1009_v13 }
  0xaa   : > { %2963 = vmatmul.msk.f32.vlgmr.msra.gmra.mxu1 %vm1050_vm1, %v1014_v14 }
  0xac   : > { %v1011_v15 = vpop.f32.mrf.mxu3 }
  0xad   : > { %v1012_v16 = vadd.f32 %v3101_v11, %v1011_v15 }
  0xaf   : > { %1101 = vmatpush.msra.mxu2 %v1012_v16 }
  0xb0   : > { %2965 = vmatmul.msk.f32.vlgmr.msra.gmra.mxu2 %vm1050_vm1, %v1016_v17 }
  0xb2   : > { %2964 = vmatmul.msk.f32.gmra.mxu1 %vm1050_vm1, %v1015_v18 }
  0xb8   : > { %2966 = vmatmul.msk.f32.gmra.mxu2 %vm1050_vm1, %v1017_v19 }
 0x127   : > { %v1074_v23 = vpop.f32.mrf.mxu1 }
 0x128   : > { %v1075_v25 = vadd.f32 %v1074_v23, %v1046_v22 }
 0x12a   : > { %v1111_v27 = vadd.f32 %v1109_v24, %v1075_v25 }
 0x12c   : > { %1115 = vst.msk [vmem:[#allocation2] sm:$0xff] %vm984_vm0, %v1111_v27 }
 0x12f   : > { %v1077_v30 = vpop.f32.mrf.mxu1 }
 0x130   : > { %v1078_v33 = vadd.f32 %v1077_v30, %v1047_v28 }
 0x132   : > { %v1112_v34 = vadd.f32 %v1110_v31, %v1078_v33 }
 0x133   : > { %v1103_v35 = vpop.f32.mrf.mxu2 }
 0x134   : > { %1116 = vst.msk [vmem:[#allocation2 + $0x8] sm:$0xff] %vm984_vm0, %v1112_v34  ;;  %v1104_v36 = vadd.f32 %v1103_v35, %v1048_v32 }
 0x136   : > { %v1113_v37 = vadd.f32 %v1109_v24, %v1104_v36 }
 0x138   : > { %1117 = vst.msk [vmem:[#allocation2 + $0x10] sm:$0xff] %vm984_vm0, %v1113_v37 }
 0x13b   : > { %v1106_v40 = vpop.f32.mrf.mxu2 }
 0x13c   : > { %v1107_v41 = vadd.f32 %v1106_v40, %v1049_v39 }
 0x13e   : > { %v1114_v42 = vadd.f32 %v1110_v31, %v1107_v41 }
 0x140   : > { %1118 = vst.msk [vmem:[#allocation2 + $0x18] sm:$0xff] %vm984_vm0, %v1114_v42 }
 0x141 PF: > { %v1121_v43 = vld [vmem:[#allocation2 + $0x10] sm:$0xff]  ;;  %vm1159_vm2 = vcmask 261120   ;;  %v1119_v44 = vld [vmem:[#allocation2] sm:$0xff]  ;;  %v1120_v48 = vld [vmem:[#allocation2 + $0x8] sm:$0xff]  ;;  %v3289_v51 = vmov 32.0   ;;  %s4194_s3 = sld [smem:[#allocation13_spill]]  ;;  %s4196_s28 = scalar_lea.vmem %s4143_s8, %s3446_s5 }
 0x142   : > { %v1166_v45 = vsel %vm1159_vm2, %v1121_v43, 0.0  ;;  %v1160_v46 = vsel %vm1159_vm2, %v1119_v44, 0.0  ;;  %v1163_v50 = vsel %vm1159_vm2, %v1120_v48, 0.0  ;;  %3151 = vrcp.f32 %v3289_v51  ;;  %v1128_v14 = vld [vmem:[%s3464_s30 + $0x18] sm:$0xff]  ;;  %v1127_v15 = vld [vmem:[%s3464_s30 + $0x10] sm:$0xff]  ;;  %v1126_v16 = vld [vmem:[%s3464_s30 + $0x8] sm:$0xff]  ;;  %s4197_s26 = scalar_lea.vmem %s4145_s10, %s3446_s5 }
 0x143   : > { %1167 = vadd.xlane.f32.xlu1 %v1166_v45  ;;  %1161 = vadd.xlane.f32.xlu0 %v1160_v46  ;;  %v1125_v17 = vld [vmem:[%s3464_s30] sm:$0xff]  ;;  %s3290_s30 = smov 96   ;;  %s3291_s11 = smov 120   ;;  %vm1326_vm0 = vcmask 64512  }
 0x144   : > { %1296 = vmatpush.msra.mxu0 %v1128_v14  ;;  %s3294_s24 = smov 112   ;;  %s3295_s6 = smov 104  }
 0x145   : > { %s3297_s7 = smov 64   ;;  %s3298_s29 = smov 56  }
 0x146   : > { %1297 = vmatpush.msra.mxu0 %v1127_v15  ;;  %p3027_p6 = scmp.ge.s32.totalorder %s3278_s4, 1 }
 0x147   : > { %v1122_v47 = vld [vmem:[#allocation2 + $0x18] sm:$0xff]  ;;  %s4195_s23 = scalar_lea.vmem %s4194_s3, %s3446_s5  ;;  %s3292_s3 = smov 80  }
 0x148   : > { %v1169_v49 = vsel %vm1159_vm2, %v1122_v47, 0.0  ;;  %v3152_v52 = vpop.eup %3151  ;;  %1298 = vmatpush.msra.mxu0 %v1126_v16 }
 0x149   : > { %v1173_v53 = vmul.f32 32.0, %v3152_v52  ;;  %vm1177_vm3 = vweird.f32 %v3152_v52 }
 0x14a   : > { %1299 = vmatpush.msra.mxu0 %v1125_v17 }
 0x14b   : > { %1170 = vadd.xlane.f32.xlu1 %v1169_v49  ;;  %1164 = vadd.xlane.f32.xlu0 %v1163_v50  ;;  %v1174_v54 = vsub.f32 1.0, %v1173_v53 }
 0x14d   : > { %v1175_v55 = vmul.f32 %v3152_v52, %v1174_v54 }
 0x14f   : > { %v1176_v56 = vadd.f32 %v3152_v52, %v1175_v55 }
 0x151   : > { %v3567_v57 = vsel %vm1177_vm3, %v3152_v52, %v1176_v56  ;;  %vm1405_vm3 = vcmask 130048  }
 0x1b6   : > { %v1168_v58 = vpop.xlane.xlu1 %1167  ;;  %v1162_v59 = vpop.xlane.xlu0 %1161 }
 0x1b7   : > { %v1181_v60 = vmul.f32 %v3567_v57, %v1168_v58  ;;  %v1179_v61 = vmul.f32 %v3567_v57, %v1162_v59 }
 0x1b9   : > { %v3571_v62 = vsub.f32 %v1121_v43, %v1181_v60  ;;  %v3573_v63 = vsub.f32 %v1119_v44, %v1179_v61  ;;  %v3143_v44 = vld [vmem:[%s4195_s23] ss:$0 sm:$0xff]  ;;  %s3293_s23 = smov 88  }
 0x1bb   : > { %v1189_v0 = vmul.f32 %v3571_v62, %v3571_v62  ;;  %v1187_v1 = vmul.f32 %v3573_v63, %v3573_v63 }
 0x1bd   : > { %v1197_v2 = vsel %vm1159_vm2, %v1189_v0, 0.0  ;;  %v1191_v3 = vsel %vm1159_vm2, %v1187_v1, 0.0 }
 0x1be   : > { %v1171_v4 = vpop.xlane.xlu1 %1170  ;;  %1198 = vadd.xlane.f32.xlu0 %v1197_v2  ;;  %1192 = vadd.xlane.f32.xlu2 %v1191_v3  ;;  %v1165_v5 = vpop.xlane.xlu0 %1164 }
 0x1bf   : > { %v1182_v6 = vmul.f32 %v3567_v57, %v1171_v4  ;;  %v1180_v7 = vmul.f32 %v3567_v57, %v1165_v5 }
 0x1c1   : > { %v3583_v8 = vsub.f32 %v1122_v47, %v1182_v6  ;;  %v3585_v9 = vsub.f32 %v1120_v48, %v1180_v7  ;;  %v3144_v48 = vld [vmem:[%s4196_s28] ss:$0 sm:$0xff]  ;;  %s3296_s28 = smov 72  }
 0x1c3   : > { %v1190_v10 = vmul.f32 %v3583_v8, %v3583_v8  ;;  %v1188_v11 = vmul.f32 %v3585_v9, %v3585_v9 }
 0x1c5   : > { %v1200_v12 = vsel %vm1159_vm2, %v1190_v10, 0.0  ;;  %v1194_v13 = vsel %vm1159_vm2, %v1188_v11, 0.0 }
 0x1c6   : > { %1201 = vadd.xlane.f32.xlu1 %v1200_v12  ;;  %1195 = vadd.xlane.f32.xlu2 %v1194_v13 }
 0x231   : > { %v1193_v18 = vpop.xlane.xlu2 %1192  ;;  %v1199_v19 = vpop.xlane.xlu0 %1198 }
 0x232   : > { %v1203_v20 = vmul.f32 %v1193_v18, %v3567_v57  ;;  %v1205_v21 = vmul.f32 %v1199_v19, %v3567_v57 }
 0x234   : > { %v1207_v22 = vadd.f32 1e-05, %v1203_v20  ;;  %v1209_v23 = vadd.f32 1e-05, %v1205_v21 }
 0x236   : > { %3153 = vrsqrt.f32 %v1207_v22  ;;  %vm1217_vm5 = vweird.f32 %v1207_v22  ;;  %vm1237_vm7 = vweird.f32 %v1209_v23 }
 0x237   : > { %3155 = vrsqrt.f32 %v1209_v23 }
 0x239   : > { %v1202_v24 = vpop.xlane.xlu1 %1201  ;;  %v1196_v25 = vpop.xlane.xlu2 %1195 }
 0x23a   : > { %v1206_v26 = vmul.f32 %v1202_v24, %v3567_v57  ;;  %v1204_v27 = vmul.f32 %v1196_v25, %v3567_v57 }
 0x23c   : > { %v3154_v28 = vpop.eup %3153  ;;  %v1210_v29 = vadd.f32 1e-05, %v1206_v26  ;;  %v1208_v30 = vadd.f32 1e-05, %v1204_v27 }
 0x23d   : > { %v3156_v31 = vpop.eup %3155  ;;  %v1212_v32 = vmul.f32 %v3154_v28, %v1207_v22  ;;  %vm1218_vm4 = vweird.f32 %v3154_v28 }
 0x23e   : > { %v1232_v33 = vmul.f32 %v3156_v31, %v1209_v23  ;;  %3157 = vrsqrt.f32 %v1210_v29  ;;  %vm1219_vm6 = vmor %vm1217_vm5, %vm1218_vm4  ;;  %vm1238_vm8 = vweird.f32 %v3156_v31  ;;  %vm1227_vm11 = vweird.f32 %v1208_v30 }
 0x23f   : > { %v1213_v34 = vmul.f32 %v3154_v28, %v1212_v32  ;;  %3159 = vrsqrt.f32 %v1208_v30  ;;  %vm1239_vm10 = vmor %vm1237_vm7, %vm1238_vm8  ;;  %vm1247_vm13 = vweird.f32 %v1210_v29  ;;  %vm2164_vm4 = vcmask 195584  }
 0x240   : > { %v1233_v36 = vmul.f32 %v3156_v31, %v1232_v33 }
 0x241   : > { %v1214_v35 = vmul.f32 0.5, %v1213_v34 }
 0x242   : > { %v1234_v41 = vmul.f32 0.5, %v1233_v36 }
 0x243   : > { %v1215_v37 = vsub.f32 1.5, %v1214_v35 }
 0x244   : > { %v3158_v38 = vpop.eup %3157  ;;  %v1235_v49 = vsub.f32 1.5, %v1234_v41 }
 0x245   : > { %v3160_v39 = vpop.eup %3159  ;;  %v1216_v40 = vmul.f32 %v3154_v28, %v1215_v37  ;;  %v1242_v42 = vmul.f32 %v3158_v38, %v1210_v29  ;;  %vm1248_vm14 = vweird.f32 %v3158_v38 }
 0x246   : > { %v1222_v43 = vmul.f32 %v3160_v39, %v1208_v30  ;;  %vm1228_vm9 = vweird.f32 %v3160_v39  ;;  %v1236_v55 = vmul.f32 %v3156_v31, %v1235_v49  ;;  %vm1249_vm15 = vmor %vm1247_vm13, %vm1248_vm14 }
 0x247   : > { %v1220_v45 = vsel %vm1219_vm6, %v3154_v28, %v1216_v40  ;;  %v1243_v50 = vmul.f32 %v3158_v38, %v1242_v42  ;;  %vm1229_vm12 = vmor %vm1227_vm11, %vm1228_vm9 }
 0x248   : > { %v1223_v46 = vmul.f32 %v3160_v39, %v1222_v43  ;;  %v1251_v47 = vmul.f32 %v1220_v45, %v3573_v63  ;;  %v1240_v61 = vsel %vm1239_vm10, %v3156_v31, %v1236_v55 }
 0x249   : > { %v1244_v56 = vmul.f32 0.5, %v1243_v50  ;;  %v1253_v2 = vmul.f32 %v1240_v61, %v3571_v62  ;;  %v3145_v62 = vld [vmem:[%s4197_s26] ss:$0 sm:$0xff]  ;;  %s3299_s26 = smov 48  }
 0x24a   : > { %v1224_v51 = vmul.f32 0.5, %v1223_v46  ;;  %v1258_v52 = vmul.f32 %v3143_v44, %v1251_v47 }
 0x24b   : > { %v1245_v63 = vsub.f32 1.5, %v1244_v56  ;;  %v1260_v4 = vmul.f32 %v3143_v44, %v1253_v2 }
 0x24c   : > { %v1225_v53 = vsub.f32 1.5, %v1224_v51  ;;  %v1265_v54 = vadd.f32 %v3144_v48, %v1258_v52 }
 0x24d   : > { %v1246_v3 = vmul.f32 %v3158_v38, %v1245_v63  ;;  %v1267_v6 = vadd.f32 %v3144_v48, %v1260_v4  ;;  %v1313_v63 = vlaneseq }
 0x24e   : > { %v1226_v58 = vmul.f32 %v3160_v39, %v1225_v53  ;;  %2967 = vmatmul.msk.f32.vlgmr.msra.gmra.mxu0 %vm1159_vm2, %v1265_v54 }
 0x24f   : > { %v1250_v5 = vsel %vm1249_vm15, %v3158_v38, %v1246_v3 }
 0x250   : > { %v1230_v59 = vsel %vm1229_vm12, %v3160_v39, %v1226_v58  ;;  %v1254_v7 = vmul.f32 %v1250_v5, %v3583_v8 }
 0x251   : > { %v1252_v60 = vmul.f32 %v1230_v59, %v3585_v9 }
 0x252   : > { %v1261_v9 = vmul.f32 %v3143_v44, %v1254_v7 }
 0x253   : > { %v1259_v0 = vmul.f32 %v3143_v44, %v1252_v60 }
 0x254   : > { %v1268_v10 = vadd.f32 %v3144_v48, %v1261_v9 }
 0x255   : > { %v1266_v1 = vadd.f32 %v3144_v48, %v1259_v0  ;;  %v3668_v0 = vand.u32 127, %v1313_v63 }
 0x257   : > { %2968 = vmatmul.msk.f32.gmra.mxu0 %vm1159_vm2, %v1266_v1  ;;  %vm1315_vm1 = vcmp.lt.s32.totalorder %v3668_v0, 9 }
 0x25f   : > { %2969 = vmatmul.msk.f32.gmra.mxu0 %vm1159_vm2, %v1267_v6 }
 0x267   : > { %2970 = vmatmul.msk.f32.gmra.mxu0 %vm1159_vm2, %v1268_v10 }
 0x2cb   : > { %v1301_v11 = vpop.f32.mrf.mxu0 }
 0x2cc   : > { %v1302_v14 = vadd.f32 %v3145_v62, %v1301_v11 }
 0x2ce   : > { %v1316_v8 = vmul.f32 0.35355338, %v1302_v14 }
 0x2d4   : > { %v1304_v12 = vpop.f32.mrf.mxu0 }
 0x2d5   : > { %v1305_v13 = vadd.f32 %v3145_v62, %v1304_v12 }
 0x2d7   : > { %1324 = vrot.lane.b32.xlu1 %v1305_v13, %s3290_s30  ;;  %v1317_v20 = vmul.f32 0.35355338, %v1305_v13  ;;  %v3628_v22 = vpack.i.bf16 %v1302_v14, %v1305_v13 }
 0x2dc   : > { %v1307_v15 = vpop.f32.mrf.mxu0 }
 0x2dd   : > { %v1308_v16 = vadd.f32 %v3145_v62, %v1307_v15 }
 0x2df   : > { %1520 = vrot.lane.b32.xlu1 %v1316_v8, %s3291_s11  ;;  %1362 = vrot.lane.b32.xlu0 %v1308_v16, %s3290_s30  ;;  %v1318_v19 = vmul.f32 0.35355338, %v1308_v16 }
 0x2e4   : > { %v1310_v17 = vpop.f32.mrf.mxu0 }
 0x2e5   : > { %v1311_v18 = vadd.f32 %v3145_v62, %v1310_v17 }
 0x2e7   : > { %1722 = vrot.lane.b32.xlu1 %v1305_v13, %s3292_s3  ;;  %1364 = vrot.lane.b32.xlu2 %v1311_v18, %s3290_s30  ;;  %v1319_v21 = vmul.f32 0.35355338, %v1311_v18  ;;  %v3633_v23 = vpack.i.bf16 %v1308_v16, %v1311_v18 }
 0x2e8   : > { %1526 = vrot.lane.b32.xlu0 %v1305_v13, %s3293_s23 }
 0x2ef   : > { %1322 = vrot.lane.b32.xlu2 %v1302_v14, %s3290_s30  ;;  %1559 = vrot.lane.b32.xlu1 %v1318_v19, %s3291_s11  ;;  %s3300_s30 = smov 40  }
 0x2f0   : > { %1522 = vrot.lane.b32.xlu0 %v1317_v20, %s3291_s11 }
 0x2f7   : > { %1524 = vrot.lane.b32.xlu2 %v1302_v14, %s3293_s23  ;;  %1718 = vrot.lane.b32.xlu1 %v1317_v20, %s3294_s24 }
 0x2f8   : > { %1563 = vrot.lane.b32.xlu0 %v1308_v16, %s3293_s23 }
 0x2ff   : > { %1720 = vrot.lane.b32.xlu2 %v1302_v14, %s3292_s3  ;;  %1759 = vrot.lane.b32.xlu1 %v1308_v16, %s3292_s3 }
 0x300   : > { %1716 = vrot.lane.b32.xlu0 %v1316_v8, %s3294_s24 }
 0x307   : > { %1565 = vrot.lane.b32.xlu2 %v1311_v18, %s3293_s23  ;;  %1912 = vrot.lane.b32.xlu1 %v1316_v8, %s3295_s6  ;;  %s3303_s23 = smov 24  }
 0x308   : > { %1761 = vrot.lane.b32.xlu0 %v1311_v18, %s3292_s3  ;;  %s3302_s3 = smov 16  }
 0x30f   : > { %1918 = vrot.lane.b32.xlu2 %v1305_v13, %s3296_s28  ;;  %1957 = vrot.lane.b32.xlu1 %v1311_v18, %s3296_s28 }
 0x310   : > { %1916 = vrot.lane.b32.xlu0 %v1302_v14, %s3296_s28 }
 0x317   : > { %1561 = vrot.lane.b32.xlu2 %v1319_v21, %s3291_s11  ;;  %1953 = vrot.lane.b32.xlu1 %v1319_v21, %s3295_s6  ;;  %s3301_s11 = smov 8  }
 0x318   : > { %1757 = vrot.lane.b32.xlu0 %v1319_v21, %s3294_s24 }
 0x31f   : > { %1755 = vrot.lane.b32.xlu2 %v1318_v19, %s3294_s24  ;;  %3109 = vrot.lane.b32.xlu1 %v3628_v22, %s3297_s7 }
 0x320   : > { %1955 = vrot.lane.b32.xlu0 %v1308_v16, %s3296_s28 }
 0x327   : > { %1914 = vrot.lane.b32.xlu2 %v1317_v20, %s3295_s6 }
 0x328   : > { %3114 = vrot.lane.b32.xlu0 %v3628_v22, %s3298_s29 }
 0x32f   : > { %1951 = vrot.lane.b32.xlu2 %v1318_v19, %s3295_s6  ;;  %s4198_s6 = scalar_lea.vmem %s4147_s12, %s3446_s5 }
 0x337   : > { %3104 = vrot.lane.b32.xlu2 %v3633_v23, %s3297_s7 }
 0x341   : > { %v1365_v24 = vpop.permute.xlu2 %1364 }
 0x342   : > { %2975 = vmatpush.xpose.msk.msra.mxu2 %vm1326_vm0, %v1365_v24 }
 0x349   : > { %v1325_v25 = vpop.permute.xlu1 %1324  ;;  %v1323_v26 = vpop.permute.xlu2 %1322 }
 0x34a   : > { %2971 = vmatpush.xpose.msk.msra.mxu1 %vm1326_vm0, %v1325_v25 }
 0x34e   : > { %2972 = vmatpush.xpose.msk.msra.mxu1 %vm1326_vm0, %v1323_v26 }
 0x351   : > { %v1521_v27 = vpop.permute.xlu1 %1520  ;;  %2973 = vmatmul.msk.f32.vlgmr.msra.gmra.mxu1 %vm1326_vm0, %v1316_v8  ;;  %v1525_v28 = vpop.permute.xlu2 %1524 }
 0x352   : > { %v1363_v29 = vpop.permute.xlu0 %1362 }
 0x353   : > { %2976 = vmatpush.xpose.msk.msra.mxu2 %vm1326_vm0, %v1363_v29 }
 0x356   : > { %2977 = vmatmul.msk.f32.vlgmr.msra.gmra.mxu2 %vm1326_vm0, %v1318_v19 }
 0x359   : > { %v1723_v30 = vpop.permute.xlu1 %1722  ;;  %2974 = vmatmul.msk.f32.gmra.mxu1 %vm1326_vm0, %v1317_v20  ;;  %v1721_v31 = vpop.permute.xlu2 %1720 }
 0x35a   : > { %v1527_v32 = vpop.permute.xlu0 %1526 }
 0x35b   : > { %2983 = vmatpush.xpose.msk.msrb.mxu1 %vm1326_vm0, %v1527_v32 }
 0x35e   : > { %2978 = vmatmul.msk.f32.gmra.mxu2 %vm1326_vm0, %v1319_v21 }
 0x35f   : > { %2984 = vmatpush.xpose.msk.msrb.mxu1 %vm1326_vm0, %v1525_v28 }
 0x361   : > { %v1566_v33 = vpop.permute.xlu2 %1565  ;;  %v1560_v34 = vpop.permute.xlu1 %1559 }
 0x362   : > { %2985 = vmatmul.msk.f32.vlgmr.msrb.gmra.mxu1 %vm1326_vm0, %v1521_v27  ;;  %v1523_v35 = vpop.permute.xlu0 %1522  ;;  %2987 = vmatpush.xpose.msk.msrb.mxu2 %vm1326_vm0, %v1566_v33 }
 0x363   : > { %2995 = vmatpush.xpose.msk.msra.mxu1 %vm1326_vm0, %v1723_v30 }
 0x367   : > { %2996 = vmatpush.xpose.msk.msra.mxu1 %vm1326_vm0, %v1721_v31 }
 0x369   : > { %v1919_v36 = vpop.permute.xlu2 %1918  ;;  %v1719_v37 = vpop.permute.xlu1 %1718 }
 0x36a   : > { %2986 = vmatmul.msk.f32.gmra.mxu1 %vm1326_vm0, %v1523_v35  ;;  %v1564_v38 = vpop.permute.xlu0 %1563 }
 0x36b   : > { %2988 = vmatpush.xpose.msk.msrb.mxu2 %vm1326_vm0, %v1564_v38  ;;  %3007 = vmatpush.xpose.msk.msrb.mxu1 %vm1326_vm0, %v1919_v36 }
 0x36e   : > { %2989 = vmatmul.msk.f32.vlgmr.msrb.gmra.mxu2 %vm1326_vm0, %v1560_v34 }
 0x371   : > { %v1562_v39 = vpop.permute.xlu2 %1561  ;;  %v1760_v40 = vpop.permute.xlu1 %1759 }
 0x372   : > { %v1717_v41 = vpop.permute.xlu0 %1716 }
 0x373   : > { %2997 = vmatmul.msk.f32.vlgmr.msra.gmra.mxu1 %vm1326_vm0, %v1717_v41 }
 0x376   : > { %2990 = vmatmul.msk.f32.gmra.mxu2 %vm1326_vm0, %v1562_v39 }
 0x379   : > { %v1756_v42 = vpop.permute.xlu2 %1755  ;;  %v1913_v43 = vpop.permute.xlu1 %1912 }
 0x37a   : > { %v1762_v44 = vpop.permute.xlu0 %1761 }
 0x37b   : > { %2998 = vmatmul.msk.f32.gmra.mxu1 %vm1326_vm0, %v1719_v37  ;;  %2999 = vmatpush.xpose.msk.msra.mxu2 %vm1326_vm0, %v1762_v44 }
 0x37f   : > { %3000 = vmatpush.xpose.msk.msra.mxu2 %vm1326_vm0, %v1760_v40 }
 0x381   : > { %v1915_v45 = vpop.permute.xlu2 %1914  ;;  %v1958_v46 = vpop.permute.xlu1 %1957 }
 0x382   : > { %v1917_v47 = vpop.permute.xlu0 %1916  ;;  %3001 = vmatmul.msk.f32.vlgmr.msra.gmra.mxu2 %vm1326_vm0, %v1756_v42 }
 0x383   : > { %3008 = vmatpush.xpose.msk.msrb.mxu1 %vm1326_vm0, %v1917_v47  ;;  %3011 = vmatpush.xpose.msk.msrb.mxu2 %vm1326_vm0, %v1958_v46 }
 0x386   : > { %3009 = vmatmul.msk.f32.vlgmr.msrb.gmra.mxu1 %vm1326_vm0, %v1913_v43 }
 0x389   : > { %v1952_v48 = vpop.permute.xlu2 %1951  ;;  %v1954_v49 = vpop.permute.xlu1 %1953 }
 0x38a   : > { %v1758_v50 = vpop.permute.xlu0 %1757 }
 0x38b   : > { %3002 = vmatmul.msk.f32.gmra.mxu2 %vm1326_vm0, %v1758_v50 }
 0x38e   : > { %3010 = vmatmul.msk.f32.gmra.mxu1 %vm1326_vm0, %v1915_v45 }
 0x391   : > { %v3105_v51 = vpop.permute.xlu2 %3104  ;;  %v3110_v52 = vpop.permute.xlu1 %3109 }
 0x392   : > { %v1956_v53 = vpop.permute.xlu0 %1955  ;;  %v3111_v54 = vunpack.i.l.bf16 %v3110_v52  ;;  %v3106_v55 = vunpack.i.l.bf16 %v3105_v51  ;;  %v3112_v56 = vunpack.i.h.bf16 %v3110_v52  ;;  %v3107_v58 = vunpack.i.h.bf16 %v3105_v51 }
 0x393   : > { %3012 = vmatpush.xpose.msk.msrb.mxu2 %vm1326_vm0, %v1956_v53 }
 0x394   : > { %1476 = vmatpush.msrb.mxu0 %v3111_v54  ;;  %3045 = vmatpush.msra.mxu3 %v3106_v55 }
 0x396   : > { %3013 = vmatmul.msk.f32.vlgmr.msrb.gmra.mxu2 %vm1326_vm0, %v1952_v48  ;;  %1477 = vmatpush.msrb.mxu0 %v3112_v56 }
 0x397   : > { %3046 = vmatpush.msra.mxu3 %v3107_v58 }
 0x398   : > { %1511 = vmatpush.msra.mxu0 %v3106_v55 }
 0x39a   : > { %1512 = vmatpush.msra.mxu0 %v3107_v58  ;;  %v3115_v59 = vpop.permute.xlu0 %3114 }
 0x39b   : > { %v3116_v60 = vunpack.i.l.bf16 %v3115_v59  ;;  %v3117_v61 = vunpack.i.h.bf16 %v3115_v59 }
 0x39d   : > { %1672 = vmatpush.msrb.mxu3 %v3116_v60 }
 0x39e   : > { %3014 = vmatmul.msk.f32.gmra.mxu2 %vm1326_vm0, %v1954_v49 }
 0x39f   : > { %1673 = vmatpush.msrb.mxu3 %v3117_v61 }
 0x3ce   : > { %v1354_v1 = vpop.f32.mrf.mxu1 }
 0x3cf   : > { %v3673_v2 = vsel %vm1315_vm1, %v1354_v1, -1e+30 }
 0x3d0   : > { %v1406_v3 = vsel %vm1405_vm3, %v3673_v2, -inf }
 0x3d1   : > { %1407 = vmax.xlane.f32.xlu2 %v1406_v3 }
 0x3d6   : > { %v1357_v4 = vpop.f32.mrf.mxu1 }
 0x3d7   : > { %v3679_v5 = vsel %vm1315_vm1, %v1357_v4, -1e+30 }
 0x3d8   : > { %v1409_v6 = vsel %vm1405_vm3, %v3679_v5, -inf }
 0x3d9   : > { %v1393_v7 = vpop.f32.mrf.mxu2  ;;  %1410 = vmax.xlane.f32.xlu0 %v1409_v6 }
 0x3da   : > { %v3697_v14 = vsel %vm1315_vm1, %v1393_v7, -1e+30 }
 0x3db   : > { %v1412_v17 = vsel %vm1405_vm3, %v3697_v14, -inf }
 0x3df   : > { %v1553_v9 = vpop.f32.mrf.mxu1 }
 0x3e0   : > { %v3685_v10 = vsel %vm1315_vm1, %v1553_v9, -1e+30 }
 0x3e1   : > { %v1396_v11 = vpop.f32.mrf.mxu2  ;;  %v1602_v62 = vsel %vm1405_vm3, %v3685_v10, -inf }
 0x3e2   : > { %v3691_v12 = vsel %vm1315_vm1, %v1396_v11, -1e+30  ;;  %1603 = vmax.xlane.f32.xlu1 %v1602_v62 }
 0x3e3   : > { %v1415_v13 = vsel %vm1405_vm3, %v3691_v12, -inf }
 0x3e4   : > { %1416 = vmax.xlane.f32.xlu0 %v1415_v13 }
 0x3e7   : > { %v1556_v15 = vpop.f32.mrf.mxu1 }
 0x3e8   : > { %v3701_v16 = vsel %vm1315_vm1, %v1556_v15, -1e+30 }
 0x3e9   : > { %v1605_v8 = vsel %vm1405_vm3, %v3701_v16, -inf }
 0x3ea   : > { %1606 = vmax.xlane.f32.xlu2 %v1605_v8  ;;  %1413 = vmax.xlane.f32.xlu1 %v1412_v17 }
 0x3f0   : > { %v1749_v18 = vpop.f32.mrf.mxu1 }
 0x3f1   : > { %v3709_v19 = vsel %vm1315_vm1, %v1749_v18, -1e+30  ;;  %v1592_v20 = vpop.f32.mrf.mxu2 }
 0x3f2   : > { %v3713_v21 = vsel %vm1315_vm1, %v1592_v20, -1e+30  ;;  %v1798_v24 = vsel %vm1405_vm3, %v3709_v19, -inf }
 0x3f3   : > { %1799 = vmax.xlane.f32.xlu0 %v1798_v24  ;;  %v1608_v25 = vsel %vm1405_vm3, %v3713_v21, -inf }
 0x3f4   : > { %1609 = vmax.xlane.f32.xlu2 %v1608_v25 }
 0x3f8   : > { %v1752_v26 = vpop.f32.mrf.mxu1 }
 0x3f9   : > { %v3721_v27 = vsel %vm1315_vm1, %v1752_v26, -1e+30  ;;  %v1595_v28 = vpop.f32.mrf.mxu2 }
 0x3fa   : > { %v3725_v29 = vsel %vm1315_vm1, %v1595_v28, -1e+30  ;;  %v1801_v30 = vsel %vm1405_vm3, %v3721_v27, -inf }
 0x3fb   : > { %1802 = vmax.xlane.f32.xlu1 %v1801_v30  ;;  %v1611_v31 = vsel %vm1405_vm3, %v3725_v29, -inf }
 0x3fc   : > { %1612 = vmax.xlane.f32.xlu0 %v1611_v31 }
 0x403   : > { %v1945_v32 = vpop.f32.mrf.mxu1 }
 0x404   : > { %v3733_v33 = vsel %vm1315_vm1, %v1945_v32, -1e+30 }
 0x405   : > { %v1788_v34 = vpop.f32.mrf.mxu2  ;;  %v1994_v35 = vsel %vm1405_vm3, %v3733_v33, -inf }
 0x406   : > { %v3739_v36 = vsel %vm1315_vm1, %v1788_v34, -1e+30  ;;  %1995 = vmax.xlane.f32.xlu2 %v1994_v35 }
 0x407   : > { %v1804_v37 = vsel %vm1405_vm3, %v3739_v36, -inf }
 0x408   : > { %1805 = vmax.xlane.f32.xlu1 %v1804_v37 }
 0x40b   : > { %v1948_v38 = vpop.f32.mrf.mxu1 }
 0x40c   : > { %v3745_v39 = vsel %vm1315_vm1, %v1948_v38, -1e+30 }
 0x40d   : > { %v1997_v40 = vsel %vm1405_vm3, %v3745_v39, -inf }
 0x40e   : > { %v1791_v41 = vpop.f32.mrf.mxu2  ;;  %1998 = vmax.xlane.f32.xlu0 %v1997_v40 }
 0x40f   : > { %v3751_v42 = vsel %vm1315_vm1, %v1791_v41, -1e+30 }
 0x410   : > { %v1807_v43 = vsel %vm1405_vm3, %v3751_v42, -inf }
 0x411   : > { %1808 = vmax.xlane.f32.xlu1 %v1807_v43 }
 0x419   : > { %v1984_v44 = vpop.f32.mrf.mxu2 }
 0x41a   : > { %v3757_v45 = vsel %vm1315_vm1, %v1984_v44, -1e+30 }
 0x41b   : > { %v2000_v46 = vsel %vm1405_vm3, %v3757_v45, -inf }
 0x41c   : > { %2001 = vmax.xlane.f32.xlu0 %v2000_v46 }
 0x421   : > { %v1987_v47 = vpop.f32.mrf.mxu2 }
 0x422   : > { %v3763_v48 = vsel %vm1315_vm1, %v1987_v47, -1e+30 }
 0x423   : > { %v2003_v49 = vsel %vm1405_vm3, %v3763_v48, -inf }
 0x424   : > { %2004 = vmax.xlane.f32.xlu1 %v2003_v49 }
 0x444   : > { %v1408_v50 = vpop.xlane.xlu2 %1407 }
 0x445   : > { %v1418_v51 = vsub.f32 %v3673_v2, %v1408_v50 }
 0x447   : > { %v1422_v52 = vmul.f32 1.442695, %v1418_v51 }
 0x449   : > { %3161 = vpow2.f32 %v1422_v52 }
 0x44c   : > { %v1411_v53 = vpop.xlane.xlu0 %1410 }
 0x44d   : > { %v1419_v54 = vsub.f32 %v3679_v5, %v1411_v53 }
 0x44f   : > { %v3769_v55 = vpop.eup %3161  ;;  %v1424_v56 = vmul.f32 1.442695, %v1419_v54 }
 0x450   : > { %v1430_v58 = vsel %vm1405_vm3, %v3769_v55, 0.0 }
 0x451   : > { %3163 = vpow2.f32 %v1424_v56  ;;  %1431 = vadd.xlane.f32.xlu0 %v1430_v58 }
 0x455   : > { %v1604_v59 = vpop.xlane.xlu1 %1603 }
 0x456   : > { %v1614_v60 = vsub.f32 %v3685_v10, %v1604_v59 }
 0x457   : > { %v3774_v61 = vpop.eup %3163  ;;  %v1417_v1 = vpop.xlane.xlu0 %1416 }
 0x458   : > { %v1618_v63 = vmul.f32 1.442695, %v1614_v60  ;;  %v1433_v0 = vsel %vm1405_vm3, %v3774_v61, 0.0  ;;  %v1421_v5 = vsub.f32 %v3691_v12, %v1417_v1 }
 0x459   : > { %1434 = vadd.xlane.f32.xlu0 %v1433_v0 }
 0x45a   : > { %3165 = vpow2.f32 %v1618_v63  ;;  %v1428_v9 = vmul.f32 1.442695, %v1421_v5 }
 0x45d   : > { %v1607_v2 = vpop.xlane.xlu2 %1606 }
 0x45e   : > { %v1615_v3 = vsub.f32 %v3701_v16, %v1607_v2  ;;  %v1414_v16 = vpop.xlane.xlu1 %1413 }
 0x45f   : > { %v1420_v34 = vsub.f32 %v3697_v14, %v1414_v16 }
 0x460   : > { %v3779_v4 = vpop.eup %3165  ;;  %v1620_v6 = vmul.f32 1.442695, %v1615_v3 }
 0x461   : > { %v1626_v7 = vsel %vm1405_vm3, %v3779_v4, 0.0  ;;  %v1426_v41 = vmul.f32 1.442695, %v1420_v34 }
 0x462   : > { %3167 = vpow2.f32 %v1620_v6  ;;  %1627 = vadd.xlane.f32.xlu1 %v1626_v7 }
 0x463   : > { %3169 = vpow2.f32 %v1428_v9 }
 0x466   : > { %v1800_v10 = vpop.xlane.xlu0 %1799 }
 0x467   : > { %v1810_v62 = vsub.f32 %v3709_v19, %v1800_v10  ;;  %v1610_v12 = vpop.xlane.xlu2 %1609 }
 0x468   : > { %v3784_v11 = vpop.eup %3167  ;;  %v1616_v17 = vsub.f32 %v3713_v21, %v1610_v12 }
 0x469   : > { %v1629_v13 = vsel %vm1405_vm3, %v3784_v11, 0.0  ;;  %v1814_v15 = vmul.f32 1.442695, %v1810_v62  ;;  %v3791_v8 = vpop.eup %3169 }
 0x46a   : > { %1630 = vadd.xlane.f32.xlu2 %v1629_v13  ;;  %v1439_v18 = vsel %vm1405_vm3, %v3791_v8, 0.0  ;;  %v1622_v19 = vmul.f32 1.442695, %v1616_v17 }
 0x46b   : > { %3171 = vpow2.f32 %v1814_v15 }
 0x46c   : > { %3173 = vpow2.f32 %v1622_v19 }
 0x46d   : > { %3124 = vrot.lane.b32.xlu0 %v3633_v23, %s3298_s29 }
 0x46e   : > { %v1803_v20 = vpop.xlane.xlu1 %1802 }
 0x46f   : > { %v1811_v25 = vsub.f32 %v3721_v27, %v1803_v20  ;;  %v1613_v28 = vpop.xlane.xlu0 %1612 }
 0x470   : > { %v1617_v31 = vsub.f32 %v3725_v29, %v1613_v28 }
 0x471   : > { %v3796_v24 = vpop.eup %3171  ;;  %v1816_v21 = vmul.f32 1.442695, %v1811_v25 }
 0x472   : > { %1440 = vadd.xlane.f32.xlu2 %v1439_v18  ;;  %v1822_v26 = vsel %vm1405_vm3, %v3796_v24, 0.0  ;;  %v3803_v30 = vpop.eup %3173  ;;  %v1624_v27 = vmul.f32 1.442695, %v1617_v31 }
 0x473   : > { %3175 = vpow2.f32 %v1816_v21  ;;  %v1632_v32 = vsel %vm1405_vm3, %v3803_v30, 0.0 }
 0x474   : > { %3177 = vpow2.f32 %v1624_v27 }
 0x475   : > { %3179 = vpow2.f32 %v1426_v41 }
 0x479   : > { %v1996_v35 = vpop.xlane.xlu2 %1995  ;;  %v3809_v37 = vpop.eup %3175 }
 0x47a   : > { %1823 = vadd.xlane.f32.xlu2 %v1822_v26  ;;  %v2006_v40 = vsub.f32 %v3733_v33, %v1996_v35  ;;  %v1825_v43 = vsel %vm1405_vm3, %v3809_v37, 0.0  ;;  %v3814_v46 = vpop.eup %3177 }
 0x47b   : > { %3119 = vrot.lane.b32.xlu1 %v3628_v22, %s3299_s26  ;;  %v1806_v38 = vpop.xlane.xlu1 %1805  ;;  %v1635_v49 = vsel %vm1405_vm3, %v3814_v46, 0.0  ;;  %v3819_v50 = vpop.eup %3179 }
 0x47c   : > { %v2010_v29 = vmul.f32 1.442695, %v2006_v40  ;;  %v1812_v33 = vsub.f32 %v3739_v36, %v1806_v38  ;;  %v1436_v53 = vsel %vm1405_vm3, %v3819_v50, 0.0 }
 0x47e   : > { %3181 = vpow2.f32 %v2010_v29  ;;  %v1818_v54 = vmul.f32 1.442695, %v1812_v33 }
 0x481   : > { %v1999_v44 = vpop.xlane.xlu0 %1998 }
 0x482   : > { %1633 = vadd.xlane.f32.xlu2 %v1632_v32  ;;  %v2007_v14 = vsub.f32 %v3745_v39, %v1999_v44 }
 0x484   : > { %v1809_v47 = vpop.xlane.xlu1 %1808  ;;  %v2012_v51 = vmul.f32 1.442695, %v2007_v14  ;;  %v3822_v52 = vpop.eup %3181 }
 0x485   : > { %v1813_v39 = vsub.f32 %v3751_v42, %v1809_v47  ;;  %v2018_v58 = vsel %vm1405_vm3, %v3822_v52, 0.0 }
 0x486   : > { %3183 = vpow2.f32 %v2012_v51 }
 0x487   : > { %3185 = vpow2.f32 %v1818_v54  ;;  %v1820_v36 = vmul.f32 1.442695, %v1813_v39 }
 0x489   : > { %3187 = vpow2.f32 %v1820_v36 }
 0x48a   : > { %1826 = vadd.xlane.f32.xlu2 %v1825_v43 }
 0x48c   : > { %v3830_v60 = vpop.eup %3183 }
 0x48d   : > { %v3832_v0 = vpop.eup %3185  ;;  %v2021_v1 = vsel %vm1405_vm3, %v3830_v60, 0.0 }
 0x48e   : > { %v1828_v42 = vsel %vm1405_vm3, %v3832_v0, 0.0 }
 0x48f   : > { %v3838_v2 = vpop.eup %3187  ;;  %v2002_v6 = vpop.xlane.xlu0 %2001 }
 0x490   : > { %v2008_v10 = vsub.f32 %v3757_v45, %v2002_v6 }
 0x492   : > { %1636 = vadd.xlane.f32.xlu2 %v1635_v49 }
 0x497   : > { %1437 = vadd.xlane.f32.xlu0 %v1436_v53  ;;  %v2005_v56 = vpop.xlane.xlu1 %2004 }
 0x498   : > { %v2009_v59 = vsub.f32 %v3763_v48, %v2005_v56  ;;  %v1831_v48 = vsel %vm1405_vm3, %v3838_v2, 0.0 }
 0x49a   : > { %2019 = vadd.xlane.f32.xlu2 %v2018_v58  ;;  %v2016_v63 = vmul.f32 1.442695, %v2009_v59 }
 0x49c   : > { %3189 = vpow2.f32 %v2016_v63 }
 0x4a2   : > { %2022 = vadd.xlane.f32.xlu2 %v2021_v1  ;;  %v3840_v3 = vpop.eup %3189 }
 0x4a3   : > { %v2027_v5 = vsel %vm1405_vm3, %v3840_v3, 0.0 }
 0x4a5   : > { %1829 = vadd.xlane.f32.xlu1 %v1828_v42 }
 0x4aa   : > { %1832 = vadd.xlane.f32.xlu2 %v1831_v48 }
 0x4ab   : > { %3129 = vrot.lane.b32.xlu0 %v3628_v22, %s3300_s30  ;;  %v2014_v22 = vmul.f32 1.442695, %v2008_v10 }
 0x4ad   : > { %2028 = vadd.xlane.f32.xlu1 %v2027_v5 }
 0x4b3   : > { %3134 = vrot.lane.b32.xlu0 %v3633_v23, %s3299_s26  ;;  %s4199_s26 = scalar_lea.vmem %s4149_s14, %s3446_s5 }
 0x4c2   : > { %3139 = vrot.lane.b32.xlu2 %v3633_v23, %s3300_s30 }
 0x4c4   : > { %v1432_v7 = vpop.xlane.xlu0 %1431 }
 0x4c5   : > { %3191 = vrcp.f32 %v1432_v7 }
 0x4cb   : > { %v3192_v9 = vpop.eup %3191 }
 0x4cc   : > { %v1435_v62 = vpop.xlane.xlu0 %1434  ;;  %v1446_v13 = vmul.f32 %v3192_v9, %v3769_v55 }
 0x4cd   : > { %3193 = vrcp.f32 %v1435_v62 }
 0x4ce   : > { %2979 = vmatmul.msk.f32.vlgmr.msrb.gmra.mxu0 %vm1405_vm3, %v1446_v13  ;;  %3195 = vpow2.f32 %v2014_v22 }
 0x4d3   : > { %v3194_v15 = vpop.eup %3193 }
 0x4d4   : > { %v1447_v16 = vmul.f32 %v3194_v15, %v3774_v61  ;;  %v3855_v12 = vpop.eup %3195 }
 0x4d5   : > { %v2024_v23 = vsel %vm1405_vm3, %v3855_v12, 0.0  ;;  %v1628_v19 = vpop.xlane.xlu1 %1627 }
 0x4d6   : > { %2980 = vmatmul.msk.f32.gmra.mxu0 %vm1405_vm3, %v1447_v16 }
 0x4dd   : > { %v1631_v17 = vpop.xlane.xlu2 %1630  ;;  %2025 = vadd.xlane.f32.xlu0 %v2024_v23 }
 0x4df   : > { %v3125_v45 = vpop.permute.xlu0 %3124 }
 0x4e0   : > { %v3126_v18 = vunpack.i.l.bf16 %v3125_v45  ;;  %v3127_v55 = vunpack.i.h.bf16 %v3125_v45 }
 0x4e2   : > { %1707 = vmatpush.msrb.mxu0 %v3126_v18 }
 0x4e4   : > { %1708 = vmatpush.msrb.mxu0 %v3127_v55 }
 0x4e5   : > { %v1441_v20 = vpop.xlane.xlu2 %1440 }
 0x4e6   : > { %3197 = vrcp.f32 %v1441_v20 }
 0x4e7   : > { %3199 = vrcp.f32 %v1628_v19 }
 0x4e8   : > { %3201 = vrcp.f32 %v1631_v17 }
 0x4ec   : > { %v3198_v25 = vpop.eup %3197 }
 0x4ed   : > { %v3120_v61 = vpop.permute.xlu1 %3119  ;;  %v1824_v26 = vpop.xlane.xlu2 %1823  ;;  %v1449_v21 = vmul.f32 %v3198_v25, %v3791_v8 }
 0x4ee   : > { %v3121_v28 = vunpack.i.l.bf16 %v3120_v61  ;;  %v3122_v31 = vunpack.i.h.bf16 %v3120_v61  ;;  %v3200_v32 = vpop.eup %3199  ;;  %3203 = vrcp.f32 %v1824_v26  ;;  %v1133_v26 = vld [vmem:[%s3469_s22 + $0x18] sm:$0xff] }
 0x4ef   : > { %2982 = vmatmul.msk.f32.vlgmr.msra.gmra.mxu3 %vm1405_vm3, %v1449_v21  ;;  %v1642_v34 = vmul.f32 %v3200_v32, %v3779_v4  ;;  %v3202_v35 = vpop.eup %3201  ;;  %2196 = vmatpush.msra.mxu1 %v1133_v26 }
 0x4f0   : > { %1868 = vmatpush.msra.mxu3 %v3121_v28  ;;  %v1643_v40 = vmul.f32 %v3202_v35, %v3784_v11  ;;  %v1132_v28 = vld [vmem:[%s3469_s22 + $0x10] sm:$0xff] }
 0x4f1   : > { %2197 = vmatpush.msra.mxu1 %v1132_v28 }
 0x4f2   : > { %1869 = vmatpush.msra.mxu3 %v3122_v31  ;;  %v1131_v31 = vld [vmem:[%s3469_s22 + $0x8] sm:$0xff] }
 0x4f3   : > { %2198 = vmatpush.msra.mxu1 %v1131_v31 }
 0x4f4   : > { %v3204_v8 = vpop.eup %3203 }
 0x4f5   : > { %v1634_v27 = vpop.xlane.xlu2 %1633  ;;  %v1838_v41 = vmul.f32 %v3204_v8, %v3796_v24 }
 0x4f7   : > { %2991 = vmatmul.msk.f32.vlgmr.msrb.gmra.mxu3 %vm1405_vm3, %v1642_v34 }
 0x4fd   : > { %v1827_v38 = vpop.xlane.xlu2 %1826 }
 0x4fe   : > { %3205 = vrcp.f32 %v1827_v38 }
 0x4ff   : > { %2992 = vmatmul.msk.f32.gmra.mxu3 %vm1405_vm3, %v1643_v40 }
 0x504   : > { %v3206_v29 = vpop.eup %3205 }
 0x505   : > { %v1637_v43 = vpop.xlane.xlu2 %1636  ;;  %v1839_v14 = vmul.f32 %v3206_v29, %v3809_v37 }
 0x507   : > { %3003 = vmatmul.msk.f32.vlgmr.msra.gmra.mxu3 %vm1405_vm3, %v1838_v41 }
 0x50a   : > { %v1438_v44 = vpop.xlane.xlu0 %1437 }
 0x50b   : > { %3207 = vrcp.f32 %v1438_v44 }
 0x50c   : > { %3209 = vrcp.f32 %v1634_v27  ;;  %v1130_v27 = vld [vmem:[%s3469_s22] sm:$0xff] }
 0x50d   : > { %v2020_v4 = vpop.xlane.xlu2 %2019  ;;  %2199 = vmatpush.msra.mxu1 %v1130_v27 }
 0x50e   : > { %3211 = vrcp.f32 %v2020_v4 }
 0x50f   : > { %3004 = vmatmul.msk.f32.gmra.mxu3 %vm1405_vm3, %v1839_v14  ;;  %3213 = vrcp.f32 %v1637_v43 }
 0x511   : > { %v3208_v47 = vpop.eup %3207 }
 0x512   : > { %v1448_v11 = vmul.f32 %v3208_v47, %v3819_v50  ;;  %v3210_v33 = vpop.eup %3209 }
 0x513   : > { %v1644_v24 = vmul.f32 %v3210_v33, %v3803_v30 }
 0x514   : > { %2981 = vmatmul.msk.f32.vlgmr.msra.gmra.mxu0 %vm1405_vm3, %v1448_v11  ;;  %v3212_v54 = vpop.eup %3211 }
 0x515   : > { %v2023_v49 = vpop.xlane.xlu2 %2022  ;;  %v3214_v56 = vpop.eup %3213  ;;  %v2034_v50 = vmul.f32 %v3212_v54, %v3822_v52 }
 0x516   : > { %3215 = vrcp.f32 %v2023_v49  ;;  %v1645_v59 = vmul.f32 %v3214_v56, %v3814_v46 }
 0x518   : > { %v1830_v37 = vpop.xlane.xlu1 %1829 }
 0x519   : > { %3217 = vrcp.f32 %v1830_v37 }
 0x51c   : > { %2993 = vmatmul.msk.f32.vlgmr.msrb.gmra.mxu0 %vm1405_vm3, %v1644_v24  ;;  %v3216_v36 = vpop.eup %3215 }
 0x51d   : > { %v1833_v51 = vpop.xlane.xlu2 %1832  ;;  %v3130_v53 = vpop.permute.xlu0 %3129  ;;  %v2035_v6 = vmul.f32 %v3216_v36, %v3830_v60 }
 0x51e   : > { %v3131_v39 = vunpack.i.l.bf16 %v3130_v53  ;;  %v3132_v58 = vunpack.i.h.bf16 %v3130_v53  ;;  %3219 = vrcp.f32 %v1833_v51 }
 0x51f   : > { %v3218_v42 = vpop.eup %3217 }
 0x520   : > { %2064 = vmatpush.msrb.mxu3 %v3131_v39  ;;  %v1840_v52 = vmul.f32 %v3218_v42, %v3832_v0  ;;  %v2029_v62 = vpop.xlane.xlu1 %2028 }
 0x522   : > { %2065 = vmatpush.msrb.mxu3 %v3132_v58 }
 0x523   : > { %3015 = vmatmul.msk.f32.vlgmr.msrb.gmra.mxu3 %vm1405_vm3, %v2034_v50 }
 0x524   : > { %2994 = vmatmul.msk.f32.gmra.mxu0 %vm1405_vm3, %v1645_v59  ;;  %v3220_v46 = vpop.eup %3219  ;;  %v3146_v59 = vld [vmem:[%s4198_s6] ss:$0 sm:$0xff] }
 0x525   : > { %v3135_v30 = vpop.permute.xlu0 %3134  ;;  %v3140_v63 = vpop.permute.xlu2 %3139  ;;  %v1841_v9 = vmul.f32 %v3220_v46, %v3838_v2 }
 0x526   : > { %v3136_v1 = vunpack.i.l.bf16 %v3135_v30  ;;  %v3137_v48 = vunpack.i.h.bf16 %v3135_v30  ;;  %v3141_v5 = vunpack.i.l.bf16 %v3140_v63  ;;  %v3142_v7 = vunpack.i.h.bf16 %v3140_v63  ;;  %v3249_v63 = vld [vmem:[#allocation2] sm:$0xff] }
 0x528   : > { %1903 = vmatpush.msra.mxu0 %v3136_v1 }
 0x52a   : > { %1904 = vmatpush.msra.mxu0 %v3137_v48 }
 0x52b   : > { %3016 = vmatmul.msk.f32.gmra.mxu3 %vm1405_vm3, %v2035_v6  ;;  %v3250_v6 = vld [vmem:[#allocation2 + $0x8] sm:$0xff] }
 0x52c   : > { %2099 = vmatpush.msrb.mxu0 %v3141_v5 }
 0x52d   : > { %3005 = vmatmul.msk.f32.vlgmr.msra.gmra.mxu0 %vm1405_vm3, %v1840_v52 }
 0x52e   : > { %2100 = vmatpush.msrb.mxu0 %v3142_v7 }
 0x535   : > { %3006 = vmatmul.msk.f32.gmra.mxu0 %vm1405_vm3, %v1841_v9 }
 0x54b   : > { %v1479_v2 = vpop.f32.mrf.mxu0 }
 0x550   : > { %v2026_v10 = vpop.xlane.xlu0 %2025 }
 0x551   : > { %3221 = vrcp.f32 %v2026_v10  ;;  %v3251_v10 = vld [vmem:[#allocation2 + $0x10] sm:$0xff] }
 0x552   : > { %3223 = vrcp.f32 %v2029_v62 }
 0x553   : > { %v1482_v17 = vpop.f32.mrf.mxu0 }
 0x557   : > { %v3222_v13 = vpop.eup %3221 }
 0x558   : > { %v2036_v60 = vmul.f32 %v3222_v13, %v3855_v12  ;;  %v3224_v0 = vpop.eup %3223 }
 0x559   : > { %v2037_v22 = vmul.f32 %v3224_v0, %v3840_v3 }
 0x55a   : > { %3017 = vmatmul.msk.f32.vlgmr.msrb.gmra.mxu0 %vm1405_vm3, %v2036_v60 }
 0x562   : > { %3018 = vmatmul.msk.f32.gmra.mxu0 %vm1405_vm3, %v2037_v22  ;;  %v3252_v22 = vld [vmem:[#allocation2 + $0x18] sm:$0xff] }
 0x572   : > { %v3887_v15 = vpop.f32.mrf.mxu3 }
 0x57a   : > { %v1675_v16 = vpop.f32.mrf.mxu3 }
 0x57b   : > { %2112 = vrot.lane.b32.xlu2 %v1675_v16, %s3301_s11 }
 0x582   : > { %v1678_v23 = vpop.f32.mrf.mxu3 }
 0x583   : > { %2114 = vrot.lane.b32.xlu0 %v1678_v23, %s3301_s11 }
 0x58a   : > { %v1871_v45 = vpop.f32.mrf.mxu3 }
 0x58b   : > { %2128 = vrot.lane.b32.xlu1 %v1871_v45, %s3302_s3 }
 0x591   : > { %v1514_v12 = vpop.f32.mrf.mxu0 }
 0x592   : > { %v1874_v18 = vpop.f32.mrf.mxu3 }
 0x593   : > { %2130 = vrot.lane.b32.xlu2 %v1874_v18, %s3302_s3 }
 0x599   : > { %v1710_v55 = vpop.f32.mrf.mxu0 }
 0x59a   : > { %2116 = vrot.lane.b32.xlu1 %v1710_v55, %s3301_s11 }
 0x5a1   : > { %v1713_v3 = vpop.f32.mrf.mxu0 }
 0x5a2   : > { %2118 = vrot.lane.b32.xlu1 %v1713_v3, %s3301_s11  ;;  %s4200_s11 = scalar_lea.vmem %s4151_s16, %s3446_s5 }
 0x5a6   : > { %v2067_v19 = vpop.f32.mrf.mxu3 }
 0x5a7   : > { %2144 = vrot.lane.b32.xlu2 %v2067_v19, %s3303_s23 }
 0x5aa   : > { %v1906_v25 = vpop.f32.mrf.mxu0 }
 0x5ae   : > { %v2070_v20 = vpop.f32.mrf.mxu3 }
 0x5af   : > { %2146 = vrot.lane.b32.xlu2 %v2070_v20, %s3303_s23 }
 0x5b2   : > { %v1909_v61 = vpop.f32.mrf.mxu0 }
 0x5b7   : > { %2132 = vrot.lane.b32.xlu2 %v1906_v25, %s3302_s3 }
 0x5bf   : > { %2134 = vrot.lane.b32.xlu2 %v1909_v61, %s3302_s3 }
 0x5d5   : > { %v2113_v34 = vpop.permute.xlu2 %2112 }
 0x5d6   : > { %v2156_v40 = vsel %vm1326_vm0, %v1479_v2, %v2113_v34 }
 0x5d7   : > { %v2102_v21 = vpop.f32.mrf.mxu0 }
 0x5d8   : > { %2148 = vrot.lane.b32.xlu0 %v2102_v21, %s3303_s23 }
 0x5df   : > { %v2105_v32 = vpop.f32.mrf.mxu0 }
 0x5e0   : > { %2150 = vrot.lane.b32.xlu0 %v2105_v32, %s3303_s23  ;;  %s4201_s23 = scalar_lea.vmem %s4153_s18, %s3446_s5 }
 0x5ed   : > { %v2131_v35 = vpop.permute.xlu2 %2130 }
 0x5f5   : > { %v2115_v29 = vpop.permute.xlu0 %2114 }
 0x5f6   : > { %v2157_v44 = vsel %vm1326_vm0, %v1482_v17, %v2115_v29 }
 0x5f7   : > { %v2161_v14 = vsel %vm1405_vm3, %v2157_v44, %v2131_v35 }
 0x5fd   : > { %v2129_v38 = vpop.permute.xlu1 %2128 }
 0x5fe   : > { %v2160_v8 = vsel %vm1405_vm3, %v2156_v40, %v2129_v38  ;;  %v1140_v38 = vld [vmem:[%s3486_s9 + $0x18] sm:$0xff]  ;;  %v1139_v40 = vld [vmem:[%s3486_s9 + $0x10] sm:$0xff] }
 0x5ff   : > { %2346 = vmatpush.msra.mxu2 %v1140_v38  ;;  %v1157_v38 = vld [vmem:[%s3496_s27 + $0x78] sm:$0xff] }
 0x600   : > { %2526 = vmatpush.msra.mxu3 %v1157_v38 }
 0x601   : > { %v2145_v41 = vpop.permute.xlu2 %2144  ;;  %2347 = vmatpush.msra.mxu2 %v1139_v40  ;;  %v3981_v40 = vld [vmem:[%s4200_s11] ss:$0 sm:$0xff] }
 0x602   : > { %v2165_v43 = vsel %vm2164_vm4, %v2160_v8, %v2145_v41  ;;  %v1138_v8 = vld [vmem:[%s3486_s9 + $0x8] sm:$0xff]  ;;  %v1137_v41 = vld [vmem:[%s3486_s9] sm:$0xff] }
 0x603   : > { %3019 = vmatmul.msk.f32.vlgmr.msra.gmra.mxu1 %vm1159_vm2, %v2165_v43  ;;  %2348 = vmatpush.msra.mxu2 %v1138_v8  ;;  %v1156_v8 = vld [vmem:[%s3496_s27 + $0x70] sm:$0xff] }
 0x604   : > { %2527 = vmatpush.msra.mxu3 %v1156_v8 }
 0x605   : > { %2349 = vmatpush.msra.mxu2 %v1137_v41  ;;  %v1155_v41 = vld [vmem:[%s3496_s27 + $0x68] sm:$0xff] }
 0x606   : > { %2528 = vmatpush.msra.mxu3 %v1155_v41 }
 0x609   : > { %v2147_v4 = vpop.permute.xlu2 %2146 }
 0x60a   : > { %v2166_v47 = vsel %vm2164_vm4, %v2161_v14, %v2147_v4 }
 0x60b   : > { %3020 = vmatmul.msk.f32.gmra.mxu1 %vm1159_vm2, %v2166_v47 }
 0x60c   : > { %v2117_v11 = vpop.permute.xlu1 %2116 }
 0x60d   : > { %v2158_v33 = vsel %vm1326_vm0, %v1514_v12, %v2117_v11 }
 0x611   : > { %v2133_v49 = vpop.permute.xlu2 %2132 }
 0x612   : > { %v2162_v24 = vsel %vm1405_vm3, %v2158_v33, %v2133_v49 }
 0x614   : > { %v2119_v54 = vpop.permute.xlu1 %2118 }
 0x615   : > { %v2159_v39 = vsel %vm1326_vm0, %v3887_v15, %v2119_v54 }
 0x619   : > { %v2135_v37 = vpop.permute.xlu2 %2134 }
 0x61a   : > { %v2163_v56 = vsel %vm1405_vm3, %v2159_v39, %v2135_v37  ;;  %v3147_v39 = vld [vmem:[%s943_s20] ss:$0 sm:$0xff] }
 0x64a   : > { %v2149_v51 = vpop.permute.xlu0 %2148 }
 0x64b   : > { %v2167_v53 = vsel %vm2164_vm4, %v2162_v24, %v2149_v51 }
 0x64c   : > { %3021 = vmatmul.msk.f32.gmra.mxu1 %vm1159_vm2, %v2167_v53 }
 0x652   : > { %v2151_v58 = vpop.permute.xlu0 %2150 }
 0x653   : > { %v2168_v50 = vsel %vm2164_vm4, %v2163_v56, %v2151_v58 }
 0x654   : > { %3022 = vmatmul.msk.f32.gmra.mxu1 %vm1159_vm2, %v2168_v50 }
 0x680   : > { %v2201_v30 = vpop.f32.mrf.mxu1 }
 0x681   : > { %v2202_v36 = vadd.f32 %v3146_v59, %v2201_v30 }
 0x683   : > { %v3915_v1 = vadd.f32 %v3249_v63, %v2202_v36 }
 0x685   : > { %v2217_v42 = vsel %vm1159_vm2, %v3915_v1, 0.0 }
 0x686   : > { %2218 = vadd.xlane.f32.xlu1 %v2217_v42 }
 0x688   : > { %v2204_v48 = vpop.f32.mrf.mxu1 }
 0x689   : > { %v2205_v5 = vadd.f32 %v3146_v59, %v2204_v48 }
 0x68b   : > { %v3919_v52 = vadd.f32 %v3250_v6, %v2205_v5 }
 0x68d   : > { %v2220_v7 = vsel %vm1159_vm2, %v3919_v52, 0.0 }
 0x68e   : > { %2221 = vadd.xlane.f32.xlu2 %v2220_v7 }
 0x6c9   : > { %v2207_v46 = vpop.f32.mrf.mxu1 }
 0x6ca   : > { %v2208_v9 = vadd.f32 %v3146_v59, %v2207_v46 }
 0x6cc   : > { %v3923_v62 = vadd.f32 %v3251_v10, %v2208_v9 }
 0x6ce   : > { %v2223_v13 = vsel %vm1159_vm2, %v3923_v62, 0.0 }
 0x6cf   : > { %2224 = vadd.xlane.f32.xlu0 %v2223_v13 }
 0x6d1   : > { %v2210_v60 = vpop.f32.mrf.mxu1 }
 0x6d2   : > { %v2211_v0 = vadd.f32 %v3146_v59, %v2210_v60  ;;  %v3148_v59 = vld [vmem:[%s4199_s26] ss:$0 sm:$0xff] }
 0x6d4   : > { %v3927_v15 = vadd.f32 %v3252_v22, %v2211_v0 }
 0x6d6   : > { %v2226_v16 = vsel %vm1159_vm2, %v3927_v15, 0.0 }
 0x6d7   : > { %2227 = vadd.xlane.f32.xlu2 %v2226_v16 }
 0x6f9   : > { %v2219_v2 = vpop.xlane.xlu1 %2218 }
 0x6fa   : > { %v2229_v23 = vmul.f32 %v2219_v2, %v3567_v57 }
 0x6fc   : > { %v2233_v17 = vsub.f32 %v3915_v1, %v2229_v23 }
 0x6fe   : > { %v2237_v45 = vmul.f32 %v2233_v17, %v2233_v17 }
 0x700   : > { %v2241_v12 = vsel %vm1159_vm2, %v2237_v45, 0.0 }
 0x701   : > { %2242 = vadd.xlane.f32.xlu1 %v2241_v12  ;;  %v2222_v18 = vpop.xlane.xlu2 %2221 }
 0x702   : > { %v2230_v55 = vmul.f32 %v2222_v18, %v3567_v57 }
 0x704   : > { %v2234_v3 = vsub.f32 %v3919_v52, %v2230_v55 }
 0x706   : > { %v2238_v19 = vmul.f32 %v2234_v3, %v2234_v3 }
 0x708   : > { %v2244_v20 = vsel %vm1159_vm2, %v2238_v19, 0.0 }
 0x709   : > { %2245 = vadd.xlane.f32.xlu0 %v2244_v20 }
 0x742   : > { %v2225_v25 = vpop.xlane.xlu0 %2224 }
 0x743   : > { %v2231_v61 = vmul.f32 %v2225_v25, %v3567_v57 }
 0x745   : > { %v3939_v26 = vsub.f32 %v3923_v62, %v2231_v61 }
 0x747   : > { %v2239_v21 = vmul.f32 %v3939_v26, %v3939_v26 }
 0x749   : > { %v2247_v28 = vsel %vm1159_vm2, %v2239_v21, 0.0 }
 0x74a   : > { %v2228_v31 = vpop.xlane.xlu2 %2227  ;;  %2248 = vadd.xlane.f32.xlu2 %v2247_v28 }
 0x74b   : > { %v2232_v32 = vmul.f32 %v2228_v31, %v3567_v57 }
 0x74d   : > { %v3946_v27 = vsub.f32 %v3927_v15, %v2232_v32 }
 0x74f   : > { %v2240_v34 = vmul.f32 %v3946_v27, %v3946_v27 }
 0x751   : > { %v2250_v35 = vsel %vm1159_vm2, %v2240_v34, 0.0 }
 0x752   : > { %2251 = vadd.xlane.f32.xlu1 %v2250_v35 }
 0x774   : > { %v2243_v43 = vpop.xlane.xlu1 %2242 }
 0x775   : > { %v2253_v29 = vmul.f32 %v2243_v43, %v3567_v57 }
 0x777   : > { %v2257_v44 = vadd.f32 1e-05, %v2253_v29  ;;  %v1154_v29 = vld [vmem:[%s3496_s27 + $0x60] sm:$0xff] }
 0x778   : > { %2529 = vmatpush.msra.mxu3 %v1154_v29 }
 0x779   : > { %3225 = vrsqrt.f32 %v2257_v44  ;;  %vm2267_vm6 = vweird.f32 %v2257_v44 }
 0x77c   : > { %v2246_v4 = vpop.xlane.xlu0 %2245 }
 0x77d   : > { %v2254_v14 = vmul.f32 %v2246_v4, %v3567_v57  ;;  %v1153_v4 = vld [vmem:[%s3496_s27 + $0x58] sm:$0xff] }
 0x77e   : > { %2530 = vmatpush.msra.mxu3 %v1153_v4 }
 0x77f   : > { %v3226_v47 = vpop.eup %3225  ;;  %v2258_v11 = vadd.f32 1e-05, %v2254_v14 }
 0x780   : > { %v2262_v49 = vmul.f32 %v3226_v47, %v2257_v44  ;;  %vm2268_vm5 = vweird.f32 %v3226_v47 }
 0x781   : > { %3227 = vrsqrt.f32 %v2258_v11  ;;  %vm2269_vm7 = vmor %vm2267_vm6, %vm2268_vm5  ;;  %vm2277_vm9 = vweird.f32 %v2258_v11 }
 0x782   : > { %v2263_v33 = vmul.f32 %v3226_v47, %v2262_v49  ;;  %v1151_v49 = vld [vmem:[%s3496_s27 + $0x48] sm:$0xff] }
 0x784   : > { %v2264_v24 = vmul.f32 0.5, %v2263_v33 }
 0x786   : > { %v2265_v51 = vsub.f32 1.5, %v2264_v24 }
 0x787   : > { %v3228_v53 = vpop.eup %3227 }
 0x788   : > { %v2266_v54 = vmul.f32 %v3226_v47, %v2265_v51  ;;  %v2272_v37 = vmul.f32 %v3228_v53, %v2258_v11  ;;  %vm2278_vm8 = vweird.f32 %v3228_v53 }
 0x789   : > { %vm2279_vm10 = vmor %vm2277_vm9, %vm2278_vm8 }
 0x78a   : > { %v2270_v56 = vsel %vm2269_vm7, %v3226_v47, %v2266_v54  ;;  %v2273_v58 = vmul.f32 %v3228_v53, %v2272_v37  ;;  %v1152_v47 = vld [vmem:[%s3496_s27 + $0x50] sm:$0xff]  ;;  %v1149_v54 = vld [vmem:[%s3496_s27 + $0x38] sm:$0xff] }
 0x78b   : > { %v2301_v50 = vmul.f32 %v2270_v56, %v2233_v17  ;;  %2531 = vmatpush.msra.mxu3 %v1152_v47 }
 0x78c   : > { %v2274_v30 = vmul.f32 0.5, %v2273_v58  ;;  %v1147_v58 = vld [vmem:[%s3496_s27 + $0x28] sm:$0xff] }
 0x78d   : > { %v2308_v36 = vmul.f32 %v3147_v39, %v2301_v50  ;;  %2532 = vmatpush.msra.mxu3 %v1151_v49 }
 0x78e   : > { %v2275_v63 = vsub.f32 1.5, %v2274_v30  ;;  %v1146_v30 = vld [vmem:[%s3496_s27 + $0x20] sm:$0xff] }
 0x78f   : > { %v2315_v42 = vadd.f32 %v3148_v59, %v2308_v36 }
 0x790   : > { %v2276_v48 = vmul.f32 %v3228_v53, %v2275_v63 }
 0x791   : > { %3023 = vmatmul.msk.f32.vlgmr.msra.gmra.mxu2 %vm1159_vm2, %v2315_v42  ;;  %v1145_v42 = vld [vmem:[%s3496_s27 + $0x18] sm:$0xff] }
 0x792   : > { %v2280_v5 = vsel %vm2279_vm10, %v3228_v53, %v2276_v48  ;;  %v1150_v53 = vld [vmem:[%s3496_s27 + $0x40] sm:$0xff] }
 0x793   : > { %v2302_v6 = vmul.f32 %v2280_v5, %v2234_v3  ;;  %2533 = vmatpush.msra.mxu3 %v1150_v53 }
 0x795   : > { %v2309_v7 = vmul.f32 %v3147_v39, %v2302_v6  ;;  %2534 = vmatpush.msra.mxu3 %v1149_v54  ;;  %v1144_v6 = vld [vmem:[%s3496_s27 + $0x10] sm:$0xff] }
 0x797   : > { %v2316_v46 = vadd.f32 %v3148_v59, %v2309_v7 }
 0x799   : > { %3024 = vmatmul.msk.f32.gmra.mxu2 %vm1159_vm2, %v2316_v46 }
 0x7bd   : > { %v2249_v9 = vpop.xlane.xlu2 %2248 }
 0x7be   : > { %v2255_v10 = vmul.f32 %v2249_v9, %v3567_v57  ;;  %v1143_v9 = vld [vmem:[%s3496_s27 + $0x8] sm:$0xff] }
 0x7c0   : > { %v2259_v13 = vadd.f32 1e-05, %v2255_v10  ;;  %v1142_v10 = vld [vmem:[%s3496_s27] sm:$0xff] }
 0x7c2   : > { %3229 = vrsqrt.f32 %v2259_v13  ;;  %vm2287_vm12 = vweird.f32 %v2259_v13 }
 0x7c5   : > { %v2252_v60 = vpop.xlane.xlu1 %2251 }
 0x7c6   : > { %v2256_v0 = vmul.f32 %v2252_v60, %v3567_v57 }
 0x7c8   : > { %v3230_v22 = vpop.eup %3229  ;;  %v2260_v16 = vadd.f32 1e-05, %v2256_v0 }
 0x7c9   : > { %v2282_v2 = vmul.f32 %v3230_v22, %v2259_v13  ;;  %vm2288_vm11 = vweird.f32 %v3230_v22 }
 0x7ca   : > { %3231 = vrsqrt.f32 %v2260_v16  ;;  %vm2289_vm13 = vmor %vm2287_vm12, %vm2288_vm11  ;;  %vm2297_vm15 = vweird.f32 %v2260_v16 }
 0x7cb   : > { %v2283_v23 = vmul.f32 %v3230_v22, %v2282_v2 }
 0x7cd   : > { %v2284_v17 = vmul.f32 0.5, %v2283_v23 }
 0x7cf   : > { %v2285_v45 = vsub.f32 1.5, %v2284_v17 }
 0x7d0   : > { %v3232_v12 = vpop.eup %3231 }
 0x7d1   : > { %v2286_v18 = vmul.f32 %v3230_v22, %v2285_v45  ;;  %v2292_v55 = vmul.f32 %v3232_v12, %v2260_v16  ;;  %vm2298_vm14 = vweird.f32 %v3232_v12 }
 0x7d2   : > { %vm2299_vm0 = vmor %vm2297_vm15, %vm2298_vm14 }
 0x7d3   : > { %v2290_v3 = vsel %vm2289_vm13, %v3230_v22, %v2286_v18  ;;  %v2293_v19 = vmul.f32 %v3232_v12, %v2292_v55 }
 0x7d4   : > { %v2303_v20 = vmul.f32 %v2290_v3, %v3939_v26 }
 0x7d5   : > { %v2294_v25 = vmul.f32 0.5, %v2293_v19 }
 0x7d6   : > { %v2310_v61 = vmul.f32 %v3147_v39, %v2303_v20 }
 0x7d7   : > { %v2295_v21 = vsub.f32 1.5, %v2294_v25 }
 0x7d8   : > { %v2317_v28 = vadd.f32 %v3148_v59, %v2310_v61 }
 0x7d9   : > { %v2296_v31 = vmul.f32 %v3232_v12, %v2295_v21 }
 0x7da   : > { %3025 = vmatmul.msk.f32.gmra.mxu2 %vm1159_vm2, %v2317_v28 }
 0x7db   : > { %v2300_v32 = vsel %vm2299_vm0, %v3232_v12, %v2296_v31 }
 0x7dc   : > { %v2304_v34 = vmul.f32 %v2300_v32, %v3946_v27 }
 0x7de   : > { %v2311_v35 = vmul.f32 %v3147_v39, %v2304_v34  ;;  %v1148_v39 = vld [vmem:[%s3496_s27 + $0x30] sm:$0xff] }
 0x7df   : > { %2535 = vmatpush.msra.mxu3 %v1148_v39 }
 0x7e0   : > { %v2318_v26 = vadd.f32 %v3148_v59, %v2311_v35 }
 0x7e1   : > { %2536 = vmatpush.msra.mxu3 %v1147_v58 }
 0x7e2   : > { %3026 = vmatmul.msk.f32.gmra.mxu2 %vm1159_vm2, %v2318_v26 }
 0x7e3   : > { %2537 = vmatpush.msra.mxu3 %v1146_v30 }
 0x7e5   : > { %2538 = vmatpush.msra.mxu3 %v1145_v42 }
 0x7e7   : > { %2539 = vmatpush.msra.mxu3 %v1144_v6 }
 0x7e9   : > { %2540 = vmatpush.msra.mxu3 %v1143_v9 }
 0x7eb   : > { %2541 = vmatpush.msra.mxu3 %v1142_v10 }
 0x814   : > { %v2351_v43 = vpop.f32.mrf.mxu2 }
 0x815   : > { %v3986_v27 = vadd.f32 %v3981_v40, %v2351_v43 }
 0x817   : > { %v3990_v44 = vmul.f32 0.70710677, %v3986_v27  ;;  %v2363_v30 = vmul.f32 0.5, %v3986_v27 }
 0x819   : > { %v2371_v14 = vand.u32 2147483647, %v3990_v44  ;;  %vm2503_vm11 = vcmp.ge.f32.partialorder %v3990_v44, 0.0 }
 0x81b   : > { %v2375_v11 = vmul.f32 0.3275911, %v2371_v14  ;;  %v2479_v2 = vsub.f32 0.0, %v2371_v14 }
 0x81c   : > { %v2354_v33 = vpop.f32.mrf.mxu2 }
 0x81d   : > { %v2379_v24 = vadd.f32 1.0, %v2375_v11  ;;  %v3997_v51 = vadd.f32 %v3981_v40, %v2354_v33  ;;  %v2483_v55 = vmul.f32 %v2479_v2, %v2371_v14 }
 0x81f   : > { %3233 = vrcp.f32 %v2379_v24  ;;  %v4002_v37 = vmul.f32 0.70710677, %v3997_v51  ;;  %v2394_v5 = vand.u32 2147483648, %v2379_v24  ;;  %v2392_v46 = vand.u32 2147483647, %v2379_v24 }
 0x820   : > { %vm2388_vm4 = vweird.f32 %v2379_v24  ;;  %v2487_v28 = vmul.f32 1.442695, %v2483_v55 }
 0x821   : > { %v2372_v56 = vand.u32 2147483647, %v4002_v37  ;;  %v2395_v60 = vor.u32 1.1754944e-38, %v2394_v5  ;;  %vm2393_vm6 = vcmp.eq.f32.partialorder %v2392_v46, 8.507059e+37  ;;  %vm2504_vm12 = vcmp.ge.f32.partialorder %v4002_v37, 0.0 }
 0x822   : > { %v2364_v46 = vmul.f32 0.5, %v3997_v51 }
 0x823   : > { %v2376_v50 = vmul.f32 0.3275911, %v2372_v56  ;;  %v2480_v34 = vsub.f32 0.0, %v2372_v56 }
 0x825   : > { %v3234_v59 = vpop.eup %3233  ;;  %v2380_v63 = vadd.f32 1.0, %v2376_v50  ;;  %v2484_v43 = vmul.f32 %v2480_v34, %v2372_v56 }
 0x826   : > { %v2384_v36 = vmul.f32 %v3234_v59, %v2379_v24  ;;  %vm2389_vm1 = vweird.f32 %v3234_v59 }
 0x827   : > { %3235 = vrcp.f32 %v2380_v63  ;;  %vm2390_vm5 = vmor %vm2388_vm4, %vm2389_vm1  ;;  %v2409_v18 = vand.u32 2147483648, %v2380_v63  ;;  %v2407_v19 = vand.u32 2147483647, %v2380_v63  ;;  %vm2403_vm8 = vweird.f32 %v2380_v63 }
 0x828   : > { %v2385_v48 = vsub.f32 1.0, %v2384_v36  ;;  %3237 = vpow2.f32 %v2487_v28  ;;  %v2489_v11 = vmul.f32 1.442695, %v2484_v43 }
 0x829   : > { %v2410_v21 = vor.u32 1.1754944e-38, %v2409_v18  ;;  %vm2408_vm10 = vcmp.eq.f32.partialorder %v2407_v19, 8.507059e+37 }
 0x82a   : > { %v2386_v7 = vmul.f32 %v3234_v59, %v2385_v48  ;;  %3239 = vpow2.f32 %v2489_v11 }
 0x82c   : > { %v2387_v13 = vadd.f32 %v3234_v59, %v2386_v7 }
 0x82d   : > { %v3236_v0 = vpop.eup %3235 }
 0x82e   : > { %v2391_v22 = vsel %vm2390_vm5, %v3234_v59, %v2387_v13  ;;  %v2399_v23 = vmul.f32 %v3236_v0, %v2380_v63  ;;  %vm2404_vm7 = vweird.f32 %v3236_v0  ;;  %v3238_v49 = vpop.eup %3237 }
 0x82f   : > { %v2396_v16 = vsel %vm2393_vm6, %v2395_v60, %v2391_v22  ;;  %vm2405_vm9 = vmor %vm2403_vm8, %vm2404_vm7 }
 0x830   : > { %v2443_v17 = vmul.f32 1.0614054, %v2396_v16  ;;  %v2400_v45 = vsub.f32 1.0, %v2399_v23  ;;  %v3240_v63 = vpop.eup %3239 }
 0x832   : > { %v2447_v12 = vadd.f32 -1.4531521, %v2443_v17  ;;  %v2401_v3 = vmul.f32 %v3236_v0, %v2400_v45 }
 0x834   : > { %v2451_v20 = vmul.f32 %v2447_v12, %v2396_v16  ;;  %v2402_v25 = vadd.f32 %v3236_v0, %v2401_v3 }
 0x836   : > { %v2455_v61 = vadd.f32 1.4214138, %v2451_v20  ;;  %v2406_v31 = vsel %vm2405_vm9, %v3236_v0, %v2402_v25 }
 0x837   : > { %v2411_v35 = vsel %vm2408_vm10, %v2410_v21, %v2406_v31 }
 0x838   : > { %v2459_v32 = vmul.f32 %v2455_v61, %v2396_v16  ;;  %v2444_v26 = vmul.f32 1.0614054, %v2411_v35 }
 0x83a   : > { %v2463_v38 = vadd.f32 -0.28449672, %v2459_v32  ;;  %v2448_v8 = vadd.f32 -1.4531521, %v2444_v26 }
 0x83c   : > { %v2467_v41 = vmul.f32 %v2463_v38, %v2396_v16  ;;  %v2452_v29 = vmul.f32 %v2448_v8, %v2411_v35 }
 0x83e   : > { %v2471_v4 = vadd.f32 0.2548296, %v2467_v41  ;;  %v2456_v14 = vadd.f32 1.4214138, %v2452_v29 }
 0x840   : > { %v2475_v47 = vmul.f32 %v2471_v4, %v2396_v16  ;;  %v2460_v33 = vmul.f32 %v2456_v14, %v2411_v35 }
 0x842   : > { %v2495_v24 = vmul.f32 %v3238_v49, %v2475_v47  ;;  %v2464_v53 = vadd.f32 -0.28449672, %v2460_v33 }
 0x844   : > { %v2499_v54 = vsub.f32 1.0, %v2495_v24  ;;  %v2468_v39 = vmul.f32 %v2464_v53, %v2411_v35 }
 0x846   : > { %v2507_v58 = vsub.f32 0.0, %v2499_v54  ;;  %v2472_v50 = vadd.f32 0.2548296, %v2468_v39 }
 0x848   : > { %v2511_v59 = vsel %vm2503_vm11, %v2499_v54, %v2507_v58  ;;  %v2476_v36 = vmul.f32 %v2472_v50, %v2411_v35 }
 0x849   : > { %v2515_v56 = vadd.f32 1.0, %v2511_v59 }
 0x84a   : > { %v2496_v48 = vmul.f32 %v3240_v63, %v2476_v36 }
 0x84b   : > { %v2519_v42 = vmul.f32 %v2515_v56, %v2363_v30 }
 0x84c   : > { %v2500_v5 = vsub.f32 1.0, %v2496_v48 }
 0x84d   : > { %2542 = vmatmul.f32.vlgmr.msra.gmra.mxu3 %v2519_v42 }
 0x84e   : > { %v2508_v6 = vsub.f32 0.0, %v2500_v5 }
 0x850   : > { %v2512_v7 = vsel %vm2504_vm12, %v2500_v5, %v2508_v6 }
 0x851   : > { %v2516_v9 = vadd.f32 1.0, %v2512_v7 }
 0x853   : > { %v2520_v10 = vmul.f32 %v2516_v9, %v2364_v46 }
 0x855   : > { %2545 = vmatmul.f32.gmra.mxu3 %v2520_v10 }
 0x85d   : > { %v2357_v44 = vpop.f32.mrf.mxu2 }
 0x85e   : > { %v4017_v13 = vadd.f32 %v3981_v40, %v2357_v44 }
 0x860   : > { %v4020_v27 = vmul.f32 0.70710677, %v4017_v13 }
 0x862   : > { %v2373_v60 = vand.u32 2147483647, %v4020_v27  ;;  %vm2505_vm7 = vcmp.ge.f32.partialorder %v4020_v27, 0.0 }
 0x864   : > { %v2377_v0 = vmul.f32 0.3275911, %v2373_v60  ;;  %v2481_v21 = vsub.f32 0.0, %v2373_v60 }
 0x865   : > { %v2360_v22 = vpop.f32.mrf.mxu2 }
 0x866   : > { %v2381_v16 = vadd.f32 1.0, %v2377_v0  ;;  %v4024_v37 = vadd.f32 %v3981_v40, %v2360_v22  ;;  %v2485_v38 = vmul.f32 %v2481_v21, %v2373_v60  ;;  %v2365_v60 = vmul.f32 0.5, %v4017_v13  ;;  %v3150_v13 = vld [vmem:[%s4201_s23] ss:$0 sm:$0xff] }
 0x868   : > { %3241 = vrcp.f32 %v2381_v16  ;;  %v4027_v51 = vmul.f32 0.70710677, %v4024_v37  ;;  %v2424_v55 = vand.u32 2147483648, %v2381_v16  ;;  %v2422_v19 = vand.u32 2147483647, %v2381_v16 }
 0x869   : > { %vm2418_vm14 = vweird.f32 %v2381_v16  ;;  %v2491_v47 = vmul.f32 1.442695, %v2485_v38 }
 0x86a   : > { %v2374_v2 = vand.u32 2147483647, %v4027_v51  ;;  %v2425_v40 = vor.u32 1.1754944e-38, %v2424_v55  ;;  %vm2423_vm0 = vcmp.eq.f32.partialorder %v2422_v19, 8.507059e+37  ;;  %vm2506_vm8 = vcmp.ge.f32.partialorder %v4027_v51, 0.0 }
 0x86c   : > { %v2378_v23 = vmul.f32 0.3275911, %v2374_v2  ;;  %v2482_v49 = vsub.f32 0.0, %v2374_v2 }
 0x86e   : > { %v3242_v17 = vpop.eup %3241  ;;  %v2382_v12 = vadd.f32 1.0, %v2378_v23  ;;  %v2486_v58 = vmul.f32 %v2482_v49, %v2374_v2 }
 0x86f   : > { %v2414_v45 = vmul.f32 %v3242_v17, %v2381_v16  ;;  %vm2419_vm13 = vweird.f32 %v3242_v17 }
 0x870   : > { %3243 = vrcp.f32 %v2382_v12  ;;  %vm2420_vm15 = vmor %vm2418_vm14, %vm2419_vm13  ;;  %v2439_v26 = vand.u32 2147483648, %v2382_v12  ;;  %v2437_v41 = vand.u32 2147483647, %v2382_v12  ;;  %vm2433_vm4 = vweird.f32 %v2382_v12 }
 0x871   : > { %v2415_v18 = vsub.f32 1.0, %v2414_v45  ;;  %3245 = vpow2.f32 %v2491_v47  ;;  %v2493_v36 = vmul.f32 1.442695, %v2486_v58 }
 0x872   : > { %v2440_v14 = vor.u32 1.1754944e-38, %v2439_v26  ;;  %vm2438_vm6 = vcmp.eq.f32.partialorder %v2437_v41, 8.507059e+37 }
 0x873   : > { %v2416_v3 = vmul.f32 %v3242_v17, %v2415_v18  ;;  %3247 = vpow2.f32 %v2493_v36  ;;  %v2366_v18 = vmul.f32 0.5, %v4024_v37 }
 0x875   : > { %v2417_v20 = vadd.f32 %v3242_v17, %v2416_v3 }
 0x876   : > { %v3244_v25 = vpop.eup %3243 }
 0x877   : > { %v2421_v61 = vsel %vm2420_vm15, %v3242_v17, %v2417_v20  ;;  %v2429_v28 = vmul.f32 %v3244_v25, %v2382_v12  ;;  %vm2434_vm1 = vweird.f32 %v3244_v25  ;;  %v3246_v42 = vpop.eup %3245 }
 0x878   : > { %v2426_v31 = vsel %vm2423_vm0, %v2425_v40, %v2421_v61  ;;  %vm2435_vm5 = vmor %vm2433_vm4, %vm2434_vm1 }
 0x879   : > { %v2445_v32 = vmul.f32 1.0614054, %v2426_v31  ;;  %v2430_v34 = vsub.f32 1.0, %v2429_v28  ;;  %v3248_v16 = vpop.eup %3247 }
 0x87b   : > { %v2449_v35 = vadd.f32 -1.4531521, %v2445_v32  ;;  %v2431_v8 = vmul.f32 %v3244_v25, %v2430_v34 }
 0x87d   : > { %v2453_v43 = vmul.f32 %v2449_v35, %v2426_v31  ;;  %v2432_v29 = vadd.f32 %v3244_v25, %v2431_v8 }
 0x87f   : > { %v2457_v4 = vadd.f32 1.4214138, %v2453_v43  ;;  %v2436_v11 = vsel %vm2435_vm5, %v3244_v25, %v2432_v29 }
 0x880   : > { %v2441_v24 = vsel %vm2438_vm6, %v2440_v14, %v2436_v11 }
 0x881   : > { %v2461_v33 = vmul.f32 %v2457_v4, %v2426_v31  ;;  %v2446_v53 = vmul.f32 1.0614054, %v2441_v24 }
 0x883   : > { %v2465_v54 = vadd.f32 -0.28449672, %v2461_v33  ;;  %v2450_v39 = vadd.f32 -1.4531521, %v2446_v53 }
 0x885   : > { %v2469_v50 = vmul.f32 %v2465_v54, %v2426_v31  ;;  %v2454_v59 = vmul.f32 %v2450_v39, %v2441_v24 }
 0x887   : > { %v2473_v30 = vadd.f32 0.2548296, %v2469_v50  ;;  %v2458_v56 = vadd.f32 1.4214138, %v2454_v59 }
 0x889   : > { %v2477_v63 = vmul.f32 %v2473_v30, %v2426_v31  ;;  %v2462_v48 = vmul.f32 %v2458_v56, %v2441_v24 }
 0x88b   : > { %v2497_v5 = vmul.f32 %v3246_v42, %v2477_v63  ;;  %v2466_v6 = vadd.f32 -0.28449672, %v2462_v48 }
 0x88d   : > { %v2501_v7 = vsub.f32 1.0, %v2497_v5  ;;  %v2470_v46 = vmul.f32 %v2466_v6, %v2441_v24 }
 0x88f   : > { %v2509_v9 = vsub.f32 0.0, %v2501_v7  ;;  %v2474_v10 = vadd.f32 0.2548296, %v2470_v46 }
 0x891   : > { %v2513_v44 = vsel %vm2505_vm7, %v2501_v7, %v2509_v9  ;;  %v2478_v22 = vmul.f32 %v2474_v10, %v2441_v24 }
 0x892   : > { %v2517_v0 = vadd.f32 1.0, %v2513_v44 }
 0x893   : > { %v2498_v23 = vmul.f32 %v3248_v16, %v2478_v22 }
 0x894   : > { %v2521_v2 = vmul.f32 %v2517_v0, %v2365_v60 }
 0x895   : > { %v2502_v17 = vsub.f32 1.0, %v2498_v23 }
 0x896   : > { %2548 = vmatmul.f32.gmra.mxu3 %v2521_v2 }
 0x897   : > { %v2510_v45 = vsub.f32 0.0, %v2502_v17 }
 0x899   : > { %v2514_v12 = vsel %vm2506_vm8, %v2502_v17, %v2510_v45 }
 0x89a   : > { %v2518_v55 = vadd.f32 1.0, %v2514_v12 }
 0x89c   : > { %v2522_v27 = vmul.f32 %v2518_v55, %v2366_v18 }
 0x89e   : > { %2551 = vmatmul.f32.gmra.mxu3 %v2522_v27 }
 0x8d0   : > { %v2543_v3 = vpop.f32.mrf.mxu3 }
 0x8d1   : > { %v2544_v19 = vadd.f32 %v3150_v13, %v2543_v3 }
 0x8d3   : > { %v2555_v20 = vadd.f32 %v2544_v19, %v3915_v1 }
 0x8d8   : > { %v2546_v40 = vpop.f32.mrf.mxu3 }
 0x8d9   : > { %v2547_v25 = vadd.f32 %v3150_v13, %v2546_v40 }
 0x8db   : > { %v2556_v61 = vadd.f32 %v2547_v25, %v3919_v52 }
 0x919   : > { %v2549_v51 = vpop.f32.mrf.mxu3 }
 0x91a   : > { %v2550_v21 = vadd.f32 %v3150_v13, %v2549_v51 }
 0x91c   : > { %v2557_v37 = vadd.f32 %v2550_v21, %v3923_v62 }
 0x920   : > { %2562 = sbr.rel (%p3027_p6) target bundleno = 2345 (0x929), region = 120 }
 0x921   : > { %v2552_v28 = vpop.f32.mrf.mxu3 }
 0x922   : > { %v2553_v31 = vadd.f32 %v3150_v13, %v2552_v28 }
 0x924   : > { %v2558_v32 = vadd.f32 %v2553_v31, %v3927_v15 }
 0x925   : > { %2563 = vst.msk [vmem:[#allocation2] sm:$0xff] %vm1159_vm2, %v2555_v20 }
 0x926   : > { %2564 = vst.msk [vmem:[#allocation2 + $0x8] sm:$0xff] %vm1159_vm2, %v2556_v61 }
 0x927   : > { %2565 = vst.msk [vmem:[#allocation2 + $0x10] sm:$0xff] %vm1159_vm2, %v2557_v37 }
 0x928   : > { %2566 = vst.msk [vmem:[#allocation2 + $0x18] sm:$0xff] %vm1159_vm2, %v2558_v32 }
 0x929 PF: > { %p3028_p7 = scmp.ne.s32.totalorder %s3278_s4, 1 }
 0x92a   : > { %s4202_s20 = sld [smem:[#allocation16_spill]] (!%p3028_p7) }
 0x92b   : > { %2570 = sbr.rel (%p3028_p7) target bundleno = 2763 (0xacb), region = 124  ;;  %s4203_s27 = sld [smem:[#allocation17_spill]] (!%p3028_p7) }
 0x92c   : > { %s4204_s4 = sld [smem:[#allocation18_spill]] (!%p3028_p7) }
 0x92d   : > { %s4205_s24 = sld [smem:[#allocation19_spill]] (!%p3028_p7) }
 0x930   : > { %v2579_v1 = vsel %vm1159_vm2, %v2557_v37, 0.0  ;;  %v2573_v52 = vsel %vm1159_vm2, %v2555_v20, 0.0  ;;  %v2582_v62 = vsel %vm1159_vm2, %v2558_v32, 0.0  ;;  %v2576_v15 = vsel %vm1159_vm2, %v2556_v61, 0.0  ;;  %v2678_v59 = vld [vmem:[%s4156_s21 + $0x18] sm:$0xff]  ;;  %v2677_v30 = vld [vmem:[%s4156_s21 + $0x10] sm:$0xff] }
 0x931   : > { %2580 = vadd.xlane.f32.xlu0 %v2579_v1  ;;  %2574 = vadd.xlane.f32.xlu1 %v2573_v52  ;;  %v2676_v56 = vld [vmem:[%s4156_s21 + $0x8] sm:$0xff]  ;;  %v2675_v36 = vld [vmem:[%s4156_s21] sm:$0xff] }
 0x932   : > { %2707 = vmatpush.msra.mxu0 %v2678_v59  ;;  %3048 = vmatpush.msra.mxu2 %v2678_v59  ;;  %v3253_v25 = vld [vmem:[%s4202_s20] ss:$0 sm:$0xff] }
 0x933   : > { %3047 = vmatpush.msra.mxu1 %v2678_v59  ;;  %3049 = vmatpush.msra.mxu3 %v2678_v59  ;;  %v3254_v28 = vld [vmem:[%s4203_s27] ss:$0 sm:$0xff]  ;;  %s4206_s6 = smov %s4205_s24 }
 0x934   : > { %2708 = vmatpush.msra.mxu0 %v2677_v30  ;;  %3051 = vmatpush.msra.mxu2 %v2677_v30 }
 0x935   : > { %3050 = vmatpush.msra.mxu1 %v2677_v30  ;;  %3052 = vmatpush.msra.mxu3 %v2677_v30 }
 0x936   : > { %2709 = vmatpush.msra.mxu0 %v2676_v56  ;;  %3054 = vmatpush.msra.mxu2 %v2676_v56 }
 0x937   : > { %3053 = vmatpush.msra.mxu1 %v2676_v56  ;;  %3055 = vmatpush.msra.mxu3 %v2676_v56 }
 0x938   : > { %2710 = vmatpush.msra.mxu0 %v2675_v36  ;;  %3057 = vmatpush.msra.mxu2 %v2675_v36 }
 0x939   : > { %2583 = vadd.xlane.f32.xlu0 %v2582_v62  ;;  %2577 = vadd.xlane.f32.xlu1 %v2576_v15 }
 0x93a   : > { %3056 = vmatpush.msra.mxu1 %v2675_v36  ;;  %3058 = vmatpush.msra.mxu3 %v2675_v36 }
 0x9a4   : > { %v2581_v34 = vpop.xlane.xlu0 %2580  ;;  %v2575_v35 = vpop.xlane.xlu1 %2574 }
 0x9a5   : > { %v2587_v26 = vmul.f32 %v2581_v34, %v3567_v57  ;;  %v2585_v38 = vmul.f32 %v2575_v35, %v3567_v57 }
 0x9a7   : > { %v4055_v8 = vsub.f32 %v2557_v37, %v2587_v26  ;;  %v4057_v41 = vsub.f32 %v2555_v20, %v2585_v38 }
 0x9a9   : > { %v2595_v43 = vmul.f32 %v4055_v8, %v4055_v8  ;;  %v2593_v29 = vmul.f32 %v4057_v41, %v4057_v41 }
 0x9ab   : > { %v2603_v4 = vsel %vm1159_vm2, %v2595_v43, 0.0  ;;  %v2597_v14 = vsel %vm1159_vm2, %v2593_v29, 0.0 }
 0x9ac   : > { %2604 = vadd.xlane.f32.xlu2 %v2603_v4  ;;  %v2584_v47 = vpop.xlane.xlu0 %2583  ;;  %2598 = vadd.xlane.f32.xlu0 %v2597_v14  ;;  %v2578_v11 = vpop.xlane.xlu1 %2577 }
 0x9ad   : > { %v2588_v49 = vmul.f32 %v2584_v47, %v3567_v57  ;;  %v2586_v33 = vmul.f32 %v2578_v11, %v3567_v57 }
 0x9af   : > { %v4067_v24 = vsub.f32 %v2558_v32, %v2588_v49  ;;  %v4069_v53 = vsub.f32 %v2556_v61, %v2586_v33 }
 0x9b1   : > { %v2596_v54 = vmul.f32 %v4067_v24, %v4067_v24  ;;  %v2594_v39 = vmul.f32 %v4069_v53, %v4069_v53 }
 0x9b3   : > { %v2606_v58 = vsel %vm1159_vm2, %v2596_v54, 0.0  ;;  %v2600_v50 = vsel %vm1159_vm2, %v2594_v39, 0.0  ;;  %v3255_v54 = vld [vmem:[%s4204_s4] ss:$0 sm:$0xff] }
 0x9b4   : > { %2607 = vadd.xlane.f32.xlu2 %v2606_v58  ;;  %2601 = vadd.xlane.f32.xlu1 %v2600_v50 }
 0xa1f   : > { %v2605_v63 = vpop.xlane.xlu2 %2604  ;;  %v2599_v42 = vpop.xlane.xlu0 %2598 }
 0xa20   : > { %v2611_v48 = vmul.f32 %v2605_v63, %v3567_v57  ;;  %v2609_v5 = vmul.f32 %v2599_v42, %v3567_v57 }
 0xa22   : > { %v2615_v6 = vadd.f32 1e-05, %v2611_v48  ;;  %v2613_v7 = vadd.f32 1e-05, %v2609_v5 }
 0xa24   : > { %3256 = vrsqrt.f32 %v2615_v6  ;;  %vm2623_vm10 = vweird.f32 %v2613_v7  ;;  %vm2643_vm12 = vweird.f32 %v2615_v6 }
 0xa25   : > { %3258 = vrsqrt.f32 %v2613_v7 }
 0xa27   : > { %v2608_v46 = vpop.xlane.xlu2 %2607  ;;  %v2602_v9 = vpop.xlane.xlu1 %2601 }
 0xa28   : > { %v2612_v10 = vmul.f32 %v2608_v46, %v3567_v57  ;;  %v2610_v44 = vmul.f32 %v2602_v9, %v3567_v57 }
 0xa2a   : > { %v3257_v60 = vpop.eup %3256  ;;  %v2616_v0 = vadd.f32 1e-05, %v2612_v10  ;;  %v2614_v22 = vadd.f32 1e-05, %v2610_v44 }
 0xa2b   : > { %v3259_v16 = vpop.eup %3258  ;;  %v2638_v2 = vmul.f32 %v3257_v60, %v2615_v6  ;;  %vm2644_vm9 = vweird.f32 %v3257_v60 }
 0xa2c   : > { %v2618_v23 = vmul.f32 %v3259_v16, %v2613_v7  ;;  %3260 = vrsqrt.f32 %v2616_v0  ;;  %vm2624_vm11 = vweird.f32 %v3259_v16  ;;  %vm2645_vm13 = vmor %vm2643_vm12, %vm2644_vm9  ;;  %vm2633_vm0 = vweird.f32 %v2614_v22 }
 0xa2d   : > { %v2639_v17 = vmul.f32 %v3257_v60, %v2638_v2  ;;  %3262 = vrsqrt.f32 %v2614_v22  ;;  %vm2625_vm14 = vmor %vm2623_vm10, %vm2624_vm11  ;;  %vm2653_vm4 = vweird.f32 %v2616_v0 }
 0xa2e   : > { %v2619_v45 = vmul.f32 %v3259_v16, %v2618_v23 }
 0xa2f   : > { %v2640_v12 = vmul.f32 0.5, %v2639_v17 }
 0xa30   : > { %v2620_v18 = vmul.f32 0.5, %v2619_v45 }
 0xa31   : > { %v2641_v55 = vsub.f32 1.5, %v2640_v12 }
 0xa32   : > { %v3261_v27 = vpop.eup %3260  ;;  %v2621_v13 = vsub.f32 1.5, %v2620_v18 }
 0xa33   : > { %v3263_v3 = vpop.eup %3262  ;;  %v2642_v57 = vmul.f32 %v3257_v60, %v2641_v55  ;;  %v2648_v19 = vmul.f32 %v3261_v27, %v2616_v0  ;;  %vm2654_vm15 = vweird.f32 %v3261_v27 }
 0xa34   : > { %v2622_v20 = vmul.f32 %v3259_v16, %v2621_v13  ;;  %v2628_v40 = vmul.f32 %v3263_v3, %v2614_v22  ;;  %vm2634_vm1 = vweird.f32 %v3263_v3  ;;  %vm2655_vm5 = vmor %vm2653_vm4, %vm2654_vm15 }
 0xa35   : > { %v2649_v61 = vmul.f32 %v3261_v27, %v2648_v19  ;;  %v2646_v51 = vsel %vm2645_vm13, %v3257_v60, %v2642_v57  ;;  %vm2635_vm6 = vmor %vm2633_vm0, %vm2634_vm1 }
 0xa36   : > { %v2629_v21 = vmul.f32 %v3263_v3, %v2628_v40  ;;  %v2626_v37 = vsel %vm2625_vm14, %v3259_v16, %v2622_v20  ;;  %v2659_v31 = vmul.f32 %v2646_v51, %v4055_v8 }
 0xa37   : > { %v2650_v32 = vmul.f32 0.5, %v2649_v61  ;;  %v2657_v1 = vmul.f32 %v2626_v37, %v4057_v41 }
 0xa38   : > { %v2630_v52 = vmul.f32 0.5, %v2629_v21  ;;  %v2666_v62 = vmul.f32 %v3253_v25, %v2659_v31 }
 0xa39   : > { %v2651_v15 = vsub.f32 1.5, %v2650_v32  ;;  %v2664_v34 = vmul.f32 %v3253_v25, %v2657_v1 }
 0xa3a   : > { %v2631_v35 = vsub.f32 1.5, %v2630_v52  ;;  %v2673_v26 = vadd.f32 %v3254_v28, %v2666_v62 }
 0xa3b   : > { %v2652_v38 = vmul.f32 %v3261_v27, %v2651_v15  ;;  %v2671_v43 = vadd.f32 %v3254_v28, %v2664_v34 }
 0xa3c   : > { %v2632_v29 = vmul.f32 %v3263_v3, %v2631_v35  ;;  %3031 = vmatmul.msk.f32.vlgmr.msra.gmra.mxu2 %vm1159_vm2, %v2673_v26 }
 0xa3d   : > { %3029 = vmatmul.msk.f32.vlgmr.msra.gmra.mxu0 %vm1159_vm2, %v2671_v43  ;;  %v2656_v8 = vsel %vm2655_vm5, %v3261_v27, %v2652_v38 }
 0xa3e   : > { %v2636_v41 = vsel %vm2635_vm6, %v3263_v3, %v2632_v29  ;;  %v2660_v4 = vmul.f32 %v2656_v8, %v4067_v24 }
 0xa3f   : > { %v2658_v14 = vmul.f32 %v2636_v41, %v4069_v53 }
 0xa40   : > { %v2667_v47 = vmul.f32 %v3253_v25, %v2660_v4 }
 0xa41   : > { %v2665_v11 = vmul.f32 %v3253_v25, %v2658_v14 }
 0xa42   : > { %v2674_v49 = vadd.f32 %v3254_v28, %v2667_v47 }
 0xa43   : > { %v2672_v33 = vadd.f32 %v3254_v28, %v2665_v11 }
 0xa44   : > { %3032 = vmatmul.msk.f32.vlgmr.msra.gmra.mxu3 %vm1159_vm2, %v2674_v49 }
 0xa45   : > { %3030 = vmatmul.msk.f32.vlgmr.msra.gmra.mxu1 %vm1159_vm2, %v2672_v33 }
 0xaba   : > { %v2712_v39 = vpop.f32.mrf.mxu0 }
 0xabb   : > { %v2713_v58 = vadd.f32 %v3255_v54, %v2712_v39 }
 0xabd   : > { %2724 = vst.msk [vmem:[%s4205_s24] sm:$0xff] %vm1405_vm3, %v2713_v58 }
 0xabf   : > { %v2718_v24 = vpop.f32.mrf.mxu2 }
 0xac0   : > { %v2719_v53 = vadd.f32 %v3255_v54, %v2718_v24 }
 0xac2   : > { %2726 = vst.msk [vmem:[%s4206_s6 + $0x10] sm:$0xff] %vm1405_vm3, %v2719_v53  ;;  %v2715_v50 = vpop.f32.mrf.mxu1 }
 0xac3   : > { %v2716_v59 = vadd.f32 %v3255_v54, %v2715_v50 }
 0xac5   : > { %2725 = vst.msk [vmem:[%s4206_s6 + $0x8] sm:$0xff] %vm1405_vm3, %v2716_v59 }
 0xac7   : > { %v2721_v30 = vpop.f32.mrf.mxu3 }
 0xac8   : > { %v2722_v56 = vadd.f32 %v3255_v54, %v2721_v30 }
 0xaca   : > { %2727 = vst.msk [vmem:[%s4206_s6 + $0x18] sm:$0xff] %vm1405_vm3, %v2722_v56 }
 0xacb PF: > { %s4207_s30 = sld [smem:[#allocation4_spill]] }
 0xacc   : > { %s4208_s4 = sld [smem:[#allocation3_spill]] }
 0xad1   : > { %s33_s24 = sadd.s32 1, %s4207_s30   ;;  %s4209_s30 = sld [smem:[#allocation5_spill]] }
 0xad2   : > { %p30_p8 = scmp.ge.s32.totalorder %s33_s24, 4  }
 0xad4   :  { %32 = sbr.rel (!%p30_p8) target bundleno = 15 (0xf), region = 196 }

// kernel: mae_forward.7
= control target key start
LH: loop header
LB: loop body
LE: loop exit
PB: predicated region body
PF: predicated region fallthrough
CT: control target
= control target key end

     0   :  { %vm73_vm0 = vcmask 261120   ;;  %v35_v33 = vlaneseq  ;;  %v1244_v35 = vmov 0.0   ;;  %vm247_vm2 = vcmask 1043456   ;;  %s2251_s1 = inlined_call_operand.vmem [shape: f32[32,1024], index: 1, kind: input, shape index: {}]   ;;  %s2252_s0 = inlined_call_operand.vmem [shape: f32[4,32], index: 0, kind: input, shape index: {}]   ;;  %s2253_s4 = inlined_call_operand.vmem [shape: f32[1024,32], index: 4, kind: input, shape index: {}]   ;;  %s2254_s2 = inlined_call_operand.vmem [shape: f32[1,1024], index: 2, kind: input, shape index: {}]   ;;  %s2255_s3 = inlined_call_operand.vmem [shape: f32[1,1024], index: 3, kind: input, shape index: {}]   ;;  %s2256_s6 = inlined_call_operand.vmem [shape: f32[1,128], index: 6, kind: input, shape index: {}]   ;;  %s2257_s7 = inlined_call_operand.vmem [shape: f32[1,128], index: 7, kind: input, shape index: {}]   ;;  %s2258_s5 = inlined_call_operand.vmem [shape: f32[32,128], index: 5, kind: input, shape index: {}]   ;;  %s2259_s9 = inlined_call_operand.vmem [shape: f32[4,32], index: 9, kind: output, shape index: {0}]   ;;  %s2260_s8 = inlined_call_operand.vmem [shape: f32[128,32], index: 8, kind: input, shape index: {}]   ;;  %s2261_s10 = inlined_call_operand.vmem [shape: f32[4,32], index: 10, kind: output, shape index: {1}]  }
   0x1   :  { %v65_v0 = vld [vmem:[%s2251_s1 + $0xc0] sm:$0xff]  ;;  %v66_v1 = vld [vmem:[%s2251_s1 + $0xc8] sm:$0xff]  ;;  %v68_v2 = vld [vmem:[%s2251_s1 + $0xd8] sm:$0xff] }
   0x2   :  { %89 = vmatpush.msra.mxu0 %v65_v0  ;;  %109 = vmatpush.msra.mxu2 %v66_v1  ;;  %v57_v3 = vld [vmem:[%s2251_s1 + $0x80] sm:$0xff]  ;;  %v58_v4 = vld [vmem:[%s2251_s1 + $0x88] sm:$0xff]  ;;  %v60_v5 = vld [vmem:[%s2251_s1 + $0x98] sm:$0xff]  ;;  %v36_v34 = vshrl.u32 %v35_v33, 7 }
   0x3   :  { %149 = vmatpush.msra.mxu3 %v68_v2  ;;  %v49_v6 = vld [vmem:[%s2251_s1 + $0x40] sm:$0xff]  ;;  %v50_v7 = vld [vmem:[%s2251_s1 + $0x48] sm:$0xff]  ;;  %v52_v8 = vld [vmem:[%s2251_s1 + $0x58] sm:$0xff] }
   0x4   :  { %90 = vmatpush.msra.mxu0 %v57_v3  ;;  %110 = vmatpush.msra.mxu2 %v58_v4  ;;  %v41_v9 = vld [vmem:[%s2251_s1] sm:$0xff]  ;;  %v42_v10 = vld [vmem:[%s2251_s1 + $0x8] sm:$0xff]  ;;  %v44_v11 = vld [vmem:[%s2251_s1 + $0x18] sm:$0xff]  ;;  %vm37_vm1 = vcmp.lt.s32.totalorder %v36_v34, 2 }
   0x5   :  { %150 = vmatpush.msra.mxu3 %v60_v5  ;;  %v34_v12 = vld [vmem:[%s2252_s0] sm:$0xf]  ;;  %v67_v13 = vld [vmem:[%s2251_s1 + $0xd0] sm:$0xff]  ;;  %v70_v15 = vld [vmem:[%s2251_s1 + $0xe8] sm:$0xff]  ;;  %v1407_v36 = vsel %vm37_vm1, 1.0, %v1244_v35 }
   0x6   :  { %91 = vmatpush.msra.mxu0 %v49_v6  ;;  %111 = vmatpush.msra.mxu2 %v50_v7  ;;  %v69_v14 = vld [vmem:[%s2251_s1 + $0xe0] sm:$0xff]  ;;  %v59_v16 = vld [vmem:[%s2251_s1 + $0x90] sm:$0xff]  ;;  %v62_v18 = vld [vmem:[%s2251_s1 + $0xa8] sm:$0xff]  ;;  %v1410_v37 = vsub.f32 1.0, %v1407_v36 }
   0x7   :  { %151 = vmatpush.msra.mxu3 %v52_v8  ;;  %v61_v17 = vld [vmem:[%s2251_s1 + $0xa0] sm:$0xff]  ;;  %v51_v19 = vld [vmem:[%s2251_s1 + $0x50] sm:$0xff]  ;;  %v54_v21 = vld [vmem:[%s2251_s1 + $0x68] sm:$0xff] }
   0x8   :  { %92 = vmatpush.msra.mxu0 %v41_v9  ;;  %112 = vmatpush.msra.mxu2 %v42_v10  ;;  %v53_v20 = vld [vmem:[%s2251_s1 + $0x60] sm:$0xff]  ;;  %v43_v22 = vld [vmem:[%s2251_s1 + $0x10] sm:$0xff]  ;;  %v46_v24 = vld [vmem:[%s2251_s1 + $0x28] sm:$0xff] }
   0x9   :  { %152 = vmatpush.msra.mxu3 %v44_v11  ;;  %1212 = vmatmul.msk.f32.vlgmr.msra.gmra.mxu0 %vm73_vm0, %v34_v12  ;;  %v45_v23 = vld [vmem:[%s2251_s1 + $0x20] sm:$0xff]  ;;  %v71_v25 = vld [vmem:[%s2251_s1 + $0xf0] sm:$0xff]  ;;  %v72_v26 = vld [vmem:[%s2251_s1 + $0xf8] sm:$0xff] }
   0xa   :  { %1213 = vmatmul.msk.f32.vlgmr.msra.gmra.mxu2 %vm73_vm0, %v34_v12  ;;  %1215 = vmatmul.msk.f32.vlgmr.msra.gmra.mxu3 %vm73_vm0, %v34_v12  ;;  %v63_v27 = vld [vmem:[%s2251_s1 + $0xb0] sm:$0xff]  ;;  %v64_v28 = vld [vmem:[%s2251_s1 + $0xb8] sm:$0xff] }
   0xb   :  { %129 = vmatpush.msrb.mxu2 %v67_v13  ;;  %169 = vmatpush.msrb.mxu0 %v69_v14  ;;  %v55_v29 = vld [vmem:[%s2251_s1 + $0x70] sm:$0xff]  ;;  %v56_v30 = vld [vmem:[%s2251_s1 + $0x78] sm:$0xff] }
   0xc   :  { %189 = vmatpush.msrb.mxu3 %v70_v15  ;;  %v47_v31 = vld [vmem:[%s2251_s1 + $0x30] sm:$0xff]  ;;  %v48_v32 = vld [vmem:[%s2251_s1 + $0x38] sm:$0xff] }
   0xd   :  { %130 = vmatpush.msrb.mxu2 %v59_v16  ;;  %170 = vmatpush.msrb.mxu0 %v61_v17 }
   0xe   :  { %190 = vmatpush.msrb.mxu3 %v62_v18 }
   0xf   :  { %131 = vmatpush.msrb.mxu2 %v51_v19  ;;  %171 = vmatpush.msrb.mxu0 %v53_v20 }
  0x10   :  { %191 = vmatpush.msrb.mxu3 %v54_v21 }
  0x11   :  { %132 = vmatpush.msrb.mxu2 %v43_v22  ;;  %172 = vmatpush.msrb.mxu0 %v45_v23 }
  0x12   :  { %192 = vmatpush.msrb.mxu3 %v46_v24  ;;  %1214 = vmatmul.msk.f32.vlgmr.msrb.gmra.mxu2 %vm73_vm0, %v34_v12 }
  0x13   :  { %1216 = vmatmul.msk.f32.vlgmr.msrb.gmra.mxu0 %vm73_vm0, %v34_v12  ;;  %1217 = vmatmul.msk.f32.vlgmr.msrb.gmra.mxu3 %vm73_vm0, %v34_v12 }
  0x14   :  { %209 = vmatpush.msra.mxu2 %v71_v25  ;;  %229 = vmatpush.msra.mxu3 %v72_v26 }
  0x16   :  { %210 = vmatpush.msra.mxu2 %v63_v27  ;;  %230 = vmatpush.msra.mxu3 %v64_v28 }
  0x18   :  { %211 = vmatpush.msra.mxu2 %v55_v29  ;;  %231 = vmatpush.msra.mxu3 %v56_v30 }
  0x1a   :  { %212 = vmatpush.msra.mxu2 %v47_v31  ;;  %232 = vmatpush.msra.mxu3 %v48_v32 }
  0x1b   :  { %1218 = vmatmul.msk.f32.vlgmr.msra.gmra.mxu2 %vm73_vm0, %v34_v12  ;;  %1219 = vmatmul.msk.f32.vlgmr.msra.gmra.mxu3 %vm73_vm0, %v34_v12 }
  0x86   :  { %v1412_v38 = vpop.f32.mrf.mxu0 }
  0x87   :  { %v239_v39 = vmul.f32 %v1407_v36, %v1412_v38  ;;  %v312_v40 = vmul.f32 %v1412_v38, %v1410_v37 }
  0x89   :  { %v248_v41 = vsel %vm247_vm2, %v239_v39, 0.0  ;;  %v320_v42 = vsel %vm247_vm2, %v312_v40, 0.0 }
  0x8a   :  { %v249_v43 = vrot.slane %v248_v41, 4  ;;  %v321_v44 = vrot.slane %v320_v42, 4 }
  0x8c   :  { %v250_v45 = vadd.f32 %v249_v43, %v248_v41  ;;  %v322_v46 = vadd.f32 %v321_v44, %v320_v42 }
  0x8d   :  { %v1420_v47 = vpop.f32.mrf.mxu2  ;;  %v1422_v48 = vpop.f32.mrf.mxu3 }
  0x8e   :  { %v251_v49 = vrot.slane %v250_v45, 2  ;;  %v323_v50 = vrot.slane %v322_v46, 2  ;;  %v240_v51 = vmul.f32 %v1407_v36, %v1420_v47  ;;  %v313_v52 = vmul.f32 %v1420_v47, %v1410_v37 }
  0x8f   :  { %v242_v53 = vmul.f32 %v1407_v36, %v1422_v48  ;;  %v315_v54 = vmul.f32 %v1422_v48, %v1410_v37 }
  0x90   :  { %v252_v55 = vadd.f32 %v251_v49, %v250_v45  ;;  %v324_v56 = vadd.f32 %v323_v50, %v322_v46  ;;  %v255_v57 = vsel %vm247_vm2, %v240_v51, 0.0  ;;  %v327_v58 = vsel %vm247_vm2, %v313_v52, 0.0  ;;  %v1434_v59 = vpop.f32.mrf.mxu0 }
  0x91   :  { %v256_v60 = vrot.slane %v255_v57, 4  ;;  %v328_v61 = vrot.slane %v327_v58, 4  ;;  %v269_v62 = vsel %vm247_vm2, %v242_v53, 0.0  ;;  %v341_v63 = vsel %vm247_vm2, %v315_v54, 0.0 }
  0x92   :  { %v253_v0 = vrot.slane %v252_v55, 1  ;;  %v325_v1 = vrot.slane %v324_v56, 1  ;;  %v270_v2 = vrot.slane %v269_v62, 4  ;;  %v342_v3 = vrot.slane %v341_v63, 4 }
  0x93   :  { %v257_v4 = vadd.f32 %v256_v60, %v255_v57  ;;  %v329_v5 = vadd.f32 %v328_v61, %v327_v58  ;;  %v243_v6 = vmul.f32 %v1407_v36, %v1434_v59  ;;  %v316_v7 = vmul.f32 %v1434_v59, %v1410_v37 }
  0x94   :  { %v254_v8 = vadd.f32 %v253_v0, %v252_v55  ;;  %v326_v9 = vadd.f32 %v325_v1, %v324_v56  ;;  %v271_v10 = vadd.f32 %v270_v2, %v269_v62  ;;  %v343_v11 = vadd.f32 %v342_v3, %v341_v63 }
  0x95   :  { %v258_v12 = vrot.slane %v257_v4, 2  ;;  %v330_v13 = vrot.slane %v329_v5, 2  ;;  %v276_v14 = vsel %vm247_vm2, %v243_v6, 0.0  ;;  %v348_v15 = vsel %vm247_vm2, %v316_v7, 0.0  ;;  %v1444_v16 = vpop.f32.mrf.mxu2 }
  0x96   :  { %v304_v17 = vmul.f32 %v1407_v36, %v254_v8  ;;  %v376_v18 = vmul.f32 %v326_v9, %v1410_v37  ;;  %v272_v19 = vrot.slane %v271_v10, 2  ;;  %v344_v20 = vrot.slane %v343_v11, 2 }
  0x97   :  { %v259_v21 = vadd.f32 %v258_v12, %v257_v4  ;;  %v331_v22 = vadd.f32 %v330_v13, %v329_v5  ;;  %v277_v23 = vrot.slane %v276_v14, 4  ;;  %v349_v24 = vrot.slane %v348_v15, 4 }
  0x98   :  { %v384_v25 = vadd.f32 %v376_v18, %v304_v17  ;;  %v273_v26 = vadd.f32 %v272_v19, %v271_v10  ;;  %v345_v27 = vadd.f32 %v344_v20, %v343_v11  ;;  %v241_v28 = vmul.f32 %v1407_v36, %v1444_v16 }
  0x99   :  { %v260_v29 = vrot.slane %v259_v21, 1  ;;  %v332_v30 = vrot.slane %v331_v22, 1  ;;  %v278_v31 = vadd.f32 %v277_v23, %v276_v14  ;;  %v350_v32 = vadd.f32 %v349_v24, %v348_v15  ;;  %v1471_v14 = vpop.f32.mrf.mxu3 }
  0x9a   :  { %v392_v33 = vmul.f32 0.5, %v384_v25  ;;  %v274_v34 = vrot.slane %v273_v26, 1  ;;  %v346_v35 = vrot.slane %v345_v27, 1  ;;  %v262_v39 = vsel %vm247_vm2, %v241_v28, 0.0  ;;  %v745_v28 = vld [vmem:[%s2253_s4 + $0x78] sm:$0xff] }
  0x9b   :  { %v261_v40 = vadd.f32 %v260_v29, %v259_v21  ;;  %v333_v41 = vadd.f32 %v332_v30, %v331_v22  ;;  %v279_v42 = vrot.slane %v278_v31, 2  ;;  %v351_v43 = vrot.slane %v350_v32, 2  ;;  %858 = vmatpush.msra.mxu0 %v745_v28 }
  0x9c   :  { %v1452_v44 = vsub.f32 %v1412_v38, %v392_v33  ;;  %v275_v45 = vadd.f32 %v274_v34, %v273_v26  ;;  %v347_v46 = vadd.f32 %v346_v35, %v345_v27  ;;  %v263_v49 = vrot.slane %v262_v39, 4 }
  0x9d   :  { %v305_v50 = vmul.f32 %v1407_v36, %v261_v40  ;;  %v377_v51 = vmul.f32 %v333_v41, %v1410_v37  ;;  %v280_v52 = vadd.f32 %v279_v42, %v278_v31  ;;  %v352_v53 = vadd.f32 %v351_v43, %v350_v32 }
  0x9e   :  { %v408_v54 = vmul.f32 %v1452_v44, %v1452_v44  ;;  %v307_v55 = vmul.f32 %v1407_v36, %v275_v45  ;;  %v379_v56 = vmul.f32 %v347_v46, %v1410_v37  ;;  %v264_v57 = vadd.f32 %v263_v49, %v262_v39 }
  0x9f   :  { %v385_v58 = vadd.f32 %v377_v51, %v305_v50  ;;  %v281_v38 = vrot.slane %v280_v52, 1  ;;  %v353_v60 = vrot.slane %v352_v53, 1  ;;  %v314_v61 = vmul.f32 %v1444_v16, %v1410_v37 }
  0xa0   :  { %v416_v62 = vmul.f32 %v1407_v36, %v408_v54  ;;  %v488_v63 = vmul.f32 %v408_v54, %v1410_v37  ;;  %v387_v0 = vadd.f32 %v379_v56, %v307_v55  ;;  %v265_v1 = vrot.slane %v264_v57, 2 }
  0xa1   :  { %v393_v2 = vmul.f32 0.5, %v385_v58  ;;  %v282_v3 = vadd.f32 %v281_v38, %v280_v52  ;;  %v354_v4 = vadd.f32 %v353_v60, %v352_v53  ;;  %v334_v5 = vsel %vm247_vm2, %v314_v61, 0.0 }
  0xa2   :  { %v424_v6 = vsel %vm247_vm2, %v416_v62, 0.0  ;;  %v496_v7 = vsel %vm247_vm2, %v488_v63, 0.0  ;;  %v395_v8 = vmul.f32 0.5, %v387_v0  ;;  %v266_v9 = vadd.f32 %v265_v1, %v264_v57 }
  0xa3   :  { %v425_v10 = vrot.slane %v424_v6, 4  ;;  %v497_v11 = vrot.slane %v496_v7, 4  ;;  %v1468_v12 = vsub.f32 %v1420_v47, %v393_v2  ;;  %v308_v13 = vmul.f32 %v1407_v36, %v282_v3 }
  0xa4   :  { %v1474_v15 = vsub.f32 %v1422_v48, %v395_v8  ;;  %v380_v17 = vmul.f32 %v354_v4, %v1410_v37  ;;  %v335_v18 = vrot.slane %v334_v5, 4  ;;  %v267_v22 = vrot.slane %v266_v9, 1 }
  0xa5   :  { %v426_v19 = vadd.f32 %v425_v10, %v424_v6  ;;  %v498_v20 = vadd.f32 %v497_v11, %v496_v7  ;;  %v409_v21 = vmul.f32 %v1468_v12, %v1468_v12  ;;  %v1483_v24 = vmul.f32 %v1407_v36, %v1471_v14 }
  0xa6   :  { %v411_v47 = vmul.f32 %v1474_v15, %v1474_v15  ;;  %v388_v23 = vadd.f32 %v380_v17, %v308_v13  ;;  %v336_v32 = vadd.f32 %v335_v18, %v334_v5  ;;  %v268_v39 = vadd.f32 %v267_v22, %v266_v9 }
  0xa7   :  { %v427_v25 = vrot.slane %v426_v19, 2  ;;  %v499_v48 = vrot.slane %v498_v20, 2  ;;  %v417_v26 = vmul.f32 %v1407_v36, %v409_v21  ;;  %v489_v27 = vmul.f32 %v409_v21, %v1410_v37 }
  0xa8   :  { %v419_v29 = vmul.f32 %v1407_v36, %v411_v47  ;;  %v491_v30 = vmul.f32 %v411_v47, %v1410_v37  ;;  %v396_v31 = vmul.f32 0.5, %v388_v23  ;;  %v337_v54 = vrot.slane %v336_v32, 2 }
  0xa9   :  { %v428_v33 = vadd.f32 %v427_v25, %v426_v19  ;;  %v500_v34 = vadd.f32 %v499_v48, %v498_v20  ;;  %v431_v35 = vsel %vm247_vm2, %v417_v26, 0.0  ;;  %v503_v41 = vsel %vm247_vm2, %v489_v27, 0.0 }
  0xaa   :  { %v432_v40 = vrot.slane %v431_v35, 4  ;;  %v445_v42 = vsel %vm247_vm2, %v419_v29, 0.0  ;;  %v517_v43 = vsel %vm247_vm2, %v491_v30, 0.0  ;;  %v504_v49 = vrot.slane %v503_v41, 4 }
  0xab   :  { %v429_v45 = vrot.slane %v428_v33, 1  ;;  %v501_v46 = vrot.slane %v500_v34, 1  ;;  %v446_v50 = vrot.slane %v445_v42, 4  ;;  %v518_v52 = vrot.slane %v517_v43, 4 }
  0xac   :  { %v433_v51 = vadd.f32 %v432_v40, %v431_v35  ;;  %v1497_v53 = vsub.f32 %v1434_v59, %v396_v31  ;;  %v505_v57 = vadd.f32 %v504_v49, %v503_v41  ;;  %v338_v62 = vadd.f32 %v337_v54, %v336_v32 }
  0xad   :  { %v430_v55 = vadd.f32 %v429_v45, %v428_v33  ;;  %v502_v56 = vadd.f32 %v501_v46, %v500_v34  ;;  %v447_v58 = vadd.f32 %v446_v50, %v445_v42  ;;  %v519_v60 = vadd.f32 %v518_v52, %v517_v43  ;;  %v744_v33 = vld [vmem:[%s2253_s4 + $0x70] sm:$0xff]  ;;  %v743_v43 = vld [vmem:[%s2253_s4 + $0x68] sm:$0xff] }
  0xae   :  { %v434_v38 = vrot.slane %v433_v51, 2  ;;  %v412_v61 = vmul.f32 %v1497_v53, %v1497_v53  ;;  %v506_v1 = vrot.slane %v505_v57, 2  ;;  %v339_v9 = vrot.slane %v338_v62, 1  ;;  %859 = vmatpush.msra.mxu0 %v744_v33 }
  0xaf   :  { %v480_v63 = vmul.f32 %v1407_v36, %v430_v55  ;;  %v552_v0 = vmul.f32 %v502_v56, %v1410_v37  ;;  %v448_v2 = vrot.slane %v447_v58, 2  ;;  %v520_v59 = vrot.slane %v519_v60, 2  ;;  %v742_v55 = vld [vmem:[%s2253_s4 + $0x60] sm:$0xff]  ;;  %v761_v56 = vld [vmem:[%s2253_s4 + $0xf8] sm:$0xff] }
  0xb0   :  { %v435_v3 = vadd.f32 %v434_v38, %v433_v51  ;;  %v420_v4 = vmul.f32 %v1407_v36, %v412_v61  ;;  %v492_v5 = vmul.f32 %v412_v61, %v1410_v37  ;;  %v507_v7 = vadd.f32 %v506_v1, %v505_v57  ;;  %860 = vmatpush.msra.mxu0 %v743_v43  ;;  %v1533_v38 = vpop.f32.mrf.mxu2  ;;  %v760_v1 = vld [vmem:[%s2253_s4 + $0xf0] sm:$0xff] }
  0xb1   :  { %v560_v6 = vadd.f32 %v552_v0, %v480_v63  ;;  %v449_v8 = vadd.f32 %v448_v2, %v447_v58  ;;  %v521_v11 = vadd.f32 %v520_v59, %v519_v60  ;;  %v306_v17 = vmul.f32 %v1407_v36, %v268_v39  ;;  %878 = vmatpush.msra.mxu1 %v761_v56  ;;  %v741_v0 = vld [vmem:[%s2253_s4 + $0x58] sm:$0xff]  ;;  %v736_v56 = vld [vmem:[%s2253_s4 + $0x30] sm:$0xff] }
  0xb2   :  { %v436_v10 = vrot.slane %v435_v3, 1  ;;  %v452_v13 = vsel %vm247_vm2, %v420_v4, 0.0  ;;  %v508_v19 = vrot.slane %v507_v7, 1  ;;  %v524_v23 = vsel %vm247_vm2, %v492_v5, 0.0  ;;  %861 = vmatpush.msra.mxu0 %v742_v55 }
  0xb3   :  { %v568_v18 = vmul.f32 0.5, %v560_v6  ;;  %v450_v20 = vrot.slane %v449_v8, 1  ;;  %v453_v21 = vrot.slane %v452_v13, 4  ;;  %v522_v47 = vrot.slane %v521_v11, 1  ;;  %879 = vmatpush.msra.mxu1 %v760_v1 }
  0xb4   :  { %v437_v22 = vadd.f32 %v436_v10, %v435_v3  ;;  %v340_v25 = vadd.f32 %v339_v9, %v338_v62  ;;  %v509_v26 = vadd.f32 %v508_v19, %v507_v7  ;;  %v525_v31 = vrot.slane %v524_v23, 4  ;;  %862 = vmatpush.msra.mxu0 %v741_v0  ;;  %v740_v7 = vld [vmem:[%s2253_s4 + $0x50] sm:$0xff]  ;;  %v791_v0 = vld [vmem:[%s2253_s4 + $0x1e8] sm:$0xff] }
  0xb5   :  { %v1508_v48 = vadd.f32 1e-05, %v568_v18  ;;  %v451_v27 = vadd.f32 %v450_v20, %v449_v8  ;;  %v454_v28 = vadd.f32 %v453_v21, %v452_v13  ;;  %v523_v30 = vadd.f32 %v522_v47, %v521_v11  ;;  %v759_v8 = vld [vmem:[%s2253_s4 + $0xe8] sm:$0xff]  ;;  %v758_v18 = vld [vmem:[%s2253_s4 + $0xe0] sm:$0xff] }
  0xb6   :  { %v481_v29 = vmul.f32 %v1407_v36, %v437_v22  ;;  %v378_v32 = vmul.f32 %v340_v25, %v1410_v37  ;;  %v553_v34 = vmul.f32 %v509_v26, %v1410_v37  ;;  %v526_v41 = vadd.f32 %v525_v31, %v524_v23  ;;  %863 = vmatpush.msra.mxu0 %v740_v7  ;;  %v738_v25 = vld [vmem:[%s2253_s4 + $0x40] sm:$0xff]  ;;  %v757_v26 = vld [vmem:[%s2253_s4 + $0xd8] sm:$0xff] }
  0xb7   :  { %1224 = vrsqrt.f32 %v1508_v48  ;;  %v483_v35 = vmul.f32 %v1407_v36, %v451_v27  ;;  %v555_v39 = vmul.f32 %v523_v30, %v1410_v37  ;;  %v455_v40 = vrot.slane %v454_v28, 2  ;;  %880 = vmatpush.msra.mxu1 %v759_v8  ;;  %v777_v27 = vld [vmem:[%s2253_s4 + $0x178] sm:$0xff] }
  0xb8   :  { %v386_v42 = vadd.f32 %v378_v32, %v306_v17  ;;  %v561_v45 = vadd.f32 %v553_v34, %v481_v29  ;;  %v283_v46 = vsel %vm247_vm2, %v1483_v24, 0.0  ;;  %v317_v49 = vmul.f32 %v1471_v14, %v1410_v37  ;;  %v739_v17 = vld [vmem:[%s2253_s4 + $0x48] sm:$0xff]  ;;  %v793_v32 = vld [vmem:[%s2253_s4 + $0x1f8] sm:$0xff]  ;;  %898 = vmatpush.msrb.mxu2 %v777_v27 }
  0xb9   :  { %v563_v50 = vadd.f32 %v555_v39, %v483_v35  ;;  %v456_v51 = vadd.f32 %v455_v40, %v454_v28  ;;  %v527_v52 = vrot.slane %v526_v41, 2  ;;  %v284_v58 = vrot.slane %v283_v46, 4  ;;  %864 = vmatpush.msra.mxu0 %v739_v17  ;;  %881 = vmatpush.msra.mxu1 %v758_v18  ;;  %v737_v39 = vld [vmem:[%s2253_s4 + $0x38] sm:$0xff]  ;;  %v756_v40 = vld [vmem:[%s2253_s4 + $0xd0] sm:$0xff] }
  0xba   :  { %v394_v54 = vmul.f32 0.5, %v386_v42  ;;  %v569_v57 = vmul.f32 0.5, %v561_v45  ;;  %v355_v24 = vsel %vm247_vm2, %v317_v49, 0.0  ;;  %v245_v6 = vmul.f32 %v1407_v36, %v1533_v38  ;;  %918 = vmatpush.msrb.mxu3 %v793_v32  ;;  %v1603_v42 = vld [vmem:[%s2254_s2] sm:$0xff]  ;;  %v792_v49 = vld [vmem:[%s2253_s4 + $0x1f0] sm:$0xff]  ;;  %v789_v27 = vld [vmem:[%s2253_s4 + $0x1d8] sm:$0xff] }
  0xbb   :  { %v571_v60 = vmul.f32 0.5, %v563_v50  ;;  %v457_v61 = vrot.slane %v456_v51, 1  ;;  %v528_v62 = vadd.f32 %v527_v52, %v526_v41  ;;  %v285_v59 = vadd.f32 %v284_v58, %v283_v46  ;;  %865 = vmatpush.msra.mxu0 %v738_v25  ;;  %882 = vmatpush.msra.mxu1 %v757_v26  ;;  %v776_v46 = vld [vmem:[%s2253_s4 + $0x170] sm:$0xff]  ;;  %v775_v58 = vld [vmem:[%s2253_s4 + $0x168] sm:$0xff]  ;;  %v1665_v26 = vpop.f32.mrf.mxu3 }
  0xbc   :  { %v1536_v63 = vsub.f32 %v1444_v16, %v394_v54  ;;  %v1546_v3 = vadd.f32 1e-05, %v569_v57  ;;  %v356_v16 = vrot.slane %v355_v24, 4  ;;  %v290_v23 = vsel %vm247_vm2, %v245_v6, 0.0  ;;  %899 = vmatpush.msrb.mxu2 %v776_v46  ;;  %919 = vmatpush.msrb.mxu3 %v792_v49  ;;  %v755_v57 = vld [vmem:[%s2253_s4 + $0xc8] sm:$0xff]  ;;  %v754_v6 = vld [vmem:[%s2253_s4 + $0xc0] sm:$0xff] }
  0xbd   :  { %v1544_v2 = vpop.eup %1224  ;;  %v1548_v4 = vadd.f32 1e-05, %v571_v60  ;;  %v458_v5 = vadd.f32 %v457_v61, %v456_v51  ;;  %v529_v9 = vrot.slane %v528_v62, 1  ;;  %v286_v22 = vrot.slane %v285_v59, 2  ;;  %866 = vmatpush.msra.mxu0 %v737_v39  ;;  %883 = vmatpush.msra.mxu1 %v756_v40  ;;  %v752_v32 = vld [vmem:[%s2253_s4 + $0xb0] sm:$0xff] }
  0xbe   :  { %1226 = vrsqrt.f32 %v1546_v3  ;;  %v410_v10 = vmul.f32 %v1536_v63, %v1536_v63  ;;  %v585_v11 = vmul.f32 %v1544_v2, %v1508_v48  ;;  %v357_v47 = vadd.f32 %v356_v16, %v355_v24  ;;  %900 = vmatpush.msrb.mxu2 %v775_v58  ;;  %920 = vmatpush.msrb.mxu3 %v791_v0  ;;  %v735_v16 = vld [vmem:[%s2253_s4 + $0x28] sm:$0xff] }
  0xbf   :  { %1228 = vrsqrt.f32 %v1548_v4  ;;  %v484_v13 = vmul.f32 %v1407_v36, %v458_v5  ;;  %v530_v19 = vadd.f32 %v529_v9, %v528_v62  ;;  %v1586_v31 = vadd.f32 %v286_v22, %v285_v59  ;;  %867 = vmatpush.msra.mxu0 %v736_v56  ;;  %884 = vmatpush.msra.mxu1 %v755_v57  ;;  %v753_v22 = vld [vmem:[%s2253_s4 + $0xb8] sm:$0xff] }
  0xc0   :  { %v418_v20 = vmul.f32 %v1407_v36, %v410_v10  ;;  %v490_v21 = vmul.f32 %v410_v10, %v1410_v37  ;;  %v586_v33 = vmul.f32 %v1544_v2, %v585_v11  ;;  %v291_v45 = vrot.slane %v290_v23, 4  ;;  %v774_v11 = vld [vmem:[%s2253_s4 + $0x160] sm:$0xff] }
  0xc1   :  { %v556_v28 = vmul.f32 %v530_v19, %v1410_v37  ;;  %v358_v54 = vrot.slane %v357_v47, 2  ;;  %v318_v55 = vmul.f32 %v1533_v38, %v1410_v37  ;;  %v288_v62 = vrot.slane %v1586_v31, 1  ;;  %868 = vmatpush.msra.mxu0 %v735_v16  ;;  %885 = vmatpush.msra.mxu1 %v754_v6  ;;  %v770_v16 = vld [vmem:[%s2253_s4 + $0x140] sm:$0xff] }
  0xc2   :  { %v438_v29 = vsel %vm247_vm2, %v418_v20, 0.0  ;;  %v510_v30 = vsel %vm247_vm2, %v490_v21, 0.0  ;;  %v1632_v1 = vmul.f32 0.5, %v586_v33  ;;  %v673_v59 = vperm.slane %v1603_v42, 0  ;;  %901 = vmatpush.msrb.mxu2 %v774_v11  ;;  %v734_v21 = vld [vmem:[%s2253_s4 + $0x20] sm:$0xff]  ;;  %v772_v33 = vld [vmem:[%s2253_s4 + $0x150] sm:$0xff] }
  0xc3   :  { %v439_v34 = vrot.slane %v438_v29, 4  ;;  %v511_v35 = vrot.slane %v510_v30, 4  ;;  %v564_v43 = vadd.f32 %v556_v28, %v484_v13  ;;  %v292_v10 = vadd.f32 %v291_v45, %v290_v23  ;;  %v790_v13 = vld [vmem:[%s2253_s4 + $0x1e0] sm:$0xff]  ;;  %v773_v23 = vld [vmem:[%s2253_s4 + $0x158] sm:$0xff]  ;;  %869 = vmatpush.msra.mxu0 %v734_v21  ;;  %886 = vmatpush.msra.mxu1 %v753_v22 }
  0xc4   :  { %v1598_v41 = vpop.eup %1226  ;;  %v359_v19 = vadd.f32 %v358_v54, %v357_v47  ;;  %v362_v20 = vsel %vm247_vm2, %v318_v55, 0.0  ;;  %921 = vmatpush.msrb.mxu3 %v790_v13  ;;  %vm590_vm3 = vweird.f32 %v1508_v48  ;;  %v676_v47 = vperm.slane %v1603_v42, 3  ;;  %902 = vmatpush.msrb.mxu2 %v773_v23  ;;  %v751_v54 = vld [vmem:[%s2253_s4 + $0xa8] sm:$0xff]  ;;  %v786_v11 = vld [vmem:[%s2253_s4 + $0x1c0] sm:$0xff]  ;;  %v769_v21 = vld [vmem:[%s2253_s4 + $0x138] sm:$0xff] }
  0xc5   :  { %v1611_v50 = vpop.eup %1228  ;;  %v595_v51 = vmul.f32 %v1598_v41, %v1546_v3  ;;  %v440_v52 = vadd.f32 %v439_v34, %v438_v29  ;;  %v572_v60 = vmul.f32 0.5, %v564_v43  ;;  %v512_v61 = vadd.f32 %v511_v35, %v510_v30  ;;  %887 = vmatpush.msra.mxu1 %v752_v32  ;;  %v788_v43 = vld [vmem:[%s2253_s4 + $0x1d0] sm:$0xff]  ;;  %v771_v55 = vld [vmem:[%s2253_s4 + $0x148] sm:$0xff]  ;;  %v765_v22 = vld [vmem:[%s2253_s4 + $0x118] sm:$0xff] }
  0xc6   :  { %v615_v24 = vmul.f32 %v1611_v50, %v1548_v4  ;;  %v289_v25 = vadd.f32 %v288_v62, %v1586_v31  ;;  %v588_v28 = vsub.f32 1.5, %v1632_v1  ;;  %vm591_vm4 = vweird.f32 %v1544_v2  ;;  %922 = vmatpush.msrb.mxu3 %v789_v27  ;;  %v733_v31 = vld [vmem:[%s2253_s4 + $0x18] sm:$0xff]  ;;  %903 = vmatpush.msrb.mxu2 %v772_v33  ;;  %v731_v1 = vld [vmem:[%s2253_s4 + $0x8] sm:$0xff] }
  0xc7   :  { %v441_v5 = vrot.slane %v440_v52, 2  ;;  %v596_v7 = vmul.f32 %v1598_v41, %v595_v51  ;;  %v1642_v8 = vadd.f32 1e-05, %v572_v60  ;;  %v513_v9 = vrot.slane %v512_v61, 2  ;;  %870 = vmatpush.msra.mxu0 %v733_v31  ;;  %v787_v60 = vld [vmem:[%s2253_s4 + $0x1c8] sm:$0xff]  ;;  %888 = vmatpush.msra.mxu1 %v751_v54  ;;  %vm1744_vm9 = vmor %vm590_vm3, %vm591_vm4 }
  0xc8   :  { %v616_v17 = vmul.f32 %v1611_v50, %v615_v24  ;;  %v360_v35 = vrot.slane %v359_v19, 1  ;;  %v293_v39 = vrot.slane %v292_v10, 2  ;;  %v363_v40 = vrot.slane %v362_v20, 4  ;;  %923 = vmatpush.msrb.mxu3 %v788_v43  ;;  %904 = vmatpush.msrb.mxu2 %v771_v55 }
  0xc9   :  { %v442_v18 = vadd.f32 %v441_v5, %v440_v52  ;;  %1230 = vrsqrt.f32 %v1642_v8  ;;  %v514_v30 = vadd.f32 %v513_v9, %v512_v61  ;;  %v1681_v34 = vmul.f32 0.5, %v596_v7  ;;  %v732_v52 = vld [vmem:[%s2253_s4 + $0x10] sm:$0xff]  ;;  %v750_v5 = vld [vmem:[%s2253_s4 + $0xa0] sm:$0xff] }
  0xca   :  { %v1686_v45 = vmul.f32 0.5, %v616_v17  ;;  %v246_v51 = vmul.f32 %v1407_v36, %v1665_v26  ;;  %v309_v56 = vmul.f32 %v1407_v36, %v289_v25  ;;  %v361_v57 = vadd.f32 %v360_v35, %v359_v19  ;;  %871 = vmatpush.msra.mxu0 %v732_v52  ;;  %924 = vmatpush.msrb.mxu3 %v787_v60  ;;  %v730_v19 = vld [vmem:[%s2253_s4] sm:$0xff]  ;;  %v768_v35 = vld [vmem:[%s2253_s4 + $0x130] sm:$0xff] }
  0xcb   :  { %v443_v29 = vrot.slane %v442_v18, 1  ;;  %v515_v49 = vrot.slane %v514_v30, 1  ;;  %v294_v58 = vadd.f32 %v293_v39, %v292_v10  ;;  %v364_v24 = vadd.f32 %v363_v40, %v362_v20  ;;  %889 = vmatpush.msra.mxu1 %v750_v5  ;;  %905 = vmatpush.msrb.mxu2 %v770_v16  ;;  %v749_v20 = vld [vmem:[%s2253_s4 + $0x98] sm:$0xff]  ;;  %v784_v39 = vld [vmem:[%s2253_s4 + $0x1b0] sm:$0xff]  ;;  %v746_v16 = vld [vmem:[%s2253_s4 + $0x80] sm:$0xff] }
  0xcc   :  { %vm620_vm5 = vweird.f32 %v1548_v4  ;;  %v297_v0 = vsel %vm247_vm2, %v246_v51, 0.0  ;;  %v1718_v7 = vmul.f32 %v1544_v2, %v588_v28  ;;  %vm601_vm6 = vweird.f32 %v1598_v41  ;;  %872 = vmatpush.msra.mxu0 %v731_v1  ;;  %925 = vmatpush.msrb.mxu3 %v786_v11 }
  0xcd   :  { %v444_v46 = vadd.f32 %v443_v29, %v442_v18  ;;  %v516_v62 = vadd.f32 %v515_v49, %v514_v30  ;;  %v381_v9 = vmul.f32 %v361_v57, %v1410_v37  ;;  %v295_v10 = vrot.slane %v294_v58, 1  ;;  %v785_v29 = vld [vmem:[%s2253_s4 + $0x1b8] sm:$0xff]  ;;  %890 = vmatpush.msra.mxu1 %v749_v20  ;;  %906 = vmatpush.msrb.mxu2 %v769_v21  ;;  %v808_v49 = vld [vmem:[%s2253_s4 + $0x270] sm:$0xff] }
  0xce   :  { %vm600_vm7 = vweird.f32 %v1546_v3  ;;  %v618_v13 = vsub.f32 1.5, %v1686_v45  ;;  %vm621_vm8 = vweird.f32 %v1611_v50  ;;  %v598_v23 = vsub.f32 1.5, %v1681_v34  ;;  %873 = vmatpush.msra.mxu0 %v730_v19  ;;  %v809_v30 = vld [vmem:[%s2253_s4 + $0x278] sm:$0xff]  ;;  %v748_v34 = vld [vmem:[%s2253_s4 + $0x90] sm:$0xff]  ;;  %926 = vmatpush.msrb.mxu3 %v785_v29  ;;  %v806_v19 = vld [vmem:[%s2253_s4 + $0x260] sm:$0xff] }
  0xcf   :  { %v482_v61 = vmul.f32 %v1407_v36, %v444_v46  ;;  %v1715_v6 = vpop.eup %1230  ;;  %v554_v18 = vmul.f32 %v516_v62, %v1410_v37  ;;  %v389_v25 = vadd.f32 %v381_v9, %v309_v56  ;;  %v365_v27 = vrot.slane %v364_v24, 2  ;;  %891 = vmatpush.msra.mxu1 %v748_v34  ;;  %v767_v56 = vld [vmem:[%s2253_s4 + $0x128] sm:$0xff]  ;;  %907 = vmatpush.msrb.mxu2 %v768_v35  ;;  %vm1805_vm10 = vmor %vm620_vm5, %vm621_vm8  ;;  %v825_v21 = vld [vmem:[%s2253_s4 + $0x2f8] sm:$0xff] }
  0xd0   :  { %v625_v17 = vmul.f32 %v1715_v6, %v1642_v8  ;;  %v298_v28 = vrot.slane %v297_v0, 4  ;;  %v296_v32 = vadd.f32 %v295_v10, %v294_v58  ;;  %v319_v33 = vmul.f32 %v1665_v26, %v1410_v37  ;;  %938 = vmatpush.msrb.mxu0 %v809_v30  ;;  %927 = vmatpush.msrb.mxu3 %v784_v39  ;;  %v807_v62 = vld [vmem:[%s2253_s4 + $0x268] sm:$0xff]  ;;  %vm1833_vm12 = vmor %vm600_vm7, %vm601_vm6  ;;  %v805_v3 = vld [vmem:[%s2253_s4 + $0x258] sm:$0xff] }
  0xd1   :  { %v562_v31 = vadd.f32 %v554_v18, %v482_v61  ;;  %v593_v40 = vsel %vm1744_vm9, %v1544_v2, %v1718_v7  ;;  %v397_v43 = vmul.f32 0.5, %v389_v25  ;;  %v366_v45 = vadd.f32 %v365_v27, %v364_v24  ;;  %v747_v2 = vld [vmem:[%s2253_s4 + $0x88] sm:$0xff]  ;;  %v766_v7 = vld [vmem:[%s2253_s4 + $0x120] sm:$0xff]  ;;  %908 = vmatpush.msrb.mxu2 %v767_v56  ;;  %v780_v39 = vld [vmem:[%s2253_s4 + $0x190] sm:$0xff] }
  0xd2   :  { %v626_v48 = vmul.f32 %v1715_v6, %v625_v17  ;;  %v299_v46 = vadd.f32 %v298_v28, %v297_v0  ;;  %v619_v51 = vmul.f32 %v1611_v50, %v618_v13  ;;  %v369_v55 = vsel %vm247_vm2, %v319_v33, 0.0  ;;  %v783_v61 = vld [vmem:[%s2253_s4 + $0x1a8] sm:$0xff]  ;;  %939 = vmatpush.msrb.mxu0 %v808_v49  ;;  %892 = vmatpush.msra.mxu1 %v747_v2  ;;  %v782_v18 = vld [vmem:[%s2253_s4 + $0x1a0] sm:$0xff]  ;;  %v781_v28 = vld [vmem:[%s2253_s4 + $0x198] sm:$0xff] }
  0xd3   :  { %v570_v54 = vmul.f32 0.5, %v562_v31  ;;  %v1783_v57 = vsub.f32 %v1471_v14, %v397_v43  ;;  %v367_v58 = vrot.slane %v366_v45, 1  ;;  %v370_v60 = vrot.slane %v369_v55, 4  ;;  %928 = vmatpush.msrb.mxu3 %v783_v61  ;;  %909 = vmatpush.msrb.mxu2 %v766_v7  ;;  %v824_v31 = vld [vmem:[%s2253_s4 + $0x2f0] sm:$0xff]  ;;  %v779_v56 = vld [vmem:[%s2253_s4 + $0x188] sm:$0xff]  ;;  %v822_v61 = vld [vmem:[%s2253_s4 + $0x2e0] sm:$0xff] }
  0xd4   :  { %v627_v52 = vmul.f32 0.5, %v626_v48  ;;  %v300_v24 = vrot.slane %v299_v46, 2  ;;  %v599_v0 = vmul.f32 %v1598_v41, %v598_v23  ;;  %v310_v14 = vmul.f32 %v1407_v36, %v296_v32  ;;  %940 = vmatpush.msrb.mxu0 %v807_v62  ;;  %893 = vmatpush.msra.mxu1 %v746_v16  ;;  %v764_v32 = vld [vmem:[%s2253_s4 + $0x110] sm:$0xff]  ;;  %v762_v62 = vld [vmem:[%s2253_s4 + $0x100] sm:$0xff] }
  0xd5   :  { %v1792_v5 = vadd.f32 1e-05, %v570_v54  ;;  %v413_v10 = vmul.f32 %v1783_v57, %v1783_v57  ;;  %v368_v11 = vadd.f32 %v367_v58, %v366_v45  ;;  %v371_v17 = vadd.f32 %v370_v60, %v369_v55  ;;  %929 = vmatpush.msrb.mxu3 %v782_v18  ;;  %910 = vmatpush.msrb.mxu2 %v765_v22  ;;  %v778_v16 = vld [vmem:[%s2253_s4 + $0x180] sm:$0xff]  ;;  %v799_v55 = vld [vmem:[%s2253_s4 + $0x228] sm:$0xff] }
  0xd6   :  { %v628_v1 = vsub.f32 1.5, %v627_v52  ;;  %v301_v13 = vadd.f32 %v300_v24, %v299_v46  ;;  %v664_v4 = vmul.f32 %v593_v40, %v1452_v44  ;;  %v623_v20 = vsel %vm1805_vm10, %v1611_v50, %v619_v51  ;;  %941 = vmatpush.msrb.mxu0 %v806_v19  ;;  %958 = vmatpush.msrb.mxu1 %v825_v21  ;;  %v804_v40 = vld [vmem:[%s2253_s4 + $0x250] sm:$0xff]  ;;  %v763_v51 = vld [vmem:[%s2253_s4 + $0x108] sm:$0xff]  ;;  %v802_v7 = vld [vmem:[%s2253_s4 + $0x240] sm:$0xff] }
  0xd7   :  { %vm630_vm11 = vweird.f32 %v1642_v8  ;;  %1232 = vrsqrt.f32 %v1792_v5  ;;  %v421_v50 = vmul.f32 %v1407_v36, %v413_v10  ;;  %v493_v23 = vmul.f32 %v413_v10, %v1410_v37  ;;  %930 = vmatpush.msrb.mxu3 %v781_v28  ;;  %911 = vmatpush.msrb.mxu2 %v764_v32  ;;  %v801_v21 = vld [vmem:[%s2253_s4 + $0x238] sm:$0xff] }
  0xd8   :  { %v382_v25 = vmul.f32 %v368_v11, %v1410_v37  ;;  %v302_v27 = vrot.slane %v301_v13, 1  ;;  %v603_v29 = vsel %vm1833_vm12, %v1598_v41, %v599_v0  ;;  %v629_v30 = vmul.f32 %v1715_v6, %v628_v1  ;;  %942 = vmatpush.msrb.mxu0 %v805_v3  ;;  %959 = vmatpush.msrb.mxu1 %v824_v31 }
  0xd9   :  { %vm631_vm13 = vweird.f32 %v1715_v6  ;;  %v372_v48 = vrot.slane %v371_v17, 2  ;;  %v667_v33 = vmul.f32 %v623_v20, %v1474_v15  ;;  %v459_v34 = vsel %vm247_vm2, %v421_v50, 0.0  ;;  %v823_v15 = vld [vmem:[%s2253_s4 + $0x2e8] sm:$0xff]  ;;  %931 = vmatpush.msrb.mxu3 %v780_v39  ;;  %912 = vmatpush.msrb.mxu2 %v763_v51  ;;  %v857_v20 = vld [vmem:[%s2253_s4 + $0x3f8] sm:$0xff]  ;;  %v820_v50 = vld [vmem:[%s2253_s4 + $0x2d0] sm:$0xff] }
  0xda   :  { %v531_v41 = vsel %vm247_vm2, %v493_v23, 0.0  ;;  %v390_v35 = vadd.f32 %v382_v25, %v310_v14  ;;  %v460_v43 = vrot.slane %v459_v34, 4  ;;  %v303_v46 = vadd.f32 %v302_v27, %v301_v13  ;;  %vm1883_vm14 = vmor %vm630_vm11, %vm631_vm13  ;;  %943 = vmatpush.msrb.mxu0 %v804_v40  ;;  %960 = vmatpush.msrb.mxu1 %v823_v15  ;;  %v841_v13 = vld [vmem:[%s2253_s4 + $0x378] sm:$0xff]  ;;  %v840_v23 = vld [vmem:[%s2253_s4 + $0x370] sm:$0xff] }
  0xdb   :  { %v532_v45 = vrot.slane %v531_v41, 4  ;;  %v373_v49 = vadd.f32 %v372_v48, %v371_v17  ;;  %v1874_v52 = vmul.f32 %v673_v59, %v664_v4  ;;  %v1877_v54 = vmul.f32 %v603_v29, %v1468_v12  ;;  %v803_v12 = vld [vmem:[%s2253_s4 + $0x248] sm:$0xff]  ;;  %932 = vmatpush.msrb.mxu3 %v779_v56  ;;  %913 = vmatpush.msrb.mxu2 %v762_v62  ;;  %v1951_v25 = vld [vmem:[%s2255_s3] sm:$0xff]  ;;  %v856_v29 = vld [vmem:[%s2253_s4 + $0x3f0] sm:$0xff] }
  0xdc   :  { %v398_v2 = vmul.f32 0.5, %v390_v35  ;;  %v633_v8 = vsel %vm1883_vm14, %v1715_v6, %v629_v30  ;;  %v461_v58 = vadd.f32 %v460_v43, %v459_v34  ;;  %v1906_v0 = vmul.f32 %v676_v47, %v667_v33  ;;  %944 = vmatpush.msrb.mxu0 %v803_v12  ;;  %961 = vmatpush.msrb.mxu1 %v822_v61  ;;  %v800_v30 = vld [vmem:[%s2253_s4 + $0x230] sm:$0xff]  ;;  %v819_v34 = vld [vmem:[%s2253_s4 + $0x2c8] sm:$0xff] }
  0xdd   :  { %v1893_v59 = vpop.eup %1232  ;;  %v533_v24 = vadd.f32 %v532_v45, %v531_v41  ;;  %v374_v60 = vrot.slane %v373_v49, 1  ;;  %v677_v1 = vperm.slane %v1603_v42, 4  ;;  %v311_v10 = vmul.f32 %v1407_v36, %v303_v46  ;;  %933 = vmatpush.msrb.mxu3 %v778_v16  ;;  %978 = vmatpush.msra.mxu2 %v841_v13  ;;  %v839_v41 = vld [vmem:[%s2253_s4 + $0x368] sm:$0xff] }
  0xde   :  { %v605_v6 = vmul.f32 %v1893_v59, %v1792_v5  ;;  %v1912_v14 = vsub.f32 %v1533_v38, %v398_v2  ;;  %v462_v47 = vrot.slane %v461_v58, 2  ;;  %v821_v38 = vld [vmem:[%s2253_s4 + $0x2d8] sm:$0xff]  ;;  %v1928_v17 = vmul.f32 %v633_v8, %v1497_v53  ;;  %945 = vmatpush.msrb.mxu0 %v802_v7  ;;  %v855_v43 = vld [vmem:[%s2253_s4 + $0x3e8] sm:$0xff]  ;;  %v818_v2 = vld [vmem:[%s2253_s4 + $0x2c0] sm:$0xff] }
  0xdf   :  { %v534_v9 = vrot.slane %v533_v24, 2  ;;  %v375_v11 = vadd.f32 %v374_v60, %v373_v49  ;;  %v675_v19 = vperm.slane %v1603_v42, 2  ;;  %vm610_vm15 = vweird.f32 %v1792_v5  ;;  %962 = vmatpush.msrb.mxu1 %v821_v38  ;;  %998 = vmatpush.msra.mxu3 %v857_v20  ;;  %v854_v8 = vld [vmem:[%s2253_s4 + $0x3e0] sm:$0xff]  ;;  %v816_v20 = vld [vmem:[%s2253_s4 + $0x2b0] sm:$0xff] }
  0xe0   :  { %v606_v18 = vmul.f32 %v1893_v59, %v605_v6  ;;  %v414_v4 = vmul.f32 %v1912_v14, %v1912_v14  ;;  %v463_v53 = vadd.f32 %v462_v47, %v461_v58  ;;  %v698_v48 = vperm.slane %v1951_v25, 0  ;;  %946 = vmatpush.msrb.mxu0 %v801_v21  ;;  %979 = vmatpush.msra.mxu2 %v840_v23  ;;  %v798_v7 = vld [vmem:[%s2253_s4 + $0x220] sm:$0xff]  ;;  %v817_v47 = vld [vmem:[%s2253_s4 + $0x2b8] sm:$0xff] }
  0xe1   :  { %v535_v22 = vadd.f32 %v534_v9, %v533_v24  ;;  %v383_v44 = vmul.f32 %v375_v11, %v1410_v37  ;;  %vm611_vm1 = vweird.f32 %v1893_v59  ;;  %963 = vmatpush.msrb.mxu1 %v820_v50  ;;  %999 = vmatpush.msra.mxu3 %v856_v29  ;;  %v674_v24 = vperm.slane %v1603_v42, 1  ;;  %v853_v11 = vld [vmem:[%s2253_s4 + $0x3d8] sm:$0xff] }
  0xe2   :  { %v607_v27 = vmul.f32 0.5, %v606_v18  ;;  %v422_v28 = vmul.f32 %v1407_v36, %v414_v4  ;;  %v494_v3 = vmul.f32 %v414_v4, %v1410_v37  ;;  %v464_v31 = vrot.slane %v463_v53, 1  ;;  %947 = vmatpush.msrb.mxu0 %v800_v30  ;;  %980 = vmatpush.msra.mxu2 %v839_v41  ;;  %vm1993_vm3 = vmor %vm610_vm15, %vm611_vm1  ;;  %v814_v41 = vld [vmem:[%s2253_s4 + $0x2a0] sm:$0xff] }
  0xe3   :  { %v536_v32 = vrot.slane %v535_v22, 1  ;;  %v391_v33 = vadd.f32 %v383_v44, %v311_v10  ;;  %v714_v45 = vadd.f32 %v698_v48, %v1874_v52  ;;  %964 = vmatpush.msrb.mxu1 %v819_v34  ;;  %v838_v52 = vld [vmem:[%s2253_s4 + $0x360] sm:$0xff]  ;;  %1000 = vmatpush.msra.mxu3 %v855_v43  ;;  %v837_v10 = vld [vmem:[%s2253_s4 + $0x358] sm:$0xff]  ;;  %v690_v38 = vmul.f32 %v674_v24, %v1877_v54  ;;  %v835_v48 = vld [vmem:[%s2253_s4 + $0x348] sm:$0xff] }
  0xe4   :  { %v608_v35 = vsub.f32 1.5, %v607_v27  ;;  %v466_v39 = vsel %vm247_vm2, %v422_v28, 0.0  ;;  %v538_v40 = vsel %vm247_vm2, %v494_v3, 0.0  ;;  %v465_v46 = vadd.f32 %v464_v31, %v463_v53  ;;  %948 = vmatpush.msrb.mxu0 %v799_v55  ;;  %981 = vmatpush.msra.mxu2 %v838_v52  ;;  %v797_v54 = vld [vmem:[%s2253_s4 + $0x218] sm:$0xff]  ;;  %v852_v28 = vld [vmem:[%s2253_s4 + $0x3d0] sm:$0xff]  ;;  %v815_v3 = vld [vmem:[%s2253_s4 + $0x2a8] sm:$0xff] }
  0xe5   :  { %v537_v49 = vadd.f32 %v536_v32, %v535_v22  ;;  %v467_v15 = vrot.slane %v466_v39, 4  ;;  %v539_v51 = vrot.slane %v538_v40, 4  ;;  %v399_v12 = vmul.f32 0.5, %v391_v33  ;;  %965 = vmatpush.msrb.mxu1 %v818_v2  ;;  %1001 = vmatpush.msra.mxu3 %v854_v8  ;;  %v851_v34 = vld [vmem:[%s2253_s4 + $0x3c8] sm:$0xff]  ;;  %v850_v55 = vld [vmem:[%s2253_s4 + $0x3c0] sm:$0xff]  ;;  %v833_v24 = vld [vmem:[%s2253_s4 + $0x338] sm:$0xff] }
  0xe6   :  { %v609_v56 = vmul.f32 %v1893_v59, %v608_v35  ;;  %v722_v58 = vmax.f32 %v714_v45, 0.0  ;;  %v485_v61 = vmul.f32 %v1407_v36, %v465_v46  ;;  %v699_v13 = vperm.slane %v1951_v25, 1  ;;  %949 = vmatpush.msrb.mxu0 %v798_v7  ;;  %982 = vmatpush.msra.mxu2 %v837_v10  ;;  %v795_v43 = vld [vmem:[%s2253_s4 + $0x208] sm:$0xff]  ;;  %v834_v45 = vld [vmem:[%s2253_s4 + $0x340] sm:$0xff] }
  0xe7   :  { %v557_v62 = vmul.f32 %v537_v49, %v1410_v37  ;;  %v468_v6 = vadd.f32 %v467_v15, %v466_v39  ;;  %v540_v16 = vadd.f32 %v539_v51, %v538_v40  ;;  %v2009_v9 = vsub.f32 %v1665_v26, %v399_v12  ;;  %966 = vmatpush.msrb.mxu1 %v817_v47  ;;  %v794_v52 = vld [vmem:[%s2253_s4 + $0x200] sm:$0xff]  ;;  %v812_v47 = vld [vmem:[%s2253_s4 + $0x290] sm:$0xff] }
  0xe8   :  { %v613_v5 = vsel %vm1993_vm3, %v1893_v59, %v609_v56  ;;  %v693_v59 = vmul.f32 %v677_v1, %v1928_v17  ;;  %v836_v1 = vld [vmem:[%s2253_s4 + $0x350] sm:$0xff]  ;;  %v715_v17 = vadd.f32 %v699_v13, %v690_v38  ;;  %v701_v53 = vperm.slane %v1951_v25, 3  ;;  %1002 = vmatpush.msra.mxu3 %v853_v11  ;;  %874 = vmatmul.f32.vlgmr.msra.gmra.mxu0 %v722_v58  ;;  %v813_v58 = vld [vmem:[%s2253_s4 + $0x298] sm:$0xff] }
  0xe9   :  { %v565_v26 = vadd.f32 %v557_v62, %v485_v61  ;;  %v469_v18 = vrot.slane %v468_v6, 2  ;;  %v541_v4 = vrot.slane %v540_v16, 2  ;;  %v415_v21 = vmul.f32 %v2009_v9, %v2009_v9  ;;  %967 = vmatpush.msrb.mxu1 %v816_v20  ;;  %950 = vmatpush.msrb.mxu0 %v797_v54  ;;  %v848_v13 = vld [vmem:[%s2253_s4 + $0x3b0] sm:$0xff] }
  0xea   :  { %v702_v22 = vperm.slane %v1951_v25, 4  ;;  %v666_v44 = vmul.f32 %v613_v5, %v1536_v63  ;;  %v796_v63 = vld [vmem:[%s2253_s4 + $0x210] sm:$0xff]  ;;  %983 = vmatpush.msra.mxu2 %v836_v1  ;;  %v717_v35 = vadd.f32 %v701_v53, %v1906_v0  ;;  %1003 = vmatpush.msra.mxu3 %v852_v28  ;;  %v723_v46 = vmax.f32 %v715_v17, 0.0  ;;  %v847_v17 = vld [vmem:[%s2253_s4 + $0x3a8] sm:$0xff]  ;;  %v846_v28 = vld [vmem:[%s2253_s4 + $0x3a0] sm:$0xff] }
  0xeb   :  { %v573_v50 = vmul.f32 0.5, %v565_v26  ;;  %v470_v23 = vadd.f32 %v469_v18, %v468_v6  ;;  %v542_v27 = vadd.f32 %v541_v4, %v540_v16  ;;  %v423_v29 = vmul.f32 %v1407_v36, %v415_v21  ;;  %968 = vmatpush.msrb.mxu1 %v815_v3  ;;  %951 = vmatpush.msrb.mxu0 %v796_v63  ;;  %v849_v16 = vld [vmem:[%s2253_s4 + $0x3b8] sm:$0xff]  ;;  %v832_v5 = vld [vmem:[%s2253_s4 + $0x330] sm:$0xff]  ;;  %v811_v18 = vld [vmem:[%s2253_s4 + $0x288] sm:$0xff] }
  0xec   :  { %v495_v30 = vmul.f32 %v415_v21, %v1410_v37  ;;  %v718_v49 = vadd.f32 %v702_v22, %v693_v59  ;;  %v691_v15 = vmul.f32 %v675_v19, %v666_v44  ;;  %984 = vmatpush.msra.mxu2 %v835_v48  ;;  %1004 = vmatpush.msra.mxu3 %v851_v34  ;;  %v725_v12 = vmax.f32 %v717_v35, 0.0  ;;  %v831_v4 = vld [vmem:[%s2253_s4 + $0x328] sm:$0xff]  ;;  %v810_v22 = vld [vmem:[%s2253_s4 + $0x280] sm:$0xff]  ;;  %v829_v3 = vld [vmem:[%s2253_s4 + $0x318] sm:$0xff] }
  0xed   :  { %v2050_v31 = vadd.f32 1e-05, %v573_v50  ;;  %v471_v32 = vrot.slane %v470_v23, 1  ;;  %v543_v33 = vrot.slane %v542_v27, 1  ;;  %v473_v39 = vsel %vm247_vm2, %v423_v29, 0.0  ;;  %969 = vmatpush.msrb.mxu1 %v814_v41  ;;  %952 = vmatpush.msrb.mxu0 %v795_v43  ;;  %v830_v44 = vld [vmem:[%s2253_s4 + $0x320] sm:$0xff] }
  0xee   :  { %v545_v40 = vsel %vm247_vm2, %v495_v30, 0.0  ;;  %v474_v2 = vrot.slane %v473_v39, 4  ;;  %985 = vmatpush.msra.mxu2 %v834_v45  ;;  %v726_v60 = vmax.f32 %v718_v49, 0.0  ;;  %v700_v61 = vperm.slane %v1951_v25, 2  ;;  %1005 = vmatpush.msra.mxu3 %v850_v55  ;;  %v845_v48 = vld [vmem:[%s2253_s4 + $0x398] sm:$0xff]  ;;  %v844_v35 = vld [vmem:[%s2253_s4 + $0x390] sm:$0xff] }
  0xef   :  { %1234 = vrsqrt.f32 %v2050_v31  ;;  %v472_v0 = vadd.f32 %v471_v32, %v470_v23  ;;  %v544_v51 = vadd.f32 %v543_v33, %v542_v27  ;;  %v546_v56 = vrot.slane %v545_v40, 4  ;;  %894 = vmatmul.f32.vlgmr.msra.gmra.mxu1 %v723_v46  ;;  %934 = vmatmul.f32.vlgmr.msrb.gmra.mxu3 %v725_v12  ;;  %v828_v32 = vld [vmem:[%s2253_s4 + $0x310] sm:$0xff]  ;;  %v843_v45 = vld [vmem:[%s2253_s4 + $0x388] sm:$0xff] }
  0xf0   :  { %v475_v62 = vadd.f32 %v474_v2, %v473_v39  ;;  %953 = vmatpush.msrb.mxu0 %v794_v52  ;;  %v716_v10 = vadd.f32 %v700_v61, %v691_v15  ;;  %970 = vmatpush.msrb.mxu1 %v813_v58  ;;  %v827_v39 = vld [vmem:[%s2253_s4 + $0x308] sm:$0xff]  ;;  %vm640_vm5 = vweird.f32 %v2050_v31  ;;  %v678_v49 = vperm.slane %v1603_v42, 5  ;;  %v826_v15 = vld [vmem:[%s2253_s4 + $0x300] sm:$0xff] }
  0xf1   :  { %v486_v19 = vmul.f32 %v1407_v36, %v472_v0  ;;  %v558_v8 = vmul.f32 %v544_v51, %v1410_v37  ;;  %v547_v6 = vadd.f32 %v546_v56, %v545_v40  ;;  %986 = vmatpush.msra.mxu2 %v833_v24  ;;  %1006 = vmatpush.msra.mxu3 %v849_v16  ;;  %v703_v56 = vperm.slane %v1951_v25, 5 }
  0xf2   :  { %v476_v11 = vrot.slane %v475_v62, 2  ;;  %954 = vmatmul.f32.vlgmr.msrb.gmra.mxu0 %v726_v60  ;;  %v724_v20 = vmax.f32 %v716_v10, 0.0  ;;  %971 = vmatpush.msrb.mxu1 %v812_v47  ;;  %v704_v47 = vperm.slane %v1951_v25, 6  ;;  %vm1019_vm13 = vcmask 257024  }
  0xf3   :  { %v566_v7 = vadd.f32 %v558_v8, %v486_v19  ;;  %v548_v38 = vrot.slane %v547_v6, 2  ;;  %987 = vmatpush.msra.mxu2 %v832_v5  ;;  %1007 = vmatpush.msra.mxu3 %v848_v13 }
  0xf4   :  { %v477_v54 = vadd.f32 %v476_v11, %v475_v62  ;;  %914 = vmatmul.f32.vlgmr.msrb.gmra.mxu2 %v724_v20  ;;  %972 = vmatpush.msrb.mxu1 %v811_v18  ;;  %v679_v62 = vperm.slane %v1603_v42, 6  ;;  %v680_v18 = vperm.slane %v1603_v42, 7 }
  0xf5   :  { %v1235_v59 = vpop.eup %1234  ;;  %v574_v26 = vmul.f32 0.5, %v566_v7  ;;  %v549_v1 = vadd.f32 %v548_v38, %v547_v6  ;;  %988 = vmatpush.msra.mxu2 %v831_v4  ;;  %1008 = vmatpush.msra.mxu3 %v847_v17 }
  0xf6   :  { %v635_v21 = vmul.f32 %v1235_v59, %v2050_v31  ;;  %v478_v23 = vrot.slane %v477_v54, 1  ;;  %973 = vmatpush.msrb.mxu1 %v810_v22  ;;  %vm641_vm4 = vweird.f32 %v1235_v59  ;;  %v842_v31 = vld [vmem:[%s2253_s4 + $0x380] sm:$0xff] }
  0xf7   :  { %v582_v53 = vadd.f32 1e-05, %v574_v26  ;;  %v550_v27 = vrot.slane %v549_v1, 1  ;;  %989 = vmatpush.msra.mxu2 %v830_v44  ;;  %1009 = vmatpush.msra.mxu3 %v846_v28  ;;  %vm642_vm6 = vmor %vm640_vm5, %vm641_vm4 }
  0xf8   :  { %v636_v50 = vmul.f32 %v1235_v59, %v635_v21  ;;  %v479_v30 = vadd.f32 %v478_v23, %v477_v54 }
  0xf9   :  { %1236 = vrsqrt.f32 %v582_v53  ;;  %v551_v63 = vadd.f32 %v550_v27, %v549_v1  ;;  %990 = vmatpush.msra.mxu2 %v829_v3  ;;  %1010 = vmatpush.msra.mxu3 %v845_v48  ;;  %vm650_vm8 = vweird.f32 %v582_v53 }
  0xfa   :  { %v637_v29 = vmul.f32 0.5, %v636_v50  ;;  %v487_v34 = vmul.f32 %v1407_v36, %v479_v30 }
  0xfb   :  { %v559_v41 = vmul.f32 %v551_v63, %v1410_v37  ;;  %991 = vmatpush.msra.mxu2 %v828_v32  ;;  %1011 = vmatpush.msra.mxu3 %v844_v35 }
  0xfc   :  { %v638_v33 = vsub.f32 1.5, %v637_v29 }
  0xfd   :  { %v567_v43 = vadd.f32 %v559_v41, %v487_v34  ;;  %992 = vmatpush.msra.mxu2 %v827_v39  ;;  %1012 = vmatpush.msra.mxu3 %v843_v45 }
  0xfe   :  { %v639_v40 = vmul.f32 %v1235_v59, %v638_v33 }
  0xff   :  { %v1237_v46 = vpop.eup %1236  ;;  %v575_v55 = vmul.f32 0.5, %v567_v43  ;;  %993 = vmatpush.msra.mxu2 %v826_v15  ;;  %1013 = vmatpush.msra.mxu3 %v842_v31 }
 0x100   :  { %v643_v0 = vsel %vm642_vm6, %v1235_v59, %v639_v40  ;;  %v645_v51 = vmul.f32 %v1237_v46, %v582_v53  ;;  %vm651_vm7 = vweird.f32 %v1237_v46 }
 0x101   :  { %v669_v2 = vmul.f32 %v643_v0, %v1783_v57  ;;  %v583_v52 = vadd.f32 1e-05, %v575_v55  ;;  %vm652_vm9 = vmor %vm650_vm8, %vm651_vm7 }
 0x102   :  { %v646_v12 = vmul.f32 %v1237_v46, %v645_v51 }
 0x103   :  { %v694_v19 = vmul.f32 %v678_v49, %v669_v2  ;;  %1238 = vrsqrt.f32 %v583_v52  ;;  %vm660_vm11 = vweird.f32 %v583_v52 }
 0x104   :  { %v647_v8 = vmul.f32 0.5, %v646_v12 }
 0x105   :  { %v719_v58 = vadd.f32 %v703_v56, %v694_v19 }
 0x106   :  { %v648_v24 = vsub.f32 1.5, %v647_v8 }
 0x107   :  { %v727_v60 = vmax.f32 %v719_v58, 0.0 }
 0x108   :  { %v649_v61 = vmul.f32 %v1237_v46, %v648_v24 }
 0x109   :  { %974 = vmatmul.f32.vlgmr.msrb.gmra.mxu1 %v727_v60  ;;  %v1239_v57 = vpop.eup %1238 }
 0x10a   :  { %v653_v6 = vsel %vm652_vm9, %v1237_v46, %v649_v61  ;;  %v655_v7 = vmul.f32 %v1239_v57, %v583_v52  ;;  %vm661_vm10 = vweird.f32 %v1239_v57 }
 0x10b   :  { %v670_v16 = vmul.f32 %v653_v6, %v1912_v14  ;;  %vm662_vm12 = vmor %vm660_vm11, %vm661_vm10  ;;  %v705_v14 = vperm.slane %v1951_v25, 7 }
 0x10c   :  { %v656_v10 = vmul.f32 %v1239_v57, %v655_v7 }
 0x10d   :  { %v695_v5 = vmul.f32 %v679_v62, %v670_v16  ;;  %v1077_v16 = vld [vmem:[%s2258_s5 + $0x18] sm:$0xff] }
 0x10e   :  { %v657_v11 = vmul.f32 0.5, %v656_v10  ;;  %1093 = vmatpush.msra.mxu0 %v1077_v16  ;;  %v1173_v16 = vld [vmem:[%s2260_s8 + $0x38] sm:$0xff] }
 0x10f   :  { %v720_v38 = vadd.f32 %v704_v47, %v695_v5  ;;  %v1076_v5 = vld [vmem:[%s2258_s5 + $0x10] sm:$0xff] }
 0x110   :  { %v658_v13 = vsub.f32 1.5, %v657_v11  ;;  %1094 = vmatpush.msra.mxu0 %v1076_v5  ;;  %v1172_v5 = vld [vmem:[%s2260_s8 + $0x30] sm:$0xff] }
 0x111   :  { %v728_v59 = vmax.f32 %v720_v38, 0.0  ;;  %v1075_v38 = vld [vmem:[%s2258_s5 + $0x8] sm:$0xff] }
 0x112   :  { %v659_v26 = vmul.f32 %v1239_v57, %v658_v13  ;;  %1095 = vmatpush.msra.mxu0 %v1075_v38  ;;  %v1171_v38 = vld [vmem:[%s2260_s8 + $0x28] sm:$0xff] }
 0x113   :  { %994 = vmatmul.f32.vlgmr.msra.gmra.mxu2 %v728_v59 }
 0x114   :  { %v663_v4 = vsel %vm662_vm12, %v1239_v57, %v659_v26  ;;  %v1074_v26 = vld [vmem:[%s2258_s5] sm:$0xff] }
 0x115   :  { %v671_v20 = vmul.f32 %v663_v4, %v2009_v9  ;;  %1096 = vmatpush.msra.mxu0 %v1074_v26  ;;  %v1170_v26 = vld [vmem:[%s2260_s8 + $0x20] sm:$0xff] }
 0x117   :  { %v696_v21 = vmul.f32 %v680_v18, %v671_v20 }
 0x119   :  { %v721_v54 = vadd.f32 %v705_v14, %v696_v21 }
 0x11b   :  { %v729_v1 = vmax.f32 %v721_v54, 0.0 }
 0x11d   :  { %1014 = vmatmul.f32.vlgmr.msra.gmra.mxu3 %v729_v1 }
 0x165   :  { %v875_v53 = vpop.f32.mrf.mxu0 }
 0x16c   :  { %v895_v17 = vpop.f32.mrf.mxu1 }
 0x16d   :  { %v896_v44 = vadd.f32 %v895_v17, %v875_v53 }
 0x16f   :  { %v955_v28 = vpop.f32.mrf.mxu0 }
 0x172   :  { %v935_v23 = vpop.f32.mrf.mxu3 }
 0x177   :  { %v915_v22 = vpop.f32.mrf.mxu2 }
 0x178   :  { %v916_v50 = vadd.f32 %v915_v22, %v896_v44 }
 0x17a   :  { %v936_v27 = vadd.f32 %v935_v23, %v916_v50 }
 0x17c   :  { %v956_v3 = vadd.f32 %v955_v28, %v936_v27 }
 0x186   :  { %v975_v29 = vpop.f32.mrf.mxu1 }
 0x187   :  { %v976_v42 = vadd.f32 %v975_v29, %v956_v3 }
 0x196   :  { %v995_v30 = vpop.f32.mrf.mxu2 }
 0x197   :  { %v996_v63 = vadd.f32 %v995_v30, %v976_v42 }
 0x1a0   :  { %v1015_v9 = vpop.f32.mrf.mxu3 }
 0x1a1   :  { %v1016_v48 = vadd.f32 %v1015_v9, %v996_v63 }
 0x1a3   :  { %v1018_v25 = vmul.f32 %v1407_v36, %v1016_v48  ;;  %v1028_v32 = vmul.f32 %v1016_v48, %v1410_v37 }
 0x1a5   :  { %v1020_v33 = vsel %vm1019_vm13, %v1018_v25, 0.0  ;;  %v1029_v34 = vsel %vm1019_vm13, %v1028_v32, 0.0 }
 0x1a6   :  { %v1021_v41 = vrot.slane %v1020_v33, 4  ;;  %v1030_v35 = vrot.slane %v1029_v34, 4 }
 0x1a8   :  { %v1022_v39 = vadd.f32 %v1021_v41, %v1020_v33  ;;  %v1031_v40 = vadd.f32 %v1030_v35, %v1029_v34 }
 0x1aa   :  { %v1023_v43 = vrot.slane %v1022_v39, 2  ;;  %v1032_v45 = vrot.slane %v1031_v40, 2 }
 0x1ac   :  { %v1024_v46 = vadd.f32 %v1023_v43, %v1022_v39  ;;  %v1033_v49 = vadd.f32 %v1032_v45, %v1031_v40  ;;  %v1181_v43 = vld [vmem:[%s2260_s8 + $0x78] sm:$0xff] }
 0x1ad   :  { %1182 = vmatpush.msra.mxu1 %v1181_v43 }
 0x1ae   :  { %v1025_v15 = vrot.slane %v1024_v46, 1  ;;  %v1034_v0 = vrot.slane %v1033_v49, 1 }
 0x1b0   :  { %v1026_v51 = vadd.f32 %v1025_v15, %v1024_v46  ;;  %v1035_v55 = vadd.f32 %v1034_v0, %v1033_v49  ;;  %v1180_v49 = vld [vmem:[%s2260_s8 + $0x70] sm:$0xff] }
 0x1b1   :  { %1183 = vmatpush.msra.mxu1 %v1180_v49 }
 0x1b2   :  { %v1027_v31 = vmul.f32 %v1407_v36, %v1026_v51  ;;  %v1036_v2 = vmul.f32 %v1035_v55, %v1410_v37  ;;  %v1179_v51 = vld [vmem:[%s2260_s8 + $0x68] sm:$0xff] }
 0x1b3   :  { %1184 = vmatpush.msra.mxu1 %v1179_v51 }
 0x1b4   :  { %v1037_v56 = vadd.f32 %v1036_v2, %v1027_v31  ;;  %v1178_v31 = vld [vmem:[%s2260_s8 + $0x60] sm:$0xff] }
 0x1b5   :  { %1185 = vmatpush.msra.mxu1 %v1178_v31 }
 0x1b6   :  { %v1038_v12 = vmul.f32 0.5, %v1037_v56  ;;  %v1177_v56 = vld [vmem:[%s2260_s8 + $0x58] sm:$0xff] }
 0x1b7   :  { %1186 = vmatpush.msra.mxu1 %v1177_v56 }
 0x1b8   :  { %v1039_v52 = vsub.f32 %v1016_v48, %v1038_v12 }
 0x1ba   :  { %v1040_v19 = vmul.f32 %v1039_v52, %v1039_v52 }
 0x1bc   :  { %v1041_v8 = vmul.f32 %v1407_v36, %v1040_v19  ;;  %v1050_v58 = vmul.f32 %v1040_v19, %v1410_v37 }
 0x1be   :  { %v1042_v24 = vsel %vm1019_vm13, %v1041_v8, 0.0  ;;  %v1051_v60 = vsel %vm1019_vm13, %v1050_v58, 0.0  ;;  %v1175_v8 = vld [vmem:[%s2260_s8 + $0x48] sm:$0xff] }
 0x1bf   :  { %v1043_v61 = vrot.slane %v1042_v24, 4  ;;  %v1052_v62 = vrot.slane %v1051_v60, 4 }
 0x1c1   :  { %v1044_v57 = vadd.f32 %v1043_v61, %v1042_v24  ;;  %v1053_v6 = vadd.f32 %v1052_v62, %v1051_v60  ;;  %v1174_v60 = vld [vmem:[%s2260_s8 + $0x40] sm:$0xff] }
 0x1c3   :  { %v1045_v7 = vrot.slane %v1044_v57, 2  ;;  %v1054_v47 = vrot.slane %v1053_v6, 2 }
 0x1c5   :  { %v1046_v10 = vadd.f32 %v1045_v7, %v1044_v57  ;;  %v1055_v11 = vadd.f32 %v1054_v47, %v1053_v6 }
 0x1c7   :  { %v1047_v13 = vrot.slane %v1046_v10, 1  ;;  %v1056_v59 = vrot.slane %v1055_v11, 1 }
 0x1c9   :  { %v1048_v18 = vadd.f32 %v1047_v13, %v1046_v10  ;;  %v1057_v4 = vadd.f32 %v1056_v59, %v1055_v11 }
 0x1cb   :  { %v1049_v20 = vmul.f32 %v1407_v36, %v1048_v18  ;;  %v1058_v14 = vmul.f32 %v1057_v4, %v1410_v37 }
 0x1cd   :  { %v1059_v21 = vadd.f32 %v1058_v14, %v1049_v20  ;;  %v1169_v20 = vld [vmem:[%s2260_s8 + $0x18] sm:$0xff] }
 0x1cf   :  { %v1060_v54 = vmul.f32 0.5, %v1059_v21 }
 0x1d1   :  { %v1061_v1 = vadd.f32 1e-05, %v1060_v54  ;;  %v1168_v54 = vld [vmem:[%s2260_s8 + $0x10] sm:$0xff] }
 0x1d3   :  { %1240 = vrsqrt.f32 %v1061_v1  ;;  %vm1068_vm15 = vweird.f32 %v1061_v1 }
 0x1d9   :  { %v1241_v17 = vpop.eup %1240 }
 0x1da   :  { %v1063_v53 = vmul.f32 %v1241_v17, %v1061_v1  ;;  %vm1069_vm14 = vweird.f32 %v1241_v17  ;;  %v1167_v1 = vld [vmem:[%s2260_s8 + $0x8] sm:$0xff] }
 0x1db   :  { %vm1070_vm1 = vmor %vm1068_vm15, %vm1069_vm14 }
 0x1dc   :  { %v1064_v22 = vmul.f32 %v1241_v17, %v1063_v53 }
 0x1de   :  { %v1065_v44 = vmul.f32 0.5, %v1064_v22  ;;  %v1166_v22 = vld [vmem:[%s2260_s8] sm:$0xff] }
 0x1e0   :  { %v1066_v50 = vsub.f32 1.5, %v1065_v44 }
 0x1e2   :  { %v1067_v23 = vmul.f32 %v1241_v17, %v1066_v50 }
 0x1e4   :  { %v1071_v27 = vsel %vm1070_vm1, %v1241_v17, %v1067_v23 }
 0x1e5   :  { %v1072_v28 = vmul.f32 %v1071_v27, %v1039_v52  ;;  %v1176_v52 = vld [vmem:[%s2260_s8 + $0x50] sm:$0xff] }
 0x1e6   :  { %1187 = vmatpush.msra.mxu1 %v1176_v52 }
 0x1e7   :  { %1073 = vst.msk [vmem:[%s2259_s9] sm:$0xf] %vm1019_vm13, %v1072_v28  ;;  %1220 = vmatmul.msk.f32.vlgmr.msra.gmra.mxu0 %vm73_vm0, %v1072_v28 }
 0x1e8   :  { %1188 = vmatpush.msra.mxu1 %v1175_v8 }
 0x1ea   :  { %1189 = vmatpush.msra.mxu1 %v1174_v60 }
 0x1ec   :  { %1190 = vmatpush.msra.mxu1 %v1173_v16 }
 0x1ee   :  { %1191 = vmatpush.msra.mxu1 %v1172_v5 }
 0x1f0   :  { %1192 = vmatpush.msra.mxu1 %v1171_v38 }
 0x1f2   :  { %1193 = vmatpush.msra.mxu1 %v1170_v26 }
 0x1f4   :  { %1194 = vmatpush.msra.mxu1 %v1169_v20 }
 0x1f6   :  { %1195 = vmatpush.msra.mxu1 %v1168_v54 }
 0x1f8   :  { %1196 = vmatpush.msra.mxu1 %v1167_v1 }
 0x1fa   :  { %1197 = vmatpush.msra.mxu1 %v1166_v22 }
 0x264   :  { %v1098_v3 = vpop.f32.mrf.mxu0 }
 0x265   :  { %v1103_v29 = vmul.f32 %v1407_v36, %v1098_v3  ;;  %v1112_v42 = vmul.f32 %v1098_v3, %v1410_v37 }
 0x267   :  { %v1104_v30 = vsel %vm247_vm2, %v1103_v29, 0.0  ;;  %v1113_v63 = vsel %vm247_vm2, %v1112_v42, 0.0 }
 0x268   :  { %v1105_v9 = vrot.slane %v1104_v30, 4  ;;  %v1114_v48 = vrot.slane %v1113_v63, 4 }
 0x26a   :  { %v1106_v25 = vadd.f32 %v1105_v9, %v1104_v30  ;;  %v1115_v32 = vadd.f32 %v1114_v48, %v1113_v63  ;;  %v1223_v9 = vld [vmem:[%s2257_s7] ss:$0 sm:$0xff] }
 0x26c   :  { %v1107_v33 = vrot.slane %v1106_v25, 2  ;;  %v1116_v34 = vrot.slane %v1115_v32, 2 }
 0x26e   :  { %v1108_v41 = vadd.f32 %v1107_v33, %v1106_v25  ;;  %v1117_v35 = vadd.f32 %v1116_v34, %v1115_v32 }
 0x270   :  { %v1109_v39 = vrot.slane %v1108_v41, 1  ;;  %v1118_v40 = vrot.slane %v1117_v35, 1 }
 0x272   :  { %v1110_v45 = vadd.f32 %v1109_v39, %v1108_v41  ;;  %v1119_v46 = vadd.f32 %v1118_v40, %v1117_v35 }
 0x274   :  { %v1111_v15 = vmul.f32 %v1407_v36, %v1110_v45  ;;  %v1120_v0 = vmul.f32 %v1119_v46, %v1410_v37 }
 0x276   :  { %v1121_v55 = vadd.f32 %v1120_v0, %v1111_v15 }
 0x278   :  { %v1122_v2 = vmul.f32 0.5, %v1121_v55 }
 0x27a   :  { %v1123_v12 = vsub.f32 %v1098_v3, %v1122_v2 }
 0x27c   :  { %v1124_v19 = vmul.f32 %v1123_v12, %v1123_v12 }
 0x27e   :  { %v1125_v58 = vmul.f32 %v1407_v36, %v1124_v19  ;;  %v1134_v24 = vmul.f32 %v1124_v19, %v1410_v37 }
 0x280   :  { %v1126_v61 = vsel %vm247_vm2, %v1125_v58, 0.0  ;;  %v1135_v62 = vsel %vm247_vm2, %v1134_v24, 0.0 }
 0x281   :  { %v1127_v57 = vrot.slane %v1126_v61, 4  ;;  %v1136_v6 = vrot.slane %v1135_v62, 4 }
 0x283   :  { %v1128_v7 = vadd.f32 %v1127_v57, %v1126_v61  ;;  %v1137_v47 = vadd.f32 %v1136_v6, %v1135_v62 }
 0x285   :  { %v1129_v10 = vrot.slane %v1128_v7, 2  ;;  %v1138_v11 = vrot.slane %v1137_v47, 2 }
 0x287   :  { %v1130_v13 = vadd.f32 %v1129_v10, %v1128_v7  ;;  %v1139_v59 = vadd.f32 %v1138_v11, %v1137_v47 }
 0x289   :  { %v1131_v18 = vrot.slane %v1130_v13, 1  ;;  %v1140_v4 = vrot.slane %v1139_v59, 1 }
 0x28b   :  { %v1132_v14 = vadd.f32 %v1131_v18, %v1130_v13  ;;  %v1141_v21 = vadd.f32 %v1140_v4, %v1139_v59 }
 0x28d   :  { %v1133_v17 = vmul.f32 %v1407_v36, %v1132_v14  ;;  %v1142_v53 = vmul.f32 %v1141_v21, %v1410_v37  ;;  %v1222_v36 = vld [vmem:[%s2256_s6] ss:$0 sm:$0xff] }
 0x28f   :  { %v1143_v44 = vadd.f32 %v1142_v53, %v1133_v17 }
 0x291   :  { %v1144_v50 = vmul.f32 0.5, %v1143_v44 }
 0x293   :  { %v1145_v23 = vadd.f32 1e-05, %v1144_v50 }
 0x295   :  { %1242 = vrsqrt.f32 %v1145_v23  ;;  %vm1152_vm2 = vweird.f32 %v1145_v23 }
 0x29b   :  { %v1243_v27 = vpop.eup %1242 }
 0x29c   :  { %v1147_v28 = vmul.f32 %v1243_v27, %v1145_v23  ;;  %vm1153_vm0 = vweird.f32 %v1243_v27 }
 0x29d   :  { %vm1154_vm3 = vmor %vm1152_vm2, %vm1153_vm0 }
 0x29e   :  { %v1148_v3 = vmul.f32 %v1243_v27, %v1147_v28 }
 0x2a0   :  { %v1149_v29 = vmul.f32 0.5, %v1148_v3 }
 0x2a2   :  { %v1150_v42 = vsub.f32 1.5, %v1149_v29 }
 0x2a4   :  { %v1151_v30 = vmul.f32 %v1243_v27, %v1150_v42 }
 0x2a6   :  { %v1155_v37 = vsel %vm1154_vm3, %v1243_v27, %v1151_v30 }
 0x2a7   :  { %v1156_v63 = vmul.f32 %v1155_v37, %v1123_v12 }
 0x2a9   :  { %v1160_v48 = vmul.f32 %v1222_v36, %v1156_v63 }
 0x2ab   :  { %v1164_v25 = vadd.f32 %v1223_v9, %v1160_v48 }
 0x2ad   :  { %v1165_v32 = vmax.f32 %v1164_v25, 0.0 }
 0x2af   :  { %1198 = vmatmul.f32.vlgmr.msra.gmra.mxu1 %v1165_v32 }
 0x32c   :  { %v1199_v33 = vpop.f32.mrf.mxu1 }
 0x32d   :  { %1202 = vst.msk [vmem:[%s2261_s10] sm:$0xf] %vm1019_vm13, %v1199_v33 }

</bundles_post_ra>
